<compile_context>
chip_gen: v6e
topology: v6e:2x2x1
jax: 0.10.0
libtpu: 0.0.40
codegen_flags: <defaults>
</compile_context>

<pallas_src>
import jax
import jax.numpy as jnp
from jax import lax
from jax.experimental import pallas as pl
from jax.experimental.pallas import tpu as pltpu

C_IN, C_MID, C_OUT = 384, 128, 32
C_OUT_PAD = 128          # lane-dense output channel padding
EPS = 1e-5


def _round_up(x, m):
    return (x + m - 1) // m * m


def _vmem_limit(nbytes):
    # honest per-stage estimate (double-buffered blocks + scratch) with
    # headroom for temporaries, capped at the 32 MiB scoped default so we
    # never crowd v7x's 64 MiB physical VMEM.
    return int(min(nbytes * 2 + (8 << 20), 32 << 20))


# ------------------------------ kernels ------------------------------------ #
def _make_stage1_kernel(M, TM):
    """BN1 + ReLU + 1x1 conv as a (TM, C_IN) x (C_IN, C_MID) matmul.

    Also emits per-block partial sum / sum-of-squares of the y1 tile so the
    stage-2 BatchNorm statistics need no extra HBM pass over y1.
    """
    ragged = (M % TM) != 0

    def kernel(x_ref, a_ref, b_ref, w_ref, y_ref, s_ref):
        # x: (TM, C_IN) f32   a/b: (1, C_IN) f32   w: (C_IN, C_MID) bf16
        # y: (TM, C_MID) f32  s: (1, 2, C_MID) f32 partial stats
        act = jnp.maximum(x_ref[...] * a_ref[...] + b_ref[...], 0.0)
        y = jnp.dot(act.astype(jnp.bfloat16), w_ref[...],
                    preferred_element_type=jnp.float32)
        y_ref[...] = y
        if ragged:
            # Only needed when the last block is ragged: zero the OOB rows'
            # contribution to the statistics.  (Their y rows are never written
            # back to HBM by Pallas, and LHS rows are independent in the MXU,
            # so the output itself needs no masking.)  Full-divisor configs
            # skip this path entirely at trace time.
            row = (lax.broadcasted_iota(jnp.int32, (TM, 1), 0)
                   + pl.program_id(0) * TM)
            y = jnp.where(row < M, y, 0.0)
        s = jnp.sum(y, axis=0, keepdims=True)          # (1, C_MID)
        ss = jnp.sum(y * y, axis=0, keepdims=True)     # (1, C_MID)
        s_ref[0] = jnp.concatenate([s, ss], axis=0)    # (2, C_MID)

    return kernel


def _make_stage2_kernel(H, W, WP, TH, R):
    """BN2 + ReLU + 3x3 conv (pad 1), row-tiled.

    At r == 0 the whole image's BN2+ReLU'd activation is written (with a zero
    halo) into a persistent VMEM scratch laid out as flattened padded rows of
    width WP.  Each row block then computes TH output rows as 9 accumulating
    (TH*WP, 128) x (128, 128) MXU dots on flat slices of that scratch; only
    the dw = 1, 2 taps need an unaligned sublane offset.
    """
    pad_rows = (R * TH + 3) * WP   # 1 top halo row, >=2 bottom (slice slack)

    def kernel(y_ref, a_ref, b_ref, w_ref, o_ref, pad_ref):
        # y: (1, H, W, C_MID) f32 (resident across the row-block axis)
        # a/b: (1, C_MID) f32     w: (9*C_MID, C_OUT_PAD) bf16
        # o: (1, TH*WP, C_OUT_PAD) f32   pad scratch: (pad_rows, C_MID) f32
        r = pl.program_id(1)

        @pl.when(r == 0)
        def _fill():
            pad_ref[...] = jnp.zeros_like(pad_ref)                    # halo
            act = jnp.maximum(y_ref[0] * a_ref[...] + b_ref[...], 0.0)  # (H,W,C)
            zl = jnp.zeros((H, 1, C_MID), jnp.float32)
            zr = jnp.zeros((H, WP - W - 1, C_MID), jnp.float32)
            padw = jnp.concatenate([zl, act, zr], axis=1)             # (H,WP,C)
            # single sublane-aligned interior store (offset WP, WP % 8 == 0)
            pad_ref[pl.ds(WP, H * WP), :] = padw.reshape(H * WP, C_MID)

        base = pl.multiple_of(r * (TH * WP), 8)
        acc = jnp.zeros((TH * WP, C_OUT_PAD), jnp.float32)
        for t in range(9):
            dh, dw = t // 3, t % 3
            tap = pad_ref[pl.ds(base + dh * WP + dw, TH * WP), :]
            acc = acc + jnp.dot(tap.astype(jnp.bfloat16),
                                w_ref[pl.ds(t * C_MID, C_MID), :],
                                preferred_element_type=jnp.float32)
        o_ref[0] = acc                      # lane-dense (TH*WP, 128) store

    return kernel


# ------------------------------ wrapper ------------------------------------ #
def forward(x_nchw, params):
    g1, be1, w1, g2, be2, w2 = params   # w1: (C_IN, C_MID); w2: (3,3,C_MID,C_OUT) HWIO
    # TODO(synk): if the surrounding network runs NHWC on TPU, take/return NHWC
    # here and drop this transpose + the final crop/transpose HBM passes.
    x = jnp.transpose(x_nchw, (0, 2, 3, 1)).astype(jnp.float32)   # NHWC
    N, H, W, _ = x.shape
    M = N * H * W
    x_flat = x.reshape(M, C_IN)

    # BN1 batch stats (biased, train mode): single fused pass in f32.
    m1 = jnp.mean(x_flat, axis=0)
    v1 = jnp.maximum(jnp.mean(x_flat * x_flat, axis=0) - m1 * m1, 0.0)
    a1 = g1 * lax.rsqrt(v1 + EPS)
    b1 = be1 - m1 * a1

    # ---------------- stage 1: BN1 + ReLU + 1x1 conv (+ y1 partial stats) --- #
    TM = min(2048, max(8, (M // 8) * 8))
    grid1 = pl.cdiv(M, TM)
    vmem1 = _vmem_limit(2 * (TM * C_IN * 4 + TM * C_MID * 4)
                        + 2 * C_IN * C_MID * 2)
    y1_flat, part = pl.pallas_call(
        _make_stage1_kernel(M, TM),
        out_shape=(jax.ShapeDtypeStruct((M, C_MID), jnp.float32),
                   jax.ShapeDtypeStruct((grid1, 2, C_MID), jnp.float32)),
        grid_spec=pltpu.PrefetchScalarGridSpec(
            num_scalar_prefetch=0,
            grid=(grid1,),
            in_specs=[pl.BlockSpec((TM, C_IN), lambda i: (i, 0)),
                      pl.BlockSpec((1, C_IN), lambda i: (0, 0)),
                      pl.BlockSpec((1, C_IN), lambda i: (0, 0)),
                      pl.BlockSpec((C_IN, C_MID), lambda i: (0, 0))],
            out_specs=[pl.BlockSpec((TM, C_MID), lambda i: (i, 0)),
                       pl.BlockSpec((1, 2, C_MID), lambda i: (i, 0, 0))]),
        compiler_params=pltpu.CompilerParams(
            dimension_semantics=("parallel",),
            vmem_limit_bytes=vmem1),
    )(x_flat, a1.reshape(1, C_IN), b1.reshape(1, C_IN),
      w1.astype(jnp.bfloat16))

    # BN2 stats from the fused partial sums (no extra HBM read of y1).
    sums = jnp.sum(part, axis=0)                       # (2, C_MID)
    m2 = sums[0] / M
    v2 = jnp.maximum(sums[1] / M - m2 * m2, 0.0)
    a2 = g2 * lax.rsqrt(v2 + EPS)
    b2 = be2 - m2 * a2

    # ---------------- stage 2: BN2 + ReLU + 3x3 conv ------------------------ #
    y1 = y1_flat.reshape(N, H, W, C_MID)
    WP = _round_up(W + 2, 8)                 # padded, sublane-aligned width
    TH = min(8, H)                           # output rows per grid step
    R = pl.cdiv(H, TH)

    # weight rows ordered (kh, kw, cin); output channels zero-padded to 128.
    w2r = w2.reshape(9 * C_MID, C_OUT)
    w2r = jnp.pad(w2r, ((0, 0), (0, C_OUT_PAD - C_OUT))).astype(jnp.bfloat16)

    pad_rows = (R * TH + 3) * WP
    vmem2 = _vmem_limit(2 * (H * W * C_MID * 4 + TH * WP * C_OUT_PAD * 4)
                        + pad_rows * C_MID * 4
                        + 2 * 9 * C_MID * C_OUT_PAD * 2)
    out2 = pl.pallas_call(
        _make_stage2_kernel(H, W, WP, TH, R),
        out_shape=jax.ShapeDtypeStruct((N, R * TH * WP, C_OUT_PAD), jnp.float32),
        grid_spec=pltpu.PrefetchScalarGridSpec(
            num_scalar_prefetch=0,
            grid=(N, R),
            in_specs=[pl.BlockSpec((1, H, W, C_MID), lambda n, r: (n, 0, 0, 0)),
                      pl.BlockSpec((1, C_MID), lambda n, r: (0, 0)),
                      pl.BlockSpec((1, C_MID), lambda n, r: (0, 0)),
                      pl.BlockSpec((9 * C_MID, C_OUT_PAD), lambda n, r: (0, 0))],
            out_specs=pl.BlockSpec((1, TH * WP, C_OUT_PAD),
                                   lambda n, r: (n, r, 0)),
            scratch_shapes=[pltpu.VMEM((pad_rows, C_MID), jnp.float32)]),
        compiler_params=pltpu.CompilerParams(
            dimension_semantics=("parallel", "arbitrary"),
            vmem_limit_bytes=vmem2),
    )(y1, a2.reshape(1, C_MID), b2.reshape(1, C_MID), w2r)

    # crop padded width / ragged rows / padded channels; back to NCHW.
    y2 = out2.reshape(N, R * TH, WP, C_OUT_PAD)[:, :H, :W, :C_OUT]
    return jnp.transpose(y2, (0, 3, 1, 2))
    # TODO(synk): train-mode running_mean/running_var buffer updates of the
    # two BatchNorms are not emulated (they do not affect this forward output).


# --------------------------- pure-JAX reference ----------------------------- #
def reference(x_nchw, params):
    g1, be1, w1, g2, be2, w2 = params
    x = jnp.transpose(x_nchw, (0, 2, 3, 1)).astype(jnp.float32)

    def stats(t):
        m = jnp.mean(t, axis=(0, 1, 2))
        v = jnp.mean(jnp.square(t - m), axis=(0, 1, 2))   # biased
        return m, v

    m1, v1 = stats(x)
    h = jnp.maximum((x - m1) * lax.rsqrt(v1 + EPS) * g1 + be1, 0.0)
    y1 = jnp.einsum('nhwc,cd->nhwd', h, w1)
    m2, v2 = stats(y1)
    h2 = jnp.maximum((y1 - m2) * lax.rsqrt(v2 + EPS) * g2 + be2, 0.0)
    y2 = lax.conv_general_dilated(
        h2, w2, window_strides=(1, 1), padding=((1, 1), (1, 1)),
        dimension_numbers=('NHWC', 'HWIO', 'NHWC'))
    return jnp.transpose(y2, (0, 3, 1, 2))


# --------------------------------- main ------------------------------------- #
if __name__ == "__main__":
    key = jax.random.PRNGKey(0)
    k_x, k_g1, k_b1, k_w1, k_g2, k_b2, k_w2 = jax.random.split(key, 7)

    # shapes consistent with the module: C_in=384, 28x28 spatial (batch=2)
    N, H, W = 2, 28, 28
    x = jax.random.normal(k_x, (N, C_IN, H, W), dtype=jnp.float32)

    gamma1 = 1.0 + 0.1 * jax.random.normal(k_g1, (C_IN,), jnp.float32)
    beta1 = 0.1 * jax.random.normal(k_b1, (C_IN,), jnp.float32)
    w1 = jax.random.normal(k_w1, (C_IN, C_MID), jnp.float32) / (C_IN ** 0.5)
    gamma2 = 1.0 + 0.1 * jax.random.normal(k_g2, (C_MID,), jnp.float32)
    beta2 = 0.1 * jax.random.normal(k_b2, (C_MID,), jnp.float32)
    w2 = jax.random.normal(k_w2, (3, 3, C_MID, C_OUT), jnp.float32) / ((9 * C_MID) ** 0.5)

    params = (gamma1, beta1, w1, gamma2, beta2, w2)

    out = jax.block_until_ready(jax.jit(forward)(x, params))
    ref = jax.block_until_ready(reference(x, params))

    assert out.shape == (N, C_OUT, H, W), out.shape
    # bf16 MXU operands (per perf guidance) => tolerance reflects bf16 matmul
    # precision; BN math and accumulation stay f32.
    err = jnp.abs(out - ref)
    max_err = float(jnp.max(err))
    mean_err = float(jnp.mean(err))
    assert jnp.allclose(out, ref, atol=4e-2, rtol=4e-2), (max_err, mean_err)
    assert mean_err < 1e-2, (max_err, mean_err)
    print("KERNEL_OK")
</pallas_src>

<mosaic_0001>
module attributes {stable_mosaic.version = 11 : i64} {
  func.func @kernel(%arg0: i32, %arg1: memref<1568x384xf32, #tpu.memory_space<vmem>>, %arg2: memref<1x384xf32, #tpu.memory_space<vmem>>, %arg3: memref<1x384xf32, #tpu.memory_space<vmem>>, %arg4: memref<384x128xbf16, #tpu.memory_space<vmem>>, %arg5: memref<1568x128xf32, #tpu.memory_space<vmem>>, %arg6: memref<1x2x128xf32, #tpu.memory_space<vmem>>) attributes {dimension_semantics = [#tpu.dimension_semantics<parallel>], iteration_bounds = array<i64: 1>, scalar_prefetch = 0 : i64, scratch_operands = 0 : i64, tpu.core_type = #tpu.core_type<tc>, window_params = [{transform_indices = @transform_0, window_bounds = array<i64: 1568, 384>}, {pipeline_mode = #tpu.pipeline_mode<synchronous>, transform_indices = @transform_1, window_bounds = array<i64: 1, 384>}, {pipeline_mode = #tpu.pipeline_mode<synchronous>, transform_indices = @transform_2, window_bounds = array<i64: 1, 384>}, {pipeline_mode = #tpu.pipeline_mode<synchronous>, transform_indices = @transform_3, window_bounds = array<i64: 384, 128>}, {transform_indices = @transform_4, window_bounds = array<i64: 1568, 128>}, {transform_indices = @transform_5, window_bounds = array<i64: 1, 2, 128>}]} {
    %c0 = arith.constant 0 : index
    %c0_0 = arith.constant 0 : index
    %0 = vector.load %arg1[%c0, %c0_0] : memref<1568x384xf32, #tpu.memory_space<vmem>>, vector<1568x384xf32>
    %c0_1 = arith.constant 0 : index
    %c0_2 = arith.constant 0 : index
    %1 = vector.load %arg2[%c0_1, %c0_2] : memref<1x384xf32, #tpu.memory_space<vmem>>, vector<1x384xf32>
    %2 = vector.broadcast %1 : vector<1x384xf32> to vector<1568x384xf32>
    %3 = arith.mulf %0, %2 : vector<1568x384xf32>
    %c0_3 = arith.constant 0 : index
    %c0_4 = arith.constant 0 : index
    %4 = vector.load %arg3[%c0_3, %c0_4] : memref<1x384xf32, #tpu.memory_space<vmem>>, vector<1x384xf32>
    %5 = vector.broadcast %4 : vector<1x384xf32> to vector<1568x384xf32>
    %6 = arith.addf %3, %5 : vector<1568x384xf32>
    %cst = arith.constant 0.000000e+00 : f32
    %7 = vector.broadcast %cst : f32 to vector<1568x384xf32>
    %8 = arith.maximumf %6, %7 : vector<1568x384xf32>
    %9 = arith.truncf %8 : vector<1568x384xf32> to vector<1568x384xbf16>
    %c0_5 = arith.constant 0 : index
    %c0_6 = arith.constant 0 : index
    %10 = vector.load %arg4[%c0_5, %c0_6] : memref<384x128xbf16, #tpu.memory_space<vmem>>, vector<384x128xbf16>
    %cst_7 = arith.constant dense<0.000000e+00> : vector<1568x128xf32>
    %11 = tpu.matmul %9, %10, %cst_7 {dimension_numbers = #tpu.dot_dimension_numbers<[1], [0], [0], [1], [0, 0, 1, 1], [], []>} : vector<1568x384xbf16>, vector<384x128xbf16>, vector<1568x128xf32> -> vector<1568x128xf32>
    %c0_8 = arith.constant 0 : index
    %c0_9 = arith.constant 0 : index
    %12 = vector.load %arg5[%c0_8, %c0_9] : memref<1568x128xf32, #tpu.memory_space<vmem>>, vector<1568x128xf32>
    tpu.vector_store %arg5[%c0_8, %c0_9], %11 {strides = array<i32>} : memref<1568x128xf32, #tpu.memory_space<vmem>>, vector<1568x128xf32>,
    %cst_10 = arith.constant dense<0.000000e+00> : vector<128xf32>
    %13 = vector.multi_reduction <add>, %11, %cst_10 [0] : vector<1568x128xf32> to vector<128xf32>
    %14 = vector.shape_cast %13 : vector<128xf32> to vector<1x128xf32>
    %15 = arith.mulf %11, %11 : vector<1568x128xf32>
    %cst_11 = arith.constant dense<0.000000e+00> : vector<128xf32>
    %16 = vector.multi_reduction <add>, %15, %cst_11 [0] : vector<1568x128xf32> to vector<128xf32>
    %17 = vector.shape_cast %16 : vector<128xf32> to vector<1x128xf32>
    %18 = tpu.concatenate %14, %17 in 0 : vector<1x128xf32>, vector<1x128xf32> -> vector<2x128xf32>
    %c0_12 = arith.constant 0 : index
    %c0_13 = arith.constant 0 : index
    %c0_14 = arith.constant 0 : index
    %19 = vector.load %arg6[%c0_12, %c0_13, %c0_14] : memref<1x2x128xf32, #tpu.memory_space<vmem>>, vector<1x2x128xf32>
    %20 = vector.shape_cast %19 : vector<1x2x128xf32> to vector<2x128xf32>
    %21 = vector.shape_cast %18 : vector<2x128xf32> to vector<1x2x128xf32>
    tpu.vector_store %arg6[%c0_12, %c0_13, %c0_14], %21 {strides = array<i32>} : memref<1x2x128xf32, #tpu.memory_space<vmem>>, vector<1x2x128xf32>,
    return
  }
  func.func @transform_0(%arg0: i32) -> (i32, i32) {
    %c0_i32 = arith.constant 0 : i32
    %c0_i32_0 = arith.constant 0 : i32
    return %arg0, %c0_i32 : i32, i32
  }
  func.func @transform_1(%arg0: i32) -> (i32, i32) {
    %c0_i32 = arith.constant 0 : i32
    %c0_i32_0 = arith.constant 0 : i32
    %c0_i32_1 = arith.constant 0 : i32
    return %c0_i32, %c0_i32_0 : i32, i32
  }
  func.func @transform_2(%arg0: i32) -> (i32, i32) {
    %c0_i32 = arith.constant 0 : i32
    %c0_i32_0 = arith.constant 0 : i32
    %c0_i32_1 = arith.constant 0 : i32
    return %c0_i32, %c0_i32_0 : i32, i32
  }
  func.func @transform_3(%arg0: i32) -> (i32, i32) {
    %c0_i32 = arith.constant 0 : i32
    %c0_i32_0 = arith.constant 0 : i32
    %c0_i32_1 = arith.constant 0 : i32
    return %c0_i32, %c0_i32_0 : i32, i32
  }
  func.func @transform_4(%arg0: i32) -> (i32, i32) {
    %c0_i32 = arith.constant 0 : i32
    %c0_i32_0 = arith.constant 0 : i32
    return %arg0, %c0_i32 : i32, i32
  }
  func.func @transform_5(%arg0: i32) -> (i32, i32, i32) {
    %c0_i32 = arith.constant 0 : i32
    %c0_i32_0 = arith.constant 0 : i32
    %c0_i32_1 = arith.constant 0 : i32
    return %arg0, %c0_i32, %c0_i32_0 : i32, i32, i32
  }
}

module attributes {stable_mosaic.version = 11 : i64} {
  func.func @kernel(%arg0: i32, %arg1: i32, %arg2: memref<1x28x28x128xf32, #tpu.memory_space<vmem>>, %arg3: memref<1x128xf32, #tpu.memory_space<vmem>>, %arg4: memref<1x128xf32, #tpu.memory_space<vmem>>, %arg5: memref<1152x128xbf16, #tpu.memory_space<vmem>>, %arg6: memref<1x256x128xf32, #tpu.memory_space<vmem>>, %arg7: memref<1120x128xf32, #tpu.memory_space<vmem>>) attributes {dimension_semantics = [#tpu.dimension_semantics<parallel>, #tpu.dimension_semantics<arbitrary>], iteration_bounds = array<i64: 2, 4>, scalar_prefetch = 0 : i64, scratch_operands = 1 : i64, tpu.core_type = #tpu.core_type<tc>, window_params = [{transform_indices = @transform_0, window_bounds = array<i64: 1, 28, 28, 128>}, {pipeline_mode = #tpu.pipeline_mode<synchronous>, transform_indices = @transform_1, window_bounds = array<i64: 1, 128>}, {pipeline_mode = #tpu.pipeline_mode<synchronous>, transform_indices = @transform_2, window_bounds = array<i64: 1, 128>}, {pipeline_mode = #tpu.pipeline_mode<synchronous>, transform_indices = @transform_3, window_bounds = array<i64: 1152, 128>}, {transform_indices = @transform_4, window_bounds = array<i64: 1, 256, 128>}]} {
    %c0_i32 = arith.constant 0 : i32
    %0 = arith.cmpi eq, %arg1, %c0_i32 : i32
    %1 = arith.extui %0 : i1 to i32
    %c0_i32_0 = arith.constant 0 : i32
    %2 = arith.cmpi ne, %1, %c0_i32_0 : i32
    scf.if %2 {
      %cst_45 = arith.constant 0.000000e+00 : f32
      %81 = vector.broadcast %cst_45 : f32 to vector<1120x128xf32>
      %c0_46 = arith.constant 0 : index
      %c0_47 = arith.constant 0 : index
      %82 = vector.load %arg7[%c0_46, %c0_47] : memref<1120x128xf32, #tpu.memory_space<vmem>>, vector<1120x128xf32>
      tpu.vector_store %arg7[%c0_46, %c0_47], %81 {strides = array<i32>} : memref<1120x128xf32, #tpu.memory_space<vmem>>, vector<1120x128xf32>,
      %c0_48 = arith.constant 0 : index
      %c0_49 = arith.constant 0 : index
      %c0_50 = arith.constant 0 : index
      %c0_51 = arith.constant 0 : index
      %83 = vector.load %arg2[%c0_48, %c0_49, %c0_50, %c0_51] : memref<1x28x28x128xf32, #tpu.memory_space<vmem>>, vector<1x28x28x128xf32>
      %84 = vector.shape_cast %83 : vector<1x28x28x128xf32> to vector<28x28x128xf32>
      %c0_52 = arith.constant 0 : index
      %c0_53 = arith.constant 0 : index
      %85 = vector.load %arg3[%c0_52, %c0_53] : memref<1x128xf32, #tpu.memory_space<vmem>>, vector<1x128xf32>
      %86 = vector.shape_cast %85 : vector<1x128xf32> to vector<1x1x128xf32>
      %87 = vector.broadcast %86 : vector<1x1x128xf32> to vector<28x28x128xf32>
      %88 = arith.mulf %84, %87 : vector<28x28x128xf32>
      %c0_54 = arith.constant 0 : index
      %c0_55 = arith.constant 0 : index
      %89 = vector.load %arg4[%c0_54, %c0_55] : memref<1x128xf32, #tpu.memory_space<vmem>>, vector<1x128xf32>
      %90 = vector.shape_cast %89 : vector<1x128xf32> to vector<1x1x128xf32>
      %91 = vector.broadcast %90 : vector<1x1x128xf32> to vector<28x28x128xf32>
      %92 = arith.addf %88, %91 : vector<28x28x128xf32>
      %cst_56 = arith.constant 0.000000e+00 : f32
      %93 = vector.broadcast %cst_56 : f32 to vector<28x28x128xf32>
      %94 = arith.maximumf %92, %93 : vector<28x28x128xf32>
      %cst_57 = arith.constant 0.000000e+00 : f32
      %95 = vector.broadcast %cst_57 : f32 to vector<28x1x128xf32>
      %cst_58 = arith.constant 0.000000e+00 : f32
      %96 = vector.broadcast %cst_58 : f32 to vector<28x3x128xf32>
      %97 = tpu.concatenate %95, %94, %96 in 1 : vector<28x1x128xf32>, vector<28x28x128xf32>, vector<28x3x128xf32> -> vector<28x32x128xf32>
      %98 = vector.shape_cast %97 : vector<28x32x128xf32> to vector<896x128xf32>
      %c32 = arith.constant 32 : index
      %c0_59 = arith.constant 0 : index
      %99 = vector.load %arg7[%c32, %c0_59] : memref<1120x128xf32, #tpu.memory_space<vmem>>, vector<896x128xf32>
      tpu.vector_store %arg7[%c32, %c0_59], %98 {strides = array<i32>} : memref<1120x128xf32, #tpu.memory_space<vmem>>, vector<896x128xf32>,
    } else {
    }
    %c256_i32 = arith.constant 256 : i32
    %3 = arith.muli %arg1, %c256_i32 : i32
    %4 = tpu.assume_multiple %3, 8 : i32
    %cst = arith.constant 0.000000e+00 : f32
    %5 = vector.broadcast %cst : f32 to vector<256x128xf32>
    %c0_i32_1 = arith.constant 0 : i32
    %6 = arith.addi %4, %c0_i32_1 : i32
    %c0_i32_2 = arith.constant 0 : i32
    %7 = arith.addi %6, %c0_i32_2 : i32
    %8 = arith.index_cast %7 : i32 to index
    %c0 = arith.constant 0 : index
    %9 = vector.load %arg7[%8, %c0] : memref<1120x128xf32, #tpu.memory_space<vmem>>, vector<256x128xf32>
    %10 = arith.truncf %9 : vector<256x128xf32> to vector<256x128xbf16>
    %c0_3 = arith.constant 0 : index
    %c0_4 = arith.constant 0 : index
    %11 = vector.load %arg5[%c0_3, %c0_4] : memref<1152x128xbf16, #tpu.memory_space<vmem>>, vector<128x128xbf16>
    %cst_5 = arith.constant dense<0.000000e+00> : vector<256x128xf32>
    %12 = tpu.matmul %10, %11, %cst_5 {dimension_numbers = #tpu.dot_dimension_numbers<[1], [0], [0], [1], [0, 0, 1, 1], [], []>} : vector<256x128xbf16>, vector<128x128xbf16>, vector<256x128xf32> -> vector<256x128xf32>
    %13 = arith.addf %5, %12 : vector<256x128xf32>
    %c0_i32_6 = arith.constant 0 : i32
    %14 = arith.addi %4, %c0_i32_6 : i32
    %c1_i32 = arith.constant 1 : i32
    %15 = arith.addi %14, %c1_i32 : i32
    %16 = arith.index_cast %15 : i32 to index
    %c0_7 = arith.constant 0 : index
    %17 = vector.load %arg7[%16, %c0_7] : memref<1120x128xf32, #tpu.memory_space<vmem>>, vector<256x128xf32>
    %18 = arith.truncf %17 : vector<256x128xf32> to vector<256x128xbf16>
    %c128 = arith.constant 128 : index
    %c0_8 = arith.constant 0 : index
    %19 = vector.load %arg5[%c128, %c0_8] : memref<1152x128xbf16, #tpu.memory_space<vmem>>, vector<128x128xbf16>
    %cst_9 = arith.constant dense<0.000000e+00> : vector<256x128xf32>
    %20 = tpu.matmul %18, %19, %cst_9 {dimension_numbers = #tpu.dot_dimension_numbers<[1], [0], [0], [1], [0, 0, 1, 1], [], []>} : vector<256x128xbf16>, vector<128x128xbf16>, vector<256x128xf32> -> vector<256x128xf32>
    %21 = arith.addf %13, %20 : vector<256x128xf32>
    %c0_i32_10 = arith.constant 0 : i32
    %22 = arith.addi %4, %c0_i32_10 : i32
    %c2_i32 = arith.constant 2 : i32
    %23 = arith.addi %22, %c2_i32 : i32
    %24 = arith.index_cast %23 : i32 to index
    %c0_11 = arith.constant 0 : index
    %25 = vector.load %arg7[%24, %c0_11] : memref<1120x128xf32, #tpu.memory_space<vmem>>, vector<256x128xf32>
    %26 = arith.truncf %25 : vector<256x128xf32> to vector<256x128xbf16>
    %c256 = arith.constant 256 : index
    %c0_12 = arith.constant 0 : index
    %27 = vector.load %arg5[%c256, %c0_12] : memref<1152x128xbf16, #tpu.memory_space<vmem>>, vector<128x128xbf16>
    %cst_13 = arith.constant dense<0.000000e+00> : vector<256x128xf32>
    %28 = tpu.matmul %26, %27, %cst_13 {dimension_numbers = #tpu.dot_dimension_numbers<[1], [0], [0], [1], [0, 0, 1, 1], [], []>} : vector<256x128xbf16>, vector<128x128xbf16>, vector<256x128xf32> -> vector<256x128xf32>
    %29 = arith.addf %21, %28 : vector<256x128xf32>
    %c32_i32 = arith.constant 32 : i32
    %30 = arith.addi %4, %c32_i32 : i32
    %c0_i32_14 = arith.constant 0 : i32
    %31 = arith.addi %30, %c0_i32_14 : i32
    %32 = arith.index_cast %31 : i32 to index
    %c0_15 = arith.constant 0 : index
    %33 = vector.load %arg7[%32, %c0_15] : memref<1120x128xf32, #tpu.memory_space<vmem>>, vector<256x128xf32>
    %34 = arith.truncf %33 : vector<256x128xf32> to vector<256x128xbf16>
    %c384 = arith.constant 384 : index
    %c0_16 = arith.constant 0 : index
    %35 = vector.load %arg5[%c384, %c0_16] : memref<1152x128xbf16, #tpu.memory_space<vmem>>, vector<128x128xbf16>
    %cst_17 = arith.constant dense<0.000000e+00> : vector<256x128xf32>
    %36 = tpu.matmul %34, %35, %cst_17 {dimension_numbers = #tpu.dot_dimension_numbers<[1], [0], [0], [1], [0, 0, 1, 1], [], []>} : vector<256x128xbf16>, vector<128x128xbf16>, vector<256x128xf32> -> vector<256x128xf32>
    %37 = arith.addf %29, %36 : vector<256x128xf32>
    %c32_i32_18 = arith.constant 32 : i32
    %38 = arith.addi %4, %c32_i32_18 : i32
    %c1_i32_19 = arith.constant 1 : i32
    %39 = arith.addi %38, %c1_i32_19 : i32
    %40 = arith.index_cast %39 : i32 to index
    %c0_20 = arith.constant 0 : index
    %41 = vector.load %arg7[%40, %c0_20] : memref<1120x128xf32, #tpu.memory_space<vmem>>, vector<256x128xf32>
    %42 = arith.truncf %41 : vector<256x128xf32> to vector<256x128xbf16>
    %c512 = arith.constant 512 : index
    %c0_21 = arith.constant 0 : index
    %43 = vector.load %arg5[%c512, %c0_21] : memref<1152x128xbf16, #tpu.memory_space<vmem>>, vector<128x128xbf16>
    %cst_22 = arith.constant dense<0.000000e+00> : vector<256x128xf32>
    %44 = tpu.matmul %42, %43, %cst_22 {dimension_numbers = #tpu.dot_dimension_numbers<[1], [0], [0], [1], [0, 0, 1, 1], [], []>} : vector<256x128xbf16>, vector<128x128xbf16>, vector<256x128xf32> -> vector<256x128xf32>
    %45 = arith.addf %37, %44 : vector<256x128xf32>
    %c32_i32_23 = arith.constant 32 : i32
    %46 = arith.addi %4, %c32_i32_23 : i32
    %c2_i32_24 = arith.constant 2 : i32
    %47 = arith.addi %46, %c2_i32_24 : i32
    %48 = arith.index_cast %47 : i32 to index
    %c0_25 = arith.constant 0 : index
    %49 = vector.load %arg7[%48, %c0_25] : memref<1120x128xf32, #tpu.memory_space<vmem>>, vector<256x128xf32>
    %50 = arith.truncf %49 : vector<256x128xf32> to vector<256x128xbf16>
    %c640 = arith.constant 640 : index
    %c0_26 = arith.constant 0 : index
    %51 = vector.load %arg5[%c640, %c0_26] : memref<1152x128xbf16, #tpu.memory_space<vmem>>, vector<128x128xbf16>
    %cst_27 = arith.constant dense<0.000000e+00> : vector<256x128xf32>
    %52 = tpu.matmul %50, %51, %cst_27 {dimension_numbers = #tpu.dot_dimension_numbers<[1], [0], [0], [1], [0, 0, 1, 1], [], []>} : vector<256x128xbf16>, vector<128x128xbf16>, vector<256x128xf32> -> vector<256x128xf32>
    %53 = arith.addf %45, %52 : vector<256x128xf32>
    %c64_i32 = arith.constant 64 : i32
    %54 = arith.addi %4, %c64_i32 : i32
    %c0_i32_28 = arith.constant 0 : i32
    %55 = arith.addi %54, %c0_i32_28 : i32
    %56 = arith.index_cast %55 : i32 to index
    %c0_29 = arith.constant 0 : index
    %57 = vector.load %arg7[%56, %c0_29] : memref<1120x128xf32, #tpu.memory_space<vmem>>, vector<256x128xf32>
    %58 = arith.truncf %57 : vector<256x128xf32> to vector<256x128xbf16>
    %c768 = arith.constant 768 : index
    %c0_30 = arith.constant 0 : index
    %59 = vector.load %arg5[%c768, %c0_30] : memref<1152x128xbf16, #tpu.memory_space<vmem>>, vector<128x128xbf16>
    %cst_31 = arith.constant dense<0.000000e+00> : vector<256x128xf32>
    %60 = tpu.matmul %58, %59, %cst_31 {dimension_numbers = #tpu.dot_dimension_numbers<[1], [0], [0], [1], [0, 0, 1, 1], [], []>} : vector<256x128xbf16>, vector<128x128xbf16>, vector<256x128xf32> -> vector<256x128xf32>
    %61 = arith.addf %53, %60 : vector<256x128xf32>
    %c64_i32_32 = arith.constant 64 : i32
    %62 = arith.addi %4, %c64_i32_32 : i32
    %c1_i32_33 = arith.constant 1 : i32
    %63 = arith.addi %62, %c1_i32_33 : i32
    %64 = arith.index_cast %63 : i32 to index
    %c0_34 = arith.constant 0 : index
    %65 = vector.load %arg7[%64, %c0_34] : memref<1120x128xf32, #tpu.memory_space<vmem>>, vector<256x128xf32>
    %66 = arith.truncf %65 : vector<256x128xf32> to vector<256x128xbf16>
    %c896 = arith.constant 896 : index
    %c0_35 = arith.constant 0 : index
    %67 = vector.load %arg5[%c896, %c0_35] : memref<1152x128xbf16, #tpu.memory_space<vmem>>, vector<128x128xbf16>
    %cst_36 = arith.constant dense<0.000000e+00> : vector<256x128xf32>
    %68 = tpu.matmul %66, %67, %cst_36 {dimension_numbers = #tpu.dot_dimension_numbers<[1], [0], [0], [1], [0, 0, 1, 1], [], []>} : vector<256x128xbf16>, vector<128x128xbf16>, vector<256x128xf32> -> vector<256x128xf32>
    %69 = arith.addf %61, %68 : vector<256x128xf32>
    %c64_i32_37 = arith.constant 64 : i32
    %70 = arith.addi %4, %c64_i32_37 : i32
    %c2_i32_38 = arith.constant 2 : i32
    %71 = arith.addi %70, %c2_i32_38 : i32
    %72 = arith.index_cast %71 : i32 to index
    %c0_39 = arith.constant 0 : index
    %73 = vector.load %arg7[%72, %c0_39] : memref<1120x128xf32, #tpu.memory_space<vmem>>, vector<256x128xf32>
    %74 = arith.truncf %73 : vector<256x128xf32> to vector<256x128xbf16>
    %c1024 = arith.constant 1024 : index
    %c0_40 = arith.constant 0 : index
    %75 = vector.load %arg5[%c1024, %c0_40] : memref<1152x128xbf16, #tpu.memory_space<vmem>>, vector<128x128xbf16>
    %cst_41 = arith.constant dense<0.000000e+00> : vector<256x128xf32>
    %76 = tpu.matmul %74, %75, %cst_41 {dimension_numbers = #tpu.dot_dimension_numbers<[1], [0], [0], [1], [0, 0, 1, 1], [], []>} : vector<256x128xbf16>, vector<128x128xbf16>, vector<256x128xf32> -> vector<256x128xf32>
    %77 = arith.addf %69, %76 : vector<256x128xf32>
    %c0_42 = arith.constant 0 : index
    %c0_43 = arith.constant 0 : index
    %c0_44 = arith.constant 0 : index
    %78 = vector.load %arg6[%c0_42, %c0_43, %c0_44] : memref<1x256x128xf32, #tpu.memory_space<vmem>>, vector<1x256x128xf32>
    %79 = vector.shape_cast %78 : vector<1x256x128xf32> to vector<256x128xf32>
    %80 = vector.shape_cast %77 : vector<256x128xf32> to vector<1x256x128xf32>
    tpu.vector_store %arg6[%c0_42, %c0_43, %c0_44], %80 {strides = array<i32>} : memref<1x256x128xf32, #tpu.memory_space<vmem>>, vector<1x256x128xf32>,
    return
  }
  func.func @transform_0(%arg0: i32, %arg1: i32) -> (i32, i32, i32, i32) {
    %c0_i32 = arith.constant 0 : i32
    %c0_i32_0 = arith.constant 0 : i32
    %c0_i32_1 = arith.constant 0 : i32
    %c0_i32_2 = arith.constant 0 : i32
    return %arg0, %c0_i32, %c0_i32_0, %c0_i32_1 : i32, i32, i32, i32
  }
  func.func @transform_1(%arg0: i32, %arg1: i32) -> (i32, i32) {
    %c0_i32 = arith.constant 0 : i32
    %c0_i32_0 = arith.constant 0 : i32
    %c0_i32_1 = arith.constant 0 : i32
    return %c0_i32, %c0_i32_0 : i32, i32
  }
  func.func @transform_2(%arg0: i32, %arg1: i32) -> (i32, i32) {
    %c0_i32 = arith.constant 0 : i32
    %c0_i32_0 = arith.constant 0 : i32
    %c0_i32_1 = arith.constant 0 : i32
    return %c0_i32, %c0_i32_0 : i32, i32
  }
  func.func @transform_3(%arg0: i32, %arg1: i32) -> (i32, i32) {
    %c0_i32 = arith.constant 0 : i32
    %c0_i32_0 = arith.constant 0 : i32
    %c0_i32_1 = arith.constant 0 : i32
    return %c0_i32, %c0_i32_0 : i32, i32
  }
  func.func @transform_4(%arg0: i32, %arg1: i32) -> (i32, i32, i32) {
    %c0_i32 = arith.constant 0 : i32
    %c0_i32_0 = arith.constant 0 : i32
    return %arg0, %arg1, %c0_i32 : i32, i32, i32
  }
}

</mosaic_0001>

<bundles_post_ra>
// kernel: forward.2
= control target key start
LH: loop header
LB: loop body
LE: loop exit
PB: predicated region body
PF: predicated region fallthrough
CT: control target
= control target key end

     0   :  { %v5732_v0 = vmov 0   ;;  %v610_v3 = vlaneseq  ;;  %vm5320_vm0 = vcmask 1040384   ;;  %s11735_s3 = inlined_call_operand.vmem [shape: bf16[384,128], index: 3, kind: input, shape index: {}]   ;;  %s11736_s0 = inlined_call_operand.vmem [shape: f32[1568,384], index: 0, kind: input, shape index: {}]   ;;  %s11737_s1 = inlined_call_operand.vmem [shape: f32[1,384], index: 1, kind: input, shape index: {}]   ;;  %s11738_s2 = inlined_call_operand.vmem [shape: f32[1,384], index: 2, kind: input, shape index: {}]   ;;  %s11739_s4 = inlined_call_operand.vmem [shape: f32[1568,128], index: 4, kind: output, shape index: {0}]   ;;  %s11740_s5 = inlined_call_operand.vmem [shape: f32[1,2,128], index: 5, kind: output, shape index: {1}]  }
   0x1   :  { %2892 = vmatprep.subr.bf16.mxu0 %v5732_v0  ;;  %5673 = vmatprep.subr.bf16.mxu1 %v5732_v0  ;;  %v5706_v1 = vld [vmem:[%s11735_s3 + $0x38] sm:$0xff]   ;;  %v5707_v2 = vld [vmem:[%s11735_s3 + $0x30] sm:$0xff]   ;;  %v5708_v4 = vld [vmem:[%s11735_s3 + $0x28] sm:$0xff]  }
   0x2   :  { %2893 = vmatpush1.bf16.msra.mxu0 %v5706_v1  ;;  %5689 = vmatpush1.bf16.msra.mxu1 %v5706_v1  ;;  %v5778_v5 = vshrl.u32 %v610_v3, 7  ;;  %v5709_v6 = vld [vmem:[%s11735_s3 + $0x20] sm:$0xff]   ;;  %v5710_v9 = vld [vmem:[%s11735_s3 + $0x18] sm:$0xff]   ;;  %v5711_v10 = vld [vmem:[%s11735_s3 + $0x10] sm:$0xff]  }
   0x3   :  { %2894 = vmatprep.subr.bf16.mxu0 %v5732_v0  ;;  %5674 = vmatprep.subr.bf16.mxu1 %v5732_v0  ;;  %v21_v11 = vld [vmem:[%s11736_s0 + $0x8] sm:$0xff]  ;;  %v24_v12 = vld [vmem:[%s11736_s0 + $0x20] sm:$0xff]  ;;  %v23_v21 = vld [vmem:[%s11736_s0 + $0x18] sm:$0xff] }
   0x4   :  { %v616_v7 = vsub.s32 1, %v5778_v5  ;;  %v612_v8 = vsub.s32 0, %v5778_v5  ;;  %v608_v13 = vld [vmem:[%s11737_s1] sm:$0x7]  ;;  %v465_v16 = vld [vmem:[%s11736_s0 + $0xde8] sm:$0xff]  ;;  %v467_v27 = vld [vmem:[%s11736_s0 + $0xdf8] sm:$0xff] }
   0x5   :  { %v1213_v15 = vld [vmem:[%s11738_s2] sm:$0x7]  ;;  %v5712_v36 = vld [vmem:[%s11735_s3 + $0x8] sm:$0xff]   ;;  %v27_v38 = vld [vmem:[%s11736_s0 + $0x38] sm:$0xff] }
   0x6   :  { %2895 = vmatpush1.bf16.msra.mxu0 %v5707_v2  ;;  %5690 = vmatpush1.bf16.msra.mxu1 %v5707_v2  ;;  %v5804_v14 = vrot.slane %v608_v13, %v616_v7  ;;  %v468_v17 = vld [vmem:[%s11736_s0 + $0xe00] sm:$0xff]  ;;  %v5815_v18 = vrot.slane %v608_v13, %v612_v8  ;;  %v5817_v19 = vrot.slane %v1213_v15, %v616_v7  ;;  %v30_v39 = vld [vmem:[%s11736_s0 + $0x50] sm:$0xff]  ;;  %v471_v43 = vld [vmem:[%s11736_s0 + $0xe18] sm:$0xff] }
   0x7   :  { %2896 = vmatprep.subr.bf16.mxu0 %v5732_v0  ;;  %5675 = vmatprep.subr.bf16.mxu1 %v5732_v0  ;;  %v20_v20 = vld [vmem:[%s11736_s0] sm:$0xff]  ;;  %v5825_v22 = vrot.slane %v1213_v15, %v612_v8  ;;  %v474_v48 = vld [vmem:[%s11736_s0 + $0xe30] sm:$0xff]  ;;  %v29_v57 = vld [vmem:[%s11736_s0 + $0x48] sm:$0xff] }
   0x8   :  { %v464_v23 = vld [vmem:[%s11736_s0 + $0xde0] sm:$0xff]  ;;  %v626_v24 = vmul.f32 %v5804_v14, %v21_v11  ;;  %v629_v25 = vmul.f32 %v5804_v14, %v24_v12  ;;  %v1070_v26 = vmul.f32 %v5804_v14, %v465_v16  ;;  %v1073_v28 = vmul.f32 %v5804_v14, %v468_v17  ;;  %v26_v53 = vld [vmem:[%s11736_s0 + $0x30] sm:$0xff]  ;;  %v473_v3 = vld [vmem:[%s11736_s0 + $0xe28] sm:$0xff] }
   0x9   :  { %v625_v29 = vmul.f32 %v5815_v18, %v20_v20  ;;  %v628_v30 = vmul.f32 %v5815_v18, %v23_v21  ;;  %v1069_v31 = vmul.f32 %v5815_v18, %v464_v23  ;;  %v1072_v35 = vmul.f32 %v5815_v18, %v467_v27  ;;  %v5713_v54 = vld [vmem:[%s11735_s3] sm:$0xff]   ;;  %v470_v61 = vld [vmem:[%s11736_s0 + $0xe10] sm:$0xff]  ;;  %v5714_v11 = vld [vmem:[%s11735_s3 + $0x78] sm:$0xff]  }
   0xa   :  { %2897 = vmatpush1.bf16.msra.mxu0 %v5708_v4  ;;  %5691 = vmatpush1.bf16.msra.mxu1 %v5708_v4  ;;  %v1231_v32 = vadd.f32 %v5817_v19, %v626_v24  ;;  %v1234_v33 = vadd.f32 %v5817_v19, %v629_v25  ;;  %v1675_v34 = vadd.f32 %v5817_v19, %v1070_v26  ;;  %v477_v17 = vld [vmem:[%s11736_s0 + $0xe48] sm:$0xff]  ;;  %v480_v20 = vld [vmem:[%s11736_s0 + $0xe60] sm:$0xff] }
   0xb   :  { %2898 = vmatprep.subr.bf16.mxu0 %v5732_v0  ;;  %5676 = vmatprep.subr.bf16.mxu1 %v5732_v0  ;;  %v1678_v37 = vadd.f32 %v5817_v19, %v1073_v28  ;;  %v1230_v45 = vadd.f32 %v5825_v22, %v625_v29  ;;  %v1233_v46 = vadd.f32 %v5825_v22, %v628_v30  ;;  %v32_v26 = vld [vmem:[%s11736_s0 + $0x60] sm:$0xff] }
   0xc   :  { %v1819_v40 = vmax.f32 %v1231_v32, 0.0  ;;  %v1822_v41 = vmax.f32 %v1234_v33, 0.0  ;;  %v2263_v42 = vmax.f32 %v1675_v34, 0.0  ;;  %v1674_v47 = vadd.f32 %v5825_v22, %v1069_v31  ;;  %v35_v31 = vld [vmem:[%s11736_s0 + $0x78] sm:$0xff]  ;;  %v5715_v32 = vld [vmem:[%s11735_s3 + $0x70] sm:$0xff]  }
   0xd   :  { %v2266_v44 = vmax.f32 %v1678_v37, 0.0  ;;  %v1677_v50 = vadd.f32 %v5825_v22, %v1072_v35  ;;  %v632_v51 = vmul.f32 %v5804_v14, %v27_v38  ;;  %v635_v52 = vmul.f32 %v5804_v14, %v30_v39  ;;  %v479_v37 = vld [vmem:[%s11736_s0 + $0xe58] sm:$0xff] }
   0xe   :  { %2899 = vmatpush1.bf16.msra.mxu0 %v5709_v6  ;;  %5692 = vmatpush1.bf16.msra.mxu1 %v5709_v6  ;;  %v2407_v49 = vpack.c.bf16 %v1822_v41, %v1819_v40  ;;  %v1076_v56 = vmul.f32 %v5804_v14, %v471_v43  ;;  %v1079_v60 = vmul.f32 %v5804_v14, %v474_v48  ;;  %v1818_v62 = vmax.f32 %v1230_v45, 0.0  ;;  %v39_v41 = vld [vmem:[%s11736_s0 + $0x98] sm:$0xff] }
   0xf   :  { %2900 = vmatprep.subr.bf16.mxu0 %v5732_v0  ;;  %5677 = vmatprep.subr.bf16.mxu1 %v5732_v0  ;;  %v2629_v55 = vpack.c.bf16 %v2266_v44, %v2263_v42  ;;  %v1237_v58 = vadd.f32 %v5817_v19, %v632_v51  ;;  %v1240_v59 = vadd.f32 %v5817_v19, %v635_v52  ;;  %v1821_v63 = vmax.f32 %v1233_v46, 0.0  ;;  %v42_v46 = vld [vmem:[%s11736_s0 + $0xb0] sm:$0xff]  ;;  %v483_v51 = vld [vmem:[%s11736_s0 + $0xe78] sm:$0xff]  ;;  %v5716_v52 = vld [vmem:[%s11735_s3 + $0x68] sm:$0xff]  }
  0x10   :  { %2924 = vmatprep.mubr.bf16.mxu0 %v2407_v49  ;;  %v2262_v1 = vmax.f32 %v1674_v47, 0.0  ;;  %v631_v2 = vmul.f32 %v5815_v18, %v26_v53  ;;  %v2265_v4 = vmax.f32 %v1677_v50, 0.0  ;;  %v1681_v6 = vadd.f32 %v5817_v19, %v1076_v56 }
  0x11   :  { %3516 = vmatprep.mubr.bf16.mxu1 %v2629_v55  ;;  %v1684_v7 = vadd.f32 %v5817_v19, %v1079_v60  ;;  %v634_v8 = vmul.f32 %v5815_v18, %v29_v57  ;;  %v1075_v12 = vmul.f32 %v5815_v18, %v470_v61  ;;  %v1825_v13 = vmax.f32 %v1237_v58, 0.0  ;;  %v486_v57 = vld [vmem:[%s11736_s0 + $0xe90] sm:$0xff] }
  0x12   :  { %2901 = vmatpush1.bf16.msra.mxu0 %v5710_v9  ;;  %5693 = vmatpush1.bf16.msra.mxu1 %v5710_v9  ;;  %v33_v9 = vld [vmem:[%s11736_s0 + $0x68] sm:$0xff]  ;;  %v1828_v15 = vmax.f32 %v1240_v59, 0.0  ;;  %v1078_v16 = vmul.f32 %v5815_v18, %v473_v3  ;;  %v5914_v21 = vpack.c.bf16 %v1821_v63, %v1818_v62  ;;  %v1236_v23 = vadd.f32 %v5825_v22, %v631_v2  ;;  %v38_v62 = vld [vmem:[%s11736_s0 + $0x90] sm:$0xff] }
  0x13   :  { %2902 = vmatprep.subr.bf16.mxu0 %v5732_v0  ;;  %5678 = vmatprep.subr.bf16.mxu1 %v5732_v0  ;;  %v638_v24 = vmul.f32 %v5804_v14, %v33_v9  ;;  %v5922_v27 = vpack.c.bf16 %v2265_v4, %v2262_v1  ;;  %v2269_v28 = vmax.f32 %v1681_v6, 0.0  ;;  %v2272_v29 = vmax.f32 %v1684_v7, 0.0  ;;  %v41_v4 = vld [vmem:[%s11736_s0 + $0xa8] sm:$0xff] }
  0x14   :  { %v1239_v30 = vadd.f32 %v5825_v22, %v634_v8  ;;  %v1680_v33 = vadd.f32 %v5825_v22, %v1075_v12  ;;  %v1082_v34 = vmul.f32 %v5804_v14, %v477_v17  ;;  %v1085_v35 = vmul.f32 %v5804_v14, %v480_v20 }
  0x15   :  { %v5942_v38 = vpack.c.bf16 %v1828_v15, %v1825_v13  ;;  %v1683_v39 = vadd.f32 %v5825_v22, %v1078_v16  ;;  %v637_v40 = vmul.f32 %v5815_v18, %v32_v26  ;;  %v1824_v42 = vmax.f32 %v1236_v23, 0.0  ;;  %v482_v16 = vld [vmem:[%s11736_s0 + $0xe70] sm:$0xff] }
  0x16   :  { %2903 = vmatpush1.bf16.msra.mxu0 %v5711_v10  ;;  %5694 = vmatpush1.bf16.msra.mxu1 %v5711_v10  ;;  %v36_v10 = vld [vmem:[%s11736_s0 + $0x80] sm:$0xff]  ;;  %v1243_v43 = vadd.f32 %v5817_v19, %v638_v24  ;;  %v640_v45 = vmul.f32 %v5815_v18, %v35_v31  ;;  %v5955_v47 = vpack.c.bf16 %v2272_v29, %v2269_v28  ;;  %v1827_v48 = vmax.f32 %v1239_v30, 0.0  ;;  %v45_v31 = vld [vmem:[%s11736_s0 + $0xc8] sm:$0xff] }
  0x17   :  { %2904 = vmatprep.subr.bf16.mxu0 %v5732_v0  ;;  %5679 = vmatprep.subr.bf16.mxu1 %v5732_v0  ;;  %v641_v25 = vmul.f32 %v5804_v14, %v36_v10  ;;  %v1084_v50 = vmul.f32 %v5815_v18, %v479_v37  ;;  %v2268_v53 = vmax.f32 %v1680_v33, 0.0  ;;  %v1690_v55 = vadd.f32 %v5817_v19, %v1085_v35  ;;  %v5717_v10 = vld [vmem:[%s11735_s3 + $0x60] sm:$0xff]   ;;  %v489_v37 = vld [vmem:[%s11736_s0 + $0xea8] sm:$0xff] }
  0x18   :  { %v644_v56 = vmul.f32 %v5804_v14, %v39_v41  ;;  %v2271_v58 = vmax.f32 %v1683_v39, 0.0  ;;  %v1242_v59 = vadd.f32 %v5825_v22, %v637_v40  ;;  %v1245_v60 = vadd.f32 %v5825_v22, %v640_v45  ;;  %v492_v39 = vld [vmem:[%s11736_s0 + $0xec0] sm:$0xff]  ;;  %v5718_v40 = vld [vmem:[%s11735_s3 + $0x58] sm:$0xff]  }
  0x19   :  { %v1246_v44 = vadd.f32 %v5817_v19, %v641_v25  ;;  %v647_v61 = vmul.f32 %v5804_v14, %v42_v46  ;;  %v1831_v63 = vmax.f32 %v1243_v43, 0.0  ;;  %v1088_v3 = vmul.f32 %v5804_v14, %v483_v51  ;;  %v485_v25 = vld [vmem:[%s11736_s0 + $0xe88] sm:$0xff] }
  0x1a   :  { %2905 = vmatpush1.bf16.msra.mxu0 %v5712_v36  ;;  %5695 = vmatpush1.bf16.msra.mxu1 %v5712_v36  ;;  %v476_v36 = vld [vmem:[%s11736_s0 + $0xe40] sm:$0xff]  ;;  %v1689_v6 = vadd.f32 %v5825_v22, %v1084_v50  ;;  %v1249_v7 = vadd.f32 %v5817_v19, %v644_v56  ;;  %v1091_v9 = vmul.f32 %v5804_v14, %v486_v57  ;;  %v2278_v13 = vmax.f32 %v1690_v55, 0.0  ;;  %v47_v50 = vld [vmem:[%s11736_s0 + $0xd8] sm:$0xff] }
  0x1b   :  { %2906 = vmatprep.subr.bf16.mxu0 %v5732_v0  ;;  %5680 = vmatprep.subr.bf16.mxu1 %v5732_v0  ;;  %v1081_v49 = vmul.f32 %v5815_v18, %v476_v36  ;;  %v1834_v1 = vmax.f32 %v1246_v44, 0.0  ;;  %v1252_v8 = vadd.f32 %v5817_v19, %v647_v61  ;;  %v643_v15 = vmul.f32 %v5815_v18, %v38_v62  ;;  %v48_v36 = vld [vmem:[%s11736_s0 + $0xe0] sm:$0xff]  ;;  %v491_v56 = vld [vmem:[%s11736_s0 + $0xeb8] sm:$0xff]  ;;  %v5719_v61 = vld [vmem:[%s11735_s3 + $0x50] sm:$0xff]  }
  0x1c   :  { %v1830_v17 = vmax.f32 %v1242_v59, 0.0  ;;  %v1833_v20 = vmax.f32 %v1245_v60, 0.0  ;;  %v1693_v23 = vadd.f32 %v5817_v19, %v1088_v3  ;;  %v646_v24 = vmul.f32 %v5815_v18, %v41_v4  ;;  %v44_v44 = vld [vmem:[%s11736_s0 + $0xc0] sm:$0xff]  ;;  %v51_v3 = vld [vmem:[%s11736_s0 + $0xf8] sm:$0xff]  ;;  %v54_v4 = vld [vmem:[%s11736_s0 + $0x110] sm:$0xff] }
  0x1d   :  { %v1686_v2 = vadd.f32 %v5825_v22, %v1081_v49  ;;  %v6004_v26 = vpack.c.bf16 %v2271_v58, %v2268_v53  ;;  %v6006_v28 = vpack.c.bf16 %v1834_v1, %v1831_v63  ;;  %v1696_v30 = vadd.f32 %v5817_v19, %v1091_v9  ;;  %v488_v55 = vld [vmem:[%s11736_s0 + $0xea0] sm:$0xff] }
  0x1e   :  { %2907 = vmatpush1.bf16.msra.mxu0 %v5713_v54  ;;  %5696 = vmatpush1.bf16.msra.mxu1 %v5713_v54  ;;  %v1687_v54 = vadd.f32 %v5817_v19, %v1082_v34  ;;  %v1837_v33 = vmax.f32 %v1249_v7, 0.0  ;;  %v1840_v34 = vmax.f32 %v1252_v8, 0.0  ;;  %v1087_v35 = vmul.f32 %v5815_v18, %v482_v16  ;;  %v498_v16 = vld [vmem:[%s11736_s0 + $0xef0] sm:$0xff] }
  0x1f   :  { %2908 = vmatprep.subr.bf16.mxu0 %v5732_v0  ;;  %5681 = vmatprep.subr.bf16.mxu1 %v5732_v0  ;;  %v2274_v29 = vmax.f32 %v1686_v2, 0.0  ;;  %v1248_v41 = vadd.f32 %v5825_v22, %v643_v15  ;;  %v1090_v43 = vmul.f32 %v5815_v18, %v485_v25  ;;  %v6035_v46 = vpack.c.bf16 %v1833_v20, %v1830_v17  ;;  %v495_v15 = vld [vmem:[%s11736_s0 + $0xed8] sm:$0xff]  ;;  %v50_v25 = vld [vmem:[%s11736_s0 + $0xf0] sm:$0xff] }
  0x20   :  { %v2275_v12 = vmax.f32 %v1687_v54, 0.0  ;;  %v650_v49 = vmul.f32 %v5804_v14, %v45_v31  ;;  %v2284_v51 = vmax.f32 %v1696_v30, 0.0  ;;  %v1094_v53 = vmul.f32 %v5804_v14, %v489_v37 }
  0x21   :  { %v1097_v54 = vmul.f32 %v5804_v14, %v492_v39  ;;  %v6052_v58 = vpack.c.bf16 %v1840_v34, %v1837_v33  ;;  %v6055_v59 = vadd.f32 %v5825_v22, %v1087_v35  ;;  %v649_v60 = vmul.f32 %v5815_v18, %v44_v44  ;;  %v53_v34 = vld [vmem:[%s11736_s0 + $0x108] sm:$0xff] }
  0x22   :  { %2909 = vmatpush2.bf16.msra.mxu0 %v5714_v11  ;;  %5697 = vmatpush2.bf16.msra.mxu1 %v5714_v11  ;;  %v5991_v11 = vpack.c.bf16 %v1827_v48, %v1824_v42  ;;  %v1251_v42 = vadd.f32 %v5825_v22, %v646_v24  ;;  %v6033_v45 = vpack.c.bf16 %v2278_v13, %v2275_v12  ;;  %v2281_v48 = vmax.f32 %v1693_v23, 0.0 }
  0x23   :  { %2910 = vmatprep.subr.bf16.mxu0 %v5732_v0  ;;  %5682 = vmatprep.subr.bf16.mxu1 %v5732_v0  ;;  %v1836_v62 = vmax.f32 %v1248_v41, 0.0  ;;  %v1695_v1 = vadd.f32 %v5825_v22, %v1090_v43  ;;  %v652_v2 = vmul.f32 %v5815_v18, %v47_v50  ;;  %v1093_v7 = vmul.f32 %v5815_v18, %v488_v55  ;;  %v497_v41 = vld [vmem:[%s11736_s0 + $0xee8] sm:$0xff] }
  0x24   :  { %v1839_v63 = vmax.f32 %v1251_v42, 0.0  ;;  %v1096_v8 = vmul.f32 %v5815_v18, %v491_v56  ;;  %v6074_v9 = vpack.c.bf16 %v2284_v51, %v2281_v48  ;;  %v1699_v12 = vadd.f32 %v5817_v19, %v1094_v53  ;;  %v57_v53 = vld [vmem:[%s11736_s0 + $0x128] sm:$0xff] }
  0x25   :  { %v1702_v13 = vadd.f32 %v5817_v19, %v1097_v54  ;;  %v2280_v17 = vmax.f32 %v6055_v59, 0.0  ;;  %v1254_v20 = vadd.f32 %v5825_v22, %v649_v60  ;;  %v656_v23 = vmul.f32 %v5804_v14, %v51_v3  ;;  %v5721_v54 = vld [vmem:[%s11735_s3 + $0x40] sm:$0xff]   ;;  %v5722_v3 = vld [vmem:[%s11735_s3 + $0xb8] sm:$0xff]  }
  0x26   :  { %2911 = vmatpush2.bf16.msra.mxu0 %v5715_v32  ;;  %5698 = vmatpush2.bf16.msra.mxu1 %v5715_v32  ;;  %v2277_v32 = vmax.f32 %v1689_v6, 0.0  ;;  %v1255_v6 = vadd.f32 %v5817_v19, %v650_v49  ;;  %v659_v24 = vmul.f32 %v5804_v14, %v54_v4  ;;  %v6095_v30 = vpack.c.bf16 %v1839_v63, %v1836_v62 }
  0x27   :  { %2912 = vmatprep.subr.bf16.mxu0 %v5732_v0  ;;  %5683 = vmatprep.subr.bf16.mxu1 %v5732_v0  ;;  %v2283_v31 = vmax.f32 %v1695_v1, 0.0  ;;  %v1698_v33 = vadd.f32 %v5825_v22, %v1093_v7  ;;  %v1100_v37 = vmul.f32 %v5804_v14, %v495_v15  ;;  %v1103_v39 = vmul.f32 %v5804_v14, %v498_v16  ;;  %v501_v15 = vld [vmem:[%s11736_s0 + $0xf08] sm:$0xff]  ;;  %v504_v16 = vld [vmem:[%s11736_s0 + $0xf20] sm:$0xff] }
  0x28   :  { %v6050_v57 = vpack.c.bf16 %v2277_v32, %v2274_v29  ;;  %v5720_v29 = vld [vmem:[%s11735_s3 + $0x48] sm:$0xff]   ;;  %v1257_v32 = vadd.f32 %v5825_v22, %v652_v2  ;;  %v1843_v35 = vmax.f32 %v1255_v6, 0.0  ;;  %v2287_v43 = vmax.f32 %v1699_v12, 0.0  ;;  %v60_v2 = vld [vmem:[%s11736_s0 + $0x140] sm:$0xff] }
  0x29   :  { %v2290_v44 = vmax.f32 %v1702_v13, 0.0  ;;  %v655_v48 = vmul.f32 %v5815_v18, %v50_v25  ;;  %v1842_v49 = vmax.f32 %v1254_v20, 0.0  ;;  %v1261_v50 = vadd.f32 %v5817_v19, %v656_v23 }
  0x2a   :  { %2913 = vmatpush2.bf16.msra.mxu0 %v5716_v52  ;;  %5699 = vmatpush2.bf16.msra.mxu1 %v5716_v52  ;;  %v653_v52 = vmul.f32 %v5804_v14, %v48_v36  ;;  %v1701_v36 = vadd.f32 %v5825_v22, %v1096_v8  ;;  %v1264_v51 = vadd.f32 %v5817_v19, %v659_v24  ;;  %v1845_v55 = vmax.f32 %v1257_v32, 0.0  ;;  %v56_v24 = vld [vmem:[%s11736_s0 + $0x120] sm:$0xff] }
  0x2b   :  { %2914 = vmatprep.subr.bf16.mxu0 %v5732_v0  ;;  %5684 = vmatprep.subr.bf16.mxu1 %v5732_v0  ;;  %v2286_v56 = vmax.f32 %v1698_v33, 0.0  ;;  %v1102_v60 = vmul.f32 %v5815_v18, %v497_v41  ;;  %v1705_v62 = vadd.f32 %v5817_v19, %v1100_v37  ;;  %v1708_v63 = vadd.f32 %v5817_v19, %v1103_v39  ;;  %v59_v33 = vld [vmem:[%s11736_s0 + $0x138] sm:$0xff] }
  0x2c   :  { %v1260_v1 = vadd.f32 %v5825_v22, %v655_v48  ;;  %v6136_v4 = vpack.c.bf16 %v2283_v31, %v2280_v17  ;;  %v662_v7 = vmul.f32 %v5804_v14, %v57_v53  ;;  %v1849_v8 = vmax.f32 %v1261_v50, 0.0  ;;  %v63_v41 = vld [vmem:[%s11736_s0 + $0x158] sm:$0xff]  ;;  %v510_v53 = vld [vmem:[%s11736_s0 + $0xf50] sm:$0xff] }
  0x2d   :  { %v1707_v13 = vadd.f32 %v5825_v22, %v1102_v60  ;;  %v6150_v17 = vpack.c.bf16 %v2290_v44, %v2287_v43  ;;  %v6152_v20 = vpack.c.bf16 %v1845_v55, %v1842_v49  ;;  %v665_v23 = vmul.f32 %v5804_v14, %v60_v2  ;;  %v5723_v43 = vld [vmem:[%s11735_s3 + $0xb0] sm:$0xff]  }
  0x2e   :  { %2915 = vmatpush2.bf16.msra.mxu0 %v5717_v10  ;;  %5700 = vmatpush2.bf16.msra.mxu1 %v5717_v10  ;;  %v1258_v10 = vadd.f32 %v5817_v19, %v653_v52  ;;  %v658_v52 = vmul.f32 %v5815_v18, %v53_v34  ;;  %v2296_v31 = vmax.f32 %v1708_v63, 0.0  ;;  %v1848_v32 = vmax.f32 %v1260_v1, 0.0  ;;  %v500_v34 = vld [vmem:[%s11736_s0 + $0xf00] sm:$0xff]  ;;  %v506_v1 = vld [vmem:[%s11736_s0 + $0xf30] sm:$0xff] }
  0x2f   :  { %2916 = vmatprep.subr.bf16.mxu0 %v5732_v0  ;;  %5685 = vmatprep.subr.bf16.mxu1 %v5732_v0  ;;  %v6170_v37 = vadd.f32 %v5817_v19, %v662_v7  ;;  %v1106_v39 = vmul.f32 %v5804_v14, %v501_v15  ;;  %v2295_v49 = vmax.f32 %v1707_v13, 0.0  ;;  %v661_v50 = vmul.f32 %v5815_v18, %v56_v24 }
  0x30   :  { %v1846_v42 = vmax.f32 %v1258_v10, 0.0  ;;  %v1852_v10 = vmax.f32 %v1264_v51, 0.0  ;;  %v507_v51 = vld [vmem:[%s11736_s0 + $0xf38] sm:$0xff] }
  0x31   :  { %v1112_v7 = vmul.f32 %v5804_v14, %v507_v51 }
  0x32   :  { %2917 = vmatpush2.bf16.msra.mxu0 %v5718_v40  ;;  %5701 = vmatpush2.bf16.msra.mxu1 %v5718_v40  ;;  %v494_v40 = vld [vmem:[%s11736_s0 + $0xed0] sm:$0xff]  ;;  %v6138_v6 = vpack.c.bf16 %v1846_v42, %v1843_v35  ;;  %v503_v35 = vld [vmem:[%s11736_s0 + $0xf18] sm:$0xff]  ;;  %v6185_v44 = vpack.c.bf16 %v1852_v10, %v1849_v8  ;;  %v509_v8 = vld [vmem:[%s11736_s0 + $0xf48] sm:$0xff] }
  0x33   :  { %2918 = vmatprep.subr.bf16.mxu0 %v5732_v0  ;;  %5686 = vmatprep.subr.bf16.mxu1 %v5732_v0  ;;  %v1099_v59 = vmul.f32 %v5815_v18, %v494_v40  ;;  %v1109_v40 = vmul.f32 %v5804_v14, %v504_v16  ;;  %v66_v42 = vld [vmem:[%s11736_s0 + $0x170] sm:$0xff]  ;;  %v69_v16 = vld [vmem:[%s11736_s0 + $0x188] sm:$0xff] }
  0x35   :  { %v1704_v12 = vadd.f32 %v5825_v22, %v1099_v59  ;;  %v65_v59 = vld [vmem:[%s11736_s0 + $0x168] sm:$0xff]  ;;  %v1714_v63 = vadd.f32 %v5817_v19, %v1109_v40 }
  0x36   :  { %2919 = vmatpush2.bf16.msra.mxu0 %v5719_v61  ;;  %5702 = vmatpush2.bf16.msra.mxu1 %v5719_v61  ;;  %v2289_v61 = vmax.f32 %v1701_v36, 0.0 }
  0x37   :  { %2920 = vmatprep.subr.bf16.mxu0 %v5732_v0  ;;  %5687 = vmatprep.subr.bf16.mxu1 %v5732_v0  ;;  %v2292_v48 = vmax.f32 %v1704_v12, 0.0 }
  0x38   :  { %v6158_v25 = vpack.c.bf16 %v2289_v61, %v2286_v56  ;;  %v671_v56 = vmul.f32 %v5804_v14, %v66_v42  ;;  %v1855_v61 = vmax.f32 %v6170_v37, 0.0  ;;  %v513_v42 = vld [vmem:[%s11736_s0 + $0xf68] sm:$0xff] }
  0x39   :  { %v6220_v2 = vpack.c.bf16 %v2295_v49, %v2292_v48 }
  0x3a   :  { %2921 = vmatpush2.bf16.msra.mxu0 %v5720_v29  ;;  %5703 = vmatpush2.bf16.msra.mxu1 %v5720_v29  ;;  %v2293_v29 = vmax.f32 %v1705_v62, 0.0  ;;  %v1711_v62 = vadd.f32 %v5817_v19, %v1106_v39  ;;  %v1717_v39 = vadd.f32 %v5817_v19, %v1112_v7 }
  0x3b   :  { %2922 = vmatprep.subr.bf16.mxu0 %v5732_v0  ;;  %5688 = vmatprep.subr.bf16.mxu1 %v5732_v0  ;;  %v1263_v0 = vadd.f32 %v5825_v22, %v658_v52  ;;  %v6194_v52 = vadd.f32 %v5817_v19, %v665_v23 }
  0x3c   :  { %v6204_v55 = vpack.c.bf16 %v2296_v31, %v2293_v29  ;;  %v1276_v29 = vadd.f32 %v5817_v19, %v671_v56  ;;  %v670_v31 = vmul.f32 %v5815_v18, %v65_v59 }
  0x3d   :  { %v1851_v36 = vmax.f32 %v1263_v0, 0.0  ;;  %v1266_v0 = vadd.f32 %v5825_v22, %v661_v50  ;;  %v1858_v10 = vmax.f32 %v6194_v52, 0.0 }
  0x3e   :  { %2923 = vmatpush2.bf16.msra.mxu0 %v5721_v54  ;;  %5704 = vmatpush2.bf16.msra.mxu1 %v5721_v54  ;;  %v62_v54 = vld [vmem:[%s11736_s0 + $0x150] sm:$0xff]  ;;  %v1275_v48 = vadd.f32 %v5825_v22, %v670_v31 }
  0x3f   :  { %5461 = vmatprep.subr.bf16.mxu1 %v5722_v3  ;;  %v6212_v60 = vpack.c.bf16 %v1851_v36, %v1848_v32  ;;  %v667_v15 = vmul.f32 %v5815_v18, %v62_v54  ;;  %v72_v32 = vld [vmem:[%s11736_s0 + $0x1a0] sm:$0xff]  ;;  %v1114_v36 = vmul.f32 %v5815_v18, %v509_v8  ;;  %v1854_v37 = vmax.f32 %v1266_v0, 0.0  ;;  %v71_v0 = vld [vmem:[%s11736_s0 + $0x198] sm:$0xff]  ;;  %v78_v31 = vld [vmem:[%s11736_s0 + $0x1d0] sm:$0xff] }
  0x40   :  { %v677_v49 = vmul.f32 %v5804_v14, %v72_v32  ;;  %v519_v32 = vld [vmem:[%s11736_s0 + $0xf98] sm:$0xff] }
  0x41   :  { %2925 = vmatmul.mubr.bf16.vlgmr.msra.gmra.mxu0 %v5914_v21  ;;  %3517 = vmatmul.mubr.bf16.vlgmr.msra.gmra.mxu1 %v5922_v27  ;;  %v664_v21 = vmul.f32 %v5815_v18, %v59_v33  ;;  %v1105_v27 = vmul.f32 %v5815_v18, %v500_v34  ;;  %v2299_v33 = vmax.f32 %v1711_v62, 0.0  ;;  %v2302_v34 = vmax.f32 %v1714_v63, 0.0 }
  0x42   :  { %2932 = vmatprep.mubr.bf16.mxu0 %v5942_v38  ;;  %3524 = vmatprep.mubr.bf16.mxu1 %v5955_v47  ;;  %v1108_v38 = vmul.f32 %v5815_v18, %v503_v35  ;;  %v668_v47 = vmul.f32 %v5804_v14, %v63_v41  ;;  %v1111_v35 = vmul.f32 %v5815_v18, %v506_v1  ;;  %v1863_v1 = vmax.f32 %v1275_v48, 0.0  ;;  %v521_v48 = vld [vmem:[%s11736_s0 + $0xfa8] sm:$0xff] }
  0x43   :  { %5462 = vmatpush3.bf16.msra.mxu1 %v5722_v3  ;;  %v1115_v3 = vmul.f32 %v5804_v14, %v510_v53  ;;  %v1269_v12 = vadd.f32 %v5825_v22, %v664_v21  ;;  %v1710_v13 = vadd.f32 %v5825_v22, %v1105_v27  ;;  %v674_v41 = vmul.f32 %v5804_v14, %v69_v16  ;;  %v68_v27 = vld [vmem:[%s11736_s0 + $0x180] sm:$0xff] }
  0x44   :  { %5463 = vmatprep.subr.bf16.mxu1 %v5723_v43  ;;  %v1713_v23 = vadd.f32 %v5825_v22, %v1108_v38  ;;  %v1273_v24 = vadd.f32 %v5817_v19, %v668_v47  ;;  %v1864_v21 = vmax.f32 %v1276_v29, 0.0  ;;  %v1716_v53 = vadd.f32 %v5825_v22, %v1111_v35  ;;  %v75_v29 = vld [vmem:[%s11736_s0 + $0x1b8] sm:$0xff] }
  0x45   :  { %v1720_v40 = vadd.f32 %v5817_v19, %v1115_v3  ;;  %v2298_v50 = vmax.f32 %v1710_v13, 0.0  ;;  %v2305_v38 = vmax.f32 %v1717_v39, 0.0  ;;  %v1279_v56 = vadd.f32 %v5817_v19, %v674_v41  ;;  %v5724_v39 = vld [vmem:[%s11735_s3 + $0xa8] sm:$0xff]   ;;  %v74_v41 = vld [vmem:[%s11736_s0 + $0x1b0] sm:$0xff] }
  0x46   :  { %v2301_v51 = vmax.f32 %v1713_v23, 0.0  ;;  %v1861_v52 = vmax.f32 %v1273_v24, 0.0  ;;  %v1282_v59 = vadd.f32 %v5817_v19, %v677_v49  ;;  %v6269_v62 = vpack.c.bf16 %v1858_v10, %v1855_v61  ;;  %v512_v61 = vld [vmem:[%s11736_s0 + $0xf60] sm:$0xff]  ;;  %v515_v10 = vld [vmem:[%s11736_s0 + $0xf78] sm:$0xff] }
  0x47   :  { %5464 = vmatpush3.bf16.msra.mxu1 %v5723_v43  ;;  %v516_v43 = vld [vmem:[%s11736_s0 + $0xf80] sm:$0xff]  ;;  %v2308_v47 = vmax.f32 %v1720_v40, 0.0  ;;  %v673_v7 = vmul.f32 %v5815_v18, %v68_v27  ;;  %v6275_v3 = vpack.c.bf16 %v2302_v34, %v2299_v33  ;;  %v1867_v34 = vmax.f32 %v1279_v56, 0.0 }
  0x48   :  { %v1121_v54 = vmul.f32 %v5804_v14, %v516_v43  ;;  %v6281_v13 = vpack.c.bf16 %v1864_v21, %v1861_v52  ;;  %v1870_v35 = vmax.f32 %v1282_v59, 0.0  ;;  %v1117_v40 = vmul.f32 %v5815_v18, %v512_v61  ;;  %5465 = vmatprep.subr.bf16.mxu1 %v5724_v39 }
  0x49   :  { %2933 = vmatmul.mubr.bf16.gmra.mxu0 %v5991_v11  ;;  %3525 = vmatmul.mubr.bf16.gmra.mxu1 %v6004_v26  ;;  %v1857_v11 = vmax.f32 %v1269_v12, 0.0  ;;  %v1272_v26 = vadd.f32 %v5825_v22, %v667_v15  ;;  %v6279_v12 = vpack.c.bf16 %v2301_v51, %v2298_v50  ;;  %v2304_v15 = vmax.f32 %v1716_v53, 0.0 }
  0x4a   :  { %2940 = vmatprep.mubr.bf16.mxu0 %v6006_v28  ;;  %3532 = vmatprep.mubr.bf16.mxu1 %v6033_v45  ;;  %v1719_v28 = vadd.f32 %v5825_v22, %v1114_v36  ;;  %v1118_v45 = vmul.f32 %v5804_v14, %v513_v42  ;;  %v1726_v24 = vadd.f32 %v5817_v19, %v1121_v54  ;;  %v77_v42 = vld [vmem:[%s11736_s0 + $0x1c8] sm:$0xff]  ;;  %v84_v54 = vld [vmem:[%s11736_s0 + $0x200] sm:$0xff] }
  0x4b   :  { %v1860_v63 = vmax.f32 %v1272_v26, 0.0  ;;  %v6277_v8 = vpack.c.bf16 %v1857_v11, %v1854_v37  ;;  %v6302_v33 = vpack.c.bf16 %v2308_v47, %v2305_v38  ;;  %v676_v36 = vmul.f32 %v5815_v18, %v71_v0  ;;  %v522_v37 = vld [vmem:[%s11736_s0 + $0xfb0] sm:$0xff]  ;;  %5466 = vmatpush3.bf16.msra.mxu1 %v5724_v39 }
  0x4c   :  { %v2307_v16 = vmax.f32 %v1719_v28, 0.0  ;;  %v1723_v23 = vadd.f32 %v5817_v19, %v1118_v45  ;;  %v1120_v43 = vmul.f32 %v5815_v18, %v515_v10  ;;  %v1124_v11 = vmul.f32 %v5804_v14, %v519_v32  ;;  %v518_v26 = vld [vmem:[%s11736_s0 + $0xf90] sm:$0xff]  ;;  %v81_v45 = vld [vmem:[%s11736_s0 + $0x1e8] sm:$0xff]  ;;  %v528_v10 = vld [vmem:[%s11736_s0 + $0xfe0] sm:$0xff] }
  0x4d   :  { %v2314_v51 = vmax.f32 %v1726_v24, 0.0  ;;  %v1127_v52 = vmul.f32 %v5804_v14, %v522_v37  ;;  %v6338_v21 = vpack.c.bf16 %v1870_v35, %v1867_v34  ;;  %v1281_v27 = vadd.f32 %v5825_v22, %v676_v36  ;;  %v80_v35 = vld [vmem:[%s11736_s0 + $0x1e0] sm:$0xff] }
  0x4e   :  { %v6335_v49 = vpack.c.bf16 %v2307_v16, %v2304_v15  ;;  %v2311_v50 = vmax.f32 %v1723_v23, 0.0  ;;  %v679_v53 = vmul.f32 %v5815_v18, %v74_v41  ;;  %v682_v28 = vmul.f32 %v5815_v18, %v77_v42  ;;  %v83_v42 = vld [vmem:[%s11736_s0 + $0x1f8] sm:$0xff] }
  0x4f   :  { %v1722_v47 = vadd.f32 %v5825_v22, %v1117_v40  ;;  %v1123_v56 = vmul.f32 %v5815_v18, %v518_v26  ;;  %v1126_v59 = vmul.f32 %v5815_v18, %v521_v48  ;;  %v1729_v61 = vadd.f32 %v5817_v19, %v1124_v11  ;;  %v527_v11 = vld [vmem:[%s11736_s0 + $0xfd8] sm:$0xff] }
  0x50   :  { %v6363_v15 = vpack.c.bf16 %v2314_v51, %v2311_v50  ;;  %v1732_v16 = vadd.f32 %v5817_v19, %v1127_v52  ;;  %v686_v23 = vmul.f32 %v5804_v14, %v81_v45  ;;  %v689_v24 = vmul.f32 %v5804_v14, %v84_v54  ;;  %v87_v45 = vld [vmem:[%s11736_s0 + $0x218] sm:$0xff] }
  0x51   :  { %2941 = vmatmul.mubr.bf16.gmra.mxu0 %v6035_v46  ;;  %3533 = vmatmul.mubr.bf16.gmra.mxu1 %v6050_v57  ;;  %v6313_v46 = vpack.c.bf16 %v1863_v1, %v1860_v63  ;;  %v6316_v57 = vadd.f32 %v5825_v22, %v673_v7  ;;  %v525_v63 = vld [vmem:[%s11736_s0 + $0xfc8] sm:$0xff]  ;;  %v1725_v1 = vadd.f32 %v5825_v22, %v1120_v43  ;;  %v2310_v36 = vmax.f32 %v1722_v47, 0.0 }
  0x52   :  { %2948 = vmatprep.mubr.bf16.mxu0 %v6052_v58  ;;  %3540 = vmatprep.mubr.bf16.mxu1 %v6074_v9  ;;  %v680_v58 = vmul.f32 %v5804_v14, %v75_v29  ;;  %v683_v9 = vmul.f32 %v5804_v14, %v78_v31  ;;  %v1869_v29 = vmax.f32 %v1281_v27, 0.0  ;;  %v1284_v31 = vadd.f32 %v5825_v22, %v679_v53 }
  0x53   :  { %v1866_v38 = vmax.f32 %v6316_v57, 0.0  ;;  %v1287_v32 = vadd.f32 %v5825_v22, %v682_v28  ;;  %v1130_v34 = vmul.f32 %v5804_v14, %v525_v63  ;;  %v1133_v37 = vmul.f32 %v5804_v14, %v528_v10  ;;  %v534_v10 = vld [vmem:[%s11736_s0 + $0x1010] sm:$0xff] }
  0x54   :  { %v1285_v0 = vadd.f32 %v5817_v19, %v680_v58  ;;  %v1288_v7 = vadd.f32 %v5817_v19, %v683_v9  ;;  %v2313_v39 = vmax.f32 %v1725_v1, 0.0  ;;  %v2317_v41 = vmax.f32 %v1729_v61, 0.0  ;;  %v524_v9 = vld [vmem:[%s11736_s0 + $0xfc0] sm:$0xff]  ;;  %v531_v61 = vld [vmem:[%s11736_s0 + $0xff8] sm:$0xff] }
  0x55   :  { %v2320_v43 = vmax.f32 %v1732_v16, 0.0  ;;  %v685_v58 = vmul.f32 %v5815_v18, %v80_v35  ;;  %v1872_v26 = vmax.f32 %v1284_v31, 0.0  ;;  %v1875_v48 = vmax.f32 %v1287_v32, 0.0  ;;  %v86_v31 = vld [vmem:[%s11736_s0 + $0x210] sm:$0xff]  ;;  %v89_v32 = vld [vmem:[%s11736_s0 + $0x228] sm:$0xff] }
  0x56   :  { %v1873_v57 = vmax.f32 %v1285_v0, 0.0  ;;  %v1876_v40 = vmax.f32 %v1288_v7, 0.0  ;;  %v1735_v50 = vadd.f32 %v5817_v19, %v1130_v34  ;;  %v1738_v51 = vadd.f32 %v5817_v19, %v1133_v37  ;;  %v530_v35 = vld [vmem:[%s11736_s0 + $0xff0] sm:$0xff]  ;;  %v93_v37 = vld [vmem:[%s11736_s0 + $0x248] sm:$0xff] }
  0x57   :  { %v6395_v52 = vpack.c.bf16 %v1869_v29, %v1866_v38  ;;  %v688_v28 = vmul.f32 %v5815_v18, %v83_v42  ;;  %v6401_v54 = vpack.c.bf16 %v2313_v39, %v2310_v36  ;;  %v90_v38 = vld [vmem:[%s11736_s0 + $0x230] sm:$0xff]  ;;  %v6410_v63 = vpack.c.bf16 %v2320_v43, %v2317_v41  ;;  %v533_v36 = vld [vmem:[%s11736_s0 + $0x1008] sm:$0xff]  ;;  %v96_v39 = vld [vmem:[%s11736_s0 + $0x260] sm:$0xff] }
  0x58   :  { %v6403_v47 = vpack.c.bf16 %v1876_v40, %v1873_v57  ;;  %v6413_v7 = vadd.f32 %v5825_v22, %v685_v58  ;;  %v6423_v16 = vpack.c.bf16 %v1875_v48, %v1872_v26  ;;  %v692_v29 = vmul.f32 %v5804_v14, %v87_v45 }
  0x59   :  { %2949 = vmatmul.mubr.bf16.gmra.mxu0 %v6095_v30  ;;  %3541 = vmatmul.mubr.bf16.gmra.mxu1 %v6136_v4  ;;  %v1728_v30 = vadd.f32 %v5825_v22, %v1123_v56  ;;  %v1731_v4 = vadd.f32 %v5825_v22, %v1126_v59  ;;  %v1129_v56 = vmul.f32 %v5815_v18, %v524_v9  ;;  %v537_v9 = vld [vmem:[%s11736_s0 + $0x1028] sm:$0xff] }
  0x5a   :  { %2956 = vmatprep.mubr.bf16.mxu0 %v6138_v6  ;;  %3548 = vmatprep.mubr.bf16.mxu1 %v6150_v17  ;;  %v1291_v6 = vadd.f32 %v5817_v19, %v686_v23  ;;  %v1294_v17 = vadd.f32 %v5817_v19, %v689_v24  ;;  %v1132_v59 = vmul.f32 %v5815_v18, %v527_v11  ;;  %v2323_v23 = vmax.f32 %v1735_v50, 0.0  ;;  %v540_v11 = vld [vmem:[%s11736_s0 + $0x1040] sm:$0xff] }
  0x5b   :  { %v2316_v27 = vmax.f32 %v1728_v30, 0.0  ;;  %v2319_v53 = vmax.f32 %v1731_v4, 0.0  ;;  %v2326_v24 = vmax.f32 %v1738_v51, 0.0  ;;  %v695_v34 = vmul.f32 %v5804_v14, %v90_v38 }
  0x5c   :  { %v1879_v1 = vmax.f32 %v1291_v6, 0.0  ;;  %v1882_v0 = vmax.f32 %v1294_v17, 0.0  ;;  %v6445_v30 = vadd.f32 %v5825_v22, %v1129_v56  ;;  %v1139_v4 = vmul.f32 %v5804_v14, %v534_v10  ;;  %v539_v10 = vld [vmem:[%s11736_s0 + $0x1038] sm:$0xff] }
  0x5d   :  { %v1878_v40 = vmax.f32 %v6413_v7, 0.0  ;;  %v691_v41 = vmul.f32 %v5815_v18, %v86_v31  ;;  %v694_v42 = vmul.f32 %v5815_v18, %v89_v32  ;;  %v6463_v43 = vpack.c.bf16 %v2326_v24, %v2323_v23  ;;  %v5725_v32 = vld [vmem:[%s11735_s3 + $0xa0] sm:$0xff]  }
  0x5e   :  { %v6458_v57 = vpack.c.bf16 %v1882_v0, %v1879_v1  ;;  %v1297_v6 = vadd.f32 %v5817_v19, %v692_v29  ;;  %v1135_v17 = vmul.f32 %v5815_v18, %v530_v35  ;;  %v1138_v58 = vmul.f32 %v5815_v18, %v533_v36  ;;  %v99_v35 = vld [vmem:[%s11736_s0 + $0x278] sm:$0xff]  ;;  %5467 = vmatprep.subr.bf16.mxu1 %v5725_v32 }
  0x5f   :  { %v1300_v48 = vadd.f32 %v5817_v19, %v695_v34  ;;  %v698_v50 = vmul.f32 %v5804_v14, %v93_v37  ;;  %v701_v51 = vmul.f32 %v5804_v14, %v96_v39  ;;  %v1744_v56 = vadd.f32 %v5817_v19, %v1139_v4  ;;  %5468 = vmatpush3.bf16.msra.mxu1 %v5725_v32 }
  0x60   :  { %v1296_v38 = vadd.f32 %v5825_v22, %v691_v41  ;;  %v1299_v1 = vadd.f32 %v5825_v22, %v694_v42  ;;  %v1142_v0 = vmul.f32 %v5804_v14, %v537_v9  ;;  %v1145_v7 = vmul.f32 %v5804_v14, %v540_v11 }
  0x61   :  { %2957 = vmatmul.mubr.bf16.gmra.mxu0 %v6152_v20  ;;  %3549 = vmatmul.mubr.bf16.gmra.mxu1 %v6158_v25  ;;  %v6434_v20 = vpack.c.bf16 %v2319_v53, %v2316_v27  ;;  %v1293_v25 = vadd.f32 %v5825_v22, %v688_v28  ;;  %v92_v27 = vld [vmem:[%s11736_s0 + $0x240] sm:$0xff]  ;;  %v2322_v53 = vmax.f32 %v6445_v30, 0.0  ;;  %v1885_v23 = vmax.f32 %v1297_v6, 0.0 }
  0x62   :  { %2964 = vmatprep.mubr.bf16.mxu0 %v6185_v44  ;;  %3556 = vmatprep.mubr.bf16.mxu1 %v6204_v55  ;;  %v6448_v44 = vadd.f32 %v5825_v22, %v1132_v59  ;;  %v1136_v55 = vmul.f32 %v5804_v14, %v531_v61  ;;  %v95_v59 = vld [vmem:[%s11736_s0 + $0x258] sm:$0xff]  ;;  %v536_v61 = vld [vmem:[%s11736_s0 + $0x1020] sm:$0xff]  ;;  %v1740_v24 = vadd.f32 %v5825_v22, %v1135_v17  ;;  %v2332_v30 = vmax.f32 %v1744_v56, 0.0 }
  0x63   :  { %v1881_v26 = vmax.f32 %v1293_v25, 0.0  ;;  %v1743_v29 = vadd.f32 %v5825_v22, %v1138_v58  ;;  %v697_v31 = vmul.f32 %v5815_v18, %v92_v27  ;;  %v1888_v25 = vmax.f32 %v1300_v48, 0.0  ;;  %v102_v48 = vld [vmem:[%s11736_s0 + $0x290] sm:$0xff]  ;;  %v543_v27 = vld [vmem:[%s11736_s0 + $0x1058] sm:$0xff] }
  0x64   :  { %v2325_v28 = vmax.f32 %v6448_v44, 0.0  ;;  %v1741_v45 = vadd.f32 %v5817_v19, %v1136_v55  ;;  %v700_v34 = vmul.f32 %v5815_v18, %v95_v59  ;;  %v1141_v44 = vmul.f32 %v5815_v18, %v536_v61 }
  0x65   :  { %v1144_v55 = vmul.f32 %v5815_v18, %v539_v10  ;;  %v1747_v4 = vadd.f32 %v5817_v19, %v1142_v0  ;;  %v1750_v37 = vadd.f32 %v5817_v19, %v1145_v7  ;;  %v6517_v39 = vpack.c.bf16 %v1881_v26, %v1878_v40  ;;  %v101_v0 = vld [vmem:[%s11736_s0 + $0x288] sm:$0xff] }
  0x66   :  { %v2329_v36 = vmax.f32 %v1741_v45, 0.0  ;;  %v1302_v41 = vadd.f32 %v5825_v22, %v697_v31  ;;  %v1305_v42 = vadd.f32 %v5825_v22, %v700_v34  ;;  %v704_v6 = vmul.f32 %v5804_v14, %v99_v35  ;;  %v5726_v45 = vld [vmem:[%s11735_s3 + $0x98] sm:$0xff]  }
  0x67   :  { %v2328_v17 = vmax.f32 %v1740_v24, 0.0  ;;  %v2331_v58 = vmax.f32 %v1743_v29, 0.0  ;;  %v1746_v40 = vadd.f32 %v5825_v22, %v1141_v44  ;;  %v1749_v26 = vadd.f32 %v5825_v22, %v1144_v55  ;;  %v542_v24 = vld [vmem:[%s11736_s0 + $0x1050] sm:$0xff]  ;;  %v545_v29 = vld [vmem:[%s11736_s0 + $0x1068] sm:$0xff]  ;;  %5469 = vmatprep.subr.bf16.mxu1 %v5726_v45 }
  0x68   :  { %v6537_v56 = vpack.c.bf16 %v2332_v30, %v2329_v36  ;;  %v1890_v7 = vmax.f32 %v1302_v41, 0.0  ;;  %v1893_v61 = vmax.f32 %v1305_v42, 0.0  ;;  %v707_v10 = vmul.f32 %v5804_v14, %v102_v48  ;;  %v552_v36 = vld [vmem:[%s11736_s0 + $0x10a0] sm:$0xff]  ;;  %5470 = vmatpush3.bf16.msra.mxu1 %v5726_v45 }
  0x69   :  { %2965 = vmatmul.mubr.bf16.gmra.mxu0 %v6212_v60  ;;  %3557 = vmatmul.mubr.bf16.gmra.mxu1 %v6220_v2  ;;  %v1303_v60 = vadd.f32 %v5817_v19, %v698_v50  ;;  %v1306_v2 = vadd.f32 %v5817_v19, %v701_v51  ;;  %v6525_v50 = vpack.c.bf16 %v2325_v28, %v2322_v53  ;;  %v2335_v53 = vmax.f32 %v1747_v4, 0.0  ;;  %v548_v48 = vld [vmem:[%s11736_s0 + $0x1080] sm:$0xff] }
  0x6a   :  { %2972 = vmatprep.mubr.bf16.mxu0 %v6269_v62  ;;  %3564 = vmatprep.mubr.bf16.mxu1 %v6275_v3  ;;  %v1884_v62 = vmax.f32 %v1296_v38, 0.0  ;;  %v1887_v3 = vmax.f32 %v1299_v1, 0.0  ;;  %v6527_v51 = vpack.c.bf16 %v1888_v25, %v1885_v23  ;;  %v2338_v28 = vmax.f32 %v1750_v37, 0.0  ;;  %v546_v38 = vld [vmem:[%s11736_s0 + $0x1070] sm:$0xff]  ;;  %v105_v25 = vld [vmem:[%s11736_s0 + $0x2a8] sm:$0xff] }
  0x6b   :  { %v1891_v9 = vmax.f32 %v1303_v60, 0.0  ;;  %v1894_v11 = vmax.f32 %v1306_v2, 0.0  ;;  %v98_v1 = vld [vmem:[%s11736_s0 + $0x270] sm:$0xff]  ;;  %v6554_v23 = vadd.f32 %v5817_v19, %v704_v6  ;;  %v1148_v32 = vmul.f32 %v5804_v14, %v543_v27  ;;  %v107_v6 = vld [vmem:[%s11736_s0 + $0x2b8] sm:$0xff] }
  0x6c   :  { %v6539_v59 = vpack.c.bf16 %v1887_v3, %v1884_v62  ;;  %v2334_v60 = vmax.f32 %v1746_v40, 0.0  ;;  %v2337_v2 = vmax.f32 %v1749_v26, 0.0  ;;  %v1151_v34 = vmul.f32 %v5804_v14, %v546_v38  ;;  %v104_v3 = vld [vmem:[%s11736_s0 + $0x2a0] sm:$0xff]  ;;  %v551_v40 = vld [vmem:[%s11736_s0 + $0x1098] sm:$0xff] }
  0x6d   :  { %v6569_v31 = vpack.c.bf16 %v1894_v11, %v1891_v9  ;;  %v703_v35 = vmul.f32 %v5815_v18, %v98_v1  ;;  %v6586_v30 = vpack.c.bf16 %v2338_v28, %v2335_v53  ;;  %v706_v44 = vmul.f32 %v5815_v18, %v101_v0  ;;  %v5728_v28 = vld [vmem:[%s11735_s3 + $0x88] sm:$0xff]  }
  0x6e   :  { %v1147_v55 = vmul.f32 %v5815_v18, %v542_v24  ;;  %v1150_v62 = vmul.f32 %v5815_v18, %v545_v29  ;;  %v6594_v4 = vpack.c.bf16 %v1893_v61, %v1890_v7  ;;  %v6597_v37 = vadd.f32 %v5817_v19, %v707_v10  ;;  %v111_v61 = vld [vmem:[%s11736_s0 + $0x2d8] sm:$0xff]  ;;  %v114_v10 = vld [vmem:[%s11736_s0 + $0x2f0] sm:$0xff] }
  0x6f   :  { %v1897_v41 = vmax.f32 %v6554_v23, 0.0  ;;  %v710_v42 = vmul.f32 %v5804_v14, %v105_v25  ;;  %v1157_v11 = vmul.f32 %v5804_v14, %v552_v36  ;;  %v6614_v26 = vpack.c.bf16 %v2337_v2, %v2334_v60  ;;  %v5729_v25 = vld [vmem:[%s11735_s3 + $0x80] sm:$0xff]   ;;  %v555_v2 = vld [vmem:[%s11736_s0 + $0x10b8] sm:$0xff] }
  0x70   :  { %v1756_v27 = vadd.f32 %v5817_v19, %v1151_v34  ;;  %v1308_v45 = vadd.f32 %v5825_v22, %v703_v35  ;;  %v709_v53 = vmul.f32 %v5815_v18, %v104_v3  ;;  %v1311_v38 = vadd.f32 %v5825_v22, %v706_v44 }
  0x71   :  { %2973 = vmatmul.mubr.bf16.gmra.mxu0 %v6277_v8  ;;  %3565 = vmatmul.mubr.bf16.gmra.mxu1 %v6279_v12  ;;  %v5727_v8 = vld [vmem:[%s11735_s3 + $0x90] sm:$0xff]   ;;  %v6567_v12 = vpack.c.bf16 %v2331_v58, %v2328_v17  ;;  %v1753_v17 = vadd.f32 %v5817_v19, %v1148_v32  ;;  %v1752_v1 = vadd.f32 %v5825_v22, %v1147_v55  ;;  %v1900_v23 = vmax.f32 %v6597_v37, 0.0 }
  0x72   :  { %2980 = vmatprep.mubr.bf16.mxu0 %v6281_v13  ;;  %3572 = vmatprep.mubr.bf16.mxu1 %v6302_v33  ;;  %v108_v13 = vld [vmem:[%s11736_s0 + $0x2c0] sm:$0xff]  ;;  %v549_v33 = vld [vmem:[%s11736_s0 + $0x1088] sm:$0xff]  ;;  %v1755_v0 = vadd.f32 %v5825_v22, %v1150_v62  ;;  %v712_v7 = vmul.f32 %v5815_v18, %v107_v6  ;;  %v1315_v24 = vadd.f32 %v5817_v19, %v710_v42  ;;  %v1899_v55 = vmax.f32 %v1311_v38, 0.0 }
  0x73   :  { %5471 = vmatprep.subr.bf16.mxu1 %v5727_v8  ;;  %v713_v58 = vmul.f32 %v5804_v14, %v108_v13  ;;  %v1154_v9 = vmul.f32 %v5804_v14, %v549_v33  ;;  %v1153_v29 = vmul.f32 %v5815_v18, %v548_v48  ;;  %v1156_v32 = vmul.f32 %v5815_v18, %v551_v40 }
  0x74   :  { %5472 = vmatpush3.bf16.msra.mxu1 %v5727_v8  ;;  %v2341_v8 = vmax.f32 %v1753_v17, 0.0  ;;  %v1762_v60 = vadd.f32 %v5817_v19, %v1157_v11  ;;  %v1314_v34 = vadd.f32 %v5825_v22, %v709_v53  ;;  %v1317_v35 = vadd.f32 %v5825_v22, %v712_v7 }
  0x75   :  { %v716_v13 = vmul.f32 %v5804_v14, %v111_v61  ;;  %5473 = vmatprep.subr.bf16.mxu1 %v5728_v28  ;;  %v1896_v33 = vmax.f32 %v1308_v45, 0.0  ;;  %v1758_v36 = vadd.f32 %v5825_v22, %v1153_v29  ;;  %v1761_v44 = vadd.f32 %v5825_v22, %v1156_v32  ;;  %v110_v45 = vld [vmem:[%s11736_s0 + $0x2d0] sm:$0xff]  ;;  %v117_v29 = vld [vmem:[%s11736_s0 + $0x308] sm:$0xff]  ;;  %v120_v32 = vld [vmem:[%s11736_s0 + $0x320] sm:$0xff] }
  0x76   :  { %v2340_v62 = vmax.f32 %v1752_v1, 0.0  ;;  %v2343_v3 = vmax.f32 %v1755_v0, 0.0  ;;  %v1160_v37 = vmul.f32 %v5804_v14, %v555_v2  ;;  %v1903_v42 = vmax.f32 %v1315_v24, 0.0 }
  0x77   :  { %v1902_v11 = vmax.f32 %v1314_v34, 0.0  ;;  %v1905_v48 = vmax.f32 %v1317_v35, 0.0  ;;  %v1321_v40 = vadd.f32 %v5817_v19, %v716_v13  ;;  %v6664_v53 = vpack.c.bf16 %v1900_v23, %v1897_v41  ;;  %v113_v41 = vld [vmem:[%s11736_s0 + $0x2e8] sm:$0xff] }
  0x78   :  { %5474 = vmatpush3.bf16.msra.mxu1 %v5728_v28  ;;  %v2346_v38 = vmax.f32 %v1758_v36, 0.0  ;;  %v2349_v1 = vmax.f32 %v1761_v44, 0.0  ;;  %v6670_v0 = vpack.c.bf16 %v1899_v55, %v1896_v33  ;;  %v6674_v61 = vadd.f32 %v5817_v19, %v1160_v37  ;;  %v563_v33 = vld [vmem:[%s11736_s0 + $0x10f8] sm:$0xff] }
  0x79   :  { %2981 = vmatmul.mubr.bf16.gmra.mxu0 %v6313_v46  ;;  %3573 = vmatmul.mubr.bf16.gmra.mxu1 %v6335_v49  ;;  %v1318_v46 = vadd.f32 %v5817_v19, %v713_v58  ;;  %v1759_v49 = vadd.f32 %v5817_v19, %v1154_v9  ;;  %v2350_v58 = vmax.f32 %v1762_v60, 0.0  ;;  %v558_v9 = vld [vmem:[%s11736_s0 + $0x10d0] sm:$0xff]  ;;  %v715_v24 = vmul.f32 %v5815_v18, %v110_v45  ;;  %v116_v60 = vld [vmem:[%s11736_s0 + $0x300] sm:$0xff] }
  0x7a   :  { %2988 = vmatprep.mubr.bf16.mxu0 %v6338_v21  ;;  %3580 = vmatprep.mubr.bf16.mxu1 %v6363_v15  ;;  %v719_v21 = vmul.f32 %v5804_v14, %v114_v10  ;;  %v2344_v15 = vmax.f32 %v1756_v27, 0.0  ;;  %v1163_v7 = vmul.f32 %v5804_v14, %v558_v9  ;;  %v554_v10 = vld [vmem:[%s11736_s0 + $0x10b0] sm:$0xff]  ;;  %v6711_v2 = vpack.c.bf16 %v2349_v1, %v2346_v38 }
  0x7b   :  { %5475 = vmatprep.subr.bf16.mxu1 %v5729_v25  ;;  %v1906_v6 = vmax.f32 %v1318_v46, 0.0  ;;  %v2347_v17 = vmax.f32 %v1759_v49, 0.0  ;;  %v561_v46 = vld [vmem:[%s11736_s0 + $0x10e8] sm:$0xff]  ;;  %v564_v49 = vld [vmem:[%s11736_s0 + $0x1100] sm:$0xff]  ;;  %v718_v34 = vmul.f32 %v5815_v18, %v113_v41  ;;  %v1159_v35 = vmul.f32 %v5815_v18, %v554_v10 }
  0x7c   :  { %v1324_v27 = vadd.f32 %v5817_v19, %v719_v21  ;;  %v6666_v28 = vpack.c.bf16 %v2344_v15, %v2341_v8  ;;  %5476 = vmatpush3.bf16.msra.mxu1 %v5729_v25  ;;  %v6700_v8 = vpack.c.bf16 %v1905_v48, %v1902_v11  ;;  %v119_v21 = vld [vmem:[%s11736_s0 + $0x318] sm:$0xff]  ;;  %v560_v15 = vld [vmem:[%s11736_s0 + $0x10e0] sm:$0xff]  ;;  %v6726_v36 = vadd.f32 %v5817_v19, %v1163_v7 }
  0x7d   :  { %v6689_v23 = vpack.c.bf16 %v1906_v6, %v1903_v42  ;;  %v6698_v25 = vpack.c.bf16 %v2350_v58, %v2347_v17  ;;  %v2353_v44 = vmax.f32 %v6674_v61, 0.0  ;;  %v722_v55 = vmul.f32 %v5804_v14, %v117_v29  ;;  %v126_v58 = vld [vmem:[%s11736_s0 + $0x350] sm:$0xff] }
  0x7e   :  { %v6735_v37 = vadd.f32 %v5825_v22, %v715_v24  ;;  %v1166_v42 = vmul.f32 %v5804_v14, %v561_v46  ;;  %v1169_v6 = vmul.f32 %v5804_v14, %v564_v49  ;;  %v721_v17 = vmul.f32 %v5815_v18, %v116_v60  ;;  %v570_v24 = vld [vmem:[%s11736_s0 + $0x1130] sm:$0xff] }
  0x7f   :  { %v724_v11 = vmul.f32 %v5815_v18, %v119_v21  ;;  %v1165_v48 = vmul.f32 %v5815_v18, %v560_v15  ;;  %v1764_v45 = vadd.f32 %v5825_v22, %v1159_v35  ;;  %v2356_v7 = vmax.f32 %v6726_v36, 0.0 }
  0x80   :  { %v1327_v61 = vadd.f32 %v5817_v19, %v722_v55  ;;  %v731_v10 = vmul.f32 %v5804_v14, %v126_v58  ;;  %v1774_v29 = vadd.f32 %v5817_v19, %v1169_v6  ;;  %v1175_v35 = vmul.f32 %v5804_v14, %v570_v24 }
  0x81   :  { %2989 = vmatmul.mubr.bf16.gmra.mxu0 %v6395_v52  ;;  %3581 = vmatmul.mubr.bf16.gmra.mxu1 %v6401_v54  ;;  %v557_v52 = vld [vmem:[%s11736_s0 + $0x10c8] sm:$0xff]  ;;  %v6687_v54 = vpack.c.bf16 %v2343_v3, %v2340_v62  ;;  %v725_v62 = vmul.f32 %v5804_v14, %v120_v32  ;;  %v123_v3 = vld [vmem:[%s11736_s0 + $0x338] sm:$0xff]  ;;  %v1326_v32 = vadd.f32 %v5825_v22, %v721_v17 }
  0x82   :  { %2996 = vmatprep.mubr.bf16.mxu0 %v6403_v47  ;;  %3588 = vmatprep.mubr.bf16.mxu1 %v6410_v63  ;;  %v1909_v47 = vmax.f32 %v1321_v40, 0.0  ;;  %v1912_v63 = vmax.f32 %v1324_v27, 0.0  ;;  %v1162_v13 = vmul.f32 %v5815_v18, %v557_v52  ;;  %v1168_v40 = vmul.f32 %v5815_v18, %v563_v33  ;;  %v567_v52 = vld [vmem:[%s11736_s0 + $0x1118] sm:$0xff]  ;;  %v125_v33 = vld [vmem:[%s11736_s0 + $0x348] sm:$0xff] }
  0x83   :  { %v1323_v27 = vadd.f32 %v5825_v22, %v718_v34  ;;  %v728_v1 = vmul.f32 %v5804_v14, %v123_v3  ;;  %v1330_v41 = vadd.f32 %v5817_v19, %v725_v62  ;;  %v1770_v46 = vadd.f32 %v5825_v22, %v1165_v48  ;;  %v569_v48 = vld [vmem:[%s11736_s0 + $0x1128] sm:$0xff] }
  0x84   :  { %v6743_v9 = vpack.c.bf16 %v1912_v63, %v1909_v47  ;;  %v1767_v38 = vadd.f32 %v5825_v22, %v1162_v13  ;;  %v122_v47 = vld [vmem:[%s11736_s0 + $0x330] sm:$0xff]  ;;  %v1329_v63 = vadd.f32 %v5825_v22, %v724_v11  ;;  %v1336_v60 = vadd.f32 %v5817_v19, %v731_v10 }
  0x85   :  { %v1911_v49 = vmax.f32 %v1323_v27, 0.0  ;;  %v1172_v34 = vmul.f32 %v5804_v14, %v567_v52  ;;  %v2352_v13 = vmax.f32 %v1764_v45, 0.0  ;;  %v1915_v15 = vmax.f32 %v1327_v61, 0.0 }
  0x86   :  { %v2355_v21 = vmax.f32 %v1767_v38, 0.0  ;;  %v727_v36 = vmul.f32 %v5815_v18, %v122_v47  ;;  %v1918_v55 = vmax.f32 %v1330_v41, 0.0  ;;  %v2362_v3 = vmax.f32 %v1774_v29, 0.0  ;;  %v128_v29 = vld [vmem:[%s11736_s0 + $0x360] sm:$0xff] }
  0x87   :  { %v1917_v6 = vmax.f32 %v1329_v63, 0.0  ;;  %v2358_v17 = vmax.f32 %v1770_v46, 0.0  ;;  %v1777_v27 = vadd.f32 %v5817_v19, %v1172_v34  ;;  %v1780_v45 = vadd.f32 %v5817_v19, %v1175_v35 }
  0x88   :  { %v730_v38 = vmul.f32 %v5815_v18, %v125_v33  ;;  %v6798_v61 = vadd.f32 %v5825_v22, %v727_v36  ;;  %v6805_v52 = vpack.c.bf16 %v2355_v21, %v2352_v13  ;;  %v1174_v24 = vmul.f32 %v5815_v18, %v569_v48  ;;  %v579_v33 = vld [vmem:[%s11736_s0 + $0x1178] sm:$0xff] }
  0x89   :  { %2997 = vmatmul.mubr.bf16.gmra.mxu0 %v6423_v16  ;;  %3589 = vmatmul.mubr.bf16.gmra.mxu1 %v6434_v20  ;;  %v1908_v16 = vmax.f32 %v6735_v37, 0.0  ;;  %v1771_v20 = vadd.f32 %v5817_v19, %v1166_v42  ;;  %v1914_v37 = vmax.f32 %v1326_v32, 0.0  ;;  %v566_v42 = vld [vmem:[%s11736_s0 + $0x1110] sm:$0xff]  ;;  %v131_v32 = vld [vmem:[%s11736_s0 + $0x378] sm:$0xff]  ;;  %v2365_v63 = vmax.f32 %v1777_v27, 0.0 }
  0x8a   :  { %3004 = vmatprep.mubr.bf16.mxu0 %v6458_v57  ;;  %3596 = vmatprep.mubr.bf16.mxu1 %v6463_v43  ;;  %v1773_v57 = vadd.f32 %v5825_v22, %v1168_v40  ;;  %v1333_v43 = vadd.f32 %v5817_v19, %v728_v1  ;;  %v1924_v40 = vmax.f32 %v1336_v60, 0.0  ;;  %v6795_v1 = vpack.c.bf16 %v2356_v7, %v2353_v44  ;;  %v135_v60 = vld [vmem:[%s11736_s0 + $0x398] sm:$0xff] }
  0x8b   :  { %v2359_v62 = vmax.f32 %v1771_v20, 0.0  ;;  %v1171_v41 = vmul.f32 %v5815_v18, %v566_v42  ;;  %v6803_v10 = vpack.c.bf16 %v1911_v49, %v1908_v16  ;;  %v6817_v44 = vpack.c.bf16 %v1918_v55, %v1915_v15  ;;  %v576_v20 = vld [vmem:[%s11736_s0 + $0x1160] sm:$0xff]  ;;  %v575_v49 = vld [vmem:[%s11736_s0 + $0x1158] sm:$0xff]  ;;  %v138_v15 = vld [vmem:[%s11736_s0 + $0x3b0] sm:$0xff] }
  0x8c   :  { %v2361_v58 = vmax.f32 %v1773_v57, 0.0  ;;  %v1921_v11 = vmax.f32 %v1333_v43, 0.0  ;;  %v6821_v7 = vpack.c.bf16 %v1917_v6, %v1914_v37  ;;  %v2368_v46 = vmax.f32 %v1780_v45, 0.0  ;;  %v572_v43 = vld [vmem:[%s11736_s0 + $0x1140] sm:$0xff]  ;;  %v582_v37 = vld [vmem:[%s11736_s0 + $0x1190] sm:$0xff] }
  0x8d   :  { %v6837_v57 = vadd.f32 %v5825_v22, %v730_v38  ;;  %v1920_v34 = vmax.f32 %v6798_v61, 0.0  ;;  %v6850_v35 = vadd.f32 %v5825_v22, %v1171_v41  ;;  %v6861_v36 = vadd.f32 %v5825_v22, %v1174_v24  ;;  %v143_v61 = vld [vmem:[%s11736_s0 + $0x3d8] sm:$0xff] }
  0x8e   :  { %v6823_v16 = vpack.c.bf16 %v2361_v58, %v2358_v17  ;;  %v6834_v47 = vpack.c.bf16 %v1924_v40, %v1921_v11  ;;  %v736_v42 = vmul.f32 %v5815_v18, %v131_v32  ;;  %v1177_v6 = vmul.f32 %v5815_v18, %v572_v43  ;;  %v581_v32 = vld [vmem:[%s11736_s0 + $0x1188] sm:$0xff] }
  0x8f   :  { %v1180_v17 = vmul.f32 %v5815_v18, %v575_v49  ;;  %v740_v58 = vmul.f32 %v5804_v14, %v135_v60  ;;  %v6873_v11 = vpack.c.bf16 %v2368_v46, %v2365_v63  ;;  %v1923_v48 = vmax.f32 %v6837_v57, 0.0 }
  0x90   :  { %v743_v40 = vmul.f32 %v5804_v14, %v138_v15  ;;  %v1184_v27 = vmul.f32 %v5804_v14, %v579_v33  ;;  %v2364_v45 = vmax.f32 %v6850_v35, 0.0  ;;  %v1187_v24 = vmul.f32 %v5804_v14, %v582_v37 }
  0x91   :  { %3005 = vmatmul.mubr.bf16.gmra.mxu0 %v6517_v39  ;;  %3597 = vmatmul.mubr.bf16.gmra.mxu1 %v6525_v50  ;;  %v129_v39 = vld [vmem:[%s11736_s0 + $0x368] sm:$0xff]  ;;  %v132_v50 = vld [vmem:[%s11736_s0 + $0x380] sm:$0xff]  ;;  %v1785_v63 = vadd.f32 %v5825_v22, %v1180_v17  ;;  %v1345_v46 = vadd.f32 %v5817_v19, %v740_v58  ;;  %v1186_v15 = vmul.f32 %v5815_v18, %v581_v32 }
  0x92   :  { %3012 = vmatprep.mubr.bf16.mxu0 %v6527_v51  ;;  %3604 = vmatprep.mubr.bf16.mxu1 %v6537_v56  ;;  %v573_v51 = vld [vmem:[%s11736_s0 + $0x1148] sm:$0xff]  ;;  %v6819_v56 = vpack.c.bf16 %v2362_v3, %v2359_v62  ;;  %v734_v13 = vmul.f32 %v5804_v14, %v129_v39  ;;  %v737_v21 = vmul.f32 %v5804_v14, %v132_v50  ;;  %v134_v39 = vld [vmem:[%s11736_s0 + $0x390] sm:$0xff]  ;;  %v144_v58 = vld [vmem:[%s11736_s0 + $0x3e0] sm:$0xff] }
  0x93   :  { %v1178_v55 = vmul.f32 %v5804_v14, %v573_v51  ;;  %v1181_v62 = vmul.f32 %v5804_v14, %v576_v20  ;;  %v733_v3 = vmul.f32 %v5815_v18, %v128_v29  ;;  %v137_v50 = vld [vmem:[%s11736_s0 + $0x3a8] sm:$0xff]  ;;  %v578_v29 = vld [vmem:[%s11736_s0 + $0x1170] sm:$0xff]  ;;  %v1348_v57 = vadd.f32 %v5817_v19, %v743_v40 }
  0x94   :  { %v1339_v38 = vadd.f32 %v5817_v19, %v734_v13  ;;  %v1342_v41 = vadd.f32 %v5817_v19, %v737_v21  ;;  %v1789_v43 = vadd.f32 %v5817_v19, %v1184_v27  ;;  %v739_v49 = vmul.f32 %v5815_v18, %v134_v39 }
  0x95   :  { %v1786_v51 = vadd.f32 %v5817_v19, %v1181_v62  ;;  %v1338_v20 = vadd.f32 %v5825_v22, %v733_v3  ;;  %v742_v60 = vmul.f32 %v5815_v18, %v137_v50  ;;  %v1792_v13 = vadd.f32 %v5817_v19, %v1187_v24  ;;  %v141_v3 = vld [vmem:[%s11736_s0 + $0x3c8] sm:$0xff] }
  0x96   :  { %v1927_v35 = vmax.f32 %v1339_v38, 0.0  ;;  %v1183_v21 = vmul.f32 %v5815_v18, %v578_v29  ;;  %v1930_v33 = vmax.f32 %v1342_v41, 0.0  ;;  %v1933_v17 = vmax.f32 %v1345_v46, 0.0  ;;  %v588_v29 = vld [vmem:[%s11736_s0 + $0x11c0] sm:$0xff]  ;;  %v587_v46 = vld [vmem:[%s11736_s0 + $0x11b8] sm:$0xff] }
  0x97   :  { %v1926_v62 = vmax.f32 %v1338_v20, 0.0  ;;  %v1936_v40 = vmax.f32 %v1348_v57, 0.0  ;;  %v2377_v27 = vmax.f32 %v1789_v43, 0.0  ;;  %v1344_v38 = vadd.f32 %v5825_v22, %v739_v49  ;;  %v147_v57 = vld [vmem:[%s11736_s0 + $0x3f8] sm:$0xff]  ;;  %v150_v43 = vld [vmem:[%s11736_s0 + $0x410] sm:$0xff] }
  0x98   :  { %v1347_v41 = vadd.f32 %v5825_v22, %v742_v60  ;;  %v2380_v24 = vmax.f32 %v1792_v13, 0.0  ;;  %v1788_v39 = vadd.f32 %v5825_v22, %v1183_v21  ;;  %v1791_v50 = vadd.f32 %v5825_v22, %v1186_v15  ;;  %v591_v21 = vld [vmem:[%s11736_s0 + $0x11d8] sm:$0xff]  ;;  %v594_v15 = vld [vmem:[%s11736_s0 + $0x11f0] sm:$0xff] }
  0x99   :  { %3013 = vmatmul.mubr.bf16.gmra.mxu0 %v6539_v59  ;;  %3605 = vmatmul.mubr.bf16.gmra.mxu1 %v6567_v12  ;;  %v2367_v59 = vmax.f32 %v6861_v36, 0.0  ;;  %v1783_v12 = vadd.f32 %v5817_v19, %v1178_v55  ;;  %v2374_v55 = vmax.f32 %v1786_v51, 0.0  ;;  %v585_v51 = vld [vmem:[%s11736_s0 + $0x11a8] sm:$0xff]  ;;  %v749_v20 = vmul.f32 %v5804_v14, %v144_v58 }
  0x9a   :  { %3020 = vmatprep.mubr.bf16.mxu0 %v6569_v31  ;;  %3612 = vmatprep.mubr.bf16.mxu1 %v6586_v30  ;;  %v1341_v31 = vadd.f32 %v5825_v22, %v736_v42  ;;  %v1782_v30 = vadd.f32 %v5825_v22, %v1177_v6  ;;  %v2373_v6 = vmax.f32 %v1785_v63, 0.0  ;;  %v6941_v32 = vpack.c.bf16 %v1930_v33, %v1927_v35 }
  0x9b   :  { %v2371_v36 = vmax.f32 %v1783_v12, 0.0  ;;  %v746_v12 = vmul.f32 %v5804_v14, %v141_v3  ;;  %v1190_v63 = vmul.f32 %v5804_v14, %v585_v51  ;;  %v6970_v49 = vpack.c.bf16 %v2380_v24, %v2377_v27  ;;  %v146_v3 = vld [vmem:[%s11736_s0 + $0x3f0] sm:$0xff] }
  0x9c   :  { %v1929_v37 = vmax.f32 %v1341_v31, 0.0  ;;  %v2370_v42 = vmax.f32 %v1782_v30, 0.0  ;;  %v2376_v60 = vmax.f32 %v1788_v39, 0.0  ;;  %v2379_v35 = vmax.f32 %v1791_v50, 0.0 }
  0x9d   :  { %v6943_v31 = vpack.c.bf16 %v2374_v55, %v2371_v36  ;;  %v1351_v13 = vadd.f32 %v5817_v19, %v746_v12  ;;  %v1354_v33 = vadd.f32 %v5817_v19, %v749_v20  ;;  %v1193_v36 = vmul.f32 %v5804_v14, %v588_v29  ;;  %v590_v12 = vld [vmem:[%s11736_s0 + $0x11d0] sm:$0xff]  ;;  %v593_v29 = vld [vmem:[%s11736_s0 + $0x11e8] sm:$0xff] }
  0x9e   :  { %v6945_v30 = vpack.c.bf16 %v1929_v37, %v1926_v62  ;;  %v748_v62 = vmul.f32 %v5815_v18, %v143_v61  ;;  %v149_v37 = vld [vmem:[%s11736_s0 + $0x408] sm:$0xff]  ;;  %v755_v58 = vmul.f32 %v5804_v14, %v150_v43  ;;  %v1795_v27 = vadd.f32 %v5817_v19, %v1190_v63 }
  0x9f   :  { %v7000_v24 = vpack.c.bf16 %v2379_v35, %v2376_v60  ;;  %v751_v39 = vmul.f32 %v5815_v18, %v146_v3  ;;  %v754_v50 = vmul.f32 %v5815_v18, %v149_v37  ;;  %v1939_v51 = vmax.f32 %v1351_v13, 0.0 }
  0xa0   :  { %v1798_v20 = vadd.f32 %v5817_v19, %v1193_v36  ;;  %v1198_v35 = vmul.f32 %v5815_v18, %v593_v29 }
  0xa1   :  { %3021 = vmatmul.mubr.bf16.gmra.mxu0 %v6594_v4  ;;  %3613 = vmatmul.mubr.bf16.gmra.mxu1 %v6614_v26  ;;  %v6933_v4 = vpack.c.bf16 %v1923_v48, %v1920_v34  ;;  %v6935_v26 = vpack.c.bf16 %v2367_v59, %v2364_v45  ;;  %v584_v34 = vld [vmem:[%s11736_s0 + $0x11a0] sm:$0xff]  ;;  %v6958_v48 = vpack.c.bf16 %v1936_v40, %v1933_v17  ;;  %v1932_v45 = vmax.f32 %v1344_v38, 0.0 }
  0xa2   :  { %3028 = vmatprep.mubr.bf16.mxu0 %v6664_v53  ;;  %3620 = vmatprep.mubr.bf16.mxu1 %v6666_v28  ;;  %v6947_v53 = vpack.c.bf16 %v2373_v6, %v2370_v42  ;;  %v140_v28 = vld [vmem:[%s11736_s0 + $0x3c0] sm:$0xff]  ;;  %v1935_v59 = vmax.f32 %v1347_v41, 0.0  ;;  %v1189_v42 = vmul.f32 %v5815_v18, %v584_v34  ;;  %v1192_v6 = vmul.f32 %v5815_v18, %v587_v46 }
  0xa3   :  { %v745_v55 = vmul.f32 %v5815_v18, %v140_v28  ;;  %v752_v17 = vmul.f32 %v5804_v14, %v147_v57  ;;  %v1196_v38 = vmul.f32 %v5804_v14, %v591_v21  ;;  %v1199_v41 = vmul.f32 %v5804_v14, %v594_v15 }
  0xa4   :  { %v6993_v40 = vpack.c.bf16 %v1935_v59, %v1932_v45  ;;  %v1794_v28 = vadd.f32 %v5825_v22, %v1189_v42  ;;  %v1797_v61 = vadd.f32 %v5825_v22, %v1192_v6  ;;  %v1942_v45 = vmax.f32 %v1354_v33, 0.0  ;;  %v156_v33 = vld [vmem:[%s11736_s0 + $0x440] sm:$0xff]  ;;  %v597_v42 = vld [vmem:[%s11736_s0 + $0x1208] sm:$0xff] }
  0xa5   :  { %v1357_v34 = vadd.f32 %v5817_v19, %v752_v17  ;;  %v1801_v59 = vadd.f32 %v5817_v19, %v1196_v38  ;;  %v1804_v63 = vadd.f32 %v5817_v19, %v1199_v41  ;;  %v1195_v46 = vmul.f32 %v5815_v18, %v590_v12  ;;  %v600_v6 = vld [vmem:[%s11736_s0 + $0x1220] sm:$0xff] }
  0xa6   :  { %v2383_v57 = vmax.f32 %v1795_v27, 0.0  ;;  %v1356_v43 = vadd.f32 %v5825_v22, %v751_v39  ;;  %v1359_v60 = vadd.f32 %v5825_v22, %v754_v50  ;;  %v2386_v13 = vmax.f32 %v1798_v20, 0.0  ;;  %v155_v20 = vld [vmem:[%s11736_s0 + $0x438] sm:$0xff] }
  0xa7   :  { %v1945_v3 = vmax.f32 %v1357_v34, 0.0  ;;  %v7038_v17 = vpack.c.bf16 %v1942_v45, %v1939_v51  ;;  %v2392_v27 = vmax.f32 %v1804_v63, 0.0  ;;  %v7041_v38 = vadd.f32 %v5825_v22, %v1195_v46  ;;  %v152_v51 = vld [vmem:[%s11736_s0 + $0x420] sm:$0xff]  ;;  %v159_v34 = vld [vmem:[%s11736_s0 + $0x458] sm:$0xff]  ;;  %v162_v63 = vld [vmem:[%s11736_s0 + $0x470] sm:$0xff] }
  0xa8   :  { %v1944_v41 = vmax.f32 %v1356_v43, 0.0  ;;  %v1947_v39 = vmax.f32 %v1359_v60, 0.0  ;;  %v7046_v50 = vadd.f32 %v5825_v22, %v1198_v35  ;;  %v761_v12 = vmul.f32 %v5804_v14, %v156_v33  ;;  %v603_v46 = vld [vmem:[%s11736_s0 + $0x1238] sm:$0xff] }
  0xa9   :  { %3029 = vmatmul.mubr.bf16.gmra.mxu0 %v6670_v0  ;;  %3621 = vmatmul.mubr.bf16.gmra.mxu1 %v6687_v54  ;;  %v1350_v0 = vadd.f32 %v5825_v22, %v745_v55  ;;  %v1353_v54 = vadd.f32 %v5825_v22, %v748_v62  ;;  %v2382_v55 = vmax.f32 %v1794_v28, 0.0  ;;  %v2385_v62 = vmax.f32 %v1797_v61, 0.0 }
  0xaa   :  { %3036 = vmatprep.mubr.bf16.mxu0 %v6689_v23  ;;  %3628 = vmatprep.mubr.bf16.mxu1 %v6698_v25  ;;  %v1360_v23 = vadd.f32 %v5817_v19, %v755_v58  ;;  %v153_v25 = vld [vmem:[%s11736_s0 + $0x428] sm:$0xff]  ;;  %v2389_v58 = vmax.f32 %v1801_v59, 0.0  ;;  %v7065_v29 = vpack.c.bf16 %v2386_v13, %v2383_v57  ;;  %v757_v45 = vmul.f32 %v5815_v18, %v152_v51  ;;  %v606_v57 = vld [vmem:[%s11736_s0 + $0x1250] sm:$0xff] }
  0xab   :  { %v1938_v21 = vmax.f32 %v1350_v0, 0.0  ;;  %v1941_v15 = vmax.f32 %v1353_v54, 0.0  ;;  %v758_v36 = vmul.f32 %v5804_v14, %v153_v25  ;;  %v1205_v0 = vmul.f32 %v5804_v14, %v600_v6  ;;  %v596_v54 = vld [vmem:[%s11736_s0 + $0x1200] sm:$0xff] }
  0xac   :  { %v1948_v37 = vmax.f32 %v1360_v23, 0.0  ;;  %v7069_v61 = vpack.c.bf16 %v2385_v62, %v2382_v55  ;;  %v7079_v23 = vpack.c.bf16 %v2392_v27, %v2389_v58  ;;  %v2388_v25 = vmax.f32 %v7041_v38, 0.0  ;;  %v165_v38 = vld [vmem:[%s11736_s0 + $0x488] sm:$0xff] }
  0xad   :  { %v7067_v28 = vpack.c.bf16 %v1941_v15, %v1938_v21  ;;  %v760_v59 = vmul.f32 %v5815_v18, %v155_v20  ;;  %v7093_v43 = vpack.c.bf16 %v1947_v39, %v1944_v41  ;;  %v2391_v60 = vmax.f32 %v7046_v50, 0.0  ;;  %v158_v21 = vld [vmem:[%s11736_s0 + $0x450] sm:$0xff]  ;;  %v161_v15 = vld [vmem:[%s11736_s0 + $0x468] sm:$0xff]  ;;  %v168_v41 = vld [vmem:[%s11736_s0 + $0x4a0] sm:$0xff] }
  0xae   :  { %v1366_v35 = vadd.f32 %v5817_v19, %v761_v12  ;;  %v1201_v13 = vmul.f32 %v5815_v18, %v596_v54  ;;  %v7109_v55 = vadd.f32 %v5817_v19, %v1205_v0  ;;  %v767_v6 = vmul.f32 %v5804_v14, %v162_v63 }
  0xaf   :  { %v1208_v58 = vmul.f32 %v5804_v14, %v603_v46  ;;  %v1211_v27 = vmul.f32 %v5804_v14, %v606_v57  ;;  %v1362_v39 = vadd.f32 %v5825_v22, %v757_v45  ;;  %v1365_v50 = vadd.f32 %v5825_v22, %v760_v59 }
  0xb0   :  { %v763_v12 = vmul.f32 %v5815_v18, %v158_v21  ;;  %v766_v51 = vmul.f32 %v5815_v18, %v161_v15  ;;  %v1954_v20 = vmax.f32 %v1366_v35, 0.0  ;;  %v1372_v45 = vadd.f32 %v5817_v19, %v767_v6 }
  0xb1   :  { %3037 = vmatmul.mubr.bf16.gmra.mxu0 %v6700_v8  ;;  %3629 = vmatmul.mubr.bf16.gmra.mxu1 %v6711_v2  ;;  %v7058_v8 = vadd.f32 %v5817_v19, %v758_v36  ;;  %v1202_v2 = vmul.f32 %v5804_v14, %v597_v42  ;;  %v764_v42 = vmul.f32 %v5804_v14, %v159_v34  ;;  %v620_v57 = vsub.s32 2, %v5778_v5 }
  0xb2   :  { %3044 = vmatprep.mubr.bf16.mxu0 %v6743_v9  ;;  %3636 = vmatprep.mubr.bf16.mxu1 %v6795_v1  ;;  %v7071_v9 = vpack.c.bf16 %v1948_v37, %v1945_v3  ;;  %v599_v1 = vld [vmem:[%s11736_s0 + $0x1218] sm:$0xff]  ;;  %v602_v3 = vld [vmem:[%s11736_s0 + $0x1230] sm:$0xff]  ;;  %v605_v37 = vld [vmem:[%s11736_s0 + $0x1248] sm:$0xff]  ;;  %v770_v34 = vmul.f32 %v5804_v14, %v165_v38  ;;  %v1813_v59 = vadd.f32 %v5817_v19, %v1208_v58  ;;  %v1950_v35 = vmax.f32 %v1362_v39, 0.0 }
  0xb3   :  { %v1951_v33 = vmax.f32 %v7058_v8, 0.0  ;;  %v7106_v36 = vadd.f32 %v5817_v19, %v1202_v2  ;;  %v1204_v62 = vmul.f32 %v5815_v18, %v599_v1  ;;  %v1806_v8 = vadd.f32 %v5825_v22, %v1201_v13 }
  0xb4   :  { %v1207_v2 = vmul.f32 %v5815_v18, %v602_v3  ;;  %v1210_v0 = vmul.f32 %v5815_v18, %v605_v37  ;;  %v1816_v63 = vadd.f32 %v5817_v19, %v1211_v27  ;;  %v1371_v46 = vadd.f32 %v5825_v22, %v766_v51  ;;  %v167_v27 = vld [vmem:[%s11736_s0 + $0x498] sm:$0xff] }
  0xb5   :  { %v2395_v54 = vmax.f32 %v7106_v36, 0.0  ;;  %v1809_v1 = vadd.f32 %v5825_v22, %v1204_v62  ;;  %v1953_v13 = vmax.f32 %v1365_v50, 0.0  ;;  %v2394_v36 = vmax.f32 %v1806_v8, 0.0  ;;  %v5730_v50 = vld [vmem:[%s11737_s1] sm:$0x7] }
  0xb6   :  { %v1812_v21 = vadd.f32 %v5825_v22, %v1207_v2  ;;  %v1815_v15 = vadd.f32 %v5825_v22, %v1210_v0  ;;  %v1375_v3 = vadd.f32 %v5817_v19, %v770_v34  ;;  %v1960_v6 = vmax.f32 %v1372_v45, 0.0  ;;  %v31_v34 = vld [vmem:[%s11736_s0 + $0x58] sm:$0xff]  ;;  %v174_v45 = vld [vmem:[%s11736_s0 + $0x4d0] sm:$0xff] }
  0xb7   :  { %v2397_v62 = vmax.f32 %v1809_v1, 0.0  ;;  %v2401_v58 = vmax.f32 %v1813_v59, 0.0  ;;  %v2404_v5 = vmax.f32 %v1816_v63, 0.0  ;;  %v7161_v38 = vpack.c.bf16 %v2391_v60, %v2388_v25  ;;  %v22_v25 = vld [vmem:[%s11736_s0 + $0x10] sm:$0xff]  ;;  %v25_v60 = vld [vmem:[%s11736_s0 + $0x28] sm:$0xff]  ;;  %v28_v1 = vld [vmem:[%s11736_s0 + $0x40] sm:$0xff] }
  0xb8   :  { %v1959_v39 = vmax.f32 %v1371_v46, 0.0  ;;  %v7170_v51 = vpack.c.bf16 %v1954_v20, %v1951_v33  ;;  %v2400_v8 = vmax.f32 %v1812_v21, 0.0  ;;  %v2403_v2 = vmax.f32 %v1815_v15, 0.0  ;;  %v34_v59 = vld [vmem:[%s11736_s0 + $0x70] sm:$0xff]  ;;  %v5731_v46 = vld [vmem:[%s11738_s2] sm:$0x7] }
  0xb9   :  { %3045 = vmatmul.mubr.bf16.gmra.mxu0 %v6803_v10  ;;  %3637 = vmatmul.mubr.bf16.gmra.mxu1 %v6805_v52  ;;  %v773_v10 = vmul.f32 %v5804_v14, %v168_v41  ;;  %v1369_v52 = vadd.f32 %v5817_v19, %v764_v42  ;;  %v772_v20 = vmul.f32 %v5815_v18, %v167_v27  ;;  %v170_v21 = vld [vmem:[%s11736_s0 + $0x4b0] sm:$0xff]  ;;  %v173_v15 = vld [vmem:[%s11736_s0 + $0x4c8] sm:$0xff] }
  0xba   :  { %3052 = vmatprep.mubr.bf16.mxu0 %v6817_v44  ;;  %3644 = vmatprep.mubr.bf16.mxu1 %v6819_v56  ;;  %v2398_v44 = vmax.f32 %v7109_v55, 0.0  ;;  %v1368_v56 = vadd.f32 %v5825_v22, %v763_v12  ;;  %v164_v55 = vld [vmem:[%s11736_s0 + $0x480] sm:$0xff]  ;;  %v7166_v12 = vrot.slane %v5730_v50, %v620_v57  ;;  %v177_v27 = vld [vmem:[%s11736_s0 + $0x4e8] sm:$0xff] }
  0xbb   :  { %v1378_v37 = vadd.f32 %v5817_v19, %v773_v10  ;;  %v1957_v42 = vmax.f32 %v1369_v52, 0.0  ;;  %v769_v0 = vmul.f32 %v5815_v18, %v164_v55  ;;  %v7190_v10 = vpack.c.bf16 %v1953_v13, %v1950_v35  ;;  %v37_v13 = vld [vmem:[%s11736_s0 + $0x88] sm:$0xff]  ;;  %v43_v55 = vld [vmem:[%s11736_s0 + $0xb8] sm:$0xff] }
  0xbc   :  { %v1956_v41 = vmax.f32 %v1368_v56, 0.0  ;;  %v7192_v52 = vpack.c.bf16 %v2397_v62, %v2394_v36  ;;  %v630_v56 = vmul.f32 %v7166_v12, %v25_v60  ;;  %v7214_v35 = vrot.slane %v5731_v46, %v620_v57 }
  0xbd   :  { %v1966_v33 = vmax.f32 %v1378_v37, 0.0  ;;  %v7225_v36 = vpack.c.bf16 %v2403_v2, %v2400_v8  ;;  %v7228_v62 = vadd.f32 %v5825_v22, %v769_v0  ;;  %v633_v57 = vmul.f32 %v7166_v12, %v28_v1  ;;  %v40_v37 = vld [vmem:[%s11736_s0 + $0xa0] sm:$0xff] }
  0xbe   :  { %v7207_v63 = vpack.c.bf16 %v1959_v39, %v1956_v41  ;;  %v180_v41 = vld [vmem:[%s11736_s0 + $0x500] sm:$0xff]  ;;  %v639_v39 = vmul.f32 %v7166_v12, %v34_v59  ;;  %v642_v50 = vmul.f32 %v7166_v12, %v37_v13  ;;  %v775_v8 = vmul.f32 %v5815_v18, %v170_v21 }
  0xbf   :  { %v778_v2 = vmul.f32 %v5815_v18, %v173_v15  ;;  %v1235_v60 = vadd.f32 %v7214_v35, %v630_v56  ;;  %v645_v0 = vmul.f32 %v7166_v12, %v40_v37  ;;  %v782_v1 = vmul.f32 %v5804_v14, %v177_v27 }
  0xc0   :  { %v1244_v56 = vadd.f32 %v7214_v35, %v639_v39  ;;  %v1247_v46 = vadd.f32 %v7214_v35, %v642_v50  ;;  %v1380_v13 = vadd.f32 %v5825_v22, %v775_v8  ;;  %v179_v39 = vld [vmem:[%s11736_s0 + $0x4f8] sm:$0xff] }
  0xc1   :  { %3053 = vmatmul.mubr.bf16.gmra.mxu0 %v6821_v7  ;;  %3645 = vmatmul.mubr.bf16.gmra.mxu1 %v6823_v16  ;;  %v7181_v7 = vpack.c.bf16 %v2398_v44, %v2395_v54  ;;  %v1963_v16 = vmax.f32 %v1375_v3, 0.0  ;;  %v171_v54 = vld [vmem:[%s11736_s0 + $0x4b8] sm:$0xff]  ;;  %v627_v44 = vmul.f32 %v7166_v12, %v22_v25  ;;  %v636_v3 = vmul.f32 %v7166_v12, %v31_v34 }
  0xc2   :  { %3060 = vmatprep.mubr.bf16.mxu0 %v6834_v47  ;;  %3652 = vmatprep.mubr.bf16.mxu1 %v6873_v11  ;;  %v7194_v47 = vpack.c.bf16 %v1960_v6, %v1957_v42  ;;  %v7196_v11 = vpack.c.bf16 %v2404_v5, %v2401_v58  ;;  %v7241_v6 = vadd.f32 %v5825_v22, %v772_v20  ;;  %v1832_v50 = vmax.f32 %v1244_v56, 0.0 }
  0xc3   :  { %v7238_v42 = vpack.c.bf16 %v1966_v33, %v1963_v16  ;;  %v776_v58 = vmul.f32 %v5804_v14, %v171_v54  ;;  %v779_v5 = vmul.f32 %v5804_v14, %v174_v45  ;;  %v1232_v25 = vadd.f32 %v7214_v35, %v627_v44  ;;  %v46_v54 = vld [vmem:[%s11736_s0 + $0xd0] sm:$0xff]  ;;  %v49_v45 = vld [vmem:[%s11736_s0 + $0xe8] sm:$0xff] }
  0xc4   :  { %v648_v16 = vmul.f32 %v7166_v12, %v43_v55  ;;  %v1962_v33 = vmax.f32 %v7228_v62, 0.0  ;;  %v1238_v20 = vadd.f32 %v7214_v35, %v633_v57  ;;  %v785_v34 = vmul.f32 %v5804_v14, %v180_v41  ;;  %v176_v41 = vld [vmem:[%s11736_s0 + $0x4e0] sm:$0xff] }
  0xc5   :  { %v1381_v59 = vadd.f32 %v5817_v19, %v776_v58  ;;  %v1384_v44 = vadd.f32 %v5817_v19, %v779_v5  ;;  %v1383_v21 = vadd.f32 %v5825_v22, %v778_v2  ;;  %v651_v15 = vmul.f32 %v7166_v12, %v46_v54 }
  0xc6   :  { %v654_v62 = vmul.f32 %v7166_v12, %v49_v45  ;;  %v1820_v57 = vmax.f32 %v1232_v25, 0.0  ;;  %v1387_v37 = vadd.f32 %v5817_v19, %v782_v1  ;;  %v1390_v55 = vadd.f32 %v5817_v19, %v785_v34 }
  0xc7   :  { %v1969_v5 = vmax.f32 %v1381_v59, 0.0  ;;  %v1972_v27 = vmax.f32 %v1384_v44, 0.0  ;;  %v1835_v8 = vmax.f32 %v1247_v46, 0.0  ;;  %v1968_v2 = vmax.f32 %v1380_v13, 0.0  ;;  %v55_v59 = vld [vmem:[%s11736_s0 + $0x118] sm:$0xff]  ;;  %v186_v46 = vld [vmem:[%s11736_s0 + $0x530] sm:$0xff] }
  0xc8   :  { %v1971_v25 = vmax.f32 %v1383_v21, 0.0  ;;  %v1259_v1 = vadd.f32 %v7214_v35, %v654_v62  ;;  %v1975_v34 = vmax.f32 %v1387_v37, 0.0  ;;  %v1978_v54 = vmax.f32 %v1390_v55, 0.0  ;;  %v64_v37 = vld [vmem:[%s11736_s0 + $0x160] sm:$0xff]  ;;  %v67_v55 = vld [vmem:[%s11736_s0 + $0x178] sm:$0xff] }
  0xc9   :  { %3061 = vmatmul.mubr.bf16.gmra.mxu0 %v6933_v4  ;;  %3653 = vmatmul.mubr.bf16.gmra.mxu1 %v6935_v26  ;;  %v1965_v4 = vmax.f32 %v7241_v6, 0.0  ;;  %v1241_v26 = vadd.f32 %v7214_v35, %v636_v3  ;;  %v1823_v3 = vmax.f32 %v1235_v60, 0.0  ;;  %v1826_v6 = vmax.f32 %v1238_v20, 0.0  ;;  %v52_v60 = vld [vmem:[%s11736_s0 + $0x100] sm:$0xff] }
  0xca   :  { %3068 = vmatprep.mubr.bf16.mxu0 %v6941_v32  ;;  %3660 = vmatprep.mubr.bf16.mxu1 %v6943_v31  ;;  %v1250_v32 = vadd.f32 %v7214_v35, %v645_v0  ;;  %v1253_v31 = vadd.f32 %v7214_v35, %v648_v16  ;;  %v1256_v20 = vadd.f32 %v7214_v35, %v651_v15  ;;  %v1847_v62 = vmax.f32 %v1259_v1, 0.0 }
  0xcb   :  { %v1829_v58 = vmax.f32 %v1241_v26, 0.0  ;;  %v781_v45 = vmul.f32 %v5815_v18, %v176_v41  ;;  %v784_v26 = vmul.f32 %v5815_v18, %v179_v39  ;;  %v7307_v44 = vpack.c.bf16 %v1823_v3, %v1820_v57  ;;  %v185_v3 = vld [vmem:[%s11736_s0 + $0x528] sm:$0xff]  ;;  %v192_v39 = vld [vmem:[%s11736_s0 + $0x560] sm:$0xff] }
  0xcc   :  { %v1838_v0 = vmax.f32 %v1250_v32, 0.0  ;;  %v1841_v16 = vmax.f32 %v1253_v31, 0.0  ;;  %v7309_v56 = vpack.c.bf16 %v1965_v4, %v1962_v33  ;;  %v7320_v21 = vpack.c.bf16 %v1972_v27, %v1969_v5  ;;  %v58_v33 = vld [vmem:[%s11736_s0 + $0x130] sm:$0xff]  ;;  %v61_v4 = vld [vmem:[%s11736_s0 + $0x148] sm:$0xff] }
  0xcd   :  { %v7318_v13 = vpack.c.bf16 %v1829_v58, %v1826_v6  ;;  %v182_v32 = vld [vmem:[%s11736_s0 + $0x510] sm:$0xff]  ;;  %v1844_v15 = vmax.f32 %v1256_v20, 0.0  ;;  %v660_v57 = vmul.f32 %v7166_v12, %v55_v59  ;;  %v7347_v6 = vpack.c.bf16 %v1978_v54, %v1975_v34  ;;  %v189_v41 = vld [vmem:[%s11736_s0 + $0x548] sm:$0xff] }
  0xce   :  { %v7335_v31 = vpack.c.bf16 %v1841_v16, %v1838_v0  ;;  %v7350_v58 = vadd.f32 %v5825_v22, %v781_v45  ;;  %v7353_v5 = vadd.f32 %v5825_v22, %v784_v26  ;;  %v73_v0 = vld [vmem:[%s11736_s0 + $0x1a8] sm:$0xff]  ;;  %v787_v16 = vmul.f32 %v5815_v18, %v182_v32  ;;  %v191_v32 = vld [vmem:[%s11736_s0 + $0x558] sm:$0xff] }
  0xcf   :  { %v790_v20 = vmul.f32 %v5815_v18, %v185_v3  ;;  %v669_v1 = vmul.f32 %v7166_v12, %v64_v37  ;;  %v672_v34 = vmul.f32 %v7166_v12, %v67_v55  ;;  %v7378_v54 = vpack.c.bf16 %v1847_v62, %v1844_v15 }
  0xd0   :  { %v1265_v45 = vadd.f32 %v7214_v35, %v660_v57  ;;  %v794_v26 = vmul.f32 %v5804_v14, %v189_v41  ;;  %v797_v59 = vmul.f32 %v5804_v14, %v192_v39  ;;  %v1392_v57 = vadd.f32 %v5825_v22, %v787_v16  ;;  %v76_v16 = vld [vmem:[%s11736_s0 + $0x1c0] sm:$0xff] }
  0xd1   :  { %3069 = vmatmul.mubr.bf16.gmra.mxu0 %v6945_v30  ;;  %3661 = vmatmul.mubr.bf16.gmra.mxu1 %v6947_v53  ;;  %v657_v30 = vmul.f32 %v7166_v12, %v52_v60  ;;  %v183_v53 = vld [vmem:[%s11736_s0 + $0x518] sm:$0xff]  ;;  %v70_v60 = vld [vmem:[%s11736_s0 + $0x190] sm:$0xff]  ;;  %v1395_v3 = vadd.f32 %v5825_v22, %v790_v20  ;;  %v1274_v37 = vadd.f32 %v7214_v35, %v669_v1 }
  0xd2   :  { %3076 = vmatprep.mubr.bf16.mxu0 %v6958_v48  ;;  %3668 = vmatprep.mubr.bf16.mxu1 %v6970_v49  ;;  %v7322_v48 = vpack.c.bf16 %v1835_v8, %v1832_v50  ;;  %v7324_v49 = vpack.c.bf16 %v1971_v25, %v1968_v2  ;;  %v788_v27 = vmul.f32 %v5804_v14, %v183_v53  ;;  %v1853_v41 = vmax.f32 %v1265_v45, 0.0  ;;  %v79_v20 = vld [vmem:[%s11736_s0 + $0x1d8] sm:$0xff] }
  0xd3   :  { %v7363_v50 = vadd.f32 %v7214_v35, %v657_v30  ;;  %v791_v8 = vmul.f32 %v5804_v14, %v186_v46  ;;  %v663_v2 = vmul.f32 %v7166_v12, %v58_v33  ;;  %v666_v25 = vmul.f32 %v7166_v12, %v61_v4  ;;  %v188_v4 = vld [vmem:[%s11736_s0 + $0x540] sm:$0xff] }
  0xd4   :  { %v1974_v30 = vmax.f32 %v7350_v58, 0.0  ;;  %v1393_v53 = vadd.f32 %v5817_v19, %v788_v27  ;;  %v675_v46 = vmul.f32 %v7166_v12, %v70_v60  ;;  %v678_v33 = vmul.f32 %v7166_v12, %v73_v0 }
  0xd5   :  { %v1268_v15 = vadd.f32 %v7214_v35, %v663_v2  ;;  %v1271_v62 = vadd.f32 %v7214_v35, %v666_v25  ;;  %v1277_v55 = vadd.f32 %v7214_v35, %v672_v34  ;;  %v793_v58 = vmul.f32 %v5815_v18, %v188_v4 }
  0xd6   :  { %v1850_v27 = vmax.f32 %v7363_v50, 0.0  ;;  %v1280_v39 = vadd.f32 %v7214_v35, %v675_v46  ;;  %v1981_v2 = vmax.f32 %v1393_v53, 0.0  ;;  %v1980_v1 = vmax.f32 %v1392_v57, 0.0 }
  0xd7   :  { %v1856_v60 = vmax.f32 %v1268_v15, 0.0  ;;  %v1859_v0 = vmax.f32 %v1271_v62, 0.0  ;;  %v1983_v34 = vmax.f32 %v1395_v3, 0.0  ;;  %v1862_v50 = vmax.f32 %v1274_v37, 0.0  ;;  %v198_v62 = vld [vmem:[%s11736_s0 + $0x590] sm:$0xff]  ;;  %v85_v37 = vld [vmem:[%s11736_s0 + $0x208] sm:$0xff] }
  0xd8   :  { %v1865_v45 = vmax.f32 %v1277_v55, 0.0  ;;  %v1398_v46 = vadd.f32 %v5825_v22, %v793_v58  ;;  %v1868_v4 = vmax.f32 %v1280_v39, 0.0  ;;  %v684_v15 = vmul.f32 %v7166_v12, %v79_v20  ;;  %v91_v39 = vld [vmem:[%s11736_s0 + $0x238] sm:$0xff]  ;;  %v94_v20 = vld [vmem:[%s11736_s0 + $0x250] sm:$0xff] }
  0xd9   :  { %3077 = vmatmul.mubr.bf16.gmra.mxu0 %v6993_v40  ;;  %3669 = vmatmul.mubr.bf16.gmra.mxu1 %v7000_v24  ;;  %v1977_v40 = vmax.f32 %v7353_v5, 0.0  ;;  %v1396_v24 = vadd.f32 %v5817_v19, %v791_v8  ;;  %v796_v5 = vmul.f32 %v5815_v18, %v191_v32  ;;  %v1283_v8 = vadd.f32 %v7214_v35, %v678_v33 }
  0xda   :  { %3084 = vmatprep.mubr.bf16.mxu0 %v7038_v17  ;;  %3676 = vmatprep.mubr.bf16.mxu1 %v7065_v29  ;;  %v1399_v17 = vadd.f32 %v5817_v19, %v794_v26  ;;  %v1402_v29 = vadd.f32 %v5817_v19, %v797_v59  ;;  %v195_v26 = vld [vmem:[%s11736_s0 + $0x578] sm:$0xff]  ;;  %v7434_v3 = vpack.c.bf16 %v1853_v41, %v1850_v27 }
  0xdb   :  { %v1984_v25 = vmax.f32 %v1396_v24, 0.0  ;;  %v1401_v33 = vadd.f32 %v5825_v22, %v796_v5  ;;  %v1871_v32 = vmax.f32 %v1283_v8, 0.0  ;;  %v681_v24 = vmul.f32 %v7166_v12, %v76_v16  ;;  %v201_v8 = vld [vmem:[%s11736_s0 + $0x5a8] sm:$0xff] }
  0xdc   :  { %v1987_v59 = vmax.f32 %v1399_v17, 0.0  ;;  %v1990_v53 = vmax.f32 %v1402_v29, 0.0  ;;  %v7432_v57 = vpack.c.bf16 %v1977_v40, %v1974_v30  ;;  %v7445_v17 = vpack.c.bf16 %v1859_v0, %v1856_v60  ;;  %v194_v30 = vld [vmem:[%s11736_s0 + $0x570] sm:$0xff]  ;;  %v197_v40 = vld [vmem:[%s11736_s0 + $0x588] sm:$0xff]  ;;  %v88_v29 = vld [vmem:[%s11736_s0 + $0x220] sm:$0xff] }
  0xdd   :  { %v7443_v55 = vpack.c.bf16 %v1984_v25, %v1981_v2  ;;  %v1986_v5 = vmax.f32 %v1398_v46, 0.0  ;;  %v1989_v27 = vmax.f32 %v1401_v33, 0.0  ;;  %v803_v41 = vmul.f32 %v5804_v14, %v198_v62  ;;  %v204_v2 = vld [vmem:[%s11736_s0 + $0x5c0] sm:$0xff] }
  0xde   :  { %v7460_v58 = vpack.c.bf16 %v1990_v53, %v1987_v59  ;;  %v7472_v25 = vpack.c.bf16 %v1871_v32, %v1868_v4  ;;  %v7475_v60 = vadd.f32 %v7214_v35, %v681_v24  ;;  %v7478_v0 = vadd.f32 %v7214_v35, %v684_v15  ;;  %v200_v59 = vld [vmem:[%s11736_s0 + $0x5a0] sm:$0xff]  ;;  %v203_v53 = vld [vmem:[%s11736_s0 + $0x5b8] sm:$0xff] }
  0xdf   :  { %v693_v46 = vmul.f32 %v7166_v12, %v88_v29  ;;  %v696_v33 = vmul.f32 %v7166_v12, %v91_v39  ;;  %v806_v4 = vmul.f32 %v5804_v14, %v201_v8  ;;  %v809_v32 = vmul.f32 %v5804_v14, %v204_v2  ;;  %v100_v29 = vld [vmem:[%s11736_s0 + $0x280] sm:$0xff] }
  0xe0   :  { %v7503_v24 = vpack.c.bf16 %v1989_v27, %v1986_v5  ;;  %v1408_v15 = vadd.f32 %v5817_v19, %v803_v41  ;;  %v699_v62 = vmul.f32 %v7166_v12, %v94_v20  ;;  %v103_v5 = vld [vmem:[%s11736_s0 + $0x298] sm:$0xff] }
  0xe1   :  { %3085 = vmatmul.mubr.bf16.gmra.mxu0 %v7067_v28  ;;  %3677 = vmatmul.mubr.bf16.gmra.mxu1 %v7069_v61  ;;  %v800_v28 = vmul.f32 %v5804_v14, %v195_v26  ;;  %v82_v61 = vld [vmem:[%s11736_s0 + $0x1f0] sm:$0xff]  ;;  %v802_v26 = vmul.f32 %v5815_v18, %v197_v40  ;;  %v808_v40 = vmul.f32 %v5815_v18, %v203_v53 }
  0xe2   :  { %3092 = vmatprep.mubr.bf16.mxu0 %v7071_v9  ;;  %3684 = vmatprep.mubr.bf16.mxu1 %v7079_v23  ;;  %v7447_v9 = vpack.c.bf16 %v1983_v34, %v1980_v1  ;;  %v7449_v23 = vpack.c.bf16 %v1865_v45, %v1862_v50  ;;  %v687_v16 = vmul.f32 %v7166_v12, %v82_v61  ;;  %v97_v1 = vld [vmem:[%s11736_s0 + $0x268] sm:$0xff]  ;;  %v1874_v61 = vmax.f32 %v7475_v60, 0.0 }
  0xe3   :  { %v7488_v34 = vadd.f32 %v5817_v19, %v800_v28  ;;  %v690_v50 = vmul.f32 %v7166_v12, %v85_v37  ;;  %v799_v45 = vmul.f32 %v5815_v18, %v194_v30  ;;  %v702_v28 = vmul.f32 %v7166_v12, %v97_v1 }
  0xe4   :  { %v1292_v37 = vadd.f32 %v7214_v35, %v687_v16  ;;  %v805_v30 = vmul.f32 %v5815_v18, %v200_v59  ;;  %v1407_v41 = vadd.f32 %v5825_v22, %v802_v26  ;;  %v1298_v39 = vadd.f32 %v7214_v35, %v693_v46 }
  0xe5   :  { %v1404_v27 = vadd.f32 %v5825_v22, %v799_v45  ;;  %v1301_v8 = vadd.f32 %v7214_v35, %v696_v33  ;;  %v1411_v2 = vadd.f32 %v5817_v19, %v806_v4  ;;  %v1414_v60 = vadd.f32 %v5817_v19, %v809_v32  ;;  %v207_v33 = vld [vmem:[%s11736_s0 + $0x5d8] sm:$0xff]  ;;  %v210_v4 = vld [vmem:[%s11736_s0 + $0x5f0] sm:$0xff] }
  0xe6   :  { %v708_v16 = vmul.f32 %v7166_v12, %v103_v5  ;;  %v1993_v20 = vmax.f32 %v7488_v34, 0.0  ;;  %v1996_v1 = vmax.f32 %v1408_v15, 0.0  ;;  %v1413_v45 = vadd.f32 %v5825_v22, %v808_v40 }
  0xe7   :  { %v1880_v26 = vmax.f32 %v1292_v37, 0.0  ;;  %v1992_v53 = vmax.f32 %v1404_v27, 0.0  ;;  %v1995_v46 = vmax.f32 %v1407_v41, 0.0  ;;  %v1886_v32 = vmax.f32 %v1298_v39, 0.0  ;;  %v109_v39 = vld [vmem:[%s11736_s0 + $0x2c8] sm:$0xff] }
  0xe8   :  { %v1999_v34 = vmax.f32 %v1411_v2, 0.0  ;;  %v2002_v15 = vmax.f32 %v1414_v60, 0.0  ;;  %v812_v27 = vmul.f32 %v5804_v14, %v207_v33  ;;  %v815_v41 = vmul.f32 %v5804_v14, %v210_v4  ;;  %v209_v60 = vld [vmem:[%s11736_s0 + $0x5e8] sm:$0xff] }
  0xe9   :  { %3093 = vmatmul.mubr.bf16.gmra.mxu0 %v7093_v43  ;;  %3685 = vmatmul.mubr.bf16.gmra.mxu1 %v7161_v38  ;;  %v1877_v43 = vmax.f32 %v7478_v0, 0.0  ;;  %v1295_v38 = vadd.f32 %v7214_v35, %v690_v50  ;;  %v705_v0 = vmul.f32 %v7166_v12, %v100_v29  ;;  %v1410_v50 = vadd.f32 %v5825_v22, %v805_v30 }
  0xea   :  { %3100 = vmatprep.mubr.bf16.mxu0 %v7170_v51  ;;  %3692 = vmatprep.mubr.bf16.mxu1 %v7181_v7  ;;  %v1304_v51 = vadd.f32 %v7214_v35, %v699_v62  ;;  %v1307_v7 = vadd.f32 %v7214_v35, %v702_v28  ;;  %v1889_v62 = vmax.f32 %v1301_v8, 0.0  ;;  %v106_v28 = vld [vmem:[%s11736_s0 + $0x2b0] sm:$0xff]  ;;  %v1313_v29 = vadd.f32 %v7214_v35, %v708_v16 }
  0xeb   :  { %v1883_v59 = vmax.f32 %v1295_v38, 0.0  ;;  %v1310_v40 = vadd.f32 %v7214_v35, %v705_v0  ;;  %v1998_v5 = vmax.f32 %v1410_v50, 0.0  ;;  %v2001_v38 = vmax.f32 %v1413_v45, 0.0  ;;  %v213_v0 = vld [vmem:[%s11736_s0 + $0x608] sm:$0xff]  ;;  %v216_v45 = vld [vmem:[%s11736_s0 + $0x620] sm:$0xff] }
  0xec   :  { %v1892_v37 = vmax.f32 %v1304_v51, 0.0  ;;  %v1895_v30 = vmax.f32 %v1307_v7, 0.0  ;;  %v7557_v8 = vpack.c.bf16 %v1877_v43, %v1874_v61  ;;  %v7559_v2 = vpack.c.bf16 %v1996_v1, %v1993_v20  ;;  %v112_v61 = vld [vmem:[%s11736_s0 + $0x2e0] sm:$0xff]  ;;  %v115_v43 = vld [vmem:[%s11736_s0 + $0x2f8] sm:$0xff] }
  0xed   :  { %v7568_v51 = vpack.c.bf16 %v1883_v59, %v1880_v26  ;;  %v7570_v7 = vpack.c.bf16 %v1995_v46, %v1992_v53  ;;  %v1898_v20 = vmax.f32 %v1310_v40, 0.0  ;;  %v1901_v1 = vmax.f32 %v1313_v29, 0.0  ;;  %v118_v26 = vld [vmem:[%s11736_s0 + $0x310] sm:$0xff]  ;;  %v121_v59 = vld [vmem:[%s11736_s0 + $0x328] sm:$0xff]  ;;  %v127_v40 = vld [vmem:[%s11736_s0 + $0x358] sm:$0xff] }
  0xee   :  { %v7585_v16 = vpack.c.bf16 %v1895_v30, %v1892_v37  ;;  %v714_v50 = vmul.f32 %v7166_v12, %v109_v39  ;;  %v7597_v53 = vpack.c.bf16 %v2001_v38, %v1998_v5  ;;  %v7600_v46 = vadd.f32 %v5817_v19, %v812_v27  ;;  %v124_v30 = vld [vmem:[%s11736_s0 + $0x340] sm:$0xff] }
  0xef   :  { %v7603_v33 = vadd.f32 %v5817_v19, %v815_v41  ;;  %v720_v37 = vmul.f32 %v7166_v12, %v115_v43  ;;  %v818_v29 = vmul.f32 %v5804_v14, %v213_v0  ;;  %v821_v5 = vmul.f32 %v5804_v14, %v216_v45 }
  0xf0   :  { %v723_v38 = vmul.f32 %v7166_v12, %v118_v26  ;;  %v726_v27 = vmul.f32 %v7166_v12, %v121_v59  ;;  %v7628_v41 = vpack.c.bf16 %v1901_v1, %v1898_v20  ;;  %v1319_v39 = vadd.f32 %v7214_v35, %v714_v50  ;;  %v219_v20 = vld [vmem:[%s11736_s0 + $0x638] sm:$0xff]  ;;  %v222_v1 = vld [vmem:[%s11736_s0 + $0x650] sm:$0xff] }
  0xf1   :  { %3101 = vmatmul.mubr.bf16.gmra.mxu0 %v7190_v10  ;;  %3693 = vmatmul.mubr.bf16.gmra.mxu1 %v7192_v52  ;;  %v711_v10 = vmul.f32 %v7166_v12, %v106_v28  ;;  %v206_v52 = vld [vmem:[%s11736_s0 + $0x5d0] sm:$0xff]  ;;  %v717_v28 = vmul.f32 %v7166_v12, %v112_v61  ;;  %v729_v43 = vmul.f32 %v7166_v12, %v124_v30 }
  0xf2   :  { %3108 = vmatprep.mubr.bf16.mxu0 %v7194_v47  ;;  %3700 = vmatprep.mubr.bf16.mxu1 %v7196_v11  ;;  %v7572_v47 = vpack.c.bf16 %v1889_v62, %v1886_v32  ;;  %v7574_v11 = vpack.c.bf16 %v2002_v15, %v1999_v34  ;;  %v811_v4 = vmul.f32 %v5815_v18, %v206_v52  ;;  %v212_v32 = vld [vmem:[%s11736_s0 + $0x600] sm:$0xff]  ;;  %v215_v62 = vld [vmem:[%s11736_s0 + $0x618] sm:$0xff] }
  0xf3   :  { %v7613_v34 = vadd.f32 %v7214_v35, %v711_v10  ;;  %v814_v15 = vmul.f32 %v5815_v18, %v209_v60  ;;  %v817_v10 = vmul.f32 %v5815_v18, %v212_v32  ;;  %v820_v52 = vmul.f32 %v5815_v18, %v215_v62 }
  0xf4   :  { %v2005_v60 = vmax.f32 %v7600_v46, 0.0  ;;  %v1416_v61 = vadd.f32 %v5825_v22, %v811_v4  ;;  %v732_v0 = vmul.f32 %v7166_v12, %v127_v40  ;;  %v1322_v50 = vadd.f32 %v7214_v35, %v717_v28 }
  0xf5   :  { %v1325_v45 = vadd.f32 %v7214_v35, %v720_v37  ;;  %v1423_v26 = vadd.f32 %v5817_v19, %v818_v29  ;;  %v1426_v59 = vadd.f32 %v5817_v19, %v821_v5  ;;  %v1328_v46 = vadd.f32 %v7214_v35, %v723_v38  ;;  %v130_v38 = vld [vmem:[%s11736_s0 + $0x370] sm:$0xff] }
  0xf6   :  { %v1331_v4 = vadd.f32 %v7214_v35, %v726_v27  ;;  %v827_v32 = vmul.f32 %v5804_v14, %v222_v1  ;;  %v1904_v62 = vmax.f32 %v7613_v34, 0.0  ;;  %v1334_v28 = vadd.f32 %v7214_v35, %v729_v43  ;;  %v133_v27 = vld [vmem:[%s11736_s0 + $0x388] sm:$0xff]  ;;  %v218_v43 = vld [vmem:[%s11736_s0 + $0x630] sm:$0xff] }
  0xf7   :  { %v1337_v37 = vadd.f32 %v7214_v35, %v732_v0  ;;  %v2004_v30 = vmax.f32 %v1416_v61, 0.0  ;;  %v1910_v29 = vmax.f32 %v1322_v50, 0.0  ;;  %v1913_v5 = vmax.f32 %v1325_v45, 0.0 }
  0xf8   :  { %v1916_v34 = vmax.f32 %v1328_v46, 0.0  ;;  %v1432_v1 = vadd.f32 %v5817_v19, %v827_v32  ;;  %v1922_v45 = vmax.f32 %v1334_v28, 0.0  ;;  %v738_v46 = vmul.f32 %v7166_v12, %v133_v27  ;;  %v224_v27 = vld [vmem:[%s11736_s0 + $0x660] sm:$0xff] }
  0xf9   :  { %3109 = vmatmul.mubr.bf16.gmra.mxu0 %v7207_v63  ;;  %3701 = vmatmul.mubr.bf16.gmra.mxu1 %v7225_v36  ;;  %v2008_v63 = vmax.f32 %v7603_v33, 0.0  ;;  %v1419_v36 = vadd.f32 %v5825_v22, %v814_v15  ;;  %v824_v33 = vmul.f32 %v5804_v14, %v219_v20  ;;  %v1907_v15 = vmax.f32 %v1319_v39, 0.0 }
  0xfa   :  { %3116 = vmatprep.mubr.bf16.mxu0 %v7238_v42  ;;  %5477 = vmatprep.mubr.bf16.mxu1 %v7307_v44  ;;  %v1422_v42 = vadd.f32 %v5825_v22, %v817_v10  ;;  %v1425_v44 = vadd.f32 %v5825_v22, %v820_v52  ;;  %v2011_v10 = vmax.f32 %v1423_v26, 0.0  ;;  %v2014_v52 = vmax.f32 %v1426_v59, 0.0 }
  0xfb   :  { %v2007_v40 = vmax.f32 %v1419_v36, 0.0  ;;  %v1919_v39 = vmax.f32 %v1331_v4, 0.0  ;;  %v1429_v20 = vadd.f32 %v5817_v19, %v824_v33  ;;  %v1925_v26 = vmax.f32 %v1337_v37, 0.0  ;;  %v221_v4 = vld [vmem:[%s11736_s0 + $0x648] sm:$0xff]  ;;  %v139_v33 = vld [vmem:[%s11736_s0 + $0x3b8] sm:$0xff] }
  0xfc   :  { %v2010_v61 = vmax.f32 %v1422_v42, 0.0  ;;  %v2013_v0 = vmax.f32 %v1425_v44, 0.0  ;;  %v735_v59 = vmul.f32 %v7166_v12, %v130_v38  ;;  %v7686_v42 = vpack.c.bf16 %v2008_v63, %v2005_v60  ;;  %v136_v44 = vld [vmem:[%s11736_s0 + $0x3a0] sm:$0xff]  ;;  %v225_v63 = vld [vmem:[%s11736_s0 + $0x668] sm:$0xff] }
  0xfd   :  { %v7697_v37 = vpack.c.bf16 %v2007_v40, %v2004_v30  ;;  %v7703_v60 = vpack.c.bf16 %v1919_v39, %v1916_v34  ;;  %v2017_v40 = vmax.f32 %v1429_v20, 0.0  ;;  %v145_v38 = vld [vmem:[%s11736_s0 + $0x3e8] sm:$0xff]  ;;  %v7730_v39 = vpack.c.bf16 %v1925_v26, %v1922_v45  ;;  %v148_v20 = vld [vmem:[%s11736_s0 + $0x400] sm:$0xff] }
  0xfe   :  { %v7714_v30 = vpack.c.bf16 %v2013_v0, %v2010_v61  ;;  %v7736_v61 = vadd.f32 %v7214_v35, %v738_v46  ;;  %v741_v0 = vmul.f32 %v7166_v12, %v136_v44  ;;  %v744_v45 = vmul.f32 %v7166_v12, %v139_v33  ;;  %v231_v46 = vld [vmem:[%s11736_s0 + $0x698] sm:$0xff]  ;;  %v234_v44 = vld [vmem:[%s11736_s0 + $0x6b0] sm:$0xff] }
  0xff   :  { %11755 = vst [vmem:[#allocation6_spill] sm:$0xff] %v7730_v39  ;;  %v830_v26 = vmul.f32 %v5804_v14, %v225_v63  ;;  %v829_v33 = vmul.f32 %v5815_v18, %v224_v27  ;;  %v154_v27 = vld [vmem:[%s11736_s0 + $0x430] sm:$0xff] }
 0x101   :  { %v7673_v36 = vpop.f32.mrf.mxu0  ;;  %3117 = vmatmul.mubr.bf16.gmra.mxu0 %v7309_v56  ;;  %v7676_v50 = vpop.f32.mrf.mxu1  ;;  %5478 = vmatmul.mubr.bf16.vlgmr.msra.gmra.mxu1 %v7318_v13  ;;  %v7688_v56 = vpack.c.bf16 %v1907_v15, %v1904_v62  ;;  %v823_v13 = vmul.f32 %v5815_v18, %v218_v43  ;;  %v228_v62 = vld [vmem:[%s11736_s0 + $0x680] sm:$0xff]  ;;  %v142_v15 = vld [vmem:[%s11736_s0 + $0x3d0] sm:$0xff]  ;;  %v7733_v43 = vadd.f32 %v7214_v35, %v735_v59 }
 0x102   :  { %11751 = vst [vmem:[#allocation2_spill] sm:$0xff] %v7673_v36  ;;  %11752 = vst [vmem:[#allocation3_spill] sm:$0xff] %v7676_v50  ;;  %3124 = vmatprep.mubr.bf16.mxu0 %v7320_v21  ;;  %5481 = vmatprep.mubr.bf16.mxu1 %v7322_v48  ;;  %v7699_v21 = vpack.c.bf16 %v1913_v5, %v1910_v29  ;;  %v7701_v48 = vpack.c.bf16 %v2014_v52, %v2011_v10  ;;  %v2020_v29 = vmax.f32 %v1432_v1, 0.0  ;;  %v227_v10 = vld [vmem:[%s11736_s0 + $0x678] sm:$0xff] }
 0x103   :  { %v2928_v32 = vpop.f32.mrf.mxu0  ;;  %v3520_v28 = vpop.f32.mrf.mxu1  ;;  %v826_v5 = vmul.f32 %v5815_v18, %v221_v4  ;;  %v151_v1 = vld [vmem:[%s11736_s0 + $0x418] sm:$0xff]  ;;  %v7746_v4 = vadd.f32 %v5825_v22, %v823_v13  ;;  %v833_v59 = vmul.f32 %v5804_v14, %v228_v62  ;;  %v750_v13 = vmul.f32 %v7166_v12, %v145_v38 }
 0x104   :  { %v832_v63 = vmul.f32 %v5815_v18, %v227_v10  ;;  %v7761_v50 = vpack.c.bf16 %v2020_v29, %v2017_v40  ;;  %v756_v36 = vmul.f32 %v7166_v12, %v151_v1  ;;  %v1928_v38 = vmax.f32 %v7733_v43, 0.0 }
 0x105   :  { %v7726_v52 = vpop.f32.mrf.mxu0  ;;  %v7728_v34 = vpop.f32.mrf.mxu1  ;;  %v7764_v62 = vadd.f32 %v5825_v22, %v826_v5  ;;  %v7776_v40 = vadd.f32 %v7214_v35, %v741_v0  ;;  %v836_v29 = vmul.f32 %v5804_v14, %v231_v46  ;;  %v839_v5 = vmul.f32 %v5804_v14, %v234_v44 }
 0x106   :  { %11753 = vst [vmem:[#allocation4_spill] sm:$0xff] %v7726_v52  ;;  %11754 = vst [vmem:[#allocation5_spill] sm:$0xff] %v7728_v34  ;;  %v747_v34 = vmul.f32 %v7166_v12, %v142_v15  ;;  %v753_v52 = vmul.f32 %v7166_v12, %v148_v20  ;;  %v1349_v10 = vadd.f32 %v7214_v35, %v744_v45 }
 0x107   :  { %v2931_v32 = vpop.f32.mrf.mxu0  ;;  %v3523_v28 = vpop.f32.mrf.mxu1  ;;  %v1435_v43 = vadd.f32 %v5817_v19, %v830_v26  ;;  %v1438_v0 = vadd.f32 %v5817_v19, %v833_v59  ;;  %v1355_v44 = vadd.f32 %v7214_v35, %v750_v13  ;;  %v759_v45 = vmul.f32 %v7166_v12, %v154_v27  ;;  %v230_v27 = vld [vmem:[%s11736_s0 + $0x690] sm:$0xff] }
 0x108   :  { %v1352_v46 = vadd.f32 %v7214_v35, %v747_v34  ;;  %v1434_v32 = vadd.f32 %v5825_v22, %v829_v33  ;;  %v2016_v34 = vmax.f32 %v7746_v4, 0.0  ;;  %v2019_v13 = vmax.f32 %v7764_v62, 0.0 }
 0x109   :  { %v7768_v39 = vpop.f32.mrf.mxu0  ;;  %3125 = vmatmul.mubr.bf16.gmra.mxu0 %v7324_v49  ;;  %v7771_v15 = vpop.f32.mrf.mxu1  ;;  %5482 = vmatmul.mubr.bf16.gmra.mxu1 %v7335_v31  ;;  %v157_v49 = vld [vmem:[%s11736_s0 + $0x448] sm:$0xff]  ;;  %v1931_v31 = vmax.f32 %v7736_v61, 0.0  ;;  %v1361_v61 = vadd.f32 %v7214_v35, %v756_v36  ;;  %v1441_v33 = vadd.f32 %v5817_v19, %v836_v29  ;;  %v2023_v36 = vmax.f32 %v1435_v43, 0.0 }
 0x10a   :  { %11756 = vst [vmem:[#allocation7_spill] sm:$0xff] %v7768_v39  ;;  %11757 = vst [vmem:[#allocation8_spill] sm:$0xff] %v7771_v15  ;;  %3132 = vmatprep.mubr.bf16.mxu0 %v7347_v6  ;;  %5485 = vmatprep.mubr.bf16.mxu1 %v7378_v54  ;;  %v1437_v6 = vadd.f32 %v5825_v22, %v832_v63  ;;  %v1358_v54 = vadd.f32 %v7214_v35, %v753_v52  ;;  %v1934_v52 = vmax.f32 %v7776_v40, 0.0  ;;  %v160_v40 = vld [vmem:[%s11736_s0 + $0x460] sm:$0xff] }
 0x10b   :  { %v2936_v20 = vpop.f32.mrf.mxu0  ;;  %v3528_v1 = vpop.f32.mrf.mxu1  ;;  %v762_v26 = vmul.f32 %v7166_v12, %v157_v49  ;;  %v1444_v63 = vadd.f32 %v5817_v19, %v839_v5  ;;  %v233_v49 = vld [vmem:[%s11736_s0 + $0x6a8] sm:$0xff]  ;;  %v1940_v62 = vmax.f32 %v1352_v46, 0.0  ;;  %v1943_v15 = vmax.f32 %v1355_v44, 0.0 }
 0x10c   :  { %v1937_v20 = vmax.f32 %v1349_v10, 0.0  ;;  %v2026_v1 = vmax.f32 %v1438_v0, 0.0  ;;  %v2022_v29 = vmax.f32 %v1434_v32, 0.0  ;;  %v1946_v5 = vmax.f32 %v1358_v54, 0.0  ;;  %v163_v54 = vld [vmem:[%s11736_s0 + $0x478] sm:$0xff] }
 0x10d   :  { %v7800_v28 = vpop.f32.mrf.mxu0  ;;  %v7802_v59 = vpop.f32.mrf.mxu1  ;;  %v1949_v10 = vmax.f32 %v1361_v61, 0.0  ;;  %v1364_v43 = vadd.f32 %v7214_v35, %v759_v45  ;;  %v1367_v0 = vadd.f32 %v7214_v35, %v762_v26  ;;  %v2029_v46 = vmax.f32 %v1441_v33, 0.0  ;;  %v237_v45 = vld [vmem:[%s11736_s0 + $0x6c8] sm:$0xff]  ;;  %v240_v26 = vld [vmem:[%s11736_s0 + $0x6e0] sm:$0xff] }
 0x10e   :  { %11758 = vst [vmem:[#allocation9_spill] sm:$0xff] %v7800_v28  ;;  %11759 = vst [vmem:[#allocation10_spill] sm:$0xff] %v7802_v59  ;;  %v2025_v28 = vmax.f32 %v1437_v6, 0.0  ;;  %v2032_v44 = vmax.f32 %v1444_v63, 0.0  ;;  %v835_v32 = vmul.f32 %v5815_v18, %v230_v27  ;;  %v838_v6 = vmul.f32 %v5815_v18, %v233_v49  ;;  %v175_v27 = vld [vmem:[%s11736_s0 + $0x4d8] sm:$0xff] }
 0x10f   :  { %v2939_v4 = vpop.f32.mrf.mxu0  ;;  %v3531_v59 = vpop.f32.mrf.mxu1  ;;  %v7833_v61 = vpack.c.bf16 %v1931_v31, %v1928_v38  ;;  %v7844_v63 = vpack.c.bf16 %v1937_v20, %v1934_v52  ;;  %v166_v31 = vld [vmem:[%s11736_s0 + $0x490] sm:$0xff]  ;;  %v7861_v52 = vpack.c.bf16 %v1949_v10, %v1946_v5  ;;  %v1952_v20 = vmax.f32 %v1364_v43, 0.0  ;;  %v243_v43 = vld [vmem:[%s11736_s0 + $0x6f8] sm:$0xff] }
 0x110   :  { %v7850_v38 = vpack.c.bf16 %v2025_v28, %v2022_v29  ;;  %v239_v28 = vld [vmem:[%s11736_s0 + $0x6d8] sm:$0xff]  ;;  %v7877_v29 = vpack.c.bf16 %v2032_v44, %v2029_v46  ;;  %v7883_v5 = vadd.f32 %v5825_v22, %v838_v6  ;;  %v842_v10 = vmul.f32 %v5804_v14, %v237_v45  ;;  %v178_v6 = vld [vmem:[%s11736_s0 + $0x4f0] sm:$0xff]  ;;  %v181_v45 = vld [vmem:[%s11736_s0 + $0x508] sm:$0xff] }
 0x111   :  { %v7820_v39 = vpop.f32.mrf.mxu0  ;;  %3133 = vmatmul.mubr.bf16.gmra.mxu0 %v7432_v57  ;;  %v7823_v4 = vpop.f32.mrf.mxu1  ;;  %5486 = vmatmul.mubr.bf16.gmra.mxu1 %v7434_v3  ;;  %v7835_v57 = vpack.c.bf16 %v2019_v13, %v2016_v34  ;;  %v765_v3 = vmul.f32 %v7166_v12, %v160_v40  ;;  %v169_v34 = vld [vmem:[%s11736_s0 + $0x4a8] sm:$0xff]  ;;  %v236_v13 = vld [vmem:[%s11736_s0 + $0x6c0] sm:$0xff]  ;;  %v7880_v40 = vadd.f32 %v5825_v22, %v835_v32 }
 0x112   :  { %11760 = vst [vmem:[#allocation11_spill] sm:$0xff] %v7820_v39  ;;  %11761 = vst [vmem:[#allocation12_spill] sm:$0xff] %v7823_v4  ;;  %3140 = vmatprep.mubr.bf16.mxu0 %v7443_v55  ;;  %5489 = vmatprep.mubr.bf16.mxu1 %v7445_v17  ;;  %v7846_v55 = vpack.c.bf16 %v2026_v1, %v2023_v36  ;;  %v7848_v17 = vpack.c.bf16 %v1943_v15, %v1940_v62  ;;  %v1955_v36 = vmax.f32 %v1367_v0, 0.0  ;;  %v172_v1 = vld [vmem:[%s11736_s0 + $0x4c0] sm:$0xff]  ;;  %v246_v0 = vld [vmem:[%s11736_s0 + $0x710] sm:$0xff] }
 0x113   :  { %v2944_v59 = vpop.f32.mrf.mxu0  ;;  %v3536_v33 = vpop.f32.mrf.mxu1  ;;  %v768_v15 = vmul.f32 %v7166_v12, %v163_v54  ;;  %11764 = vst [vmem:[#allocation15_spill] sm:$0xff] %v7877_v29  ;;  %v7893_v54 = vadd.f32 %v7214_v35, %v765_v3  ;;  %v845_v46 = vmul.f32 %v5804_v14, %v240_v26  ;;  %v771_v44 = vmul.f32 %v7166_v12, %v166_v31 }
 0x114   :  { %v774_v32 = vmul.f32 %v7166_v12, %v169_v34  ;;  %v844_v3 = vmul.f32 %v5815_v18, %v239_v28  ;;  %v777_v26 = vmul.f32 %v7166_v12, %v172_v1  ;;  %v780_v31 = vmul.f32 %v7166_v12, %v175_v27  ;;  %v242_v1 = vld [vmem:[%s11736_s0 + $0x6f0] sm:$0xff] }
 0x115   :  { %v7873_v49 = vpop.f32.mrf.mxu0  ;;  %v7875_v62 = vpop.f32.mrf.mxu1  ;;  %v7908_v4 = vpack.c.bf16 %v1955_v36, %v1952_v20  ;;  %v7911_v34 = vadd.f32 %v7214_v35, %v768_v15  ;;  %v851_v39 = vmul.f32 %v5804_v14, %v246_v0  ;;  %v2028_v28 = vmax.f32 %v7880_v40, 0.0 }
 0x116   :  { %11762 = vst [vmem:[#allocation13_spill] sm:$0xff] %v7873_v49  ;;  %11763 = vst [vmem:[#allocation14_spill] sm:$0xff] %v7875_v62  ;;  %v841_v62 = vmul.f32 %v5815_v18, %v236_v13  ;;  %v848_v49 = vmul.f32 %v5804_v14, %v243_v43  ;;  %v7923_v20 = vadd.f32 %v5817_v19, %v842_v10 }
 0x117   :  { %v2947_v59 = vpop.f32.mrf.mxu0  ;;  %v3539_v33 = vpop.f32.mrf.mxu1  ;;  %v783_v36 = vmul.f32 %v7166_v12, %v178_v6  ;;  %v786_v15 = vmul.f32 %v7166_v12, %v181_v45  ;;  %v1450_v27 = vadd.f32 %v5817_v19, %v845_v46  ;;  %v1376_v40 = vadd.f32 %v7214_v35, %v771_v44 }
 0x118   :  { %v1379_v10 = vadd.f32 %v7214_v35, %v774_v32  ;;  %v1446_v6 = vadd.f32 %v5825_v22, %v841_v62  ;;  %v1449_v45 = vadd.f32 %v5825_v22, %v844_v3  ;;  %v1382_v59 = vadd.f32 %v7214_v35, %v777_v26 }
 0x119   :  { %v7915_v29 = vpop.f32.mrf.mxu0  ;;  %3141 = vmatmul.mubr.bf16.gmra.mxu0 %v7447_v9  ;;  %v7918_v13 = vpop.f32.mrf.mxu1  ;;  %5490 = vmatmul.mubr.bf16.gmra.mxu1 %v7449_v23  ;;  %v245_v9 = vld [vmem:[%s11736_s0 + $0x708] sm:$0xff]  ;;  %v2031_v23 = vmax.f32 %v7883_v5, 0.0  ;;  %v1456_v5 = vadd.f32 %v5817_v19, %v851_v39  ;;  %v847_v46 = vmul.f32 %v5815_v18, %v242_v1  ;;  %v1958_v62 = vmax.f32 %v7893_v54, 0.0  ;;  %v184_v1 = vld [vmem:[%s11736_s0 + $0x520] sm:$0xff] }
 0x11a   :  { %11765 = vst [vmem:[#allocation16_spill] sm:$0xff] %v7915_v29  ;;  %11766 = vst [vmem:[#allocation17_spill] sm:$0xff] %v7918_v13  ;;  %3148 = vmatprep.mubr.bf16.mxu0 %v7460_v58  ;;  %5493 = vmatprep.mubr.bf16.mxu1 %v7472_v25  ;;  %v1385_v58 = vadd.f32 %v7214_v35, %v780_v31  ;;  %v1453_v25 = vadd.f32 %v5817_v19, %v848_v49  ;;  %v1961_v3 = vmax.f32 %v7911_v34, 0.0 }
 0x11b   :  { %v2952_v43 = vpop.f32.mrf.mxu0  ;;  %v3544_v0 = vpop.f32.mrf.mxu1  ;;  %v850_v44 = vmul.f32 %v5815_v18, %v245_v9  ;;  %v1388_v26 = vadd.f32 %v7214_v35, %v783_v36  ;;  %v1391_v31 = vadd.f32 %v7214_v35, %v786_v15  ;;  %v2035_v49 = vmax.f32 %v7923_v20, 0.0  ;;  %v187_v9 = vld [vmem:[%s11736_s0 + $0x538] sm:$0xff]  ;;  %v249_v20 = vld [vmem:[%s11736_s0 + $0x728] sm:$0xff] }
 0x11c   :  { %v2038_v43 = vmax.f32 %v1450_v27, 0.0  ;;  %v1964_v39 = vmax.f32 %v1376_v40, 0.0  ;;  %v1967_v0 = vmax.f32 %v1379_v10, 0.0  ;;  %v2034_v34 = vmax.f32 %v1446_v6, 0.0 }
 0x11d   :  { %v7947_v33 = vpop.f32.mrf.mxu0  ;;  %v7949_v32 = vpop.f32.mrf.mxu1  ;;  %v2037_v13 = vmax.f32 %v1449_v45, 0.0  ;;  %v1970_v36 = vmax.f32 %v1382_v59, 0.0  ;;  %v2041_v15 = vmax.f32 %v1453_v25, 0.0  ;;  %v2044_v27 = vmax.f32 %v1456_v5, 0.0  ;;  %v252_v25 = vld [vmem:[%s11736_s0 + $0x740] sm:$0xff] }
 0x11e   :  { %11767 = vst [vmem:[#allocation18_spill] sm:$0xff] %v7947_v33  ;;  %11768 = vst [vmem:[#allocation19_spill] sm:$0xff] %v7949_v32  ;;  %v1973_v33 = vmax.f32 %v1385_v58, 0.0  ;;  %v1452_v40 = vadd.f32 %v5825_v22, %v847_v46  ;;  %v1455_v10 = vadd.f32 %v5825_v22, %v850_v44  ;;  %v1976_v6 = vmax.f32 %v1388_v26, 0.0  ;;  %v190_v46 = vld [vmem:[%s11736_s0 + $0x550] sm:$0xff]  ;;  %v193_v44 = vld [vmem:[%s11736_s0 + $0x568] sm:$0xff] }
 0x11f   :  { %v2955_v54 = vpop.f32.mrf.mxu0  ;;  %v3547_v32 = vpop.f32.mrf.mxu1  ;;  %v1979_v45 = vmax.f32 %v1391_v31, 0.0  ;;  %v789_v59 = vmul.f32 %v7166_v12, %v184_v1  ;;  %v792_v58 = vmul.f32 %v7166_v12, %v187_v9  ;;  %v7980_v5 = vpack.c.bf16 %v2031_v23, %v2028_v28  ;;  %v248_v23 = vld [vmem:[%s11736_s0 + $0x720] sm:$0xff]  ;;  %v258_v1 = vld [vmem:[%s11736_s0 + $0x770] sm:$0xff] }
 0x120   :  { %v7991_v31 = vpack.c.bf16 %v2038_v43, %v2035_v49  ;;  %v7997_v28 = vpack.c.bf16 %v1973_v33, %v1970_v36  ;;  %v8008_v49 = vpack.c.bf16 %v2044_v27, %v2041_v15  ;;  %v2040_v43 = vmax.f32 %v1452_v40, 0.0  ;;  %v199_v33 = vld [vmem:[%s11736_s0 + $0x598] sm:$0xff]  ;;  %v202_v40 = vld [vmem:[%s11736_s0 + $0x5b0] sm:$0xff] }
 0x121   :  { %v7967_v29 = vpop.f32.mrf.mxu0  ;;  %3149 = vmatmul.mubr.bf16.gmra.mxu0 %v7503_v24  ;;  %v7970_v54 = vpop.f32.mrf.mxu1  ;;  %5494 = vmatmul.mubr.bf16.gmra.mxu1 %v7557_v8  ;;  %v7982_v24 = vpack.c.bf16 %v1961_v3, %v1958_v62  ;;  %v854_v8 = vmul.f32 %v5804_v14, %v249_v20  ;;  %v251_v62 = vld [vmem:[%s11736_s0 + $0x738] sm:$0xff]  ;;  %v196_v3 = vld [vmem:[%s11736_s0 + $0x580] sm:$0xff]  ;;  %v8024_v36 = vpack.c.bf16 %v1979_v45, %v1976_v6 }
 0x122   :  { %11769 = vst [vmem:[#allocation20_spill] sm:$0xff] %v7967_v29  ;;  %11770 = vst [vmem:[#allocation21_spill] sm:$0xff] %v7970_v54  ;;  %3156 = vmatprep.mubr.bf16.mxu0 %v7559_v2  ;;  %5497 = vmatprep.mubr.bf16.mxu1 %v7568_v51  ;;  %v7993_v2 = vpack.c.bf16 %v1967_v0, %v1964_v39  ;;  %v7995_v51 = vpack.c.bf16 %v2037_v13, %v2034_v34  ;;  %v2043_v39 = vmax.f32 %v1455_v10, 0.0  ;;  %v255_v0 = vld [vmem:[%s11736_s0 + $0x758] sm:$0xff]  ;;  %v205_v10 = vld [vmem:[%s11736_s0 + $0x5c8] sm:$0xff] }
 0x123   :  { %v2960_v32 = vpop.f32.mrf.mxu0  ;;  %v3552_v26 = vpop.f32.mrf.mxu1  ;;  %v857_v13 = vmul.f32 %v5804_v14, %v252_v25  ;;  %11773 = vst [vmem:[#allocation24_spill] sm:$0xff] %v8024_v36  ;;  %v8027_v20 = vadd.f32 %v7214_v35, %v789_v59  ;;  %v8030_v15 = vadd.f32 %v7214_v35, %v792_v58  ;;  %v795_v27 = vmul.f32 %v7166_v12, %v190_v46  ;;  %v254_v58 = vld [vmem:[%s11736_s0 + $0x750] sm:$0xff]  ;;  %v257_v46 = vld [vmem:[%s11736_s0 + $0x768] sm:$0xff] }
 0x124   :  { %v8040_v25 = vadd.f32 %v5817_v19, %v854_v8  ;;  %v798_v6 = vmul.f32 %v7166_v12, %v193_v44  ;;  %v853_v45 = vmul.f32 %v5815_v18, %v248_v23  ;;  %v856_v59 = vmul.f32 %v5815_v18, %v251_v62 }
 0x125   :  { %v8020_v9 = vpop.f32.mrf.mxu0  ;;  %v8022_v34 = vpop.f32.mrf.mxu1  ;;  %v804_v8 = vmul.f32 %v7166_v12, %v199_v33  ;;  %v860_v44 = vmul.f32 %v5804_v14, %v255_v0  ;;  %v863_v23 = vmul.f32 %v5804_v14, %v258_v1  ;;  %v8055_v54 = vpack.c.bf16 %v2043_v39, %v2040_v43  ;;  %v208_v0 = vld [vmem:[%s11736_s0 + $0x5e0] sm:$0xff] }
 0x126   :  { %11771 = vst [vmem:[#allocation22_spill] sm:$0xff] %v8020_v9  ;;  %11772 = vst [vmem:[#allocation23_spill] sm:$0xff] %v8022_v34  ;;  %v801_v34 = vmul.f32 %v7166_v12, %v196_v3  ;;  %v8058_v62 = vadd.f32 %v5817_v19, %v857_v13  ;;  %v807_v9 = vmul.f32 %v7166_v12, %v202_v40  ;;  %v1982_v33 = vmax.f32 %v8027_v20, 0.0 }
 0x127   :  { %v2963_v32 = vpop.f32.mrf.mxu0  ;;  %v3555_v26 = vpop.f32.mrf.mxu1  ;;  %v810_v29 = vmul.f32 %v7166_v12, %v205_v10  ;;  %v8070_v43 = vadd.f32 %v7214_v35, %v795_v27  ;;  %v859_v39 = vmul.f32 %v5815_v18, %v254_v58  ;;  %v862_v13 = vmul.f32 %v5815_v18, %v257_v46 }
 0x128   :  { %v1403_v1 = vadd.f32 %v7214_v35, %v798_v6  ;;  %v1458_v20 = vadd.f32 %v5825_v22, %v853_v45  ;;  %v1461_v27 = vadd.f32 %v5825_v22, %v856_v59  ;;  %v1406_v58 = vadd.f32 %v7214_v35, %v801_v34 }
 0x129   :  { %v8062_v36 = vpop.f32.mrf.mxu0  ;;  %3157 = vmatmul.mubr.bf16.gmra.mxu0 %v7570_v7  ;;  %v8065_v3 = vpop.f32.mrf.mxu1  ;;  %5498 = vmatmul.mubr.bf16.gmra.mxu1 %v7572_v47  ;;  %v211_v7 = vld [vmem:[%s11736_s0 + $0x5f8] sm:$0xff]  ;;  %v1985_v47 = vmax.f32 %v8030_v15, 0.0  ;;  %v1409_v46 = vadd.f32 %v7214_v35, %v804_v8  ;;  %v1465_v32 = vadd.f32 %v5817_v19, %v860_v44  ;;  %v1415_v15 = vadd.f32 %v7214_v35, %v810_v29 }
 0x12a   :  { %11774 = vst [vmem:[#allocation25_spill] sm:$0xff] %v8062_v36  ;;  %11775 = vst [vmem:[#allocation26_spill] sm:$0xff] %v8065_v3  ;;  %3164 = vmatprep.mubr.bf16.mxu0 %v7574_v11  ;;  %5501 = vmatprep.mubr.bf16.mxu1 %v7585_v16  ;;  %v1468_v11 = vadd.f32 %v5817_v19, %v863_v23  ;;  %v1412_v16 = vadd.f32 %v7214_v35, %v807_v9  ;;  %v2047_v34 = vmax.f32 %v8040_v25, 0.0 }
 0x12b   :  { %v2968_v40 = vpop.f32.mrf.mxu0  ;;  %v3560_v10 = vpop.f32.mrf.mxu1  ;;  %v813_v6 = vmul.f32 %v7166_v12, %v208_v0  ;;  %v816_v45 = vmul.f32 %v7166_v12, %v211_v7  ;;  %v2050_v8 = vmax.f32 %v8058_v62, 0.0  ;;  %v1464_v44 = vadd.f32 %v5825_v22, %v859_v39  ;;  %v261_v0 = vld [vmem:[%s11736_s0 + $0x788] sm:$0xff]  ;;  %v264_v7 = vld [vmem:[%s11736_s0 + $0x7a0] sm:$0xff] }
 0x12c   :  { %v1467_v23 = vadd.f32 %v5825_v22, %v862_v13  ;;  %v1988_v9 = vmax.f32 %v8070_v43, 0.0  ;;  %v1991_v40 = vmax.f32 %v1403_v1, 0.0  ;;  %v2046_v29 = vmax.f32 %v1458_v20, 0.0  ;;  %v214_v43 = vld [vmem:[%s11736_s0 + $0x610] sm:$0xff] }
 0x12d   :  { %v8094_v26 = vpop.f32.mrf.mxu0  ;;  %v8096_v59 = vpop.f32.mrf.mxu1  ;;  %v2049_v10 = vmax.f32 %v1461_v27, 0.0  ;;  %v1994_v62 = vmax.f32 %v1406_v58, 0.0  ;;  %v1997_v3 = vmax.f32 %v1409_v46, 0.0  ;;  %v2053_v39 = vmax.f32 %v1465_v32, 0.0 }
 0x12e   :  { %11776 = vst [vmem:[#allocation27_spill] sm:$0xff] %v8094_v26  ;;  %11777 = vst [vmem:[#allocation28_spill] sm:$0xff] %v8096_v59  ;;  %v2056_v26 = vmax.f32 %v1468_v11, 0.0  ;;  %v2000_v13 = vmax.f32 %v1412_v16, 0.0  ;;  %v2003_v1 = vmax.f32 %v1415_v15, 0.0  ;;  %v1418_v20 = vadd.f32 %v7214_v35, %v813_v6  ;;  %v217_v16 = vld [vmem:[%s11736_s0 + $0x628] sm:$0xff] }
 0x12f   :  { %v2971_v25 = vpop.f32.mrf.mxu0  ;;  %v3563_v59 = vpop.f32.mrf.mxu1  ;;  %v1421_v27 = vadd.f32 %v7214_v35, %v816_v45  ;;  %v2052_v58 = vmax.f32 %v1464_v44, 0.0  ;;  %v2055_v46 = vmax.f32 %v1467_v23, 0.0  ;;  %v866_v32 = vmul.f32 %v5804_v14, %v261_v0  ;;  %v260_v6 = vld [vmem:[%s11736_s0 + $0x780] sm:$0xff]  ;;  %v263_v45 = vld [vmem:[%s11736_s0 + $0x798] sm:$0xff]  ;;  %v229_v0 = vld [vmem:[%s11736_s0 + $0x688] sm:$0xff] }
 0x130   :  { %v869_v11 = vmul.f32 %v5804_v14, %v264_v7  ;;  %v8127_v15 = vpack.c.bf16 %v1985_v47, %v1982_v33  ;;  %v8138_v23 = vpack.c.bf16 %v1991_v40, %v1988_v9  ;;  %v8144_v33 = vpack.c.bf16 %v2056_v26, %v2053_v39  ;;  %v220_v47 = vld [vmem:[%s11736_s0 + $0x640] sm:$0xff]  ;;  %v270_v26 = vld [vmem:[%s11736_s0 + $0x7d0] sm:$0xff] }
 0x131   :  { %v8114_v36 = vpop.f32.mrf.mxu0  ;;  %3165 = vmatmul.mubr.bf16.gmra.mxu0 %v7597_v53  ;;  %v8117_v25 = vpop.f32.mrf.mxu1  ;;  %5502 = vmatmul.mubr.bf16.gmra.mxu1 %v7628_v41  ;;  %v8129_v53 = vpack.c.bf16 %v2050_v8, %v2047_v34  ;;  %v819_v41 = vmul.f32 %v7166_v12, %v214_v43  ;;  %v223_v34 = vld [vmem:[%s11736_s0 + $0x658] sm:$0xff]  ;;  %v8155_v9 = vpack.c.bf16 %v2003_v1, %v2000_v13  ;;  %v2006_v40 = vmax.f32 %v1418_v20, 0.0  ;;  %v266_v20 = vld [vmem:[%s11736_s0 + $0x7b0] sm:$0xff] }
 0x132   :  { %11778 = vst [vmem:[#allocation29_spill] sm:$0xff] %v8114_v36  ;;  %11779 = vst [vmem:[#allocation30_spill] sm:$0xff] %v8117_v25  ;;  %3172 = vmatprep.mubr.bf16.mxu0 %v7686_v42  ;;  %5505 = vmatprep.mubr.bf16.mxu1 %v7688_v56  ;;  %v8140_v42 = vpack.c.bf16 %v2049_v10, %v2046_v29  ;;  %v8142_v56 = vpack.c.bf16 %v1997_v3, %v1994_v62  ;;  %v267_v8 = vld [vmem:[%s11736_s0 + $0x7b8] sm:$0xff]  ;;  %v2009_v29 = vmax.f32 %v1421_v27, 0.0  ;;  %v226_v10 = vld [vmem:[%s11736_s0 + $0x670] sm:$0xff] }
 0x133   :  { %v2976_v59 = vpop.f32.mrf.mxu0  ;;  %v3568_v44 = vpop.f32.mrf.mxu1  ;;  %v822_v3 = vmul.f32 %v7166_v12, %v217_v16  ;;  %v8171_v39 = vpack.c.bf16 %v2055_v46, %v2052_v58  ;;  %v8174_v43 = vadd.f32 %v5817_v19, %v866_v32  ;;  %v8177_v13 = vadd.f32 %v5817_v19, %v869_v11  ;;  %v269_v27 = vld [vmem:[%s11736_s0 + $0x7c8] sm:$0xff]  ;;  %v232_v11 = vld [vmem:[%s11736_s0 + $0x6a0] sm:$0xff] }
 0x134   :  { %v865_v1 = vmul.f32 %v5815_v18, %v260_v6  ;;  %v8187_v16 = vadd.f32 %v7214_v35, %v819_v41  ;;  %v868_v58 = vmul.f32 %v5815_v18, %v263_v45  ;;  %v825_v46 = vmul.f32 %v7166_v12, %v220_v47  ;;  %v235_v6 = vld [vmem:[%s11736_s0 + $0x6b8] sm:$0xff] }
 0x135   :  { %v8167_v7 = vpop.f32.mrf.mxu0  ;;  %v8169_v62 = vpop.f32.mrf.mxu1  ;;  %11782 = vst [vmem:[#allocation33_spill] sm:$0xff] %v8171_v39  ;;  %v828_v32 = vmul.f32 %v7166_v12, %v223_v34  ;;  %v875_v41 = vmul.f32 %v5804_v14, %v270_v26  ;;  %v831_v45 = vmul.f32 %v7166_v12, %v226_v10  ;;  %v834_v47 = vmul.f32 %v7166_v12, %v229_v0  ;;  %v273_v10 = vld [vmem:[%s11736_s0 + $0x7e8] sm:$0xff] }
 0x136   :  { %11780 = vst [vmem:[#allocation31_spill] sm:$0xff] %v8167_v7  ;;  %11781 = vst [vmem:[#allocation32_spill] sm:$0xff] %v8169_v62  ;;  %v872_v62 = vmul.f32 %v5804_v14, %v267_v8  ;;  %v8202_v25 = vpack.c.bf16 %v2009_v29, %v2006_v40  ;;  %v8205_v34 = vadd.f32 %v7214_v35, %v822_v3  ;;  %v2059_v26 = vmax.f32 %v8174_v43, 0.0 }
 0x137   :  { %v2979_v59 = vpop.f32.mrf.mxu0  ;;  %v3571_v44 = vpop.f32.mrf.mxu1  ;;  %v871_v7 = vmul.f32 %v5815_v18, %v266_v20  ;;  %v874_v36 = vmul.f32 %v5815_v18, %v269_v27  ;;  %v8217_v40 = vadd.f32 %v5825_v22, %v865_v1  ;;  %v837_v29 = vmul.f32 %v7166_v12, %v232_v11 }
 0x138   :  { %v840_v3 = vmul.f32 %v7166_v12, %v235_v6  ;;  %v1473_v0 = vadd.f32 %v5825_v22, %v868_v58  ;;  %v1430_v43 = vadd.f32 %v7214_v35, %v825_v46  ;;  %v1433_v1 = vadd.f32 %v7214_v35, %v828_v32 }
 0x139   :  { %v8209_v39 = vpop.f32.mrf.mxu0  ;;  %3173 = vmatmul.mubr.bf16.gmra.mxu0 %v7697_v37  ;;  %v8212_v8 = vpop.f32.mrf.mxu1  ;;  %5506 = vmatmul.mubr.bf16.gmra.mxu1 %v7699_v21  ;;  %v276_v37 = vld [vmem:[%s11736_s0 + $0x800] sm:$0xff]  ;;  %v2062_v21 = vmax.f32 %v8177_v13, 0.0  ;;  %v1477_v11 = vadd.f32 %v5817_v19, %v872_v62  ;;  %v1480_v6 = vadd.f32 %v5817_v19, %v875_v41  ;;  %v1436_v59 = vadd.f32 %v7214_v35, %v831_v45 }
 0x13a   :  { %11783 = vst [vmem:[#allocation34_spill] sm:$0xff] %v8209_v39  ;;  %11784 = vst [vmem:[#allocation35_spill] sm:$0xff] %v8212_v8  ;;  %3180 = vmatprep.mubr.bf16.mxu0 %v7701_v48  ;;  %5509 = vmatprep.mubr.bf16.mxu1 %v7703_v60  ;;  %v1439_v48 = vadd.f32 %v7214_v35, %v834_v47  ;;  %v1476_v60 = vadd.f32 %v5825_v22, %v871_v7  ;;  %v2012_v62 = vmax.f32 %v8187_v16, 0.0 }
 0x13b   :  { %v2984_v20 = vpop.f32.mrf.mxu0  ;;  %v3576_v27 = vpop.f32.mrf.mxu1  ;;  %v1479_v13 = vadd.f32 %v5825_v22, %v874_v36  ;;  %v878_v58 = vmul.f32 %v5804_v14, %v273_v10  ;;  %v881_v46 = vmul.f32 %v5804_v14, %v276_v37  ;;  %v2015_v41 = vmax.f32 %v8205_v34, 0.0  ;;  %v238_v10 = vld [vmem:[%s11736_s0 + $0x6d0] sm:$0xff]  ;;  %v241_v37 = vld [vmem:[%s11736_s0 + $0x6e8] sm:$0xff] }
 0x13c   :  { %v1442_v45 = vadd.f32 %v7214_v35, %v837_v29  ;;  %v1445_v47 = vadd.f32 %v7214_v35, %v840_v3  ;;  %v2058_v7 = vmax.f32 %v8217_v40, 0.0  ;;  %v2061_v20 = vmax.f32 %v1473_v0, 0.0  ;;  %v272_v40 = vld [vmem:[%s11736_s0 + $0x7e0] sm:$0xff] }
 0x13d   :  { %v8241_v44 = vpop.f32.mrf.mxu0  ;;  %v8243_v32 = vpop.f32.mrf.mxu1  ;;  %v2018_v36 = vmax.f32 %v1430_v43, 0.0  ;;  %v2021_v27 = vmax.f32 %v1433_v1, 0.0  ;;  %v2065_v34 = vmax.f32 %v1477_v11, 0.0  ;;  %v2068_v8 = vmax.f32 %v1480_v6, 0.0  ;;  %v11789_v11 = vld [vmem:[#allocation6_spill] sm:$0xff] }
 0x13e   :  { %11785 = vst [vmem:[#allocation36_spill] sm:$0xff] %v8241_v44  ;;  %11786 = vst [vmem:[#allocation37_spill] sm:$0xff] %v8243_v32  ;;  %v2024_v29 = vmax.f32 %v1436_v59, 0.0  ;;  %v2027_v44 = vmax.f32 %v1439_v48, 0.0  ;;  %v2064_v3 = vmax.f32 %v1476_v60, 0.0  ;;  %v2067_v0 = vmax.f32 %v1479_v13, 0.0 }
 0x13f   :  { %v2987_v16 = vpop.f32.mrf.mxu0  ;;  %v3579_v32 = vpop.f32.mrf.mxu1  ;;  %v1483_v43 = vadd.f32 %v5817_v19, %v878_v58  ;;  %v1486_v1 = vadd.f32 %v5817_v19, %v881_v46  ;;  %v2030_v6 = vmax.f32 %v1442_v45, 0.0  ;;  %v2033_v59 = vmax.f32 %v1445_v47, 0.0  ;;  %v275_v60 = vld [vmem:[%s11736_s0 + $0x7f8] sm:$0xff]  ;;  %v244_v46 = vld [vmem:[%s11736_s0 + $0x700] sm:$0xff] }
 0x140   :  { %v843_v48 = vmul.f32 %v7166_v12, %v238_v10  ;;  %v846_v32 = vmul.f32 %v7166_v12, %v241_v37  ;;  %v8274_v13 = vpack.c.bf16 %v2062_v21, %v2059_v26  ;;  %v877_v58 = vmul.f32 %v5815_v18, %v272_v40  ;;  %v247_v45 = vld [vmem:[%s11736_s0 + $0x718] sm:$0xff] }
 0x141   :  { %v8261_v39 = vpop.f32.mrf.mxu0  ;;  %3181 = vmatmul.mubr.bf16.gmra.mxu0 %v7714_v30  ;;  %v8264_v16 = vpop.f32.mrf.mxu1  ;;  %5510 = vmatmul.mubr.bf16.gmra.mxu1 %v11789_v11  ;;  %v8276_v30 = vpack.c.bf16 %v2015_v41, %v2012_v62  ;;  %v8285_v37 = vpack.c.bf16 %v2061_v20, %v2058_v7  ;;  %v8291_v26 = vpack.c.bf16 %v2027_v44, %v2024_v29  ;;  %v279_v21 = vld [vmem:[%s11736_s0 + $0x818] sm:$0xff]  ;;  %v282_v62 = vld [vmem:[%s11736_s0 + $0x830] sm:$0xff]  ;;  %v2071_v20 = vmax.f32 %v1483_v43, 0.0  ;;  %v253_v44 = vld [vmem:[%s11736_s0 + $0x748] sm:$0xff] }
 0x142   :  { %11787 = vst [vmem:[#allocation38_spill] sm:$0xff] %v8261_v39  ;;  %11788 = vst [vmem:[#allocation39_spill] sm:$0xff] %v8264_v16  ;;  %3188 = vmatprep.mubr.bf16.mxu0 %v7761_v50  ;;  %5513 = vmatprep.mubr.bf16.mxu1 %v7833_v61  ;;  %v8287_v50 = vpack.c.bf16 %v2021_v27, %v2018_v36  ;;  %v8289_v61 = vpack.c.bf16 %v2068_v8, %v2065_v34  ;;  %v250_v41 = vld [vmem:[%s11736_s0 + $0x730] sm:$0xff]  ;;  %v2074_v36 = vmax.f32 %v1486_v1, 0.0  ;;  %v281_v34 = vld [vmem:[%s11736_s0 + $0x828] sm:$0xff] }
 0x143   :  { %v2992_v47 = vpop.f32.mrf.mxu0  ;;  %v3584_v10 = vpop.f32.mrf.mxu1  ;;  %v8302_v7 = vpack.c.bf16 %v2067_v0, %v2064_v3  ;;  %v880_v8 = vmul.f32 %v5815_v18, %v275_v60  ;;  %v278_v27 = vld [vmem:[%s11736_s0 + $0x810] sm:$0xff]  ;;  %v8318_v3 = vpack.c.bf16 %v2033_v59, %v2030_v6  ;;  %v8321_v0 = vadd.f32 %v7214_v35, %v843_v48  ;;  %v256_v11 = vld [vmem:[%s11736_s0 + $0x760] sm:$0xff]  ;;  %v259_v60 = vld [vmem:[%s11736_s0 + $0x778] sm:$0xff] }
 0x144   :  { %v8324_v43 = vadd.f32 %v7214_v35, %v846_v32  ;;  %v849_v1 = vmul.f32 %v7166_v12, %v244_v46  ;;  %v8334_v47 = vadd.f32 %v5825_v22, %v877_v58  ;;  %v852_v6 = vmul.f32 %v7166_v12, %v247_v45  ;;  %v285_v32 = vld [vmem:[%s11736_s0 + $0x848] sm:$0xff]  ;;  %v288_v46 = vld [vmem:[%s11736_s0 + $0x860] sm:$0xff] }
 0x145   :  { %11790 = vst [vmem:[#allocation6_spill] sm:$0xff] %v8302_v7  ;;  %v8314_v29 = vpop.f32.mrf.mxu0  ;;  %v8316_v40 = vpop.f32.mrf.mxu1  ;;  %11793 = vst [vmem:[#allocation42_spill] sm:$0xff] %v8318_v3  ;;  %v884_v59 = vmul.f32 %v5804_v14, %v279_v21  ;;  %v887_v48 = vmul.f32 %v5804_v14, %v282_v62  ;;  %v855_v16 = vmul.f32 %v7166_v12, %v250_v41 }
 0x146   :  { %11791 = vst [vmem:[#allocation40_spill] sm:$0xff] %v8314_v29  ;;  %11792 = vst [vmem:[#allocation41_spill] sm:$0xff] %v8316_v40  ;;  %v858_v58 = vmul.f32 %v7166_v12, %v253_v44  ;;  %v883_v45 = vmul.f32 %v5815_v18, %v278_v27  ;;  %v886_v21 = vmul.f32 %v5815_v18, %v281_v34  ;;  %v2036_v44 = vmax.f32 %v8321_v0, 0.0  ;;  %v262_v27 = vld [vmem:[%s11736_s0 + $0x790] sm:$0xff] }
 0x147   :  { %v2995_v10 = vpop.f32.mrf.mxu0  ;;  %v3587_v40 = vpop.f32.mrf.mxu1  ;;  %v8349_v29 = vpack.c.bf16 %v2074_v36, %v2071_v20  ;;  %v8352_v62 = vadd.f32 %v5825_v22, %v880_v8  ;;  %v861_v39 = vmul.f32 %v7166_v12, %v256_v11  ;;  %v864_v3 = vmul.f32 %v7166_v12, %v259_v60 }
 0x148   :  { %v8364_v20 = vadd.f32 %v7214_v35, %v849_v1  ;;  %v890_v36 = vmul.f32 %v5804_v14, %v285_v32  ;;  %v893_v8 = vmul.f32 %v5804_v14, %v288_v46  ;;  %v1457_v34 = vadd.f32 %v7214_v35, %v852_v6 }
 0x149   :  { %v8356_v7 = vpop.f32.mrf.mxu0  ;;  %3189 = vmatmul.mubr.bf16.gmra.mxu0 %v7835_v57  ;;  %v8359_v41 = vpop.f32.mrf.mxu1  ;;  %5514 = vmatmul.mubr.bf16.gmra.mxu1 %v7844_v63  ;;  %v265_v57 = vld [vmem:[%s11736_s0 + $0x7a8] sm:$0xff]  ;;  %v2039_v63 = vmax.f32 %v8324_v43, 0.0  ;;  %v1489_v40 = vadd.f32 %v5817_v19, %v884_v59  ;;  %v1492_v0 = vadd.f32 %v5817_v19, %v887_v48  ;;  %v1460_v60 = vadd.f32 %v7214_v35, %v855_v16 }
 0x14a   :  { %11794 = vst [vmem:[#allocation43_spill] sm:$0xff] %v8356_v7  ;;  %11795 = vst [vmem:[#allocation44_spill] sm:$0xff] %v8359_v41  ;;  %3196 = vmatprep.mubr.bf16.mxu0 %v7846_v55  ;;  %5517 = vmatprep.mubr.bf16.mxu1 %v7848_v17  ;;  %v1463_v32 = vadd.f32 %v7214_v35, %v858_v58  ;;  %v1488_v46 = vadd.f32 %v5825_v22, %v883_v45  ;;  %v2070_v16 = vmax.f32 %v8334_v47, 0.0 }
 0x14b   :  { %v3000_v1 = vpop.f32.mrf.mxu0  ;;  %v3592_v11 = vpop.f32.mrf.mxu1  ;;  %v1491_v55 = vadd.f32 %v5825_v22, %v886_v21  ;;  %v1466_v17 = vadd.f32 %v7214_v35, %v861_v39  ;;  %v1469_v43 = vadd.f32 %v7214_v35, %v864_v3  ;;  %v867_v6 = vmul.f32 %v7166_v12, %v262_v27  ;;  %v284_v27 = vld [vmem:[%s11736_s0 + $0x840] sm:$0xff] }
 0x14c   :  { %v870_v59 = vmul.f32 %v7166_v12, %v265_v57  ;;  %v2073_v58 = vmax.f32 %v8352_v62, 0.0  ;;  %v1495_v45 = vadd.f32 %v5817_v19, %v890_v36  ;;  %v1498_v21 = vadd.f32 %v5817_v19, %v893_v8  ;;  %v287_v57 = vld [vmem:[%s11736_s0 + $0x858] sm:$0xff] }
 0x14d   :  { %v8388_v10 = vpop.f32.mrf.mxu0  ;;  %v8390_v48 = vpop.f32.mrf.mxu1  ;;  %v2042_v39 = vmax.f32 %v8364_v20, 0.0  ;;  %v2045_v1 = vmax.f32 %v1457_v34, 0.0  ;;  %v2077_v3 = vmax.f32 %v1489_v40, 0.0  ;;  %v2080_v11 = vmax.f32 %v1492_v0, 0.0  ;;  %v268_v20 = vld [vmem:[%s11736_s0 + $0x7c0] sm:$0xff] }
 0x14e   :  { %11796 = vst [vmem:[#allocation45_spill] sm:$0xff] %v8388_v10  ;;  %11797 = vst [vmem:[#allocation46_spill] sm:$0xff] %v8390_v48  ;;  %v2048_v62 = vmax.f32 %v1460_v60, 0.0  ;;  %v2051_v41 = vmax.f32 %v1463_v32, 0.0  ;;  %v2076_v36 = vmax.f32 %v1488_v46, 0.0  ;;  %v2079_v10 = vmax.f32 %v1491_v55, 0.0 }
 0x14f   :  { %v3003_v47 = vpop.f32.mrf.mxu0  ;;  %v3595_v48 = vpop.f32.mrf.mxu1  ;;  %v2054_v8 = vmax.f32 %v1466_v17, 0.0  ;;  %v2057_v34 = vmax.f32 %v1469_v43, 0.0  ;;  %v1472_v40 = vadd.f32 %v7214_v35, %v867_v6  ;;  %v1475_v0 = vadd.f32 %v7214_v35, %v870_v59  ;;  %v271_v17 = vld [vmem:[%s11736_s0 + $0x7d8] sm:$0xff]  ;;  %v11800_v43 = vld [vmem:[#allocation15_spill] sm:$0xff] }
 0x150   :  { %v2083_v60 = vmax.f32 %v1495_v45, 0.0  ;;  %v2086_v32 = vmax.f32 %v1498_v21, 0.0  ;;  %v889_v46 = vmul.f32 %v5815_v18, %v284_v27  ;;  %v892_v55 = vmul.f32 %v5815_v18, %v287_v57  ;;  %v291_v59 = vld [vmem:[%s11736_s0 + $0x878] sm:$0xff]  ;;  %v294_v48 = vld [vmem:[%s11736_s0 + $0x890] sm:$0xff] }
 0x151   :  { %v8408_v7 = vpop.f32.mrf.mxu0  ;;  %3197 = vmatmul.mubr.bf16.gmra.mxu0 %v7850_v38  ;;  %v8411_v47 = vpop.f32.mrf.mxu1  ;;  %5518 = vmatmul.mubr.bf16.gmra.mxu1 %v7861_v52  ;;  %v8421_v6 = vpack.c.bf16 %v2039_v63, %v2036_v44  ;;  %v8423_v38 = vpack.c.bf16 %v2073_v58, %v2070_v16  ;;  %v873_v52 = vmul.f32 %v7166_v12, %v268_v20  ;;  %v274_v63 = vld [vmem:[%s11736_s0 + $0x7f0] sm:$0xff]  ;;  %v277_v16 = vld [vmem:[%s11736_s0 + $0x808] sm:$0xff] }
 0x152   :  { %11798 = vst [vmem:[#allocation47_spill] sm:$0xff] %v8408_v7  ;;  %11799 = vst [vmem:[#allocation48_spill] sm:$0xff] %v8411_v47  ;;  %3204 = vmatprep.mubr.bf16.mxu0 %v11800_v43  ;;  %5521 = vmatprep.mubr.bf16.mxu1 %v7908_v4  ;;  %v8432_v27 = vpack.c.bf16 %v2045_v1, %v2042_v39  ;;  %v8434_v57 = vpack.c.bf16 %v2080_v11, %v2077_v3  ;;  %v290_v58 = vld [vmem:[%s11736_s0 + $0x870] sm:$0xff]  ;;  %v2060_v1 = vmax.f32 %v1472_v40, 0.0  ;;  %v280_v11 = vld [vmem:[%s11736_s0 + $0x820] sm:$0xff] }
 0x153   :  { %v3008_v45 = vpop.f32.mrf.mxu0  ;;  %v3600_v21 = vpop.f32.mrf.mxu1  ;;  %v8436_v4 = vpack.c.bf16 %v2051_v41, %v2048_v62  ;;  %v8438_v44 = vpack.c.bf16 %v2079_v10, %v2076_v36  ;;  %v8449_v39 = vpack.c.bf16 %v2057_v34, %v2054_v8  ;;  %v2063_v3 = vmax.f32 %v1475_v0, 0.0  ;;  %v293_v10 = vld [vmem:[%s11736_s0 + $0x888] sm:$0xff]  ;;  %v283_v62 = vld [vmem:[%s11736_s0 + $0x838] sm:$0xff]  ;;  %v300_v43 = vld [vmem:[%s11736_s0 + $0x8c0] sm:$0xff] }
 0x154   :  { %v876_v41 = vmul.f32 %v7166_v12, %v271_v17  ;;  %v8465_v8 = vpack.c.bf16 %v2086_v32, %v2083_v60  ;;  %v8468_v34 = vadd.f32 %v5825_v22, %v889_v46  ;;  %v8471_v40 = vadd.f32 %v5825_v22, %v892_v55  ;;  %v297_v17 = vld [vmem:[%s11736_s0 + $0x8a8] sm:$0xff]  ;;  %v286_v55 = vld [vmem:[%s11736_s0 + $0x850] sm:$0xff] }
 0x155   :  { %11801 = vst [vmem:[#allocation15_spill] sm:$0xff] %v8449_v39  ;;  %v8461_v36 = vpop.f32.mrf.mxu0  ;;  %v8463_v20 = vpop.f32.mrf.mxu1  ;;  %v896_v0 = vmul.f32 %v5804_v14, %v291_v59  ;;  %v8481_v45 = vadd.f32 %v7214_v35, %v873_v52  ;;  %v899_v60 = vmul.f32 %v5804_v14, %v294_v48  ;;  %v879_v32 = vmul.f32 %v7166_v12, %v274_v63  ;;  %v289_v59 = vld [vmem:[%s11736_s0 + $0x868] sm:$0xff] }
 0x156   :  { %11802 = vst [vmem:[#allocation49_spill] sm:$0xff] %v8461_v36  ;;  %11803 = vst [vmem:[#allocation50_spill] sm:$0xff] %v8463_v20  ;;  %v882_v46 = vmul.f32 %v7166_v12, %v277_v16  ;;  %v895_v47 = vmul.f32 %v5815_v18, %v290_v58  ;;  %v898_v52 = vmul.f32 %v5815_v18, %v293_v10  ;;  %v2082_v10 = vmax.f32 %v8468_v34, 0.0 }
 0x157   :  { %11804 = vst [vmem:[#allocation51_spill] sm:$0xff] %v8465_v8  ;;  %v3011_v21 = vpop.f32.mrf.mxu0  ;;  %v3603_v20 = vpop.f32.mrf.mxu1  ;;  %v885_v48 = vmul.f32 %v7166_v12, %v280_v11  ;;  %v888_v63 = vmul.f32 %v7166_v12, %v283_v62  ;;  %v8496_v36 = vpack.c.bf16 %v2063_v3, %v2060_v1  ;;  %v8499_v16 = vadd.f32 %v7214_v35, %v876_v41  ;;  %v296_v11 = vld [vmem:[%s11736_s0 + $0x8a0] sm:$0xff] }
 0x158   :  { %v902_v7 = vmul.f32 %v5804_v14, %v297_v17  ;;  %v905_v8 = vmul.f32 %v5804_v14, %v300_v43  ;;  %v8511_v1 = vadd.f32 %v5817_v19, %v896_v0  ;;  %v891_v3 = vmul.f32 %v7166_v12, %v286_v55 }
 0x159   :  { %v8503_v39 = vpop.f32.mrf.mxu0  ;;  %3205 = vmatmul.mubr.bf16.gmra.mxu0 %v7980_v5  ;;  %v8506_v58 = vpop.f32.mrf.mxu1  ;;  %5522 = vmatmul.mubr.bf16.gmra.mxu1 %v7982_v24  ;;  %v894_v41 = vmul.f32 %v7166_v12, %v289_v59  ;;  %v299_v5 = vld [vmem:[%s11736_s0 + $0x8b8] sm:$0xff]  ;;  %v2085_v24 = vmax.f32 %v8471_v40, 0.0  ;;  %v1504_v62 = vadd.f32 %v5817_v19, %v899_v60  ;;  %v1484_v20 = vadd.f32 %v7214_v35, %v879_v32 }
 0x15a   :  { %11805 = vst [vmem:[#allocation52_spill] sm:$0xff] %v8503_v39  ;;  %11806 = vst [vmem:[#allocation53_spill] sm:$0xff] %v8506_v58  ;;  %3212 = vmatprep.mubr.bf16.mxu0 %v7991_v31  ;;  %5525 = vmatprep.mubr.bf16.mxu1 %v7993_v2  ;;  %v1487_v34 = vadd.f32 %v7214_v35, %v882_v46  ;;  %v1500_v43 = vadd.f32 %v5825_v22, %v895_v47  ;;  %v2066_v47 = vmax.f32 %v8481_v45, 0.0 }
 0x15b   :  { %v3016_v0 = vpop.f32.mrf.mxu0  ;;  %v3608_v17 = vpop.f32.mrf.mxu1  ;;  %v1503_v55 = vadd.f32 %v5825_v22, %v898_v52  ;;  %v1490_v59 = vadd.f32 %v7214_v35, %v885_v48  ;;  %v1493_v31 = vadd.f32 %v7214_v35, %v888_v63  ;;  %v1507_v2 = vadd.f32 %v5817_v19, %v902_v7 }
 0x15c   :  { %v1510_v40 = vadd.f32 %v5817_v19, %v905_v8  ;;  %v901_v60 = vmul.f32 %v5815_v18, %v296_v11  ;;  %v904_v32 = vmul.f32 %v5815_v18, %v299_v5  ;;  %v2069_v52 = vmax.f32 %v8499_v16, 0.0  ;;  %v292_v11 = vld [vmem:[%s11736_s0 + $0x880] sm:$0xff]  ;;  %v295_v5 = vld [vmem:[%s11736_s0 + $0x898] sm:$0xff] }
 0x15d   :  { %v8535_v21 = vpop.f32.mrf.mxu0  ;;  %v8537_v46 = vpop.f32.mrf.mxu1  ;;  %v1496_v48 = vadd.f32 %v7214_v35, %v891_v3  ;;  %v1499_v63 = vadd.f32 %v7214_v35, %v894_v41  ;;  %v2089_v7 = vmax.f32 %v8511_v1, 0.0  ;;  %v2092_v0 = vmax.f32 %v1504_v62, 0.0  ;;  %v303_v1 = vld [vmem:[%s11736_s0 + $0x8d8] sm:$0xff] }
 0x15e   :  { %11807 = vst [vmem:[#allocation54_spill] sm:$0xff] %v8535_v21  ;;  %11808 = vst [vmem:[#allocation55_spill] sm:$0xff] %v8537_v46  ;;  %v2072_v8 = vmax.f32 %v1484_v20, 0.0  ;;  %v2075_v17 = vmax.f32 %v1487_v34, 0.0  ;;  %v2088_v16 = vmax.f32 %v1500_v43, 0.0  ;;  %v2091_v58 = vmax.f32 %v1503_v55, 0.0 }
 0x15f   :  { %v3019_v45 = vpop.f32.mrf.mxu0  ;;  %v3611_v46 = vpop.f32.mrf.mxu1  ;;  %v2078_v3 = vmax.f32 %v1490_v59, 0.0  ;;  %v2081_v21 = vmax.f32 %v1493_v31, 0.0  ;;  %v2095_v41 = vmax.f32 %v1507_v2, 0.0  ;;  %v2098_v62 = vmax.f32 %v1510_v40, 0.0  ;;  %v306_v2 = vld [vmem:[%s11736_s0 + $0x8f0] sm:$0xff] }
 0x160   :  { %v1506_v20 = vadd.f32 %v5825_v22, %v901_v60  ;;  %v1509_v34 = vadd.f32 %v5825_v22, %v904_v32  ;;  %v2084_v43 = vmax.f32 %v1496_v48, 0.0  ;;  %v2087_v55 = vmax.f32 %v1499_v63, 0.0  ;;  %v11811_v40 = vld [vmem:[#allocation24_spill] sm:$0xff]  ;;  %v301_v46 = vld [vmem:[%s11736_s0 + $0x8c8] sm:$0xff] }
 0x161   :  { %v8555_v39 = vpop.f32.mrf.mxu0  ;;  %3213 = vmatmul.mubr.bf16.gmra.mxu0 %v7995_v51  ;;  %v8558_v45 = vpop.f32.mrf.mxu1  ;;  %5526 = vmatmul.mubr.bf16.gmra.mxu1 %v7997_v28  ;;  %v897_v59 = vmul.f32 %v7166_v12, %v292_v11  ;;  %v900_v31 = vmul.f32 %v7166_v12, %v295_v5  ;;  %v8568_v60 = vpack.c.bf16 %v2085_v24, %v2082_v10  ;;  %v298_v32 = vld [vmem:[%s11736_s0 + $0x8b0] sm:$0xff]  ;;  %v304_v5 = vld [vmem:[%s11736_s0 + $0x8e0] sm:$0xff] }
 0x162   :  { %11809 = vst [vmem:[#allocation56_spill] sm:$0xff] %v8555_v39  ;;  %11810 = vst [vmem:[#allocation57_spill] sm:$0xff] %v8558_v45  ;;  %3220 = vmatprep.mubr.bf16.mxu0 %v8008_v49  ;;  %5529 = vmatprep.mubr.bf16.mxu1 %v11811_v40  ;;  %v8570_v51 = vpack.c.bf16 %v2069_v52, %v2066_v47  ;;  %v908_v28 = vmul.f32 %v5804_v14, %v303_v1  ;;  %v302_v47 = vld [vmem:[%s11736_s0 + $0x8d0] sm:$0xff]  ;;  %v305_v52 = vld [vmem:[%s11736_s0 + $0x8e8] sm:$0xff] }
 0x163   :  { %v3024_v48 = vpop.f32.mrf.mxu0  ;;  %v3616_v63 = vpop.f32.mrf.mxu1  ;;  %v8579_v11 = vpack.c.bf16 %v2092_v0, %v2089_v7  ;;  %v8581_v49 = vpack.c.bf16 %v2075_v17, %v2072_v8  ;;  %v8583_v10 = vpack.c.bf16 %v2091_v58, %v2088_v16  ;;  %v8585_v24 = vpack.c.bf16 %v2081_v21, %v2078_v3  ;;  %v307_v21 = vld [vmem:[%s11736_s0 + $0x8f8] sm:$0xff]  ;;  %v309_v17 = vld [vmem:[%s11736_s0 + $0x908] sm:$0xff]  ;;  %v312_v16 = vld [vmem:[%s11736_s0 + $0x920] sm:$0xff] }
 0x164   :  { %v8596_v7 = vpack.c.bf16 %v2098_v62, %v2095_v41  ;;  %v2094_v0 = vmax.f32 %v1506_v20, 0.0  ;;  %v2097_v8 = vmax.f32 %v1509_v34, 0.0  ;;  %v911_v58 = vmul.f32 %v5804_v14, %v306_v2  ;;  %v310_v2 = vld [vmem:[%s11736_s0 + $0x910] sm:$0xff]  ;;  %v313_v40 = vld [vmem:[%s11736_s0 + $0x928] sm:$0xff] }
 0x165   :  { %v8608_v3 = vpop.f32.mrf.mxu0  ;;  %v8610_v1 = vpop.f32.mrf.mxu1  ;;  %v8612_v41 = vpack.c.bf16 %v2087_v55, %v2084_v43  ;;  %v8615_v62 = vadd.f32 %v7214_v35, %v897_v59  ;;  %v8618_v20 = vadd.f32 %v7214_v35, %v900_v31  ;;  %v903_v34 = vmul.f32 %v7166_v12, %v298_v32  ;;  %v308_v31 = vld [vmem:[%s11736_s0 + $0x900] sm:$0xff]  ;;  %v311_v32 = vld [vmem:[%s11736_s0 + $0x918] sm:$0xff] }
 0x166   :  { %11812 = vst [vmem:[#allocation24_spill] sm:$0xff] %v8596_v7  ;;  %11813 = vst [vmem:[#allocation58_spill] sm:$0xff] %v8608_v3  ;;  %v8628_v48 = vadd.f32 %v5817_v19, %v908_v28  ;;  %v906_v43 = vmul.f32 %v7166_v12, %v301_v46  ;;  %v907_v55 = vmul.f32 %v5815_v18, %v302_v47 }
 0x167   :  { %11814 = vst [vmem:[#allocation59_spill] sm:$0xff] %v8610_v1  ;;  %11815 = vst [vmem:[#allocation60_spill] sm:$0xff] %v8612_v41  ;;  %v910_v59 = vmul.f32 %v5815_v18, %v305_v52  ;;  %v3027_v63 = vpop.f32.mrf.mxu0  ;;  %v3619_v1 = vpop.f32.mrf.mxu1  ;;  %v909_v45 = vmul.f32 %v7166_v12, %v304_v5  ;;  %v912_v28 = vmul.f32 %v7166_v12, %v307_v21  ;;  %v2090_v21 = vmax.f32 %v8615_v62, 0.0  ;;  %v319_v62 = vld [vmem:[%s11736_s0 + $0x958] sm:$0xff] }
 0x168   :  { %v914_v46 = vmul.f32 %v5804_v14, %v309_v17  ;;  %v917_v47 = vmul.f32 %v5804_v14, %v312_v16  ;;  %v8643_v3 = vpack.c.bf16 %v2097_v8, %v2094_v0  ;;  %v8646_v52 = vadd.f32 %v5817_v19, %v911_v58  ;;  %v316_v17 = vld [vmem:[%s11736_s0 + $0x940] sm:$0xff] }
 0x169   :  { %v915_v39 = vmul.f32 %v7166_v12, %v310_v2  ;;  %v918_v41 = vmul.f32 %v7166_v12, %v313_v40  ;;  %v8650_v7 = vpop.f32.mrf.mxu0  ;;  %3221 = vmatmul.mubr.bf16.gmra.mxu0 %v8055_v54  ;;  %v8653_v5 = vpop.f32.mrf.mxu1  ;;  %5530 = vmatmul.mubr.bf16.gmra.mxu1 %v8127_v15  ;;  %v8658_v0 = vadd.f32 %v7214_v35, %v903_v34  ;;  %v2093_v54 = vmax.f32 %v8618_v20, 0.0 }
 0x16a   :  { %11816 = vst [vmem:[#allocation61_spill] sm:$0xff] %v8643_v3  ;;  %11817 = vst [vmem:[#allocation62_spill] sm:$0xff] %v8650_v7  ;;  %v913_v8 = vmul.f32 %v5815_v18, %v308_v31  ;;  %v916_v58 = vmul.f32 %v5815_v18, %v311_v32  ;;  %3228 = vmatprep.mubr.bf16.mxu0 %v8129_v53  ;;  %5533 = vmatprep.mubr.bf16.mxu1 %v8138_v23 }
 0x16b   :  { %11818 = vst [vmem:[#allocation63_spill] sm:$0xff] %v8653_v5  ;;  %v1511_v15 = vadd.f32 %v7214_v35, %v906_v43  ;;  %v1512_v16 = vadd.f32 %v5825_v22, %v907_v55  ;;  %v1515_v1 = vadd.f32 %v5825_v22, %v910_v59  ;;  %v3032_v34 = vpop.f32.mrf.mxu0  ;;  %v3624_v2 = vpop.f32.mrf.mxu1  ;;  %v1514_v40 = vadd.f32 %v7214_v35, %v909_v45 }
 0x16c   :  { %v1517_v53 = vadd.f32 %v7214_v35, %v912_v28  ;;  %v1519_v23 = vadd.f32 %v5817_v19, %v914_v46  ;;  %v1522_v20 = vadd.f32 %v5817_v19, %v917_v47  ;;  %v2101_v43 = vmax.f32 %v8628_v48, 0.0  ;;  %v318_v2 = vld [vmem:[%s11736_s0 + $0x950] sm:$0xff] }
 0x16d   :  { %v1520_v55 = vadd.f32 %v7214_v35, %v915_v39  ;;  %v1523_v59 = vadd.f32 %v7214_v35, %v918_v41  ;;  %v921_v31 = vmul.f32 %v7166_v12, %v316_v17  ;;  %v8682_v32 = vpop.f32.mrf.mxu0  ;;  %v8684_v63 = vpop.f32.mrf.mxu1  ;;  %v2104_v45 = vmax.f32 %v8646_v52, 0.0  ;;  %v315_v39 = vld [vmem:[%s11736_s0 + $0x938] sm:$0xff] }
 0x16e   :  { %11819 = vst [vmem:[#allocation64_spill] sm:$0xff] %v8682_v32  ;;  %11820 = vst [vmem:[#allocation65_spill] sm:$0xff] %v8684_v63  ;;  %v1518_v28 = vadd.f32 %v5825_v22, %v913_v8  ;;  %v1521_v46 = vadd.f32 %v5825_v22, %v916_v58  ;;  %v924_v47 = vmul.f32 %v7166_v12, %v319_v62  ;;  %v2096_v41 = vmax.f32 %v8658_v0, 0.0  ;;  %v322_v62 = vld [vmem:[%s11736_s0 + $0x970] sm:$0xff] }
 0x16f   :  { %v2099_v48 = vmax.f32 %v1511_v15, 0.0  ;;  %v2100_v17 = vmax.f32 %v1512_v16, 0.0  ;;  %v2103_v34 = vmax.f32 %v1515_v1, 0.0  ;;  %v3035_v52 = vpop.f32.mrf.mxu0  ;;  %v3627_v63 = vpop.f32.mrf.mxu1  ;;  %v2102_v8 = vmax.f32 %v1514_v40, 0.0 }
 0x170   :  { %v2105_v5 = vmax.f32 %v1517_v53, 0.0  ;;  %v2107_v58 = vmax.f32 %v1519_v23, 0.0  ;;  %v2110_v32 = vmax.f32 %v1522_v20, 0.0  ;;  %v2108_v7 = vmax.f32 %v1520_v55, 0.0  ;;  %v325_v55 = vld [vmem:[%s11736_s0 + $0x988] sm:$0xff] }
 0x171   :  { %v2111_v3 = vmax.f32 %v1523_v59, 0.0  ;;  %v8701_v0 = vadd.f32 %v7214_v35, %v921_v31  ;;  %v920_v15 = vmul.f32 %v5804_v14, %v315_v39  ;;  %v8704_v16 = vpop.f32.mrf.mxu0  ;;  %3229 = vmatmul.mubr.bf16.gmra.mxu0 %v8140_v42  ;;  %v8707_v1 = vpop.f32.mrf.mxu1  ;;  %5534 = vmatmul.mubr.bf16.gmra.mxu1 %v8142_v56  ;;  %v2106_v40 = vmax.f32 %v1518_v28, 0.0  ;;  %v314_v31 = vld [vmem:[%s11736_s0 + $0x930] sm:$0xff]  ;;  %v317_v63 = vld [vmem:[%s11736_s0 + $0x948] sm:$0xff] }
 0x172   :  { %11821 = vst [vmem:[#allocation66_spill] sm:$0xff] %v8704_v16  ;;  %11822 = vst [vmem:[#allocation67_spill] sm:$0xff] %v8707_v1  ;;  %v2109_v53 = vmax.f32 %v1521_v46, 0.0  ;;  %v8711_v23 = vadd.f32 %v7214_v35, %v924_v47  ;;  %v923_v20 = vmul.f32 %v5804_v14, %v318_v2  ;;  %3236 = vmatprep.mubr.bf16.mxu0 %v8144_v33  ;;  %5537 = vmatprep.mubr.bf16.mxu1 %v8155_v9 }
 0x173   :  { %v8719_v42 = vpack.c.bf16 %v2093_v54, %v2090_v21  ;;  %v8721_v59 = vpack.c.bf16 %v2104_v45, %v2101_v43  ;;  %v927_v56 = vmul.f32 %v7166_v12, %v322_v62  ;;  %v3040_v28 = vpop.f32.mrf.mxu0  ;;  %v3632_v46 = vpop.f32.mrf.mxu1  ;;  %v8730_v47 = vpack.c.bf16 %v2099_v48, %v2096_v41  ;;  %v328_v54 = vld [vmem:[%s11736_s0 + $0x9a0] sm:$0xff]  ;;  %v331_v43 = vld [vmem:[%s11736_s0 + $0x9b8] sm:$0xff]  ;;  %v321_v45 = vld [vmem:[%s11736_s0 + $0x968] sm:$0xff] }
 0x174   :  { %v8732_v33 = vpack.c.bf16 %v2103_v34, %v2100_v17  ;;  %v8734_v9 = vpack.c.bf16 %v2105_v5, %v2102_v8  ;;  %v8736_v21 = vpack.c.bf16 %v2110_v32, %v2107_v58  ;;  %v8747_v39 = vpack.c.bf16 %v2111_v3, %v2108_v7  ;;  %v324_v48 = vld [vmem:[%s11736_s0 + $0x980] sm:$0xff]  ;;  %v334_v17 = vld [vmem:[%s11736_s0 + $0x9d0] sm:$0xff]  ;;  %v337_v7 = vld [vmem:[%s11736_s0 + $0x9e8] sm:$0xff] }
 0x175   :  { %v8751_v5 = vadd.f32 %v5817_v19, %v920_v15  ;;  %v930_v32 = vmul.f32 %v7166_v12, %v325_v55  ;;  %v8763_v3 = vpop.f32.mrf.mxu0  ;;  %v8765_v34 = vpop.f32.mrf.mxu1  ;;  %v8767_v2 = vpack.c.bf16 %v2109_v53, %v2106_v40  ;;  %v8771_v8 = vadd.f32 %v5817_v19, %v923_v20  ;;  %v320_v62 = vld [vmem:[%s11736_s0 + $0x960] sm:$0xff]  ;;  %v323_v15 = vld [vmem:[%s11736_s0 + $0x978] sm:$0xff] }
 0x176   :  { %11823 = vst [vmem:[#allocation68_spill] sm:$0xff] %v8736_v21  ;;  %11824 = vst [vmem:[#allocation69_spill] sm:$0xff] %v8747_v39  ;;  %v919_v58 = vmul.f32 %v5815_v18, %v314_v31  ;;  %v8781_v55 = vadd.f32 %v7214_v35, %v927_v56  ;;  %v922_v40 = vmul.f32 %v5815_v18, %v317_v63  ;;  %v340_v31 = vld [vmem:[%s11736_s0 + $0xa00] sm:$0xff]  ;;  %v343_v28 = vld [vmem:[%s11736_s0 + $0xa18] sm:$0xff] }
 0x177   :  { %11825 = vst [vmem:[#allocation70_spill] sm:$0xff] %v8763_v3  ;;  %11826 = vst [vmem:[#allocation71_spill] sm:$0xff] %v8765_v34  ;;  %v933_v53 = vmul.f32 %v7166_v12, %v328_v54  ;;  %v936_v20 = vmul.f32 %v7166_v12, %v331_v43  ;;  %v3043_v46 = vpop.f32.mrf.mxu0  ;;  %v3635_v52 = vpop.f32.mrf.mxu1  ;;  %v926_v41 = vmul.f32 %v5804_v14, %v321_v45 }
 0x178   :  { %11827 = vst [vmem:[#allocation72_spill] sm:$0xff] %v8767_v2  ;;  %v929_v56 = vmul.f32 %v5804_v14, %v324_v48  ;;  %v939_v63 = vmul.f32 %v7166_v12, %v334_v17  ;;  %v942_v54 = vmul.f32 %v7166_v12, %v337_v7  ;;  %v8798_v34 = vadd.f32 %v7214_v35, %v930_v32  ;;  %v11829_v52 = vld [vmem:[#allocation33_spill] sm:$0xff] }
 0x179   :  { %v925_v1 = vmul.f32 %v5815_v18, %v320_v62  ;;  %v928_v3 = vmul.f32 %v5815_v18, %v323_v15  ;;  %v8802_v16 = vpop.f32.mrf.mxu0  ;;  %3237 = vmatmul.mubr.bf16.gmra.mxu0 %v11829_v52  ;;  %v8805_v45 = vpop.f32.mrf.mxu1  ;;  %5538 = vmatmul.mubr.bf16.gmra.mxu1 %v8202_v25  ;;  %v2116_v48 = vmax.f32 %v8771_v8, 0.0  ;;  %v8810_v17 = vadd.f32 %v5825_v22, %v919_v58  ;;  %v327_v62 = vld [vmem:[%s11736_s0 + $0x998] sm:$0xff]  ;;  %v330_v15 = vld [vmem:[%s11736_s0 + $0x9b0] sm:$0xff] }
 0x17a   :  { %11828 = vst [vmem:[#allocation73_spill] sm:$0xff] %v8802_v16  ;;  %11830 = vst [vmem:[#allocation33_spill] sm:$0xff] %v8805_v45  ;;  %v945_v32 = vmul.f32 %v7166_v12, %v340_v31  ;;  %v948_v7 = vmul.f32 %v7166_v12, %v343_v28  ;;  %3244 = vmatprep.mubr.bf16.mxu0 %v8274_v13  ;;  %5541 = vmatprep.mubr.bf16.mxu1 %v8276_v30  ;;  %v2120_v25 = vmax.f32 %v8781_v55, 0.0  ;;  %v346_v28 = vld [vmem:[%s11736_s0 + $0xa30] sm:$0xff] }
 0x17b   :  { %v1527_v8 = vadd.f32 %v5825_v22, %v922_v40  ;;  %v1538_v58 = vadd.f32 %v7214_v35, %v933_v53  ;;  %v1541_v31 = vadd.f32 %v7214_v35, %v936_v20  ;;  %v3048_v46 = vpop.f32.mrf.mxu0  ;;  %v3640_v52 = vpop.f32.mrf.mxu1  ;;  %v1531_v43 = vadd.f32 %v5817_v19, %v926_v41 }
 0x17c   :  { %v1534_v13 = vadd.f32 %v5817_v19, %v929_v56  ;;  %v1544_v30 = vadd.f32 %v7214_v35, %v939_v63  ;;  %v1547_v55 = vadd.f32 %v7214_v35, %v942_v54  ;;  %v1530_v40 = vadd.f32 %v5825_v22, %v925_v1 }
 0x17d   :  { %v1533_v53 = vadd.f32 %v5825_v22, %v928_v3  ;;  %v932_v20 = vmul.f32 %v5804_v14, %v327_v62  ;;  %v935_v45 = vmul.f32 %v5804_v14, %v330_v15  ;;  %v8837_v16 = vpop.f32.mrf.mxu0  ;;  %v8839_v46 = vpop.f32.mrf.mxu1  ;;  %v2123_v41 = vmax.f32 %v8798_v34, 0.0  ;;  %v349_v62 = vld [vmem:[%s11736_s0 + $0xa48] sm:$0xff] }
 0x17e   :  { %11831 = vst [vmem:[#allocation74_spill] sm:$0xff] %v8837_v16  ;;  %11832 = vst [vmem:[#allocation75_spill] sm:$0xff] %v8839_v46  ;;  %v1550_v56 = vadd.f32 %v7214_v35, %v945_v32  ;;  %v1553_v63 = vadd.f32 %v7214_v35, %v948_v7  ;;  %v951_v54 = vmul.f32 %v7166_v12, %v346_v28  ;;  %v2112_v1 = vmax.f32 %v8810_v17, 0.0  ;;  %v326_v32 = vld [vmem:[%s11736_s0 + $0x990] sm:$0xff] }
 0x17f   :  { %v2115_v52 = vmax.f32 %v1527_v8, 0.0  ;;  %v2126_v3 = vmax.f32 %v1538_v58, 0.0  ;;  %v2129_v2 = vmax.f32 %v1541_v31, 0.0  ;;  %v3051_v15 = vpop.f32.mrf.mxu0  ;;  %v3643_v16 = vpop.f32.mrf.mxu1  ;;  %v2119_v46 = vmax.f32 %v1531_v43, 0.0 }
 0x180   :  { %v2122_v39 = vmax.f32 %v1534_v13, 0.0  ;;  %v2132_v34 = vmax.f32 %v1544_v30, 0.0  ;;  %v2135_v21 = vmax.f32 %v1547_v55, 0.0  ;;  %v2118_v7 = vmax.f32 %v1530_v40, 0.0 }
 0x181   :  { %v2121_v28 = vmax.f32 %v1533_v53, 0.0  ;;  %v1537_v17 = vadd.f32 %v5817_v19, %v932_v20  ;;  %v1540_v8 = vadd.f32 %v5817_v19, %v935_v45  ;;  %v8854_v58 = vpop.f32.mrf.mxu0  ;;  %3245 = vmatmul.mubr.bf16.gmra.mxu0 %v8285_v37  ;;  %v8857_v31 = vpop.f32.mrf.mxu1  ;;  %5542 = vmatmul.mubr.bf16.gmra.mxu1 %v8287_v50  ;;  %v2138_v16 = vmax.f32 %v1550_v56, 0.0  ;;  %v329_v53 = vld [vmem:[%s11736_s0 + $0x9a8] sm:$0xff] }
 0x182   :  { %11833 = vst [vmem:[#allocation76_spill] sm:$0xff] %v8854_v58  ;;  %11834 = vst [vmem:[#allocation77_spill] sm:$0xff] %v8857_v31  ;;  %v2141_v43 = vmax.f32 %v1553_v63, 0.0  ;;  %v954_v13 = vmul.f32 %v7166_v12, %v349_v62  ;;  %v8862_v30 = vadd.f32 %v7214_v35, %v951_v54  ;;  %3252 = vmatprep.mubr.bf16.mxu0 %v8289_v61  ;;  %5545 = vmatprep.mubr.bf16.mxu1 %v8291_v26  ;;  %v352_v61 = vld [vmem:[%s11736_s0 + $0xa60] sm:$0xff]  ;;  %v333_v54 = vld [vmem:[%s11736_s0 + $0x9c8] sm:$0xff] }
 0x183   :  { %v11835_v45 = vmax.f32 %v8701_v0, 0.0  ;;  %v11836_v55 = vmax.f32 %v8711_v23, 0.0  ;;  %v11837_v40 = vmax.f32 %v8751_v5, 0.0  ;;  %v931_v20 = vmul.f32 %v5815_v18, %v326_v32  ;;  %v3056_v26 = vpop.f32.mrf.mxu0  ;;  %v3648_v0 = vpop.f32.mrf.mxu1  ;;  %v336_v62 = vld [vmem:[%s11736_s0 + $0x9e0] sm:$0xff] }
 0x184   :  { %v8883_v56 = vpack.c.bf16 %v2123_v41, %v2120_v25  ;;  %v8885_v23 = vpack.c.bf16 %v2115_v52, %v2112_v1  ;;  %v8887_v63 = vpack.c.bf16 %v2129_v2, %v2126_v3  ;;  %v8889_v5 = vpack.c.bf16 %v2122_v39, %v2119_v46  ;;  %v358_v39 = vld [vmem:[%s11736_s0 + $0xa90] sm:$0xff]  ;;  %v361_v46 = vld [vmem:[%s11736_s0 + $0xaa8] sm:$0xff]  ;;  %v332_v52 = vld [vmem:[%s11736_s0 + $0x9c0] sm:$0xff] }
 0x185   :  { %v8870_v37 = vpack.c.bf16 %v11836_v55, %v11835_v45  ;;  %v8874_v50 = vpack.c.bf16 %v2116_v48, %v11837_v40  ;;  %v355_v48 = vld [vmem:[%s11736_s0 + $0xa78] sm:$0xff]  ;;  %v8900_v25 = vpack.c.bf16 %v2135_v21, %v2132_v34  ;;  %v8902_v41 = vpack.c.bf16 %v2121_v28, %v2118_v7  ;;  %v8913_v3 = vpop.f32.mrf.mxu0  ;;  %v8915_v21 = vpop.f32.mrf.mxu1  ;;  %v342_v40 = vld [vmem:[%s11736_s0 + $0xa10] sm:$0xff] }
 0x186   :  { %v2125_v2 = vmax.f32 %v1537_v17, 0.0  ;;  %v2128_v1 = vmax.f32 %v1540_v8, 0.0  ;;  %11838 = vst [vmem:[#allocation78_spill] sm:$0xff] %v8913_v3  ;;  %11839 = vst [vmem:[#allocation79_spill] sm:$0xff] %v8915_v21  ;;  %v8917_v15 = vpack.c.bf16 %v2141_v43, %v2138_v16  ;;  %v8920_v34 = vadd.f32 %v7214_v35, %v954_v13  ;;  %v335_v28 = vld [vmem:[%s11736_s0 + $0x9d8] sm:$0xff]  ;;  %v364_v17 = vld [vmem:[%s11736_s0 + $0xac0] sm:$0xff] }
 0x187   :  { %v934_v7 = vmul.f32 %v5815_v18, %v329_v53  ;;  %v367_v8 = vld [vmem:[%s11736_s0 + $0xad8] sm:$0xff]  ;;  %v8934_v16 = vadd.f32 %v5825_v22, %v931_v20  ;;  %v957_v43 = vmul.f32 %v7166_v12, %v352_v61  ;;  %v960_v13 = vmul.f32 %v7166_v12, %v355_v48  ;;  %v3059_v53 = vpop.f32.mrf.mxu0  ;;  %v3651_v26 = vpop.f32.mrf.mxu1 }
 0x188   :  { %11840 = vst [vmem:[#allocation80_spill] sm:$0xff] %v8917_v15  ;;  %v938_v45 = vmul.f32 %v5804_v14, %v333_v54  ;;  %v339_v55 = vld [vmem:[%s11736_s0 + $0x9f8] sm:$0xff]  ;;  %v941_v0 = vmul.f32 %v5804_v14, %v336_v62  ;;  %v963_v20 = vmul.f32 %v7166_v12, %v358_v39  ;;  %v966_v61 = vmul.f32 %v7166_v12, %v361_v46  ;;  %v11843_v53 = vld [vmem:[#allocation6_spill] sm:$0xff] }
 0x189   :  { %v937_v48 = vmul.f32 %v5815_v18, %v332_v52  ;;  %v8949_v32 = vpack.c.bf16 %v2128_v1, %v2125_v2  ;;  %v940_v54 = vmul.f32 %v5815_v18, %v335_v28  ;;  %v969_v21 = vmul.f32 %v7166_v12, %v364_v17  ;;  %v8954_v3 = vpop.f32.mrf.mxu0  ;;  %3253 = vmatmul.mubr.bf16.gmra.mxu0 %v11843_v53  ;;  %v8957_v26 = vpop.f32.mrf.mxu1  ;;  %v11845_v62 = vld [vmem:[#allocation42_spill] sm:$0xff]  ;;  %v370_v52 = vld [vmem:[%s11736_s0 + $0xaf0] sm:$0xff] }
 0x18a   :  { %v972_v31 = vmul.f32 %v7166_v12, %v367_v8  ;;  %11842 = vst [vmem:[#allocation82_spill] sm:$0xff] %v8954_v3  ;;  %11844 = vst [vmem:[#allocation6_spill] sm:$0xff] %v8957_v26  ;;  %5546 = vmatmul.mubr.bf16.gmra.mxu1 %v11845_v62  ;;  %v2147_v39 = vmax.f32 %v8920_v34, 0.0  ;;  %v8962_v46 = vadd.f32 %v5825_v22, %v934_v7  ;;  %3260 = vmatprep.mubr.bf16.mxu0 %v8349_v29  ;;  %v373_v8 = vld [vmem:[%s11736_s0 + $0xb08] sm:$0xff] }
 0x18b   :  { %11841 = vst [vmem:[#allocation81_spill] sm:$0xff] %v8949_v32  ;;  %v944_v2 = vmul.f32 %v5804_v14, %v339_v55  ;;  %v947_v1 = vmul.f32 %v5804_v14, %v342_v40  ;;  %5549 = vmatprep.mubr.bf16.mxu1 %v8421_v6  ;;  %v2124_v28 = vmax.f32 %v8934_v16, 0.0  ;;  %v1562_v17 = vadd.f32 %v7214_v35, %v957_v43  ;;  %v3064_v55 = vpop.f32.mrf.mxu0  ;;  %v3656_v40 = vpop.f32.mrf.mxu1  ;;  %v338_v43 = vld [vmem:[%s11736_s0 + $0x9f0] sm:$0xff] }
 0x18c   :  { %v1565_v34 = vadd.f32 %v7214_v35, %v960_v13  ;;  %v1543_v7 = vadd.f32 %v5817_v19, %v938_v45  ;;  %v1546_v53 = vadd.f32 %v5817_v19, %v941_v0  ;;  %v1568_v29 = vadd.f32 %v7214_v35, %v963_v20 }
 0x18d   :  { %v1571_v6 = vadd.f32 %v7214_v35, %v966_v61  ;;  %v1542_v16 = vadd.f32 %v5825_v22, %v937_v48  ;;  %v1545_v13 = vadd.f32 %v5825_v22, %v940_v54  ;;  %v1574_v45 = vadd.f32 %v7214_v35, %v969_v21  ;;  %v8989_v40 = vpop.f32.mrf.mxu0  ;;  %v8991_v0 = vpop.f32.mrf.mxu1 }
 0x18e   :  { %v1577_v62 = vadd.f32 %v7214_v35, %v972_v31  ;;  %v975_v55 = vmul.f32 %v7166_v12, %v370_v52  ;;  %11846 = vst [vmem:[#allocation42_spill] sm:$0xff] %v8989_v40  ;;  %11847 = vst [vmem:[#allocation83_spill] sm:$0xff] %v8991_v0  ;;  %v2127_v20 = vmax.f32 %v8962_v46, 0.0  ;;  %v1549_v61 = vadd.f32 %v5817_v19, %v944_v2  ;;  %v341_v31 = vld [vmem:[%s11736_s0 + $0xa08] sm:$0xff]  ;;  %v376_v2 = vld [vmem:[%s11736_s0 + $0xb20] sm:$0xff] }
 0x18f   :  { %v1552_v48 = vadd.f32 %v5817_v19, %v947_v1  ;;  %v978_v26 = vmul.f32 %v7166_v12, %v373_v8  ;;  %v2150_v58 = vmax.f32 %v1562_v17, 0.0  ;;  %v2153_v54 = vmax.f32 %v1565_v34, 0.0  ;;  %v3067_v52 = vpop.f32.mrf.mxu0  ;;  %v3659_v40 = vpop.f32.mrf.mxu1  ;;  %v379_v1 = vld [vmem:[%s11736_s0 + $0xb38] sm:$0xff] }
 0x190   :  { %v2131_v3 = vmax.f32 %v1543_v7, 0.0  ;;  %v943_v21 = vmul.f32 %v5815_v18, %v338_v43  ;;  %v2134_v0 = vmax.f32 %v1546_v53, 0.0  ;;  %v2156_v32 = vmax.f32 %v1568_v29, 0.0 }
 0x191   :  { %v2159_v46 = vmax.f32 %v1571_v6, 0.0  ;;  %v2130_v15 = vmax.f32 %v1542_v16, 0.0  ;;  %v2133_v17 = vmax.f32 %v1545_v13, 0.0  ;;  %v2162_v34 = vmax.f32 %v1574_v45, 0.0  ;;  %v9010_v43 = vpop.f32.mrf.mxu0  ;;  %3261 = vmatmul.mubr.bf16.gmra.mxu0 %v8423_v38  ;;  %v9013_v53 = vpop.f32.mrf.mxu1 }
 0x192   :  { %v2165_v7 = vmax.f32 %v1577_v62, 0.0  ;;  %v9008_v8 = vadd.f32 %v7214_v35, %v975_v55  ;;  %11848 = vst [vmem:[#allocation84_spill] sm:$0xff] %v9010_v43  ;;  %11849 = vst [vmem:[#allocation85_spill] sm:$0xff] %v9013_v53  ;;  %5550 = vmatmul.mubr.bf16.gmra.mxu1 %v8432_v27  ;;  %v2137_v29 = vmax.f32 %v1549_v61, 0.0  ;;  %v2140_v6 = vmax.f32 %v1552_v48, 0.0  ;;  %3268 = vmatprep.mubr.bf16.mxu0 %v8434_v57  ;;  %v345_v27 = vld [vmem:[%s11736_s0 + $0xa28] sm:$0xff] }
 0x193   :  { %v9017_v16 = vadd.f32 %v7214_v35, %v978_v26  ;;  %v946_v13 = vmul.f32 %v5815_v18, %v341_v31  ;;  %5553 = vmatprep.mubr.bf16.mxu1 %v8436_v4  ;;  %v9023_v45 = vadd.f32 %v5825_v22, %v943_v21  ;;  %v981_v38 = vmul.f32 %v7166_v12, %v376_v2  ;;  %v3072_v55 = vpop.f32.mrf.mxu0  ;;  %v3664_v26 = vpop.f32.mrf.mxu1  ;;  %v348_v31 = vld [vmem:[%s11736_s0 + $0xa40] sm:$0xff]  ;;  %v382_v21 = vld [vmem:[%s11736_s0 + $0xb50] sm:$0xff] }
 0x194   :  { %v984_v62 = vmul.f32 %v7166_v12, %v379_v1  ;;  %v11850_v40 = vmax.f32 %v8862_v30, 0.0  ;;  %v9034_v57 = vpack.c.bf16 %v2127_v20, %v2124_v28  ;;  %v9036_v4 = vpack.c.bf16 %v2153_v54, %v2150_v58  ;;  %v385_v30 = vld [vmem:[%s11736_s0 + $0xb68] sm:$0xff]  ;;  %v347_v20 = vld [vmem:[%s11736_s0 + $0xa38] sm:$0xff]  ;;  %v388_v54 = vld [vmem:[%s11736_s0 + $0xb80] sm:$0xff] }
 0x195   :  { %v9038_v48 = vpack.c.bf16 %v2134_v0, %v2131_v3  ;;  %v9051_v28 = vpack.c.bf16 %v2133_v17, %v2130_v15  ;;  %v9053_v58 = vpack.c.bf16 %v2165_v7, %v2162_v34  ;;  %v344_v0 = vld [vmem:[%s11736_s0 + $0xa20] sm:$0xff]  ;;  %v9067_v15 = vpop.f32.mrf.mxu1  ;;  %v9069_v52 = vpack.c.bf16 %v2140_v6, %v2137_v29  ;;  %v391_v17 = vld [vmem:[%s11736_s0 + $0xb98] sm:$0xff]  ;;  %v354_v7 = vld [vmem:[%s11736_s0 + $0xa70] sm:$0xff] }
 0x196   :  { %v9032_v61 = vpack.c.bf16 %v2147_v39, %v11850_v40  ;;  %v9049_v39 = vpack.c.bf16 %v2159_v46, %v2156_v32  ;;  %v9065_v32 = vpop.f32.mrf.mxu0  ;;  %11855 = vst [vmem:[#allocation90_spill] sm:$0xff] %v9067_v15  ;;  %v9073_v2 = vadd.f32 %v5825_v22, %v946_v13  ;;  %v950_v1 = vmul.f32 %v5804_v14, %v345_v27  ;;  %v351_v34 = vld [vmem:[%s11736_s0 + $0xa58] sm:$0xff]  ;;  %v394_v55 = vld [vmem:[%s11736_s0 + $0xbb0] sm:$0xff]  ;;  %v397_v26 = vld [vmem:[%s11736_s0 + $0xbc8] sm:$0xff] }
 0x197   :  { %11852 = vst [vmem:[#allocation87_spill] sm:$0xff] %v9051_v28  ;;  %11853 = vst [vmem:[#allocation88_spill] sm:$0xff] %v9053_v58  ;;  %v9087_v6 = vadd.f32 %v7214_v35, %v981_v38  ;;  %v9090_v13 = vadd.f32 %v7214_v35, %v984_v62  ;;  %v953_v27 = vmul.f32 %v5804_v14, %v348_v31  ;;  %v3667_v46 = vpop.f32.mrf.mxu1  ;;  %v350_v31 = vld [vmem:[%s11736_s0 + $0xa50] sm:$0xff]  ;;  %v353_v15 = vld [vmem:[%s11736_s0 + $0xa68] sm:$0xff] }
 0x198   :  { %11851 = vst [vmem:[#allocation86_spill] sm:$0xff] %v9049_v39  ;;  %11854 = vst [vmem:[#allocation89_spill] sm:$0xff] %v9065_v32  ;;  %v3075_v40 = vpop.f32.mrf.mxu0  ;;  %v987_v29 = vmul.f32 %v7166_v12, %v382_v21  ;;  %v990_v38 = vmul.f32 %v7166_v12, %v385_v30  ;;  %v949_v3 = vmul.f32 %v5815_v18, %v344_v0 }
 0x199   :  { %11856 = vst [vmem:[#allocation91_spill] sm:$0xff] %v9069_v52  ;;  %v952_v62 = vmul.f32 %v5815_v18, %v347_v20  ;;  %v993_v53 = vmul.f32 %v7166_v12, %v388_v54  ;;  %v996_v46 = vmul.f32 %v7166_v12, %v391_v17  ;;  %v956_v21 = vmul.f32 %v5804_v14, %v351_v34  ;;  %v9116_v0 = vpop.f32.mrf.mxu1  ;;  %v11859_v20 = vld [vmem:[#allocation15_spill] sm:$0xff] }
 0x19a   :  { %v959_v30 = vmul.f32 %v5804_v14, %v354_v7  ;;  %v9113_v40 = vpop.f32.mrf.mxu0  ;;  %3269 = vmatmul.mubr.bf16.gmra.mxu0 %v8438_v44  ;;  %11858 = vst [vmem:[#allocation93_spill] sm:$0xff] %v9116_v0  ;;  %5554 = vmatmul.mubr.bf16.gmra.mxu1 %v11859_v20  ;;  %v9121_v43 = vadd.f32 %v5817_v19, %v950_v1  ;;  %v11860_v34 = vld [vmem:[#allocation51_spill] sm:$0xff]  ;;  %v2174_v7 = vmax.f32 %v9087_v6, 0.0 }
 0x19b   :  { %11857 = vst [vmem:[#allocation92_spill] sm:$0xff] %v9113_v40  ;;  %v999_v54 = vmul.f32 %v7166_v12, %v394_v55  ;;  %v1002_v17 = vmul.f32 %v7166_v12, %v397_v26  ;;  %3276 = vmatprep.mubr.bf16.mxu0 %v11860_v34  ;;  %5557 = vmatprep.mubr.bf16.mxu1 %v8496_v36  ;;  %v3672_v40 = vpop.f32.mrf.mxu1  ;;  %v400_v36 = vld [vmem:[%s11736_s0 + $0xbe0] sm:$0xff] }
 0x19c   :  { %v1558_v44 = vadd.f32 %v5817_v19, %v953_v27  ;;  %v955_v0 = vmul.f32 %v5815_v18, %v350_v31  ;;  %v958_v20 = vmul.f32 %v5815_v18, %v353_v15  ;;  %v3080_v32 = vpop.f32.mrf.mxu0  ;;  %v1592_v1 = vadd.f32 %v7214_v35, %v987_v29 }
 0x19d   :  { %v1595_v55 = vadd.f32 %v7214_v35, %v990_v38  ;;  %v1554_v26 = vadd.f32 %v5825_v22, %v949_v3  ;;  %v1557_v34 = vadd.f32 %v5825_v22, %v952_v62  ;;  %v1598_v6 = vadd.f32 %v7214_v35, %v993_v53  ;;  %v9144_v29 = vpop.f32.mrf.mxu1 }
 0x19e   :  { %v1601_v27 = vadd.f32 %v7214_v35, %v996_v46  ;;  %v1561_v15 = vadd.f32 %v5817_v19, %v956_v21  ;;  %v1564_v32 = vadd.f32 %v5817_v19, %v959_v30  ;;  %v9142_v31 = vpop.f32.mrf.mxu0  ;;  %11862 = vst [vmem:[#allocation51_spill] sm:$0xff] %v9144_v29  ;;  %v2177_v3 = vmax.f32 %v9090_v13, 0.0  ;;  %v403_v21 = vld [vmem:[%s11736_s0 + $0xbf8] sm:$0xff]  ;;  %v357_v13 = vld [vmem:[%s11736_s0 + $0xa88] sm:$0xff] }
 0x19f   :  { %11861 = vst [vmem:[#allocation15_spill] sm:$0xff] %v9142_v31  ;;  %v2143_v38 = vmax.f32 %v9121_v43, 0.0  ;;  %v1604_v62 = vadd.f32 %v7214_v35, %v999_v54  ;;  %v1607_v40 = vadd.f32 %v7214_v35, %v1002_v17  ;;  %v2146_v52 = vmax.f32 %v1558_v44, 0.0  ;;  %v3675_v29 = vpop.f32.mrf.mxu1 }
 0x1a0   :  { %v1560_v53 = vadd.f32 %v5825_v22, %v955_v0  ;;  %v1563_v46 = vadd.f32 %v5825_v22, %v958_v20  ;;  %v1005_v30 = vmul.f32 %v7166_v12, %v400_v36  ;;  %v3083_v43 = vpop.f32.mrf.mxu0  ;;  %v2180_v54 = vmax.f32 %v1592_v1, 0.0  ;;  %v360_v0 = vld [vmem:[%s11736_s0 + $0xaa0] sm:$0xff]  ;;  %v406_v36 = vld [vmem:[%s11736_s0 + $0xc10] sm:$0xff]  ;;  %v409_v29 = vld [vmem:[%s11736_s0 + $0xc28] sm:$0xff] }
 0x1a1   :  { %v2183_v31 = vmax.f32 %v1595_v55, 0.0  ;;  %v2142_v17 = vmax.f32 %v1554_v26, 0.0  ;;  %v2145_v44 = vmax.f32 %v1557_v34, 0.0  ;;  %v2186_v20 = vmax.f32 %v1598_v6, 0.0  ;;  %v9171_v55 = vpop.f32.mrf.mxu1 }
 0x1a2   :  { %v2189_v58 = vmax.f32 %v1601_v27, 0.0  ;;  %v2149_v28 = vmax.f32 %v1561_v15, 0.0  ;;  %v2152_v39 = vmax.f32 %v1564_v32, 0.0  ;;  %v9168_v1 = vpop.f32.mrf.mxu0  ;;  %3277 = vmatmul.mubr.bf16.gmra.mxu0 %v8568_v60  ;;  %11864 = vst [vmem:[#allocation95_spill] sm:$0xff] %v9171_v55  ;;  %5558 = vmatmul.mubr.bf16.gmra.mxu1 %v8570_v51  ;;  %v2192_v26 = vmax.f32 %v1604_v62, 0.0 }
 0x1a3   :  { %11863 = vst [vmem:[#allocation94_spill] sm:$0xff] %v9168_v1  ;;  %v2195_v34 = vmax.f32 %v1607_v40, 0.0  ;;  %v1008_v6 = vmul.f32 %v7166_v12, %v403_v21  ;;  %v962_v27 = vmul.f32 %v5804_v14, %v357_v13  ;;  %3284 = vmatprep.mubr.bf16.mxu0 %v8579_v11  ;;  %5561 = vmatprep.mubr.bf16.mxu1 %v8581_v49  ;;  %v2148_v15 = vmax.f32 %v1560_v53, 0.0  ;;  %v3680_v1 = vpop.f32.mrf.mxu1 }
 0x1a4   :  { %v2151_v32 = vmax.f32 %v1563_v46, 0.0  ;;  %v9179_v43 = vadd.f32 %v7214_v35, %v1005_v30  ;;  %v965_v60 = vmul.f32 %v5804_v14, %v360_v0  ;;  %v3088_v55 = vpop.f32.mrf.mxu0  ;;  %v11865_v51 = vmax.f32 %v9008_v8, 0.0  ;;  %v421_v1 = vld [vmem:[%s11736_s0 + $0xc88] sm:$0xff] }
 0x1a5   :  { %v11866_v62 = vmax.f32 %v9017_v16, 0.0  ;;  %v11867_v21 = vmax.f32 %v9023_v45, 0.0  ;;  %v11868_v11 = vmax.f32 %v9073_v2, 0.0  ;;  %v1011_v53 = vmul.f32 %v7166_v12, %v406_v36  ;;  %v356_v16 = vld [vmem:[%s11736_s0 + $0xa80] sm:$0xff]  ;;  %v359_v45 = vld [vmem:[%s11736_s0 + $0xa98] sm:$0xff]  ;;  %v362_v55 = vld [vmem:[%s11736_s0 + $0xab0] sm:$0xff] }
 0x1a6   :  { %v1014_v46 = vmul.f32 %v7166_v12, %v409_v29  ;;  %v9196_v30 = vpack.c.bf16 %v2177_v3, %v2174_v7  ;;  %v9198_v13 = vpack.c.bf16 %v2146_v52, %v2143_v38  ;;  %v9200_v0 = vpack.c.bf16 %v2183_v31, %v2180_v54  ;;  %v412_v2 = vld [vmem:[%s11736_s0 + $0xc40] sm:$0xff]  ;;  %v9213_v7 = vpop.f32.mrf.mxu0  ;;  %v9215_v52 = vpop.f32.mrf.mxu1  ;;  %v418_v29 = vld [vmem:[%s11736_s0 + $0xc70] sm:$0xff] }
 0x1a7   :  { %v9186_v40 = vpack.c.bf16 %v11866_v62, %v11865_v51  ;;  %v9192_v49 = vpack.c.bf16 %v11868_v11, %v11867_v21  ;;  %v9202_v8 = vpack.c.bf16 %v2145_v44, %v2142_v17  ;;  %11870 = vst [vmem:[#allocation97_spill] sm:$0xff] %v9213_v7  ;;  %11871 = vst [vmem:[#allocation98_spill] sm:$0xff] %v9215_v52  ;;  %v415_v17 = vld [vmem:[%s11736_s0 + $0xc58] sm:$0xff]  ;;  %v424_v51 = vld [vmem:[%s11736_s0 + $0xca0] sm:$0xff] }
 0x1a8   :  { %v9217_v31 = vpack.c.bf16 %v2189_v58, %v2186_v20  ;;  %v9219_v3 = vpack.c.bf16 %v2152_v39, %v2149_v28  ;;  %v9221_v38 = vpack.c.bf16 %v2195_v34, %v2192_v26  ;;  %v9224_v54 = vadd.f32 %v7214_v35, %v1008_v6  ;;  %v363_v44 = vld [vmem:[%s11736_s0 + $0xab8] sm:$0xff]  ;;  %v366_v58 = vld [vmem:[%s11736_s0 + $0xad0] sm:$0xff]  ;;  %v3091_v26 = vpop.f32.mrf.mxu0  ;;  %v3683_v34 = vpop.f32.mrf.mxu1 }
 0x1a9   :  { %11869 = vst [vmem:[#allocation96_spill] sm:$0xff] %v9202_v8  ;;  %v9235_v20 = vpack.c.bf16 %v2151_v32, %v2148_v15  ;;  %v9239_v28 = vadd.f32 %v5817_v19, %v962_v27  ;;  %v9242_v36 = vadd.f32 %v5817_v19, %v965_v60  ;;  %v9254_v6 = vadd.f32 %v7214_v35, %v1011_v53  ;;  %v365_v60 = vld [vmem:[%s11736_s0 + $0xac8] sm:$0xff]  ;;  %v427_v62 = vld [vmem:[%s11736_s0 + $0xcb8] sm:$0xff]  ;;  %v11878_v39 = vld [vmem:[#allocation24_spill] sm:$0xff] }
 0x1aa   :  { %11872 = vst [vmem:[#allocation99_spill] sm:$0xff] %v9217_v31  ;;  %11873 = vst [vmem:[#allocation100_spill] sm:$0xff] %v9219_v3  ;;  %v9257_v27 = vadd.f32 %v7214_v35, %v1014_v46  ;;  %v961_v15 = vmul.f32 %v5815_v18, %v356_v16  ;;  %v964_v32 = vmul.f32 %v5815_v18, %v359_v45  ;;  %v9274_v16 = vpop.f32.mrf.mxu0  ;;  %3285 = vmatmul.mubr.bf16.gmra.mxu0 %v8583_v10  ;;  %v9277_v45 = vpop.f32.mrf.mxu1 }
 0x1ab   :  { %11874 = vst [vmem:[#allocation101_spill] sm:$0xff] %v9221_v38  ;;  %11875 = vst [vmem:[#allocation102_spill] sm:$0xff] %v9235_v20  ;;  %v1017_v21 = vmul.f32 %v7166_v12, %v412_v2  ;;  %v1020_v11 = vmul.f32 %v7166_v12, %v415_v17  ;;  %v968_v53 = vmul.f32 %v5804_v14, %v363_v44  ;;  %5562 = vmatmul.mubr.bf16.gmra.mxu1 %v8585_v24  ;;  %v11879_v44 = vld [vmem:[#allocation60_spill] sm:$0xff] }
 0x1ac   :  { %v971_v46 = vmul.f32 %v5804_v14, %v366_v58  ;;  %11876 = vst [vmem:[#allocation103_spill] sm:$0xff] %v9274_v16  ;;  %11877 = vst [vmem:[#allocation104_spill] sm:$0xff] %v9277_v45  ;;  %v1023_v34 = vmul.f32 %v7166_v12, %v418_v29  ;;  %v1026_v2 = vmul.f32 %v7166_v12, %v421_v1  ;;  %3292 = vmatprep.mubr.bf16.mxu0 %v11878_v39  ;;  %v3096_v45 = vpop.f32.mrf.mxu0  ;;  %v3688_v26 = vpop.f32.mrf.mxu1 }
 0x1ad   :  { %v967_v17 = vmul.f32 %v5815_v18, %v362_v55  ;;  %5565 = vmatprep.mubr.bf16.mxu1 %v11879_v44  ;;  %v2155_v58 = vmax.f32 %v9239_v28, 0.0  ;;  %v970_v10 = vmul.f32 %v5815_v18, %v365_v60  ;;  %v1029_v52 = vmul.f32 %v7166_v12, %v424_v51  ;;  %v369_v28 = vld [vmem:[%s11736_s0 + $0xae8] sm:$0xff] }
 0x1ae   :  { %v1032_v24 = vmul.f32 %v7166_v12, %v427_v62  ;;  %v2158_v29 = vmax.f32 %v9242_v36, 0.0  ;;  %v2204_v1 = vmax.f32 %v9254_v6, 0.0  ;;  %v1566_v55 = vadd.f32 %v5825_v22, %v961_v15  ;;  %v372_v36 = vld [vmem:[%s11736_s0 + $0xb00] sm:$0xff]  ;;  %v430_v6 = vld [vmem:[%s11736_s0 + $0xcd0] sm:$0xff]  ;;  %v9307_v15 = vpop.f32.mrf.mxu0  ;;  %v433_v26 = vld [vmem:[%s11736_s0 + $0xce8] sm:$0xff] }
 0x1af   :  { %v1569_v39 = vadd.f32 %v5825_v22, %v964_v32  ;;  %v2207_v60 = vmax.f32 %v9257_v27, 0.0  ;;  %v1622_v51 = vadd.f32 %v7214_v35, %v1017_v21  ;;  %v1625_v62 = vadd.f32 %v7214_v35, %v1020_v11  ;;  %11880 = vst [vmem:[#allocation24_spill] sm:$0xff] %v9307_v15  ;;  %v9309_v32 = vpop.f32.mrf.mxu1 }
 0x1b0   :  { %v1573_v45 = vadd.f32 %v5817_v19, %v968_v53  ;;  %11881 = vst [vmem:[#allocation60_spill] sm:$0xff] %v9309_v32  ;;  %v1576_v27 = vadd.f32 %v5817_v19, %v971_v46  ;;  %v1628_v21 = vadd.f32 %v7214_v35, %v1023_v34  ;;  %v1631_v11 = vadd.f32 %v7214_v35, %v1026_v2  ;;  %v3099_v16 = vpop.f32.mrf.mxu0 }
 0x1b1   :  { %v1572_v53 = vadd.f32 %v5825_v22, %v967_v17  ;;  %v1575_v44 = vadd.f32 %v5825_v22, %v970_v10  ;;  %v1634_v7 = vadd.f32 %v7214_v35, %v1029_v52  ;;  %v1637_v15 = vadd.f32 %v7214_v35, %v1032_v24  ;;  %v3691_v46 = vpop.f32.mrf.mxu1  ;;  %v368_v52 = vld [vmem:[%s11736_s0 + $0xae0] sm:$0xff]  ;;  %v11883_v24 = vld [vmem:[#allocation61_spill] sm:$0xff] }
 0x1b2   :  { %v974_v32 = vmul.f32 %v5804_v14, %v369_v28  ;;  %v2154_v20 = vmax.f32 %v1566_v55, 0.0  ;;  %v2157_v34 = vmax.f32 %v1569_v39, 0.0  ;;  %v977_v2 = vmul.f32 %v5804_v14, %v372_v36  ;;  %v9328_v10 = vpop.f32.mrf.mxu0  ;;  %3293 = vmatmul.mubr.bf16.gmra.mxu0 %v11883_v24 }
 0x1b3   :  { %v1035_v17 = vmul.f32 %v7166_v12, %v430_v6  ;;  %v2210_v38 = vmax.f32 %v1622_v51, 0.0  ;;  %v2213_v3 = vmax.f32 %v1625_v62, 0.0  ;;  %v2161_v31 = vmax.f32 %v1573_v45, 0.0  ;;  %11882 = vst [vmem:[#allocation105_spill] sm:$0xff] %v9328_v10  ;;  %v9331_v16 = vpop.f32.mrf.mxu1  ;;  %5566 = vmatmul.mubr.bf16.gmra.mxu1 %v8719_v42  ;;  %v371_v62 = vld [vmem:[%s11736_s0 + $0xaf8] sm:$0xff]  ;;  %v436_v45 = vld [vmem:[%s11736_s0 + $0xd00] sm:$0xff]  ;;  %3300 = vmatprep.mubr.bf16.mxu0 %v8721_v59 }
 0x1b4   :  { %v1038_v8 = vmul.f32 %v7166_v12, %v433_v26  ;;  %11884 = vst [vmem:[#allocation61_spill] sm:$0xff] %v9331_v16  ;;  %v2164_v55 = vmax.f32 %v1576_v27, 0.0  ;;  %v2216_v39 = vmax.f32 %v1628_v21, 0.0  ;;  %v2219_v28 = vmax.f32 %v1631_v11, 0.0  ;;  %5569 = vmatprep.mubr.bf16.mxu1 %v8730_v47  ;;  %v3104_v27 = vpop.f32.mrf.mxu0  ;;  %v11898_v10 = vld [vmem:[#allocation7_spill] sm:$0xff] }
 0x1b5   :  { %v2160_v51 = vmax.f32 %v1572_v53, 0.0  ;;  %v2163_v36 = vmax.f32 %v1575_v44, 0.0  ;;  %v2222_v6 = vmax.f32 %v1634_v7, 0.0  ;;  %v2225_v26 = vmax.f32 %v1637_v15, 0.0  ;;  %v3696_v21 = vpop.f32.mrf.mxu1 }
 0x1b6   :  { %v1579_v42 = vadd.f32 %v5817_v19, %v974_v32  ;;  %v11885_v11 = vmax.f32 %v9179_v43, 0.0  ;;  %v11886_v53 = vmax.f32 %v9224_v54, 0.0  ;;  %v1582_v24 = vadd.f32 %v5817_v19, %v977_v2  ;;  %v439_v43 = vld [vmem:[%s11736_s0 + $0xd18] sm:$0xff]  ;;  %v9360_v32 = vpop.f32.mrf.mxu0 }
 0x1b7   :  { %v1640_v16 = vadd.f32 %v7214_v35, %v1035_v17  ;;  %v973_v59 = vmul.f32 %v5815_v18, %v368_v52  ;;  %v9352_v47 = vpack.c.bf16 %v2158_v29, %v2155_v58  ;;  %v1643_v7 = vadd.f32 %v7214_v35, %v1038_v8  ;;  %11887 = vst [vmem:[#allocation106_spill] sm:$0xff] %v9360_v32  ;;  %v9362_v44 = vpop.f32.mrf.mxu1  ;;  %v375_v8 = vld [vmem:[%s11736_s0 + $0xb18] sm:$0xff] }
 0x1b8   :  { %v9347_v46 = vpack.c.bf16 %v11886_v53, %v11885_v11  ;;  %v976_v15 = vmul.f32 %v5815_v18, %v371_v62  ;;  %v1041_v54 = vmul.f32 %v7166_v12, %v436_v45  ;;  %11888 = vst [vmem:[#allocation107_spill] sm:$0xff] %v9362_v44  ;;  %v9364_v2 = vpack.c.bf16 %v2207_v60, %v2204_v1  ;;  %v451_v21 = vld [vmem:[%s11736_s0 + $0xd78] sm:$0xff] }
 0x1b9   :  { %v9366_v17 = vpack.c.bf16 %v2157_v34, %v2154_v20  ;;  %v9368_v58 = vpack.c.bf16 %v2213_v3, %v2210_v38  ;;  %v9370_v29 = vpack.c.bf16 %v2164_v55, %v2161_v31  ;;  %v9375_v52 = vpack.c.bf16 %v2219_v28, %v2216_v39  ;;  %v378_v20 = vld [vmem:[%s11736_s0 + $0xb30] sm:$0xff]  ;;  %v445_v3 = vld [vmem:[%s11736_s0 + $0xd48] sm:$0xff]  ;;  %v3107_v38 = vpop.f32.mrf.mxu0  ;;  %v3699_v1 = vpop.f32.mrf.mxu1 }
 0x1ba   :  { %v9377_v62 = vpack.c.bf16 %v2163_v36, %v2160_v51  ;;  %v9379_v45 = vpack.c.bf16 %v2225_v26, %v2222_v6  ;;  %v2167_v27 = vmax.f32 %v1579_v42, 0.0  ;;  %v442_v31 = vld [vmem:[%s11736_s0 + $0xd30] sm:$0xff]  ;;  %v2170_v60 = vmax.f32 %v1582_v24, 0.0  ;;  %v377_v51 = vld [vmem:[%s11736_s0 + $0xb28] sm:$0xff]  ;;  %v448_v36 = vld [vmem:[%s11736_s0 + $0xd60] sm:$0xff]  ;;  %3301 = vmatmul.mubr.bf16.gmra.mxu0 %v8732_v33 }
 0x1bb   :  { %v2228_v34 = vmax.f32 %v1640_v16, 0.0  ;;  %v9391_v55 = vadd.f32 %v5825_v22, %v973_v59  ;;  %v1044_v39 = vmul.f32 %v7166_v12, %v439_v43  ;;  %v374_v28 = vld [vmem:[%s11736_s0 + $0xb10] sm:$0xff]  ;;  %v2231_v6 = vmax.f32 %v1643_v7, 0.0  ;;  %v9413_v11 = vpop.f32.mrf.mxu0  ;;  %v9416_v53 = vpop.f32.mrf.mxu1  ;;  %5570 = vmatmul.mubr.bf16.gmra.mxu1 %v8734_v9  ;;  %v384_v43 = vld [vmem:[%s11736_s0 + $0xb60] sm:$0xff]  ;;  %v11892_v33 = vld [vmem:[#allocation69_spill] sm:$0xff] }
 0x1bc   :  { %v9404_v16 = vadd.f32 %v5825_v22, %v976_v15  ;;  %v9407_v26 = vadd.f32 %v7214_v35, %v1041_v54  ;;  %v980_v42 = vmul.f32 %v5804_v14, %v375_v8  ;;  %11889 = vst [vmem:[#allocation108_spill] sm:$0xff] %v9413_v11  ;;  %11890 = vst [vmem:[#allocation109_spill] sm:$0xff] %v9416_v53  ;;  %v381_v15 = vld [vmem:[%s11736_s0 + $0xb48] sm:$0xff]  ;;  %v11891_v54 = vld [vmem:[#allocation68_spill] sm:$0xff]  ;;  %5573 = vmatprep.mubr.bf16.mxu1 %v11892_v33 }
 0x1bd   :  { %v983_v24 = vmul.f32 %v5804_v14, %v378_v20  ;;  %v1047_v59 = vmul.f32 %v7166_v12, %v442_v31  ;;  %v1050_v7 = vmul.f32 %v7166_v12, %v445_v3  ;;  %3308 = vmatprep.mubr.bf16.mxu0 %v11891_v54  ;;  %v979_v9 = vmul.f32 %v5815_v18, %v374_v28  ;;  %v3112_v31 = vpop.f32.mrf.mxu0  ;;  %v3704_v3 = vpop.f32.mrf.mxu1 }
 0x1be   :  { %v982_v8 = vmul.f32 %v5815_v18, %v377_v51  ;;  %v1053_v20 = vmul.f32 %v7166_v12, %v448_v36  ;;  %v9433_v38 = vpack.c.bf16 %v2170_v60, %v2167_v27  ;;  %v2166_v1 = vmax.f32 %v9391_v55, 0.0  ;;  %v454_v27 = vld [vmem:[%s11736_s0 + $0xd90] sm:$0xff]  ;;  %v457_v60 = vld [vmem:[%s11736_s0 + $0xda8] sm:$0xff] }
 0x1bf   :  { %v9437_v44 = vadd.f32 %v7214_v35, %v1044_v39  ;;  %v1056_v53 = vmul.f32 %v7166_v12, %v451_v21  ;;  %v9440_v54 = vpack.c.bf16 %v2231_v6, %v2228_v34  ;;  %v9443_v33 = vadd.f32 %v5817_v19, %v980_v42  ;;  %v9453_v55 = vpop.f32.mrf.mxu0  ;;  %v9455_v39 = vpop.f32.mrf.mxu1  ;;  %v380_v21 = vld [vmem:[%s11736_s0 + $0xb40] sm:$0xff] }
 0x1c0   :  { %v986_v28 = vmul.f32 %v5804_v14, %v381_v15  ;;  %v989_v51 = vmul.f32 %v5804_v14, %v384_v43  ;;  %11894 = vst [vmem:[#allocation69_spill] sm:$0xff] %v9453_v55  ;;  %11895 = vst [vmem:[#allocation110_spill] sm:$0xff] %v9455_v39  ;;  %v2169_v34 = vmax.f32 %v9404_v16, 0.0  ;;  %v1588_v36 = vadd.f32 %v5817_v19, %v983_v24  ;;  %v383_v16 = vld [vmem:[%s11736_s0 + $0xb58] sm:$0xff] }
 0x1c1   :  { %11893 = vst [vmem:[#allocation68_spill] sm:$0xff] %v9440_v54  ;;  %v1652_v6 = vadd.f32 %v7214_v35, %v1047_v59  ;;  %v1655_v42 = vadd.f32 %v7214_v35, %v1050_v7  ;;  %v2234_v15 = vmax.f32 %v9407_v26, 0.0  ;;  %v1584_v43 = vadd.f32 %v5825_v22, %v979_v9  ;;  %v3115_v24 = vpop.f32.mrf.mxu0  ;;  %v3707_v59 = vpop.f32.mrf.mxu1 }
 0x1c2   :  { %v1587_v31 = vadd.f32 %v5825_v22, %v982_v8  ;;  %v1658_v3 = vadd.f32 %v7214_v35, %v1053_v20  ;;  %v2237_v7 = vmax.f32 %v9437_v44, 0.0  ;;  %v1661_v39 = vadd.f32 %v7214_v35, %v1056_v53  ;;  %v460_v24 = vld [vmem:[%s11736_s0 + $0xdc0] sm:$0xff]  ;;  %v11897_v44 = vld [vmem:[#allocation72_spill] sm:$0xff] }
 0x1c3   :  { %v1059_v32 = vmul.f32 %v7166_v12, %v454_v27  ;;  %v1062_v26 = vmul.f32 %v7166_v12, %v457_v60  ;;  %v2173_v9 = vmax.f32 %v9443_v33, 0.0  ;;  %v1591_v8 = vadd.f32 %v5817_v19, %v986_v28  ;;  %v9482_v59 = vpop.f32.mrf.mxu0  ;;  %3309 = vmatmul.mubr.bf16.gmra.mxu0 %v11897_v44  ;;  %v5479_v53 = vpop.f32.mrf.mxu1  ;;  %5574 = vmatmul.mubr.bf16.gmra.mxu1 %v8870_v37  ;;  %v463_v44 = vld [vmem:[%s11736_s0 + $0xdd8] sm:$0xff] }
 0x1c4   :  { %v1594_v20 = vadd.f32 %v5817_v19, %v989_v51  ;;  %v985_v55 = vmul.f32 %v5815_v18, %v380_v21  ;;  %11896 = vst [vmem:[#allocation111_spill] sm:$0xff] %v9482_v59  ;;  %v2176_v27 = vmax.f32 %v1588_v36, 0.0  ;;  %v2240_v60 = vmax.f32 %v1652_v6, 0.0  ;;  %3316 = vmatprep.mubr.bf16.mxu0 %v8874_v50  ;;  %5577 = vmatprep.mubr.bf16.mxu1 %v8883_v56  ;;  %v11899_v50 = vld [vmem:[#allocation2_spill] sm:$0xff] }
 0x1c5   :  { %v2243_v33 = vmax.f32 %v1655_v42, 0.0  ;;  %v988_v28 = vmul.f32 %v5815_v18, %v383_v16  ;;  %v9488_v51 = vadd.f32 %v5479_v53, %v11898_v10  ;;  %v2172_v21 = vmax.f32 %v1584_v43, 0.0  ;;  %v3120_v37 = vpop.f32.mrf.mxu0  ;;  %v3743_v36 = vpop.f32.mrf.mxu1 }
 0x1c6   :  { %v2175_v11 = vmax.f32 %v1587_v31, 0.0  ;;  %v2246_v59 = vmax.f32 %v1658_v3, 0.0  ;;  %v2249_v6 = vmax.f32 %v1661_v39, 0.0  ;;  %v1664_v42 = vadd.f32 %v7214_v35, %v1059_v32  ;;  %v387_v39 = vld [vmem:[%s11736_s0 + $0xb78] sm:$0xff] }
 0x1c7   :  { %v1667_v16 = vadd.f32 %v7214_v35, %v1062_v26  ;;  %v1065_v10 = vmul.f32 %v7166_v12, %v460_v24  ;;  %4528 = vst [vmem:[%s11739_s4 + $0x10] sm:$0xff] %v9488_v51  ;;  %v3744_v56 = vadd.f32 %v3743_v36, %v11899_v50  ;;  %v2179_v43 = vmax.f32 %v1591_v8, 0.0  ;;  %v9507_v32 = vpop.f32.mrf.mxu0  ;;  %v5480_v26 = vpop.f32.mrf.mxu1 }
 0x1c8   :  { %v2182_v31 = vmax.f32 %v1594_v20, 0.0  ;;  %v1590_v3 = vadd.f32 %v5825_v22, %v985_v55  ;;  %11900 = vst [vmem:[#allocation72_spill] sm:$0xff] %v9507_v32  ;;  %v9509_v53 = vpack.c.bf16 %v2169_v34, %v2166_v1  ;;  %v9511_v24 = vpack.c.bf16 %v2237_v7, %v2234_v15  ;;  %v11901_v55 = vld [vmem:[#allocation9_spill] sm:$0xff]  ;;  %v390_v1 = vld [vmem:[%s11736_s0 + $0xb90] sm:$0xff] }
 0x1c9   :  { %v1593_v37 = vadd.f32 %v5825_v22, %v988_v28  ;;  %v1068_v54 = vmul.f32 %v7166_v12, %v463_v44  ;;  %4526 = vst [vmem:[%s11739_s4] sm:$0xff] %v3744_v56  ;;  %v3755_v8 = vadd.f32 %v5480_v26, %v11901_v55  ;;  %v9519_v20 = vpack.c.bf16 %v2176_v27, %v2173_v9  ;;  %v3123_v34 = vpop.f32.mrf.mxu0  ;;  %v3746_v15 = vpop.f32.mrf.mxu1  ;;  %v11902_v9 = vld [vmem:[#allocation4_spill] sm:$0xff] }
 0x1ca   :  { %v9521_v36 = vpack.c.bf16 %v2243_v33, %v2240_v60  ;;  %v9523_v50 = vpack.c.bf16 %v2175_v11, %v2172_v21  ;;  %v2252_v7 = vmax.f32 %v1664_v42, 0.0  ;;  %v2255_v28 = vmax.f32 %v1667_v16, 0.0  ;;  %v466_v21 = vld [vmem:[%s11736_s0 + $0xdf0] sm:$0xff] }
 0x1cb   :  { %v9529_v44 = vadd.f32 %v7214_v35, %v1065_v10  ;;  %v992_v32 = vmul.f32 %v5804_v14, %v387_v39  ;;  %4529 = vst [vmem:[%s11739_s4 + $0x18] sm:$0xff] %v3755_v8  ;;  %v3747_v11 = vadd.f32 %v3746_v15, %v11902_v9  ;;  %v9536_v27 = vpack.c.bf16 %v2249_v6, %v2246_v59  ;;  %v9543_v16 = vpop.f32.mrf.mxu0  ;;  %v5483_v10 = vpop.f32.mrf.mxu1  ;;  %v11904_v15 = vld [vmem:[#allocation11_spill] sm:$0xff] }
 0x1cc   :  { %v9538_v60 = vpack.c.bf16 %v2182_v31, %v2179_v43  ;;  %v2178_v33 = vmax.f32 %v1590_v3, 0.0  ;;  %v4923_v42 = vmul.f32 %v3744_v56, %v3744_v56  ;;  %3317 = vmatmul.mubr.bf16.gmra.mxu0 %v8885_v23  ;;  %5578 = vmatmul.mubr.bf16.gmra.mxu1 %v8887_v63  ;;  %v2181_v39 = vmax.f32 %v1593_v37, 0.0  ;;  %v11903_v31 = vld [vmem:[#allocation16_spill] sm:$0xff]  ;;  %v469_v23 = vld [vmem:[%s11736_s0 + $0xe08] sm:$0xff] }
 0x1cd   :  { %v1673_v26 = vadd.f32 %v7214_v35, %v1068_v54  ;;  %v995_v59 = vmul.f32 %v5804_v14, %v390_v1  ;;  %4527 = vst [vmem:[%s11739_s4 + $0x8] sm:$0xff] %v3747_v11  ;;  %v4722_v6 = vadd.f32 %v3747_v11, %v3744_v56  ;;  %v4924_v43 = vmul.f32 %v3747_v11, %v3747_v11  ;;  %v3128_v63 = vpop.f32.mrf.mxu0  ;;  %v3759_v54 = vpop.f32.mrf.mxu1 }
 0x1ce   :  { %v9553_v3 = vadd.f32 %v5483_v10, %v11903_v31  ;;  %3324 = vmatprep.mubr.bf16.mxu0 %v8889_v5  ;;  %5581 = vmatprep.mubr.bf16.mxu1 %v8900_v25  ;;  %v9560_v37 = vpack.c.bf16 %v2255_v28, %v2252_v7  ;;  %v2258_v55 = vmax.f32 %v9529_v44, 0.0  ;;  %v9564_v56 = vadd.f32 %v5817_v19, %v992_v32  ;;  %v386_v32 = vld [vmem:[%s11736_s0 + $0xb70] sm:$0xff]  ;;  %v389_v28 = vld [vmem:[%s11736_s0 + $0xb88] sm:$0xff]  ;;  %v11906_v31 = vld [vmem:[#allocation18_spill] sm:$0xff] }
 0x1cf   :  { %v1071_v1 = vmul.f32 %v7166_v12, %v466_v21  ;;  %v4925_v5 = vmul.f32 %v9488_v51, %v9488_v51  ;;  %v4723_v25 = vadd.f32 %v4722_v6, %v9488_v51  ;;  %v5119_v34 = vadd.f32 %v4924_v43, %v4923_v42  ;;  %v9581_v44 = vpop.f32.mrf.mxu0  ;;  %v5484_v9 = vpop.f32.mrf.mxu1 }
 0x1d0   :  { %4532 = vst [vmem:[%s11739_s4 + $0x30] sm:$0xff] %v9553_v3  ;;  %v3760_v7 = vadd.f32 %v3759_v54, %v11904_v15  ;;  %11905 = vst [vmem:[#allocation7_spill] sm:$0xff] %v9581_v44  ;;  %v9583_v51 = vpack.c.bf16 %v2181_v39, %v2178_v33  ;;  %v2261_v11 = vmax.f32 %v1673_v26, 0.0  ;;  %v1600_v21 = vadd.f32 %v5817_v19, %v995_v59  ;;  %v472_v54 = vld [vmem:[%s11736_s0 + $0xe20] sm:$0xff]  ;;  %v475_v33 = vld [vmem:[%s11736_s0 + $0xe38] sm:$0xff] }
 0x1d1   :  { %v1074_v42 = vmul.f32 %v7166_v12, %v469_v23  ;;  %v4926_v10 = vmul.f32 %v3755_v8, %v3755_v8  ;;  %v4724_v6 = vadd.f32 %v4723_v25, %v3755_v8  ;;  %v5120_v43 = vadd.f32 %v5119_v34, %v4925_v5  ;;  %v3131_v39 = vpop.f32.mrf.mxu0  ;;  %v3762_v26 = vpop.f32.mrf.mxu1 }
 0x1d2   :  { %4530 = vst [vmem:[%s11739_s4 + $0x20] sm:$0xff] %v3760_v7  ;;  %v3771_v63 = vadd.f32 %v5484_v9, %v11906_v31  ;;  %v2185_v59 = vmax.f32 %v9564_v56, 0.0  ;;  %v9599_v8 = vadd.f32 %v7214_v35, %v1071_v1  ;;  %v991_v23 = vmul.f32 %v5815_v18, %v386_v32  ;;  %v11907_v9 = vld [vmem:[#allocation13_spill] sm:$0xff]  ;;  %v11909_v1 = vld [vmem:[#allocation80_spill] sm:$0xff] }
 0x1d3   :  { %v994_v5 = vmul.f32 %v5815_v18, %v389_v28  ;;  %v5121_v25 = vadd.f32 %v5120_v43, %v4926_v10  ;;  %v4725_v34 = vadd.f32 %v4724_v6, %v3760_v7  ;;  %v4927_v15 = vmul.f32 %v3760_v7, %v3760_v7  ;;  %v9607_v39 = vpop.f32.mrf.mxu0  ;;  %v5487_v56 = vpop.f32.mrf.mxu1 }
 0x1d4   :  { %4533 = vst [vmem:[%s11739_s4 + $0x38] sm:$0xff] %v3771_v63  ;;  %v3763_v31 = vadd.f32 %v3762_v26, %v11907_v9  ;;  %11908 = vst [vmem:[#allocation2_spill] sm:$0xff] %v9607_v39  ;;  %3325 = vmatmul.mubr.bf16.gmra.mxu0 %v8902_v41  ;;  %5582 = vmatmul.mubr.bf16.gmra.mxu1 %v11909_v1  ;;  %v9611_v44 = vpack.c.bf16 %v2261_v11, %v2258_v55  ;;  %v2188_v32 = vmax.f32 %v1600_v21, 0.0  ;;  %v11910_v26 = vld [vmem:[#allocation25_spill] sm:$0xff]  ;;  %v393_v55 = vld [vmem:[%s11736_s0 + $0xba8] sm:$0xff] }
 0x1d5   :  { %v1077_v28 = vmul.f32 %v7166_v12, %v472_v54  ;;  %v1080_v7 = vmul.f32 %v7166_v12, %v475_v33  ;;  %v5122_v10 = vadd.f32 %v5121_v25, %v4927_v15  ;;  %v9619_v9 = vadd.f32 %v5487_v56, %v11910_v26  ;;  %v11911_v41 = vld [vmem:[#allocation81_spill] sm:$0xff]  ;;  %v3136_v11 = vpop.f32.mrf.mxu0  ;;  %v3775_v21 = vpop.f32.mrf.mxu1  ;;  %5585 = vmatprep.mubr.bf16.mxu1 %v9032_v61  ;;  %v11912_v61 = vld [vmem:[#allocation20_spill] sm:$0xff] }
 0x1d6   :  { %4531 = vst [vmem:[%s11739_s4 + $0x28] sm:$0xff] %v3763_v31  ;;  %v4726_v6 = vadd.f32 %v4725_v34, %v3763_v31  ;;  %v4928_v43 = vmul.f32 %v3763_v31, %v3763_v31  ;;  %3332 = vmatprep.mubr.bf16.mxu0 %v11911_v41  ;;  %v1679_v54 = vadd.f32 %v7214_v35, %v1074_v42  ;;  %v2264_v33 = vmax.f32 %v9599_v8, 0.0  ;;  %v396_v42 = vld [vmem:[%s11736_s0 + $0xbc0] sm:$0xff]  ;;  %v11914_v11 = vld [vmem:[#allocation27_spill] sm:$0xff] }
 0x1d7   :  { %v1596_v25 = vadd.f32 %v5825_v22, %v991_v23  ;;  %v1599_v34 = vadd.f32 %v5825_v22, %v994_v5  ;;  %v4929_v15 = vmul.f32 %v9553_v3, %v9553_v3  ;;  %4536 = vst [vmem:[%s11739_s4 + $0x50] sm:$0xff] %v9619_v9  ;;  %v3776_v1 = vadd.f32 %v3775_v21, %v11912_v61  ;;  %v9641_v8 = vpop.f32.mrf.mxu0  ;;  %v5488_v23 = vpop.f32.mrf.mxu1 }
 0x1d8   :  { %v4727_v31 = vadd.f32 %v4726_v6, %v9553_v3  ;;  %v5123_v56 = vadd.f32 %v5122_v10, %v4928_v43  ;;  %11913 = vst [vmem:[#allocation9_spill] sm:$0xff] %v9641_v8  ;;  %v9643_v5 = vpack.c.bf16 %v2188_v32, %v2185_v59  ;;  %v1682_v26 = vadd.f32 %v7214_v35, %v1077_v28  ;;  %v478_v59 = vld [vmem:[%s11736_s0 + $0xe50] sm:$0xff] }
 0x1d9   :  { %v1685_v3 = vadd.f32 %v7214_v35, %v1080_v7  ;;  %v998_v10 = vmul.f32 %v5804_v14, %v393_v55  ;;  %v4930_v6 = vmul.f32 %v3771_v63, %v3771_v63  ;;  %4534 = vst [vmem:[%s11739_s4 + $0x40] sm:$0xff] %v3776_v1  ;;  %v3787_v21 = vadd.f32 %v5488_v23, %v11914_v11  ;;  %v3139_v32 = vpop.f32.mrf.mxu0  ;;  %v3778_v61 = vpop.f32.mrf.mxu1  ;;  %v481_v23 = vld [vmem:[%s11736_s0 + $0xe68] sm:$0xff] }
 0x1da   :  { %v4728_v43 = vadd.f32 %v4727_v31, %v3771_v63  ;;  %v5124_v41 = vadd.f32 %v5123_v56, %v4929_v15  ;;  %v2267_v28 = vmax.f32 %v1679_v54, 0.0  ;;  %v2184_v8 = vmax.f32 %v1596_v25, 0.0  ;;  %v11915_v31 = vld [vmem:[#allocation22_spill] sm:$0xff] }
 0x1db   :  { %v2187_v7 = vmax.f32 %v1599_v34, 0.0  ;;  %v1001_v55 = vmul.f32 %v5804_v14, %v396_v42  ;;  %v4931_v15 = vmul.f32 %v3776_v1, %v3776_v1  ;;  %4537 = vst [vmem:[%s11739_s4 + $0x58] sm:$0xff] %v3787_v21  ;;  %v3779_v56 = vadd.f32 %v3778_v61, %v11915_v31  ;;  %v9663_v11 = vpop.f32.mrf.mxu0  ;;  %v5491_v54 = vpop.f32.mrf.mxu1  ;;  %v11917_v32 = vld [vmem:[#allocation34_spill] sm:$0xff] }
 0x1dc   :  { %v5125_v39 = vadd.f32 %v5124_v41, %v4930_v6  ;;  %v4729_v63 = vadd.f32 %v4728_v43, %v3776_v1  ;;  %11916 = vst [vmem:[#allocation4_spill] sm:$0xff] %v9663_v11  ;;  %3333 = vmatmul.mubr.bf16.gmra.mxu0 %v9034_v57  ;;  %5586 = vmatmul.mubr.bf16.gmra.mxu1 %v9036_v4  ;;  %v2270_v25 = vmax.f32 %v1682_v26, 0.0  ;;  %v2273_v34 = vmax.f32 %v1685_v3, 0.0  ;;  %v392_v57 = vld [vmem:[%s11736_s0 + $0xba0] sm:$0xff]  ;;  %v11926_v11 = vld [vmem:[#allocation87_spill] sm:$0xff] }
 0x1dd   :  { %v9668_v1 = vadd.f32 %v5817_v19, %v998_v10  ;;  %v1083_v42 = vmul.f32 %v7166_v12, %v478_v59  ;;  %4535 = vst [vmem:[%s11739_s4 + $0x48] sm:$0xff] %v3779_v56  ;;  %v4932_v41 = vmul.f32 %v3779_v56, %v3779_v56  ;;  %v9675_v61 = vadd.f32 %v5491_v54, %v11917_v32  ;;  %v3144_v4 = vpop.f32.mrf.mxu0  ;;  %v3791_v26 = vpop.f32.mrf.mxu1  ;;  %v11918_v3 = vld [vmem:[#allocation86_spill] sm:$0xff]  ;;  %v11924_v54 = vld [vmem:[#allocation31_spill] sm:$0xff] }
 0x1de   :  { %v5126_v6 = vadd.f32 %v5125_v39, %v4931_v15  ;;  %v4730_v43 = vadd.f32 %v4729_v63, %v3779_v56  ;;  %3340 = vmatprep.mubr.bf16.mxu0 %v9038_v48  ;;  %5589 = vmatprep.mubr.bf16.mxu1 %v11918_v3  ;;  %v9682_v39 = vpack.c.bf16 %v2267_v28, %v2264_v33  ;;  %v11920_v33 = vld [vmem:[#allocation29_spill] sm:$0xff] }
 0x1df   :  { %v9684_v10 = vpack.c.bf16 %v2187_v7, %v2184_v8  ;;  %v9687_v59 = vadd.f32 %v5817_v19, %v1001_v55  ;;  %v1086_v63 = vmul.f32 %v7166_v12, %v481_v23  ;;  %v4933_v48 = vmul.f32 %v9619_v9, %v9619_v9  ;;  %4540 = vst [vmem:[%s11739_s4 + $0x70] sm:$0xff] %v9675_v61  ;;  %v395_v8 = vld [vmem:[%s11736_s0 + $0xbb8] sm:$0xff]  ;;  %v484_v7 = vld [vmem:[%s11736_s0 + $0xe80] sm:$0xff]  ;;  %v9707_v55 = vpop.f32.mrf.mxu0  ;;  %v5492_v56 = vpop.f32.mrf.mxu1 }
 0x1e0   :  { %v4731_v15 = vadd.f32 %v4730_v43, %v9619_v9  ;;  %v5127_v31 = vadd.f32 %v5126_v6, %v4932_v41  ;;  %v3792_v28 = vadd.f32 %v3791_v26, %v11920_v33  ;;  %v487_v9 = vld [vmem:[%s11736_s0 + $0xe98] sm:$0xff]  ;;  %11921 = vst [vmem:[#allocation11_spill] sm:$0xff] %v9707_v55  ;;  %v9709_v23 = vpack.c.bf16 %v2273_v34, %v2270_v25  ;;  %v11923_v26 = vld [vmem:[#allocation36_spill] sm:$0xff] }
 0x1e1   :  { %11919 = vst [vmem:[#allocation16_spill] sm:$0xff] %v9684_v10  ;;  %v9713_v6 = vadd.f32 %v7214_v35, %v1083_v42  ;;  %v997_v43 = vmul.f32 %v5815_v18, %v392_v57  ;;  %v4934_v41 = vmul.f32 %v3787_v21, %v3787_v21  ;;  %v3803_v3 = vadd.f32 %v5492_v56, %v11923_v26  ;;  %v399_v25 = vld [vmem:[%s11736_s0 + $0xbd8] sm:$0xff]  ;;  %v402_v34 = vld [vmem:[%s11736_s0 + $0xbf0] sm:$0xff]  ;;  %v3147_v42 = vpop.f32.mrf.mxu0  ;;  %v3794_v33 = vpop.f32.mrf.mxu1 }
 0x1e2   :  { %11922 = vst [vmem:[#allocation18_spill] sm:$0xff] %v9709_v23  ;;  %v4732_v32 = vadd.f32 %v4731_v15, %v3787_v21  ;;  %v5128_v4 = vadd.f32 %v5127_v31, %v4933_v48  ;;  %4538 = vst [vmem:[%s11739_s4 + $0x60] sm:$0xff] %v3792_v28  ;;  %v9727_v57 = vadd.f32 %v7214_v35, %v1086_v63  ;;  %v11927_v23 = vld [vmem:[#allocation88_spill] sm:$0xff] }
 0x1e3   :  { %v1000_v21 = vmul.f32 %v5815_v18, %v395_v8  ;;  %v1089_v48 = vmul.f32 %v7166_v12, %v484_v7  ;;  %v1092_v15 = vmul.f32 %v7166_v12, %v487_v9  ;;  %v4935_v26 = vmul.f32 %v3792_v28, %v3792_v28  ;;  %4541 = vst [vmem:[%s11739_s4 + $0x78] sm:$0xff] %v3803_v3  ;;  %v9736_v42 = vpop.f32.mrf.mxu0  ;;  %v5495_v63 = vpop.f32.mrf.mxu1 }
 0x1e4   :  { %v5129_v31 = vadd.f32 %v5128_v4, %v4934_v41  ;;  %v4733_v56 = vadd.f32 %v4732_v32, %v3792_v28  ;;  %v3795_v55 = vadd.f32 %v3794_v33, %v11924_v54  ;;  %11925 = vst [vmem:[#allocation13_spill] sm:$0xff] %v9736_v42  ;;  %3341 = vmatmul.mubr.bf16.gmra.mxu0 %v11926_v11  ;;  %v2194_v8 = vmax.f32 %v9687_v59, 0.0  ;;  %v11928_v11 = vld [vmem:[#allocation43_spill] sm:$0xff] }
 0x1e5   :  { %5590 = vmatmul.mubr.bf16.gmra.mxu1 %v11927_v23  ;;  %v9742_v7 = vadd.f32 %v5825_v22, %v997_v43  ;;  %v1004_v28 = vmul.f32 %v5804_v14, %v399_v25  ;;  %v1007_v9 = vmul.f32 %v5804_v14, %v402_v34  ;;  %v9750_v4 = vadd.f32 %v5495_v63, %v11928_v11  ;;  %v11929_v23 = vld [vmem:[#allocation91_spill] sm:$0xff]  ;;  %v3152_v59 = vpop.f32.mrf.mxu0  ;;  %v3807_v33 = vpop.f32.mrf.mxu1 }
 0x1e6   :  { %v5130_v41 = vadd.f32 %v5129_v31, %v4935_v26  ;;  %4539 = vst [vmem:[%s11739_s4 + $0x68] sm:$0xff] %v3795_v55  ;;  %v4734_v54 = vadd.f32 %v4733_v56, %v3795_v55  ;;  %v4936_v32 = vmul.f32 %v3795_v55, %v3795_v55  ;;  %3348 = vmatprep.mubr.bf16.mxu0 %v11929_v23  ;;  %v2276_v43 = vmax.f32 %v9713_v6, 0.0  ;;  %v490_v6 = vld [vmem:[%s11736_s0 + $0xeb0] sm:$0xff]  ;;  %v11932_v59 = vld [vmem:[#allocation45_spill] sm:$0xff] }
 0x1e7   :  { %5593 = vmatprep.mubr.bf16.mxu1 %v9186_v40  ;;  %v1605_v25 = vadd.f32 %v5825_v22, %v1000_v21  ;;  %v1694_v34 = vadd.f32 %v7214_v35, %v1089_v48  ;;  %v1697_v31 = vadd.f32 %v7214_v35, %v1092_v15  ;;  %v4937_v55 = vmul.f32 %v9675_v61, %v9675_v61  ;;  %v11930_v40 = vld [vmem:[#allocation38_spill] sm:$0xff]  ;;  %v9769_v21 = vpop.f32.mrf.mxu0  ;;  %v5496_v48 = vpop.f32.mrf.mxu1 }
 0x1e8   :  { %v4735_v56 = vadd.f32 %v4734_v54, %v9675_v61  ;;  %v5131_v26 = vadd.f32 %v5130_v41, %v4936_v32  ;;  %4544 = vst [vmem:[%s11739_s4 + $0x90] sm:$0xff] %v9750_v4  ;;  %v3808_v63 = vadd.f32 %v3807_v33, %v11930_v40  ;;  %11931 = vst [vmem:[#allocation80_spill] sm:$0xff] %v9769_v21  ;;  %v2279_v15 = vmax.f32 %v9727_v57, 0.0  ;;  %v493_v40 = vld [vmem:[%s11736_s0 + $0xec8] sm:$0xff] }
 0x1e9   :  { %v2190_v11 = vmax.f32 %v9742_v7, 0.0  ;;  %v1609_v61 = vadd.f32 %v5817_v19, %v1004_v28  ;;  %v1612_v41 = vadd.f32 %v5817_v19, %v1007_v9  ;;  %v4938_v54 = vmul.f32 %v3803_v3, %v3803_v3  ;;  %v3155_v57 = vpop.f32.mrf.mxu0  ;;  %v3810_v21 = vpop.f32.mrf.mxu1 }
 0x1ea   :  { %v4736_v32 = vadd.f32 %v4735_v56, %v3803_v3  ;;  %v5132_v23 = vadd.f32 %v5131_v26, %v4937_v55  ;;  %4542 = vst [vmem:[%s11739_s4 + $0x80] sm:$0xff] %v3808_v63  ;;  %v3819_v33 = vadd.f32 %v5496_v48, %v11932_v59  ;;  %v2193_v7 = vmax.f32 %v1605_v25, 0.0  ;;  %v11933_v56 = vld [vmem:[#allocation40_spill] sm:$0xff]  ;;  %v496_v57 = vld [vmem:[%s11736_s0 + $0xee0] sm:$0xff] }
 0x1eb   :  { %v2282_v42 = vmax.f32 %v1694_v34, 0.0  ;;  %v2285_v28 = vmax.f32 %v1697_v31, 0.0  ;;  %v1095_v9 = vmul.f32 %v7166_v12, %v490_v6  ;;  %v4939_v55 = vmul.f32 %v3808_v63, %v3808_v63  ;;  %v9787_v48 = vpop.f32.mrf.mxu0  ;;  %v5499_v59 = vpop.f32.mrf.mxu1 }
 0x1ec   :  { %v5133_v10 = vadd.f32 %v5132_v23, %v4938_v54  ;;  %v4737_v3 = vadd.f32 %v4736_v32, %v3808_v63  ;;  %4545 = vst [vmem:[%s11739_s4 + $0x98] sm:$0xff] %v3819_v33  ;;  %v3811_v26 = vadd.f32 %v3810_v21, %v11933_v56  ;;  %3349 = vmatmul.mubr.bf16.gmra.mxu0 %v9192_v49  ;;  %v11934_v25 = vmax.f32 %v9668_v1, 0.0  ;;  %v11935_v23 = vld [vmem:[#allocation52_spill] sm:$0xff]  ;;  %v401_v1 = vld [vmem:[%s11736_s0 + $0xbe8] sm:$0xff] }
 0x1ed   :  { %5594 = vmatmul.mubr.bf16.gmra.mxu1 %v9196_v30  ;;  %v2197_v31 = vmax.f32 %v1609_v61, 0.0  ;;  %v2200_v6 = vmax.f32 %v1612_v41, 0.0  ;;  %v1098_v63 = vmul.f32 %v7166_v12, %v493_v40  ;;  %v9800_v49 = vadd.f32 %v5499_v59, %v11935_v23  ;;  %3356 = vmatprep.mubr.bf16.mxu0 %v9198_v13  ;;  %v398_v30 = vld [vmem:[%s11736_s0 + $0xbd0] sm:$0xff] }
 0x1ee   :  { %v9793_v34 = vpack.c.bf16 %v2194_v8, %v11934_v25  ;;  %v5134_v54 = vadd.f32 %v5133_v10, %v4939_v55  ;;  %4543 = vst [vmem:[%s11739_s4 + $0x88] sm:$0xff] %v3811_v26  ;;  %v4738_v21 = vadd.f32 %v4737_v3, %v3811_v26  ;;  %v4940_v32 = vmul.f32 %v3811_v26, %v3811_v26  ;;  %v3160_v10 = vpop.f32.mrf.mxu0  ;;  %v3823_v8 = vpop.f32.mrf.mxu1 }
 0x1ef   :  { %5597 = vmatprep.mubr.bf16.mxu1 %v9200_v0  ;;  %v9810_v61 = vpack.c.bf16 %v2279_v15, %v2276_v43  ;;  %v9812_v41 = vpack.c.bf16 %v2193_v7, %v2190_v11  ;;  %v9814_v40 = vpack.c.bf16 %v2285_v28, %v2282_v42  ;;  %v1700_v13 = vadd.f32 %v7214_v35, %v1095_v9  ;;  %v11936_v0 = vld [vmem:[#allocation47_spill] sm:$0xff]  ;;  %v499_v43 = vld [vmem:[%s11736_s0 + $0xef8] sm:$0xff] }
 0x1f0   :  { %v4941_v3 = vmul.f32 %v9750_v4, %v9750_v4  ;;  %v4739_v55 = vadd.f32 %v4738_v21, %v9750_v4  ;;  %v5135_v56 = vadd.f32 %v5134_v54, %v4940_v32  ;;  %4548 = vst [vmem:[%s11739_s4 + $0xb0] sm:$0xff] %v9800_v49  ;;  %v3824_v42 = vadd.f32 %v3823_v8, %v11936_v0  ;;  %v405_v15 = vld [vmem:[%s11736_s0 + $0xc08] sm:$0xff]  ;;  %v408_v4 = vld [vmem:[%s11736_s0 + $0xc20] sm:$0xff]  ;;  %v9837_v11 = vpop.f32.mrf.mxu0  ;;  %v5500_v7 = vpop.f32.mrf.mxu1 }
 0x1f1   :  { %11937 = vst [vmem:[#allocation25_spill] sm:$0xff] %v9837_v11  ;;  %v9839_v28 = vpack.c.bf16 %v2200_v6, %v2197_v31  ;;  %v1703_v9 = vadd.f32 %v7214_v35, %v1098_v63  ;;  %v1003_v26 = vmul.f32 %v5815_v18, %v398_v30  ;;  %v1006_v59 = vmul.f32 %v5815_v18, %v401_v1  ;;  %v11938_v32 = vld [vmem:[#allocation54_spill] sm:$0xff] }
 0x1f2   :  { %v4942_v25 = vmul.f32 %v3819_v33, %v3819_v33  ;;  %v4740_v54 = vadd.f32 %v4739_v55, %v3819_v33  ;;  %v5136_v21 = vadd.f32 %v5135_v56, %v4941_v3  ;;  %4546 = vst [vmem:[%s11739_s4 + $0xa0] sm:$0xff] %v3824_v42  ;;  %v3835_v23 = vadd.f32 %v5500_v7, %v11938_v32  ;;  %v3163_v10 = vpop.f32.mrf.mxu0  ;;  %v3826_v8 = vpop.f32.mrf.mxu1  ;;  %v11939_v3 = vld [vmem:[#allocation49_spill] sm:$0xff]  ;;  %v11941_v7 = vld [vmem:[#allocation96_spill] sm:$0xff]  ;;  %v11942_v32 = vld [vmem:[#allocation99_spill] sm:$0xff] }
 0x1f3   :  { %v1101_v31 = vmul.f32 %v7166_v12, %v496_v57  ;;  %v1104_v6 = vmul.f32 %v7166_v12, %v499_v43  ;;  %v1010_v63 = vmul.f32 %v5804_v14, %v405_v15  ;;  %v1013_v30 = vmul.f32 %v5804_v14, %v408_v4  ;;  %v11943_v10 = vld [vmem:[#allocation62_spill] sm:$0xff] }
 0x1f4   :  { %v5137_v1 = vadd.f32 %v5136_v21, %v4942_v25  ;;  %v4741_v0 = vadd.f32 %v4740_v54, %v3824_v42  ;;  %v4943_v33 = vmul.f32 %v3824_v42, %v3824_v42  ;;  %4549 = vst [vmem:[%s11739_s4 + $0xb8] sm:$0xff] %v3835_v23  ;;  %v3827_v55 = vadd.f32 %v3826_v8, %v11939_v3  ;;  %v9856_v56 = vpop.f32.mrf.mxu0  ;;  %v5503_v57 = vpop.f32.mrf.mxu1  ;;  %v11944_v3 = vld [vmem:[#allocation100_spill] sm:$0xff] }
 0x1f5   :  { %11940 = vst [vmem:[#allocation81_spill] sm:$0xff] %v9856_v56  ;;  %3357 = vmatmul.mubr.bf16.gmra.mxu0 %v11941_v7  ;;  %5598 = vmatmul.mubr.bf16.gmra.mxu1 %v11942_v32  ;;  %v2288_v43 = vmax.f32 %v1700_v13, 0.0  ;;  %v2291_v15 = vmax.f32 %v1703_v9, 0.0  ;;  %v9861_v4 = vadd.f32 %v5825_v22, %v1003_v26  ;;  %v9864_v42 = vadd.f32 %v5825_v22, %v1006_v59  ;;  %v502_v13 = vld [vmem:[%s11736_s0 + $0xf10] sm:$0xff]  ;;  %v11945_v7 = vld [vmem:[#allocation101_spill] sm:$0xff] }
 0x1f6   :  { %v5138_v25 = vadd.f32 %v5137_v1, %v4943_v33  ;;  %4547 = vst [vmem:[%s11739_s4 + $0xa8] sm:$0xff] %v3827_v55  ;;  %v4742_v54 = vadd.f32 %v4741_v0, %v3827_v55  ;;  %v4944_v21 = vmul.f32 %v3827_v55, %v3827_v55  ;;  %v3848_v8 = vadd.f32 %v5503_v57, %v11943_v10  ;;  %v3168_v9 = vpop.f32.mrf.mxu0  ;;  %v3839_v26 = vpop.f32.mrf.mxu1  ;;  %v11946_v10 = vld [vmem:[#allocation56_spill] sm:$0xff] }
 0x1f7   :  { %3364 = vmatprep.mubr.bf16.mxu0 %v11944_v3  ;;  %5601 = vmatprep.mubr.bf16.mxu1 %v11945_v7  ;;  %v1706_v59 = vadd.f32 %v7214_v35, %v1101_v31  ;;  %v1709_v1 = vadd.f32 %v7214_v35, %v1104_v6  ;;  %v1615_v33 = vadd.f32 %v5817_v19, %v1010_v63  ;;  %v2196_v63 = vmax.f32 %v9861_v4, 0.0 }
 0x1f8   :  { %v1618_v0 = vadd.f32 %v5817_v19, %v1013_v30  ;;  %v4945_v55 = vmul.f32 %v9800_v49, %v9800_v49  ;;  %v4743_v57 = vadd.f32 %v4742_v54, %v9800_v49  ;;  %v5139_v32 = vadd.f32 %v5138_v25, %v4944_v21  ;;  %4552 = vst [vmem:[%s11739_s4 + $0xd0] sm:$0xff] %v3848_v8  ;;  %v9886_v9 = vpop.f32.mrf.mxu0  ;;  %v5504_v31 = vpop.f32.mrf.mxu1  ;;  %v11948_v54 = vld [vmem:[#allocation64_spill] sm:$0xff] }
 0x1f9   :  { %v3840_v3 = vadd.f32 %v3839_v26, %v11946_v10  ;;  %11947 = vst [vmem:[#allocation20_spill] sm:$0xff] %v9886_v9  ;;  %v9888_v6 = vpack.c.bf16 %v2291_v15, %v2288_v43  ;;  %v2199_v30 = vmax.f32 %v9864_v42, 0.0  ;;  %v1107_v7 = vmul.f32 %v7166_v12, %v502_v13  ;;  %v505_v43 = vld [vmem:[%s11736_s0 + $0xf28] sm:$0xff]  ;;  %v404_v15 = vld [vmem:[%s11736_s0 + $0xc00] sm:$0xff]  ;;  %v407_v9 = vld [vmem:[%s11736_s0 + $0xc18] sm:$0xff] }
 0x1fa   :  { %v4946_v56 = vmul.f32 %v3835_v23, %v3835_v23  ;;  %v4744_v49 = vadd.f32 %v4743_v57, %v3835_v23  ;;  %v5140_v25 = vadd.f32 %v5139_v32, %v4945_v55  ;;  %v3851_v21 = vadd.f32 %v5504_v31, %v11948_v54  ;;  %v3171_v4 = vpop.f32.mrf.mxu0  ;;  %v3842_v42 = vpop.f32.mrf.mxu1  ;;  %v11949_v31 = vld [vmem:[#allocation58_spill] sm:$0xff] }
 0x1fb   :  { %4550 = vst [vmem:[%s11739_s4 + $0xc0] sm:$0xff] %v3840_v3  ;;  %v2294_v13 = vmax.f32 %v1706_v59, 0.0  ;;  %v2297_v26 = vmax.f32 %v1709_v1, 0.0  ;;  %v2203_v23 = vmax.f32 %v1615_v33, 0.0  ;;  %v2206_v55 = vmax.f32 %v1618_v0, 0.0  ;;  %v11950_v4 = vld [vmem:[#allocation102_spill] sm:$0xff] }
 0x1fc   :  { %v5141_v57 = vadd.f32 %v5140_v25, %v4946_v56  ;;  %v4745_v32 = vadd.f32 %v4744_v49, %v3840_v3  ;;  %v4947_v10 = vmul.f32 %v3840_v3, %v3840_v3  ;;  %4553 = vst [vmem:[%s11739_s4 + $0xd8] sm:$0xff] %v3851_v21  ;;  %v3843_v54 = vadd.f32 %v3842_v42, %v11949_v31  ;;  %v9910_v11 = vpop.f32.mrf.mxu0  ;;  %v5507_v59 = vpop.f32.mrf.mxu1  ;;  %v11951_v25 = vld [vmem:[#allocation73_spill] sm:$0xff] }
 0x1fd   :  { %3365 = vmatmul.mubr.bf16.gmra.mxu0 %v11950_v4  ;;  %5602 = vmatmul.mubr.bf16.gmra.mxu1 %v9347_v46  ;;  %v1110_v56 = vmul.f32 %v7166_v12, %v505_v43  ;;  %v9916_v1 = vadd.f32 %v7214_v35, %v1107_v7  ;;  %v1009_v33 = vmul.f32 %v5815_v18, %v404_v15  ;;  %v508_v46 = vld [vmem:[%s11736_s0 + $0xf40] sm:$0xff] }
 0x1fe   :  { %v5142_v0 = vadd.f32 %v5141_v57, %v4947_v10  ;;  %4551 = vst [vmem:[%s11739_s4 + $0xc8] sm:$0xff] %v3843_v54  ;;  %v4746_v3 = vadd.f32 %v4745_v32, %v3843_v54  ;;  %v4948_v49 = vmul.f32 %v3843_v54, %v3843_v54  ;;  %v9923_v42 = vadd.f32 %v5507_v59, %v11951_v25  ;;  %v3176_v7 = vpop.f32.mrf.mxu0  ;;  %v3855_v43 = vpop.f32.mrf.mxu1  ;;  %v11954_v25 = vld [vmem:[#allocation74_spill] sm:$0xff] }
 0x1ff   :  { %3372 = vmatprep.mubr.bf16.mxu0 %v9352_v47  ;;  %5605 = vmatprep.mubr.bf16.mxu1 %v9364_v2  ;;  %v9930_v15 = vpack.c.bf16 %v2199_v30, %v2196_v63  ;;  %v9932_v57 = vpack.c.bf16 %v2297_v26, %v2294_v13  ;;  %v9934_v10 = vpack.c.bf16 %v2206_v55, %v2203_v23  ;;  %v11952_v47 = vld [vmem:[#allocation66_spill] sm:$0xff]  ;;  %v511_v2 = vld [vmem:[%s11736_s0 + $0xf58] sm:$0xff] }
 0x200   :  { %v1012_v32 = vmul.f32 %v5815_v18, %v407_v9  ;;  %v4949_v31 = vmul.f32 %v3848_v8, %v3848_v8  ;;  %v4747_v54 = vadd.f32 %v4746_v3, %v3848_v8  ;;  %v5143_v4 = vadd.f32 %v5142_v0, %v4948_v49  ;;  %4556 = vst [vmem:[%s11739_s4 + $0xf0] sm:$0xff] %v9923_v42  ;;  %v411_v63 = vld [vmem:[%s11736_s0 + $0xc38] sm:$0xff]  ;;  %v414_v8 = vld [vmem:[%s11736_s0 + $0xc50] sm:$0xff]  ;;  %v9951_v9 = vpop.f32.mrf.mxu0  ;;  %v5508_v30 = vpop.f32.mrf.mxu1  ;;  %v11955_v26 = vld [vmem:[#allocation70_spill] sm:$0xff] }
 0x201   :  { %v3856_v59 = vadd.f32 %v3855_v43, %v11952_v47  ;;  %11953 = vst [vmem:[#allocation27_spill] sm:$0xff] %v9951_v9  ;;  %v9954_v13 = vadd.f32 %v7214_v35, %v1110_v56  ;;  %v9958_v23 = vadd.f32 %v5825_v22, %v1009_v33  ;;  %v1113_v55 = vmul.f32 %v7166_v12, %v508_v46  ;;  %v514_v56 = vld [vmem:[%s11736_s0 + $0xf70] sm:$0xff]  ;;  %v517_v33 = vld [vmem:[%s11736_s0 + $0xf88] sm:$0xff] }
 0x202   :  { %v4950_v0 = vmul.f32 %v3851_v21, %v3851_v21  ;;  %v4748_v3 = vadd.f32 %v4747_v54, %v3851_v21  ;;  %v5144_v49 = vadd.f32 %v5143_v4, %v4949_v31  ;;  %v3867_v7 = vadd.f32 %v5508_v30, %v11954_v25  ;;  %v3179_v43 = vpop.f32.mrf.mxu0  ;;  %v3858_v47 = vpop.f32.mrf.mxu1 }
 0x203   :  { %4554 = vst [vmem:[%s11739_s4 + $0xe0] sm:$0xff] %v3856_v59  ;;  %v9972_v46 = vadd.f32 %v5825_v22, %v1012_v32  ;;  %v1116_v21 = vmul.f32 %v7166_v12, %v511_v2  ;;  %v1016_v31 = vmul.f32 %v5804_v14, %v411_v63  ;;  %v1019_v54 = vmul.f32 %v5804_v14, %v414_v8 }
 0x204   :  { %v5145_v4 = vadd.f32 %v5144_v49, %v4950_v0  ;;  %v4749_v30 = vadd.f32 %v4748_v3, %v3856_v59  ;;  %v4951_v25 = vmul.f32 %v3856_v59, %v3856_v59  ;;  %4557 = vst [vmem:[%s11739_s4 + $0xf8] sm:$0xff] %v3867_v7  ;;  %v3859_v9 = vadd.f32 %v3858_v47, %v11955_v26  ;;  %v9981_v43 = vpop.f32.mrf.mxu0  ;;  %v5511_v32 = vpop.f32.mrf.mxu1 }
 0x205   :  { %11956 = vst [vmem:[#allocation22_spill] sm:$0xff] %v9981_v43  ;;  %3373 = vmatmul.mubr.bf16.gmra.mxu0 %v9366_v17  ;;  %5606 = vmatmul.mubr.bf16.gmra.mxu1 %v9368_v58  ;;  %v2303_v2 = vmax.f32 %v9954_v13, 0.0  ;;  %v9987_v63 = vadd.f32 %v7214_v35, %v1113_v55  ;;  %v1119_v59 = vmul.f32 %v7166_v12, %v514_v56  ;;  %v11957_v17 = vld [vmem:[#allocation82_spill] sm:$0xff]  ;;  %v2202_v55 = vmax.f32 %v9958_v23, 0.0  ;;  %v410_v23 = vld [vmem:[%s11736_s0 + $0xc30] sm:$0xff] }
 0x206   :  { %v1122_v8 = vmul.f32 %v7166_v12, %v517_v33  ;;  %v5146_v0 = vadd.f32 %v5145_v4, %v4951_v25  ;;  %4555 = vst [vmem:[%s11739_s4 + $0xe8] sm:$0xff] %v3859_v9  ;;  %v4750_v26 = vadd.f32 %v4749_v30, %v3859_v9  ;;  %v4952_v3 = vmul.f32 %v3859_v9, %v3859_v9  ;;  %v3184_v58 = vpop.f32.mrf.mxu0  ;;  %v3871_v13 = vpop.f32.mrf.mxu1 }
 0x207   :  { %v9995_v49 = vadd.f32 %v5511_v32, %v11957_v17  ;;  %3380 = vmatprep.mubr.bf16.mxu0 %v9370_v29  ;;  %5609 = vmatprep.mubr.bf16.mxu1 %v9375_v52  ;;  %v1721_v56 = vadd.f32 %v7214_v35, %v1116_v21  ;;  %v1621_v33 = vadd.f32 %v5817_v19, %v1016_v31  ;;  %v11958_v29 = vld [vmem:[#allocation76_spill] sm:$0xff]  ;;  %v2306_v25 = vmax.f32 %v9987_v63, 0.0  ;;  %v11960_v17 = vld [vmem:[#allocation42_spill] sm:$0xff] }
 0x208   :  { %v1624_v47 = vadd.f32 %v5817_v19, %v1019_v54  ;;  %v4953_v9 = vmul.f32 %v9923_v42, %v9923_v42  ;;  %v4751_v4 = vadd.f32 %v4750_v26, %v9923_v42  ;;  %v5147_v30 = vadd.f32 %v5146_v0, %v4952_v3  ;;  %v10014_v21 = vpop.f32.mrf.mxu0  ;;  %v5512_v31 = vpop.f32.mrf.mxu1 }
 0x209   :  { %4560 = vst [vmem:[%s11739_s4 + $0x110] sm:$0xff] %v9995_v49  ;;  %v3872_v52 = vadd.f32 %v3871_v13, %v11958_v29  ;;  %11959 = vst [vmem:[#allocation34_spill] sm:$0xff] %v10014_v21  ;;  %v2205_v54 = vmax.f32 %v9972_v46, 0.0  ;;  %v1724_v42 = vadd.f32 %v7214_v35, %v1119_v59  ;;  %v1727_v32 = vadd.f32 %v7214_v35, %v1122_v8  ;;  %v413_v13 = vld [vmem:[%s11736_s0 + $0xc48] sm:$0xff] }
 0x20a   :  { %v4954_v0 = vmul.f32 %v3867_v7, %v3867_v7  ;;  %v4752_v26 = vadd.f32 %v4751_v4, %v3867_v7  ;;  %v5148_v3 = vadd.f32 %v5147_v30, %v4953_v9  ;;  %v3883_v58 = vadd.f32 %v5512_v31, %v11960_v17  ;;  %v3187_v46 = vpop.f32.mrf.mxu0  ;;  %v3874_v29 = vpop.f32.mrf.mxu1  ;;  %v11961_v4 = vld [vmem:[#allocation78_spill] sm:$0xff] }
 0x20b   :  { %4558 = vst [vmem:[%s11739_s4 + $0x100] sm:$0xff] %v3872_v52  ;;  %v2309_v63 = vmax.f32 %v1721_v56, 0.0  ;;  %v2209_v21 = vmax.f32 %v1621_v33, 0.0  ;;  %v2212_v59 = vmax.f32 %v1624_v47, 0.0  ;;  %v1015_v8 = vmul.f32 %v5815_v18, %v410_v23  ;;  %v11963_v46 = vld [vmem:[#allocation92_spill] sm:$0xff] }
 0x20c   :  { %v5149_v43 = vadd.f32 %v5148_v3, %v4954_v0  ;;  %v4753_v7 = vadd.f32 %v4752_v26, %v3872_v52  ;;  %v4955_v9 = vmul.f32 %v3872_v52, %v3872_v52  ;;  %4561 = vst [vmem:[%s11739_s4 + $0x118] sm:$0xff] %v3883_v58  ;;  %v3875_v30 = vadd.f32 %v3874_v29, %v11961_v4  ;;  %v10032_v31 = vpop.f32.mrf.mxu0  ;;  %v5515_v17 = vpop.f32.mrf.mxu1 }
 0x20d   :  { %3381 = vmatmul.mubr.bf16.gmra.mxu0 %v9377_v62  ;;  %5610 = vmatmul.mubr.bf16.gmra.mxu1 %v9379_v45  ;;  %v11962_v56 = vmax.f32 %v9916_v1, 0.0  ;;  %v2312_v47 = vmax.f32 %v1724_v42, 0.0  ;;  %v2315_v23 = vmax.f32 %v1727_v32, 0.0  ;;  %v1018_v52 = vmul.f32 %v5815_v18, %v413_v13  ;;  %v520_v45 = vld [vmem:[%s11736_s0 + $0xfa0] sm:$0xff]  ;;  %v523_v1 = vld [vmem:[%s11736_s0 + $0xfb8] sm:$0xff]  ;;  %v11964_v42 = vld [vmem:[#allocation68_spill] sm:$0xff] }
 0x20e   :  { %v5150_v0 = vadd.f32 %v5149_v43, %v4955_v9  ;;  %4559 = vst [vmem:[%s11739_s4 + $0x108] sm:$0xff] %v3875_v30  ;;  %v4754_v26 = vadd.f32 %v4753_v7, %v3875_v30  ;;  %v4956_v3 = vmul.f32 %v3875_v30, %v3875_v30  ;;  %v10045_v62 = vadd.f32 %v5515_v17, %v11963_v46  ;;  %v3192_v43 = vpop.f32.mrf.mxu0  ;;  %v417_v7 = vld [vmem:[%s11736_s0 + $0xc68] sm:$0xff] }
 0x20f   :  { %v10038_v33 = vpack.c.bf16 %v2303_v2, %v11962_v56  ;;  %3388 = vmatprep.mubr.bf16.mxu0 %v9433_v38  ;;  %v3887_v2 = vpop.f32.mrf.mxu1  ;;  %5613 = vmatprep.mubr.bf16.mxu1 %v11964_v42  ;;  %v10055_v32 = vpack.c.bf16 %v2205_v54, %v2202_v55  ;;  %v10057_v13 = vpack.c.bf16 %v2309_v63, %v2306_v25  ;;  %v11965_v55 = vld [vmem:[#allocation84_spill] sm:$0xff]  ;;  %v420_v54 = vld [vmem:[%s11736_s0 + $0xc80] sm:$0xff]  ;;  %v11967_v43 = vld [vmem:[#allocation15_spill] sm:$0xff] }
 0x210   :  { %v10059_v29 = vpack.c.bf16 %v2212_v59, %v2209_v21  ;;  %v1620_v38 = vadd.f32 %v5825_v22, %v1015_v8  ;;  %v4957_v9 = vmul.f32 %v9995_v49, %v9995_v49  ;;  %v4755_v4 = vadd.f32 %v4754_v26, %v9995_v49  ;;  %4564 = vst [vmem:[%s11739_s4 + $0x130] sm:$0xff] %v10045_v62  ;;  %v526_v25 = vld [vmem:[%s11736_s0 + $0xfd0] sm:$0xff]  ;;  %v529_v49 = vld [vmem:[%s11736_s0 + $0xfe8] sm:$0xff]  ;;  %v10082_v63 = vpop.f32.mrf.mxu0 }
 0x211   :  { %v5151_v30 = vadd.f32 %v5150_v0, %v4956_v3  ;;  %v3888_v21 = vadd.f32 %v3887_v2, %v11965_v55  ;;  %11966 = vst [vmem:[#allocation86_spill] sm:$0xff] %v10082_v63  ;;  %v5516_v59 = vpop.f32.mrf.mxu1  ;;  %v10084_v8 = vpack.c.bf16 %v2315_v23, %v2312_v47  ;;  %v1623_v17 = vadd.f32 %v5825_v22, %v1018_v52 }
 0x212   :  { %v1125_v56 = vmul.f32 %v7166_v12, %v520_v45  ;;  %v1128_v0 = vmul.f32 %v7166_v12, %v523_v1  ;;  %v4958_v26 = vmul.f32 %v3883_v58, %v3883_v58  ;;  %v4756_v3 = vadd.f32 %v4755_v4, %v3883_v58  ;;  %v3195_v42 = vpop.f32.mrf.mxu0 }
 0x213   :  { %v5152_v46 = vadd.f32 %v5151_v30, %v4957_v9  ;;  %4562 = vst [vmem:[%s11739_s4 + $0x120] sm:$0xff] %v3888_v21  ;;  %v3899_v2 = vadd.f32 %v5516_v59, %v11967_v43  ;;  %v3890_v55 = vpop.f32.mrf.mxu1  ;;  %v1022_v47 = vmul.f32 %v5804_v14, %v417_v7  ;;  %v1025_v23 = vmul.f32 %v5804_v14, %v420_v54  ;;  %v11968_v9 = vld [vmem:[#allocation89_spill] sm:$0xff] }
 0x214   :  { %v1131_v52 = vmul.f32 %v7166_v12, %v526_v25  ;;  %v1134_v45 = vmul.f32 %v7166_v12, %v529_v49  ;;  %v4757_v63 = vadd.f32 %v4756_v3, %v3888_v21  ;;  %v4959_v58 = vmul.f32 %v3888_v21, %v3888_v21  ;;  %v10101_v30 = vpop.f32.mrf.mxu0 }
 0x215   :  { %v5153_v1 = vadd.f32 %v5152_v46, %v4958_v26  ;;  %4565 = vst [vmem:[%s11739_s4 + $0x138] sm:$0xff] %v3899_v2  ;;  %v3891_v4 = vadd.f32 %v3890_v55, %v11968_v9  ;;  %3389 = vmatmul.mubr.bf16.gmra.mxu0 %v9509_v53  ;;  %v5519_v7 = vpop.f32.mrf.mxu1  ;;  %5614 = vmatmul.mubr.bf16.gmra.mxu1 %v9511_v24  ;;  %v2208_v54 = vmax.f32 %v1620_v38, 0.0  ;;  %v2211_v25 = vmax.f32 %v1623_v17, 0.0  ;;  %v11969_v46 = vld [vmem:[#allocation103_spill] sm:$0xff]  ;;  %v416_v24 = vld [vmem:[%s11736_s0 + $0xc60] sm:$0xff] }
 0x216   :  { %v10106_v49 = vadd.f32 %v7214_v35, %v1125_v56  ;;  %v10109_v21 = vadd.f32 %v7214_v35, %v1128_v0  ;;  %v3912_v53 = vadd.f32 %v5519_v7, %v11969_v46  ;;  %3396 = vmatprep.mubr.bf16.mxu0 %v9519_v20  ;;  %v3200_v38 = vpop.f32.mrf.mxu0  ;;  %5617 = vmatprep.mubr.bf16.mxu1 %v9521_v36 }
 0x217   :  { %v5154_v59 = vadd.f32 %v5153_v1, %v4959_v58  ;;  %4563 = vst [vmem:[%s11739_s4 + $0x128] sm:$0xff] %v3891_v4  ;;  %v4758_v26 = vadd.f32 %v4757_v63, %v3891_v4  ;;  %v4960_v3 = vmul.f32 %v3891_v4, %v3891_v4  ;;  %v3903_v17 = vpop.f32.mrf.mxu1  ;;  %v1627_v56 = vadd.f32 %v5817_v19, %v1022_v47  ;;  %v11970_v1 = vld [vmem:[#allocation94_spill] sm:$0xff] }
 0x218   :  { %v1630_v0 = vadd.f32 %v5817_v19, %v1025_v23  ;;  %v1736_v43 = vadd.f32 %v7214_v35, %v1131_v52  ;;  %v1739_v63 = vadd.f32 %v7214_v35, %v1134_v45  ;;  %v4961_v42 = vmul.f32 %v10045_v62, %v10045_v62  ;;  %4568 = vst [vmem:[%s11739_s4 + $0x150] sm:$0xff] %v3912_v53  ;;  %v10131_v58 = vpop.f32.mrf.mxu0 }
 0x219   :  { %v4759_v20 = vadd.f32 %v4758_v26, %v10045_v62  ;;  %v5155_v55 = vadd.f32 %v5154_v59, %v4960_v3  ;;  %v3904_v36 = vadd.f32 %v3903_v17, %v11970_v1  ;;  %v5520_v47 = vpop.f32.mrf.mxu1  ;;  %v10133_v23 = vpack.c.bf16 %v2211_v25, %v2208_v54  ;;  %v11971_v59 = vld [vmem:[#allocation24_spill] sm:$0xff]  ;;  %v419_v54 = vld [vmem:[%s11736_s0 + $0xc78] sm:$0xff]  ;;  %v532_v25 = vld [vmem:[%s11736_s0 + $0x1000] sm:$0xff] }
 0x21a   :  { %v2318_v52 = vmax.f32 %v10106_v49, 0.0  ;;  %v2321_v45 = vmax.f32 %v10109_v21, 0.0  ;;  %v1021_v9 = vmul.f32 %v5815_v18, %v416_v24  ;;  %v4962_v4 = vmul.f32 %v3899_v2, %v3899_v2  ;;  %v3203_v49 = vpop.f32.mrf.mxu0  ;;  %v535_v1 = vld [vmem:[%s11736_s0 + $0x1018] sm:$0xff] }
 0x21b   :  { %v4760_v62 = vadd.f32 %v4759_v20, %v3899_v2  ;;  %v5156_v7 = vadd.f32 %v5155_v55, %v4961_v42  ;;  %4566 = vst [vmem:[%s11739_s4 + $0x140] sm:$0xff] %v3904_v36  ;;  %v3915_v26 = vadd.f32 %v5520_v47, %v11971_v59  ;;  %v3906_v21 = vpop.f32.mrf.mxu1  ;;  %v2215_v3 = vmax.f32 %v1627_v56, 0.0  ;;  %v11972_v20 = vld [vmem:[#allocation97_spill] sm:$0xff] }
 0x21c   :  { %v2218_v46 = vmax.f32 %v1630_v0, 0.0  ;;  %v2324_v2 = vmax.f32 %v1736_v43, 0.0  ;;  %v2327_v24 = vmax.f32 %v1739_v63, 0.0  ;;  %v4963_v42 = vmul.f32 %v3904_v36, %v3904_v36  ;;  %v10155_v47 = vpop.f32.mrf.mxu0 }
 0x21d   :  { %v5157_v38 = vadd.f32 %v5156_v7, %v4962_v4  ;;  %v4761_v17 = vadd.f32 %v4760_v62, %v3904_v36  ;;  %4569 = vst [vmem:[%s11739_s4 + $0x158] sm:$0xff] %v3915_v26  ;;  %v3907_v55 = vadd.f32 %v3906_v21, %v11972_v20  ;;  %3397 = vmatmul.mubr.bf16.gmra.mxu0 %v9523_v50  ;;  %v5523_v56 = vpop.f32.mrf.mxu1  ;;  %v11973_v7 = vld [vmem:[#allocation108_spill] sm:$0xff]  ;;  %v423_v50 = vld [vmem:[%s11736_s0 + $0xc98] sm:$0xff] }
 0x21e   :  { %5618 = vmatmul.mubr.bf16.gmra.mxu1 %v9536_v27  ;;  %v1024_v0 = vmul.f32 %v5815_v18, %v419_v54  ;;  %v10161_v43 = vadd.f32 %v5825_v22, %v1021_v9  ;;  %v1137_v63 = vmul.f32 %v7166_v12, %v532_v25  ;;  %v10168_v59 = vadd.f32 %v5523_v56, %v11973_v7  ;;  %v3208_v27 = vpop.f32.mrf.mxu0 }
 0x21f   :  { %v5158_v36 = vadd.f32 %v5157_v38, %v4963_v42  ;;  %4567 = vst [vmem:[%s11739_s4 + $0x148] sm:$0xff] %v3907_v55  ;;  %v4762_v4 = vadd.f32 %v4761_v17, %v3907_v55  ;;  %v4964_v62 = vmul.f32 %v3907_v55, %v3907_v55  ;;  %3404 = vmatprep.mubr.bf16.mxu0 %v9538_v60  ;;  %v3919_v9 = vpop.f32.mrf.mxu1  ;;  %v11974_v60 = vld [vmem:[#allocation105_spill] sm:$0xff] }
 0x220   :  { %5621 = vmatprep.mubr.bf16.mxu1 %v9560_v37  ;;  %v10175_v54 = vpack.c.bf16 %v2321_v45, %v2318_v52  ;;  %v10177_v25 = vpack.c.bf16 %v2218_v46, %v2215_v3  ;;  %v10179_v49 = vpack.c.bf16 %v2327_v24, %v2324_v2  ;;  %v1140_v21 = vmul.f32 %v7166_v12, %v535_v1  ;;  %v426_v37 = vld [vmem:[%s11736_s0 + $0xcb0] sm:$0xff]  ;;  %v10196_v45 = vpop.f32.mrf.mxu0 }
 0x221   :  { %v4965_v38 = vmul.f32 %v3912_v53, %v3912_v53  ;;  %v4763_v17 = vadd.f32 %v4762_v4, %v3912_v53  ;;  %v5159_v42 = vadd.f32 %v5158_v36, %v4964_v62  ;;  %4572 = vst [vmem:[%s11739_s4 + $0x170] sm:$0xff] %v10168_v59  ;;  %v3920_v20 = vadd.f32 %v3919_v9, %v11974_v60  ;;  %v538_v52 = vld [vmem:[%s11736_s0 + $0x1030] sm:$0xff]  ;;  %v541_v53 = vld [vmem:[%s11736_s0 + $0x1048] sm:$0xff]  ;;  %v5524_v3 = vpop.f32.mrf.mxu1  ;;  %v11975_v4 = vld [vmem:[#allocation69_spill] sm:$0xff] }
 0x222   :  { %v10199_v46 = vadd.f32 %v5825_v22, %v1024_v0  ;;  %v10203_v24 = vadd.f32 %v7214_v35, %v1137_v63  ;;  %v1028_v55 = vmul.f32 %v5804_v14, %v423_v50  ;;  %v4966_v1 = vmul.f32 %v3915_v26, %v3915_v26  ;;  %v422_v0 = vld [vmem:[%s11736_s0 + $0xc90] sm:$0xff]  ;;  %v425_v63 = vld [vmem:[%s11736_s0 + $0xca8] sm:$0xff]  ;;  %v3211_v7 = vpop.f32.mrf.mxu0 }
 0x223   :  { %v4764_v56 = vadd.f32 %v4763_v17, %v3915_v26  ;;  %v5160_v36 = vadd.f32 %v5159_v42, %v4965_v38  ;;  %4570 = vst [vmem:[%s11739_s4 + $0x160] sm:$0xff] %v3920_v20  ;;  %v3931_v62 = vadd.f32 %v5524_v3, %v11975_v4  ;;  %v3922_v27 = vpop.f32.mrf.mxu1  ;;  %v10217_v50 = vadd.f32 %v7214_v35, %v1140_v21  ;;  %v11976_v3 = vld [vmem:[#allocation106_spill] sm:$0xff] }
 0x224   :  { %v1031_v26 = vmul.f32 %v5804_v14, %v426_v37  ;;  %v1143_v9 = vmul.f32 %v7166_v12, %v538_v52  ;;  %v1146_v38 = vmul.f32 %v7166_v12, %v541_v53  ;;  %v4967_v60 = vmul.f32 %v3920_v20, %v3920_v20  ;;  %v10226_v7 = vpop.f32.mrf.mxu0 }
 0x225   :  { %v5161_v17 = vadd.f32 %v5160_v36, %v4966_v1  ;;  %v4765_v42 = vadd.f32 %v4764_v56, %v3920_v20  ;;  %4573 = vst [vmem:[%s11739_s4 + $0x178] sm:$0xff] %v3931_v62  ;;  %v3923_v4 = vadd.f32 %v3922_v27, %v11976_v3  ;;  %11977 = vst [vmem:[#allocation29_spill] sm:$0xff] %v10226_v7  ;;  %3405 = vmatmul.mubr.bf16.gmra.mxu0 %v9583_v51  ;;  %v5527_v21 = vpop.f32.mrf.mxu1 }
 0x226   :  { %5622 = vmatmul.mubr.bf16.gmra.mxu1 %v9611_v44  ;;  %v2217_v37 = vmax.f32 %v10199_v46, 0.0  ;;  %v10232_v52 = vadd.f32 %v5817_v19, %v1028_v55  ;;  %v1027_v20 = vmul.f32 %v5815_v18, %v422_v0  ;;  %v1030_v53 = vmul.f32 %v5815_v18, %v425_v63  ;;  %3412 = vmatprep.mubr.bf16.mxu0 %v9643_v5  ;;  %v3216_v44 = vpop.f32.mrf.mxu0  ;;  %v11978_v5 = vld [vmem:[#allocation111_spill] sm:$0xff] }
 0x227   :  { %v5162_v1 = vadd.f32 %v5161_v17, %v4967_v60  ;;  %4571 = vst [vmem:[%s11739_s4 + $0x168] sm:$0xff] %v3923_v4  ;;  %v4766_v56 = vadd.f32 %v4765_v42, %v3923_v4  ;;  %v4968_v36 = vmul.f32 %v3923_v4, %v3923_v4  ;;  %v10240_v51 = vadd.f32 %v5527_v21, %v9543_v16  ;;  %v3935_v46 = vpop.f32.mrf.mxu1 }
 0x228   :  { %5625 = vmatprep.mubr.bf16.mxu1 %v9682_v39  ;;  %v2330_v55 = vmax.f32 %v10203_v24, 0.0  ;;  %v1636_v0 = vadd.f32 %v5817_v19, %v1031_v26  ;;  %v1748_v63 = vadd.f32 %v7214_v35, %v1143_v9  ;;  %v1751_v27 = vadd.f32 %v7214_v35, %v1146_v38  ;;  %v544_v24 = vld [vmem:[%s11736_s0 + $0x1060] sm:$0xff]  ;;  %v10259_v26 = vpop.f32.mrf.mxu0 }
 0x229   :  { %v4969_v17 = vmul.f32 %v10168_v59, %v10168_v59  ;;  %v4767_v16 = vadd.f32 %v4766_v56, %v10168_v59  ;;  %v5163_v42 = vadd.f32 %v5162_v1, %v4968_v36  ;;  %4576 = vst [vmem:[%s11739_s4 + $0x190] sm:$0xff] %v10240_v51  ;;  %v3936_v39 = vadd.f32 %v3935_v46, %v11978_v5  ;;  %v5528_v9 = vpop.f32.mrf.mxu1  ;;  %v11980_v56 = vld [vmem:[#allocation7_spill] sm:$0xff] }
 0x22a   :  { %11979 = vst [vmem:[#allocation36_spill] sm:$0xff] %v10259_v26  ;;  %v2333_v38 = vmax.f32 %v10217_v50, 0.0  ;;  %v2221_v60 = vmax.f32 %v10232_v52, 0.0  ;;  %v1632_v59 = vadd.f32 %v5825_v22, %v1027_v20  ;;  %v1635_v3 = vadd.f32 %v5825_v22, %v1030_v53  ;;  %v3219_v44 = vpop.f32.mrf.mxu0 }
 0x22b   :  { %v4970_v4 = vmul.f32 %v3931_v62, %v3931_v62  ;;  %v4768_v21 = vadd.f32 %v4767_v16, %v3931_v62  ;;  %v5164_v1 = vadd.f32 %v5163_v42, %v4969_v17  ;;  %4574 = vst [vmem:[%s11739_s4 + $0x180] sm:$0xff] %v3936_v39  ;;  %v3947_v36 = vadd.f32 %v5528_v9, %v11980_v56  ;;  %v3938_v46 = vpop.f32.mrf.mxu1  ;;  %v11981_v62 = vld [vmem:[#allocation72_spill] sm:$0xff]  ;;  %v547_v17 = vld [vmem:[%s11736_s0 + $0x1078] sm:$0xff] }
 0x22c   :  { %v2224_v5 = vmax.f32 %v1636_v0, 0.0  ;;  %v2336_v2 = vmax.f32 %v1748_v63, 0.0  ;;  %v2339_v50 = vmax.f32 %v1751_v27, 0.0  ;;  %v1149_v52 = vmul.f32 %v7166_v12, %v544_v24  ;;  %v10277_v16 = vpop.f32.mrf.mxu0  ;;  %v11982_v0 = vld [vmem:[#allocation16_spill] sm:$0xff]  ;;  %v11983_v27 = vld [vmem:[#allocation18_spill] sm:$0xff] }
 0x22d   :  { %v5165_v26 = vadd.f32 %v5164_v1, %v4970_v4  ;;  %v4769_v20 = vadd.f32 %v4768_v21, %v3936_v39  ;;  %v4971_v7 = vmul.f32 %v3936_v39, %v3936_v39  ;;  %4577 = vst [vmem:[%s11739_s4 + $0x198] sm:$0xff] %v3947_v36  ;;  %v3939_v53 = vadd.f32 %v3938_v46, %v11981_v62  ;;  %v5531_v63 = vpop.f32.mrf.mxu1  ;;  %v11985_v44 = vld [vmem:[#allocation4_spill] sm:$0xff] }
 0x22e   :  { %3413 = vmatmul.mubr.bf16.gmra.mxu0 %v11982_v0  ;;  %5626 = vmatmul.mubr.bf16.gmra.mxu1 %v11983_v27  ;;  %v11984_v42 = vmax.f32 %v10161_v43, 0.0  ;;  %v10285_v24 = vpack.c.bf16 %v2333_v38, %v2330_v55  ;;  %v2220_v9 = vmax.f32 %v1632_v59, 0.0  ;;  %v2223_v4 = vmax.f32 %v1635_v3, 0.0  ;;  %v429_v43 = vld [vmem:[%s11736_s0 + $0xcc8] sm:$0xff]  ;;  %v3224_v55 = vpop.f32.mrf.mxu0 }
 0x22f   :  { %v5166_v21 = vadd.f32 %v5165_v26, %v4971_v7  ;;  %4575 = vst [vmem:[%s11739_s4 + $0x188] sm:$0xff] %v3939_v53  ;;  %v4770_v1 = vadd.f32 %v4769_v20, %v3939_v53  ;;  %v4972_v56 = vmul.f32 %v3939_v53, %v3939_v53  ;;  %v10291_v46 = vadd.f32 %v5531_v63, %v11985_v44  ;;  %v550_v7 = vld [vmem:[%s11736_s0 + $0x1090] sm:$0xff]  ;;  %v3951_v26 = vpop.f32.mrf.mxu1 }
 0x230   :  { %v10283_v39 = vpack.c.bf16 %v2217_v37, %v11984_v42  ;;  %3420 = vmatprep.mubr.bf16.mxu0 %v9793_v34  ;;  %v432_v37 = vld [vmem:[%s11736_s0 + $0xce0] sm:$0xff]  ;;  %5629 = vmatprep.mubr.bf16.mxu1 %v9810_v61  ;;  %v10304_v38 = vpack.c.bf16 %v2224_v5, %v2221_v60  ;;  %v10306_v59 = vpack.c.bf16 %v2339_v50, %v2336_v2  ;;  %v553_v2 = vld [vmem:[%s11736_s0 + $0x10a8] sm:$0xff]  ;;  %v10329_v50 = vpop.f32.mrf.mxu0 }
 0x231   :  { %v1152_v34 = vmul.f32 %v7166_v12, %v547_v17  ;;  %v10310_v3 = vadd.f32 %v7214_v35, %v1149_v52  ;;  %v4973_v20 = vmul.f32 %v10240_v51, %v10240_v51  ;;  %v4771_v62 = vadd.f32 %v4770_v1, %v10240_v51  ;;  %4580 = vst [vmem:[%s11739_s4 + $0x1b0] sm:$0xff] %v10291_v46  ;;  %v11986_v61 = vld [vmem:[#allocation2_spill] sm:$0xff]  ;;  %v431_v51 = vld [vmem:[%s11736_s0 + $0xcd8] sm:$0xff]  ;;  %v5532_v52 = vpop.f32.mrf.mxu1 }
 0x232   :  { %v5167_v53 = vadd.f32 %v5166_v21, %v4972_v56  ;;  %v3952_v60 = vadd.f32 %v3951_v26, %v11986_v61  ;;  %v428_v5 = vld [vmem:[%s11736_s0 + $0xcc0] sm:$0xff]  ;;  %v10331_v17 = vpack.c.bf16 %v2223_v4, %v2220_v9  ;;  %v1034_v0 = vmul.f32 %v5804_v14, %v429_v43  ;;  %v11987_v56 = vld [vmem:[#allocation11_spill] sm:$0xff]  ;;  %v3227_v55 = vpop.f32.mrf.mxu0 }
 0x233   :  { %v1037_v63 = vmul.f32 %v5804_v14, %v432_v37  ;;  %v1155_v27 = vmul.f32 %v7166_v12, %v550_v7  ;;  %v4974_v42 = vmul.f32 %v3947_v36, %v3947_v36  ;;  %v4772_v21 = vadd.f32 %v4771_v62, %v3947_v36  ;;  %v3954_v26 = vpop.f32.mrf.mxu1  ;;  %v11988_v62 = vld [vmem:[#allocation9_spill] sm:$0xff] }
 0x234   :  { %v5168_v1 = vadd.f32 %v5167_v53, %v4973_v20  ;;  %4578 = vst [vmem:[%s11739_s4 + $0x1a0] sm:$0xff] %v3952_v60  ;;  %v3963_v44 = vadd.f32 %v5532_v52, %v11987_v56  ;;  %v10341_v9 = vadd.f32 %v7214_v35, %v1152_v34  ;;  %v1158_v4 = vmul.f32 %v7166_v12, %v553_v2  ;;  %v10350_v61 = vpop.f32.mrf.mxu0 }
 0x235   :  { %v1033_v43 = vmul.f32 %v5815_v18, %v428_v5  ;;  %v1036_v37 = vmul.f32 %v5815_v18, %v431_v51  ;;  %v4773_v36 = vadd.f32 %v4772_v21, %v3952_v60  ;;  %v4975_v20 = vmul.f32 %v3952_v60, %v3952_v60  ;;  %v5535_v34 = vpop.f32.mrf.mxu1 }
 0x236   :  { %v5169_v7 = vadd.f32 %v5168_v1, %v4974_v42  ;;  %4581 = vst [vmem:[%s11739_s4 + $0x1b8] sm:$0xff] %v3963_v44  ;;  %v3955_v53 = vadd.f32 %v3954_v26, %v11988_v62  ;;  %3421 = vmatmul.mubr.bf16.gmra.mxu0 %v9812_v41  ;;  %5630 = vmatmul.mubr.bf16.gmra.mxu1 %v9814_v40  ;;  %v2342_v2 = vmax.f32 %v10310_v3, 0.0  ;;  %v556_v40 = vld [vmem:[%s11736_s0 + $0x10c0] sm:$0xff]  ;;  %v3232_v3 = vpop.f32.mrf.mxu0 }
 0x237   :  { %v1639_v5 = vadd.f32 %v5817_v19, %v1034_v0  ;;  %v1642_v51 = vadd.f32 %v5817_v19, %v1037_v63  ;;  %v10358_v60 = vadd.f32 %v7214_v35, %v1155_v27  ;;  %v10364_v41 = vadd.f32 %v5535_v34, %v9787_v48  ;;  %3428 = vmatprep.mubr.bf16.mxu0 %v9839_v28  ;;  %v3967_v0 = vpop.f32.mrf.mxu1  ;;  %v11991_v34 = vld [vmem:[#allocation25_spill] sm:$0xff] }
 0x238   :  { %v5170_v52 = vadd.f32 %v5169_v7, %v4975_v20  ;;  %4579 = vst [vmem:[%s11739_s4 + $0x1a8] sm:$0xff] %v3955_v53  ;;  %v4774_v42 = vadd.f32 %v4773_v36, %v3955_v53  ;;  %v4976_v21 = vmul.f32 %v3955_v53, %v3955_v53  ;;  %5633 = vmatprep.mubr.bf16.mxu1 %v9888_v6  ;;  %v2345_v63 = vmax.f32 %v10341_v9, 0.0  ;;  %v11989_v6 = vld [vmem:[#allocation13_spill] sm:$0xff] }
 0x239   :  { %v1763_v27 = vadd.f32 %v7214_v35, %v1158_v4  ;;  %v1638_v1 = vadd.f32 %v5825_v22, %v1033_v43  ;;  %v1641_v56 = vadd.f32 %v5825_v22, %v1036_v37  ;;  %v4977_v48 = vmul.f32 %v10291_v46, %v10291_v46  ;;  %4584 = vst [vmem:[%s11739_s4 + $0x1d0] sm:$0xff] %v10364_v41  ;;  %v559_v9 = vld [vmem:[%s11736_s0 + $0x10d8] sm:$0xff]  ;;  %v10386_v4 = vpop.f32.mrf.mxu0  ;;  %v5536_v43 = vpop.f32.mrf.mxu1 }
 0x23a   :  { %v4775_v28 = vadd.f32 %v4774_v42, %v10291_v46  ;;  %v5171_v55 = vadd.f32 %v5170_v52, %v4976_v21  ;;  %v3968_v26 = vadd.f32 %v3967_v0, %v11989_v6  ;;  %11990 = vst [vmem:[#allocation31_spill] sm:$0xff] %v10386_v4  ;;  %v2227_v37 = vmax.f32 %v1639_v5, 0.0 }
 0x23b   :  { %v2230_v7 = vmax.f32 %v1642_v51, 0.0  ;;  %v2348_v36 = vmax.f32 %v10358_v60, 0.0  ;;  %v1161_v46 = vmul.f32 %v7166_v12, %v556_v40  ;;  %v4978_v20 = vmul.f32 %v3963_v44, %v3963_v44  ;;  %v3235_v42 = vpop.f32.mrf.mxu0  ;;  %v3970_v21 = vpop.f32.mrf.mxu1 }
 0x23c   :  { %v4776_v62 = vadd.f32 %v4775_v28, %v3963_v44  ;;  %v5172_v53 = vadd.f32 %v5171_v55, %v4977_v48  ;;  %4582 = vst [vmem:[%s11739_s4 + $0x1c0] sm:$0xff] %v3968_v26  ;;  %v3979_v52 = vadd.f32 %v5536_v43, %v11991_v34  ;;  %v2351_v3 = vmax.f32 %v1763_v27, 0.0  ;;  %v11992_v44 = vld [vmem:[#allocation80_spill] sm:$0xff]  ;;  %v435_v48 = vld [vmem:[%s11736_s0 + $0xcf8] sm:$0xff]  ;;  %v437_v42 = vld [vmem:[%s11736_s0 + $0xd08] sm:$0xff] }
 0x23d   :  { %v2226_v0 = vmax.f32 %v1638_v1, 0.0  ;;  %v2229_v6 = vmax.f32 %v1641_v56, 0.0  ;;  %v1164_v5 = vmul.f32 %v7166_v12, %v559_v9  ;;  %v4979_v4 = vmul.f32 %v3968_v26, %v3968_v26  ;;  %v10402_v28 = vpop.f32.mrf.mxu0  ;;  %v5539_v27 = vpop.f32.mrf.mxu1  ;;  %v434_v34 = vld [vmem:[%s11736_s0 + $0xcf0] sm:$0xff] }
 0x23e   :  { %v5173_v51 = vadd.f32 %v5172_v53, %v4978_v20  ;;  %v4777_v60 = vadd.f32 %v4776_v62, %v3968_v26  ;;  %4585 = vst [vmem:[%s11739_s4 + $0x1d8] sm:$0xff] %v3979_v52  ;;  %v3971_v40 = vadd.f32 %v3970_v21, %v11992_v44  ;;  %3429 = vmatmul.mubr.bf16.gmra.mxu0 %v9930_v15  ;;  %v438_v15 = vld [vmem:[%s11736_s0 + $0xd10] sm:$0xff] }
 0x23f   :  { %5634 = vmatmul.mubr.bf16.gmra.mxu1 %v9932_v57  ;;  %v10406_v1 = vpack.c.bf16 %v2345_v63, %v2342_v2  ;;  %v10408_v56 = vpack.c.bf16 %v2230_v7, %v2227_v37  ;;  %v10411_v55 = vadd.f32 %v7214_v35, %v1161_v46  ;;  %v10417_v20 = vadd.f32 %v5539_v27, %v9910_v11  ;;  %v562_v57 = vld [vmem:[%s11736_s0 + $0x10f0] sm:$0xff]  ;;  %v565_v2 = vld [vmem:[%s11736_s0 + $0x1108] sm:$0xff]  ;;  %v3240_v63 = vpop.f32.mrf.mxu0 }
 0x240   :  { %v5174_v26 = vadd.f32 %v5173_v51, %v4979_v4  ;;  %4583 = vst [vmem:[%s11739_s4 + $0x1c8] sm:$0xff] %v3971_v40  ;;  %v4778_v9 = vadd.f32 %v4777_v60, %v3971_v40  ;;  %v4980_v43 = vmul.f32 %v3971_v40, %v3971_v40  ;;  %3436 = vmatprep.mubr.bf16.mxu0 %v9934_v10  ;;  %v3983_v4 = vpop.f32.mrf.mxu1  ;;  %v11994_v40 = vld [vmem:[#allocation27_spill] sm:$0xff]  ;;  %v11995_v63 = vld [vmem:[#allocation20_spill] sm:$0xff] }
 0x241   :  { %5637 = vmatprep.mubr.bf16.mxu1 %v10038_v33  ;;  %v10430_v11 = vpack.c.bf16 %v2351_v3, %v2348_v36  ;;  %v10432_v37 = vpack.c.bf16 %v2229_v6, %v2226_v0  ;;  %v1769_v10 = vadd.f32 %v7214_v35, %v1164_v5  ;;  %v1040_v7 = vmul.f32 %v5804_v14, %v435_v48  ;;  %v11993_v33 = vld [vmem:[#allocation81_spill] sm:$0xff]  ;;  %v10450_v21 = vpop.f32.mrf.mxu0 }
 0x242   :  { %v4981_v46 = vmul.f32 %v10364_v41, %v10364_v41  ;;  %v4779_v62 = vadd.f32 %v4778_v9, %v10364_v41  ;;  %v5175_v53 = vadd.f32 %v5174_v26, %v4980_v43  ;;  %4588 = vst [vmem:[%s11739_s4 + $0x1f0] sm:$0xff] %v10417_v20  ;;  %v3984_v36 = vadd.f32 %v3983_v4, %v11993_v33  ;;  %v5540_v3 = vpop.f32.mrf.mxu1 }
 0x243   :  { %v2354_v41 = vmax.f32 %v10411_v55, 0.0  ;;  %v1043_v0 = vmul.f32 %v5804_v14, %v438_v15  ;;  %v1167_v6 = vmul.f32 %v7166_v12, %v562_v57  ;;  %v1170_v5 = vmul.f32 %v7166_v12, %v565_v2  ;;  %v3243_v27 = vpop.f32.mrf.mxu0 }
 0x244   :  { %v4982_v51 = vmul.f32 %v3979_v52, %v3979_v52  ;;  %v4780_v60 = vadd.f32 %v4779_v62, %v3979_v52  ;;  %v5176_v44 = vadd.f32 %v5175_v53, %v4981_v46  ;;  %4586 = vst [vmem:[%s11739_s4 + $0x1e0] sm:$0xff] %v3984_v36  ;;  %v3995_v48 = vadd.f32 %v5540_v3, %v11994_v40  ;;  %v3986_v26 = vpop.f32.mrf.mxu1 }
 0x245   :  { %v2357_v9 = vmax.f32 %v1769_v10, 0.0  ;;  %v10461_v55 = vadd.f32 %v5817_v19, %v1040_v7  ;;  %v1039_v43 = vmul.f32 %v5815_v18, %v434_v34  ;;  %v1042_v15 = vmul.f32 %v5815_v18, %v437_v42  ;;  %v568_v10 = vld [vmem:[%s11736_s0 + $0x1120] sm:$0xff]  ;;  %v10472_v46 = vpop.f32.mrf.mxu0 }
 0x246   :  { %v5177_v57 = vadd.f32 %v5176_v44, %v4982_v51  ;;  %v4781_v2 = vadd.f32 %v4780_v60, %v3984_v36  ;;  %v4983_v52 = vmul.f32 %v3984_v36, %v3984_v36  ;;  %4589 = vst [vmem:[%s11739_s4 + $0x1f8] sm:$0xff] %v3995_v48  ;;  %v3987_v4 = vadd.f32 %v3986_v26, %v11995_v63  ;;  %v5543_v7 = vpop.f32.mrf.mxu1 }
 0x247   :  { %3437 = vmatmul.mubr.bf16.gmra.mxu0 %v10055_v32  ;;  %5638 = vmatmul.mubr.bf16.gmra.mxu1 %v10057_v13  ;;  %v1648_v62 = vadd.f32 %v5817_v19, %v1043_v0  ;;  %v1772_v53 = vadd.f32 %v7214_v35, %v1167_v6  ;;  %v1775_v33 = vadd.f32 %v7214_v35, %v1170_v5  ;;  %v3248_v32 = vpop.f32.mrf.mxu0  ;;  %v2233_v26 = vmax.f32 %v10461_v55, 0.0 }
 0x248   :  { %v5178_v36 = vadd.f32 %v5177_v57, %v4983_v52  ;;  %4587 = vst [vmem:[%s11739_s4 + $0x1e8] sm:$0xff] %v3987_v4  ;;  %v4782_v34 = vadd.f32 %v4781_v2, %v3987_v4  ;;  %v4984_v42 = vmul.f32 %v3987_v4, %v3987_v4  ;;  %v10483_v3 = vadd.f32 %v5543_v7, %v10032_v31  ;;  %v3999_v13 = vpop.f32.mrf.mxu1  ;;  %v11997_v52 = vld [vmem:[#allocation86_spill] sm:$0xff]  ;;  %v441_v4 = vld [vmem:[%s11736_s0 + $0xd28] sm:$0xff] }
 0x249   :  { %3444 = vmatprep.mubr.bf16.mxu0 %v10059_v29  ;;  %5641 = vmatprep.mubr.bf16.mxu1 %v10084_v8  ;;  %v10487_v0 = vpack.c.bf16 %v2357_v9, %v2354_v41  ;;  %v1644_v6 = vadd.f32 %v5825_v22, %v1039_v43  ;;  %v1647_v5 = vadd.f32 %v5825_v22, %v1042_v15  ;;  %v11996_v29 = vld [vmem:[#allocation22_spill] sm:$0xff]  ;;  %v571_v41 = vld [vmem:[%s11736_s0 + $0x1138] sm:$0xff]  ;;  %v10503_v40 = vpop.f32.mrf.mxu0  ;;  %v2236_v9 = vmax.f32 %v1648_v62, 0.0 }
 0x24a   :  { %v1173_v51 = vmul.f32 %v7166_v12, %v568_v10  ;;  %v4985_v60 = vmul.f32 %v10417_v20, %v10417_v20  ;;  %v4783_v31 = vadd.f32 %v4782_v34, %v10417_v20  ;;  %v5179_v44 = vadd.f32 %v5178_v36, %v4984_v42  ;;  %4592 = vst [vmem:[%s11739_s4 + $0x210] sm:$0xff] %v10483_v3  ;;  %v5544_v27 = vpop.f32.mrf.mxu1  ;;  %v11998_v42 = vld [vmem:[#allocation34_spill] sm:$0xff] }
 0x24b   :  { %v4000_v8 = vadd.f32 %v3999_v13, %v11996_v29  ;;  %v2360_v43 = vmax.f32 %v1772_v53, 0.0  ;;  %v2363_v20 = vmax.f32 %v1775_v33, 0.0  ;;  %v4986_v15 = vmul.f32 %v3995_v48, %v3995_v48  ;;  %v3251_v10 = vpop.f32.mrf.mxu0  ;;  %v444_v13 = vld [vmem:[%s11736_s0 + $0xd40] sm:$0xff] }
 0x24c   :  { %v4784_v57 = vadd.f32 %v4783_v31, %v3995_v48  ;;  %v5180_v2 = vadd.f32 %v5179_v44, %v4985_v60  ;;  %v4011_v63 = vadd.f32 %v5544_v27, %v11997_v52  ;;  %v4002_v7 = vpop.f32.mrf.mxu1  ;;  %v2232_v36 = vmax.f32 %v1644_v6, 0.0  ;;  %v440_v27 = vld [vmem:[%s11736_s0 + $0xd20] sm:$0xff]  ;;  %v443_v52 = vld [vmem:[%s11736_s0 + $0xd38] sm:$0xff] }
 0x24d   :  { %4590 = vst [vmem:[%s11739_s4 + $0x200] sm:$0xff] %v4000_v8  ;;  %v2235_v55 = vmax.f32 %v1647_v5, 0.0  ;;  %v1176_v62 = vmul.f32 %v7166_v12, %v571_v41  ;;  %v10515_v53 = vadd.f32 %v7214_v35, %v1173_v51  ;;  %v4987_v34 = vmul.f32 %v4000_v8, %v4000_v8  ;;  %v10524_v6 = vpop.f32.mrf.mxu0 }
 0x24e   :  { %v5181_v48 = vadd.f32 %v5180_v2, %v4986_v15  ;;  %v4785_v33 = vadd.f32 %v4784_v57, %v4000_v8  ;;  %4593 = vst [vmem:[%s11739_s4 + $0x218] sm:$0xff] %v4011_v63  ;;  %v4003_v32 = vadd.f32 %v4002_v7, %v11998_v42  ;;  %v5547_v5 = vpop.f32.mrf.mxu1  ;;  %v10528_v51 = vpack.c.bf16 %v2236_v9, %v2233_v26 }
 0x24f   :  { %3445 = vmatmul.mubr.bf16.gmra.mxu0 %v10133_v23  ;;  %5642 = vmatmul.mubr.bf16.gmra.mxu1 %v10175_v54  ;;  %v10530_v60 = vpack.c.bf16 %v2363_v20, %v2360_v43  ;;  %v1046_v31 = vmul.f32 %v5804_v14, %v441_v4  ;;  %v10537_v41 = vadd.f32 %v5547_v5, %v10155_v47  ;;  %v574_v23 = vld [vmem:[%s11736_s0 + $0x1150] sm:$0xff]  ;;  %v577_v54 = vld [vmem:[%s11736_s0 + $0x1168] sm:$0xff]  ;;  %v3256_v26 = vpop.f32.mrf.mxu0  ;;  %v2366_v43 = vmax.f32 %v10515_v53, 0.0  ;;  %v580_v4 = vld [vmem:[%s11736_s0 + $0x1180] sm:$0xff] }
 0x250   :  { %v5182_v44 = vadd.f32 %v5181_v48, %v4987_v34  ;;  %4591 = vst [vmem:[%s11739_s4 + $0x208] sm:$0xff] %v4003_v32  ;;  %v4786_v29 = vadd.f32 %v4785_v33, %v4003_v32  ;;  %v4988_v8 = vmul.f32 %v4003_v32, %v4003_v32  ;;  %3452 = vmatprep.mubr.bf16.mxu0 %v10177_v25  ;;  %v4015_v9 = vpop.f32.mrf.mxu1  ;;  %v589_v53 = vld [vmem:[%s11736_s0 + $0x11c8] sm:$0xff] }
 0x251   :  { %5645 = vmatprep.mubr.bf16.mxu1 %v10179_v49  ;;  %v10550_v47 = vpack.c.bf16 %v2235_v55, %v2232_v36  ;;  %v10553_v25 = vadd.f32 %v7214_v35, %v1176_v62  ;;  %v1049_v20 = vmul.f32 %v5804_v14, %v444_v13  ;;  %v4989_v15 = vmul.f32 %v10483_v3, %v10483_v3  ;;  %v10574_v10 = vpop.f32.mrf.mxu0 }
 0x252   :  { %v4787_v57 = vadd.f32 %v4786_v29, %v10483_v3  ;;  %v5183_v2 = vadd.f32 %v5182_v44, %v4988_v8  ;;  %4596 = vst [vmem:[%s11739_s4 + $0x230] sm:$0xff] %v10537_v41  ;;  %v4016_v49 = vadd.f32 %v4015_v9, %v10101_v30  ;;  %v583_v3 = vld [vmem:[%s11736_s0 + $0x1198] sm:$0xff]  ;;  %v5548_v7 = vpop.f32.mrf.mxu1  ;;  %v10577_v36 = vadd.f32 %v5817_v19, %v1046_v31 }
 0x253   :  { %v1179_v30 = vmul.f32 %v7166_v12, %v574_v23  ;;  %v1182_v55 = vmul.f32 %v7166_v12, %v577_v54  ;;  %v1045_v62 = vmul.f32 %v5815_v18, %v440_v27  ;;  %v4990_v48 = vmul.f32 %v4011_v63, %v4011_v63  ;;  %v3259_v32 = vpop.f32.mrf.mxu0 }
 0x254   :  { %v4788_v33 = vadd.f32 %v4787_v57, %v4011_v63  ;;  %v5184_v34 = vadd.f32 %v5183_v2, %v4989_v15  ;;  %4594 = vst [vmem:[%s11739_s4 + $0x220] sm:$0xff] %v4016_v49  ;;  %v4027_v42 = vadd.f32 %v5548_v7, %v10196_v45  ;;  %v4018_v13 = vpop.f32.mrf.mxu1  ;;  %v10587_v5 = vadd.f32 %v5817_v19, %v1049_v20 }
 0x255   :  { %v1048_v31 = vmul.f32 %v5815_v18, %v443_v52  ;;  %v1185_v44 = vmul.f32 %v7166_v12, %v580_v4  ;;  %v1188_v29 = vmul.f32 %v7166_v12, %v583_v3  ;;  %v4991_v23 = vmul.f32 %v4016_v49, %v4016_v49  ;;  %v10596_v54 = vpop.f32.mrf.mxu0 }
 0x256   :  { %v5185_v8 = vadd.f32 %v5184_v34, %v4990_v48  ;;  %v4789_v63 = vadd.f32 %v4788_v33, %v4016_v49  ;;  %4597 = vst [vmem:[%s11739_s4 + $0x238] sm:$0xff] %v4027_v42  ;;  %v4019_v45 = vadd.f32 %v4018_v13, %v10131_v58  ;;  %v5551_v27 = vpop.f32.mrf.mxu1  ;;  %v2369_v26 = vmax.f32 %v10553_v25, 0.0 }
 0x257   :  { %3453 = vmatmul.mubr.bf16.gmra.mxu0 %v10283_v39  ;;  %5646 = vmatmul.mubr.bf16.gmra.mxu1 %v10285_v24  ;;  %v10602_v9 = vadd.f32 %v7214_v35, %v1179_v30  ;;  %v10605_v20 = vadd.f32 %v7214_v35, %v1182_v55  ;;  %v10608_v15 = vadd.f32 %v5825_v22, %v1045_v62  ;;  %v3264_v25 = vpop.f32.mrf.mxu0  ;;  %v2239_v49 = vmax.f32 %v10577_v36, 0.0  ;;  %v447_v36 = vld [vmem:[%s11736_s0 + $0xd58] sm:$0xff] }
 0x258   :  { %v5186_v57 = vadd.f32 %v5185_v8, %v4991_v23  ;;  %4595 = vst [vmem:[%s11739_s4 + $0x228] sm:$0xff] %v4019_v45  ;;  %v4790_v58 = vadd.f32 %v4789_v63, %v4019_v45  ;;  %v4992_v39 = vmul.f32 %v4019_v45, %v4019_v45  ;;  %v4040_v24 = vadd.f32 %v5551_v27, %v10277_v16  ;;  %v4031_v2 = vpop.f32.mrf.mxu1 }
 0x259   :  { %3460 = vmatprep.mubr.bf16.mxu0 %v10304_v38  ;;  %5649 = vmatprep.mubr.bf16.mxu1 %v10306_v59  ;;  %v1653_v52 = vadd.f32 %v5825_v22, %v1048_v31  ;;  %v1790_v4 = vadd.f32 %v7214_v35, %v1185_v44  ;;  %v1793_v3 = vadd.f32 %v7214_v35, %v1188_v29  ;;  %v11999_v38 = vld [vmem:[#allocation29_spill] sm:$0xff]  ;;  %v10630_v55 = vpop.f32.mrf.mxu0  ;;  %v2242_v48 = vmax.f32 %v10587_v5, 0.0  ;;  %v450_v29 = vld [vmem:[%s11736_s0 + $0xd70] sm:$0xff] }
 0x25a   :  { %v4993_v7 = vmul.f32 %v10537_v41, %v10537_v41  ;;  %v4791_v30 = vadd.f32 %v4790_v58, %v10537_v41  ;;  %v5187_v16 = vadd.f32 %v5186_v57, %v4992_v39  ;;  %4600 = vst [vmem:[%s11739_s4 + $0x250] sm:$0xff] %v4040_v24  ;;  %v4032_v59 = vadd.f32 %v4031_v2, %v11999_v38  ;;  %v5552_v62 = vpop.f32.mrf.mxu1 }
 0x25b   :  { %v2372_v33 = vmax.f32 %v10602_v9, 0.0  ;;  %v2375_v41 = vmax.f32 %v10605_v20, 0.0  ;;  %v2238_v34 = vmax.f32 %v10608_v15, 0.0  ;;  %v4994_v32 = vmul.f32 %v4027_v42, %v4027_v42  ;;  %v3267_v5 = vpop.f32.mrf.mxu0  ;;  %v12000_v15 = vld [vmem:[#allocation36_spill] sm:$0xff] }
 0x25c   :  { %v4792_v13 = vadd.f32 %v4791_v30, %v4027_v42  ;;  %v5188_v31 = vadd.f32 %v5187_v16, %v4993_v7  ;;  %4598 = vst [vmem:[%s11739_s4 + $0x240] sm:$0xff] %v4032_v59  ;;  %v4043_v44 = vadd.f32 %v5552_v62, %v10329_v50  ;;  %v4034_v8 = vpop.f32.mrf.mxu1  ;;  %v2241_v63 = vmax.f32 %v1653_v52, 0.0  ;;  %v592_v62 = vld [vmem:[%s11736_s0 + $0x11e0] sm:$0xff] }
 0x25d   :  { %v2378_v23 = vmax.f32 %v1790_v4, 0.0  ;;  %v2381_v45 = vmax.f32 %v1793_v3, 0.0  ;;  %v1052_v27 = vmul.f32 %v5804_v14, %v447_v36  ;;  %v4995_v20 = vmul.f32 %v4032_v59, %v4032_v59  ;;  %v10648_v57 = vpop.f32.mrf.mxu0 }
 0x25e   :  { %v5189_v9 = vadd.f32 %v5188_v31, %v4994_v32  ;;  %v4793_v42 = vadd.f32 %v4792_v13, %v4032_v59  ;;  %4601 = vst [vmem:[%s11739_s4 + $0x258] sm:$0xff] %v4043_v44  ;;  %v4035_v50 = vadd.f32 %v4034_v8, %v12000_v15  ;;  %v5555_v58 = vpop.f32.mrf.mxu1  ;;  %v10654_v39 = vpack.c.bf16 %v2369_v26, %v2366_v43  ;;  %v446_v43 = vld [vmem:[%s11736_s0 + $0xd50] sm:$0xff]  ;;  %v12001_v15 = vld [vmem:[#allocation31_spill] sm:$0xff] }
 0x25f   :  { %3461 = vmatmul.mubr.bf16.gmra.mxu0 %v10331_v17  ;;  %5650 = vmatmul.mubr.bf16.gmra.mxu1 %v10406_v1  ;;  %v10656_v25 = vpack.c.bf16 %v2242_v48, %v2239_v49  ;;  %v1055_v2 = vmul.f32 %v5804_v14, %v450_v29  ;;  %v10663_v17 = vadd.f32 %v5555_v58, %v10402_v28  ;;  %v586_v1 = vld [vmem:[%s11736_s0 + $0x11b0] sm:$0xff]  ;;  %v3272_v26 = vpop.f32.mrf.mxu0 }
 0x260   :  { %v5190_v52 = vadd.f32 %v5189_v9, %v4995_v20  ;;  %4599 = vst [vmem:[%s11739_s4 + $0x248] sm:$0xff] %v4035_v50  ;;  %v4794_v4 = vadd.f32 %v4793_v42, %v4035_v50  ;;  %v4996_v3 = vmul.f32 %v4035_v50, %v4035_v50  ;;  %3468 = vmatprep.mubr.bf16.mxu0 %v10408_v56  ;;  %v4047_v49 = vpop.f32.mrf.mxu1  ;;  %v456_v26 = vld [vmem:[%s11736_s0 + $0xda0] sm:$0xff] }
 0x261   :  { %5653 = vmatprep.mubr.bf16.mxu1 %v10430_v11  ;;  %v10676_v28 = vpack.c.bf16 %v2375_v41, %v2372_v33  ;;  %v10678_v7 = vpack.c.bf16 %v2241_v63, %v2238_v34  ;;  %v10680_v56 = vpack.c.bf16 %v2381_v45, %v2378_v23  ;;  %v10683_v30 = vadd.f32 %v5817_v19, %v1052_v27  ;;  %v449_v11 = vld [vmem:[%s11736_s0 + $0xd68] sm:$0xff]  ;;  %v10699_v48 = vpop.f32.mrf.mxu0 }
 0x262   :  { %v4997_v16 = vmul.f32 %v4040_v24, %v4040_v24  ;;  %v4795_v38 = vadd.f32 %v4794_v4, %v4040_v24  ;;  %v5191_v59 = vadd.f32 %v5190_v52, %v4996_v3  ;;  %4604 = vst [vmem:[%s11739_s4 + $0x270] sm:$0xff] %v10663_v17  ;;  %v4048_v36 = vadd.f32 %v4047_v49, %v10350_v61  ;;  %v595_v24 = vld [vmem:[%s11736_s0 + $0x11f8] sm:$0xff]  ;;  %v5556_v33 = vpop.f32.mrf.mxu1 }
 0x263   :  { %v10702_v41 = vadd.f32 %v5817_v19, %v1055_v2  ;;  %v1191_v61 = vmul.f32 %v7166_v12, %v586_v1  ;;  %v1194_v34 = vmul.f32 %v7166_v12, %v589_v53  ;;  %v1051_v32 = vmul.f32 %v5815_v18, %v446_v43  ;;  %v3275_v8 = vpop.f32.mrf.mxu0 }
 0x264   :  { %v4998_v13 = vmul.f32 %v4043_v44, %v4043_v44  ;;  %v4796_v31 = vadd.f32 %v4795_v38, %v4043_v44  ;;  %v5192_v29 = vadd.f32 %v5191_v59, %v4997_v16  ;;  %4602 = vst [vmem:[%s11739_s4 + $0x260] sm:$0xff] %v4048_v36  ;;  %v4059_v5 = vadd.f32 %v5556_v33, %v10450_v21  ;;  %v4050_v63 = vpop.f32.mrf.mxu1  ;;  %v453_v21 = vld [vmem:[%s11736_s0 + $0xd88] sm:$0xff]  ;;  %v598_v8 = vld [vmem:[%s11736_s0 + $0x1210] sm:$0xff] }
 0x265   :  { %v2245_v23 = vmax.f32 %v10683_v30, 0.0  ;;  %v1054_v45 = vmul.f32 %v5815_v18, %v449_v11  ;;  %v1197_v27 = vmul.f32 %v7166_v12, %v592_v62  ;;  %v1200_v9 = vmul.f32 %v7166_v12, %v595_v24  ;;  %v10722_v58 = vpop.f32.mrf.mxu0  ;;  %v455_v30 = vld [vmem:[%s11736_s0 + $0xd98] sm:$0xff] }
 0x266   :  { %v5193_v42 = vadd.f32 %v5192_v29, %v4998_v13  ;;  %v4797_v20 = vadd.f32 %v4796_v31, %v4048_v36  ;;  %v4999_v44 = vmul.f32 %v4048_v36, %v4048_v36  ;;  %4605 = vst [vmem:[%s11739_s4 + $0x278] sm:$0xff] %v4059_v5  ;;  %v4051_v50 = vadd.f32 %v4050_v63, %v12001_v15  ;;  %v5559_v2 = vpop.f32.mrf.mxu1  ;;  %v601_v63 = vld [vmem:[%s11736_s0 + $0x1228] sm:$0xff] }
 0x267   :  { %3469 = vmatmul.mubr.bf16.gmra.mxu0 %v10432_v37  ;;  %5654 = vmatmul.mubr.bf16.gmra.mxu1 %v10487_v0  ;;  %v2248_v52 = vmax.f32 %v10702_v41, 0.0  ;;  %v10728_v4 = vadd.f32 %v7214_v35, %v1191_v61  ;;  %v10731_v3 = vadd.f32 %v7214_v35, %v1194_v34  ;;  %v10734_v1 = vadd.f32 %v5825_v22, %v1051_v32  ;;  %v3280_v49 = vpop.f32.mrf.mxu0  ;;  %v604_v41 = vld [vmem:[%s11736_s0 + $0x1240] sm:$0xff] }
 0x268   :  { %v5194_v53 = vadd.f32 %v5193_v42, %v4999_v44  ;;  %4603 = vst [vmem:[%s11739_s4 + $0x268] sm:$0xff] %v4051_v50  ;;  %v4798_v37 = vadd.f32 %v4797_v20, %v4051_v50  ;;  %v5000_v43 = vmul.f32 %v4051_v50, %v4051_v50  ;;  %v4072_v0 = vadd.f32 %v5559_v2, %v10524_v6  ;;  %v4063_v16 = vpop.f32.mrf.mxu1 }
 0x269   :  { %3476 = vmatprep.mubr.bf16.mxu0 %v10528_v51  ;;  %5657 = vmatprep.mubr.bf16.mxu1 %v10530_v60  ;;  %v1659_v38 = vadd.f32 %v5825_v22, %v1054_v45  ;;  %v1802_v59 = vadd.f32 %v7214_v35, %v1197_v27  ;;  %v1805_v36 = vadd.f32 %v7214_v35, %v1200_v9  ;;  %v10756_v24 = vpop.f32.mrf.mxu0  ;;  %v2384_v61 = vmax.f32 %v10728_v4, 0.0 }
 0x26a   :  { %v1058_v11 = vmul.f32 %v5804_v14, %v453_v21  ;;  %v5001_v6 = vmul.f32 %v10663_v17, %v10663_v17  ;;  %v4799_v51 = vadd.f32 %v4798_v37, %v10663_v17  ;;  %v5195_v62 = vadd.f32 %v5194_v53, %v5000_v43  ;;  %4608 = vst [vmem:[%s11739_s4 + $0x290] sm:$0xff] %v4072_v0  ;;  %v5560_v33 = vpop.f32.mrf.mxu1 }
 0x26b   :  { %v4064_v60 = vadd.f32 %v4063_v16, %v10472_v46  ;;  %v2387_v34 = vmax.f32 %v10731_v3, 0.0  ;;  %v2244_v32 = vmax.f32 %v10734_v1, 0.0  ;;  %v1061_v13 = vmul.f32 %v5804_v14, %v456_v26  ;;  %v3283_v45 = vpop.f32.mrf.mxu0 }
 0x26c   :  { %v5002_v31 = vmul.f32 %v4059_v5, %v4059_v5  ;;  %v4800_v17 = vadd.f32 %v4799_v51, %v4059_v5  ;;  %v5196_v29 = vadd.f32 %v5195_v62, %v5001_v6  ;;  %v4075_v46 = vadd.f32 %v5560_v33, %v10574_v10  ;;  %v4066_v27 = vpop.f32.mrf.mxu1 }
 0x26d   :  { %4606 = vst [vmem:[%s11739_s4 + $0x280] sm:$0xff] %v4064_v60  ;;  %v2247_v9 = vmax.f32 %v1659_v38, 0.0  ;;  %v2390_v42 = vmax.f32 %v1802_v59, 0.0  ;;  %v2393_v5 = vmax.f32 %v1805_v36, 0.0  ;;  %v10773_v20 = vadd.f32 %v5817_v19, %v1058_v11  ;;  %v10779_v21 = vpop.f32.mrf.mxu0 }
 0x26e   :  { %v5197_v44 = vadd.f32 %v5196_v29, %v5002_v31  ;;  %v4801_v15 = vadd.f32 %v4800_v17, %v4064_v60  ;;  %v5003_v50 = vmul.f32 %v4064_v60, %v4064_v60  ;;  %4609 = vst [vmem:[%s11739_s4 + $0x298] sm:$0xff] %v4075_v46  ;;  %v4067_v10 = vadd.f32 %v4066_v27, %v10503_v40  ;;  %v5563_v2 = vpop.f32.mrf.mxu1 }
 0x26f   :  { %3477 = vmatmul.mubr.bf16.gmra.mxu0 %v10550_v47  ;;  %5658 = vmatmul.mubr.bf16.gmra.mxu1 %v10654_v39  ;;  %v10784_v4 = vadd.f32 %v5817_v19, %v1061_v13  ;;  %v1203_v3 = vmul.f32 %v7166_v12, %v598_v8  ;;  %v1206_v1 = vmul.f32 %v7166_v12, %v601_v63  ;;  %v3288_v47 = vpop.f32.mrf.mxu0  ;;  %v2251_v11 = vmax.f32 %v10773_v20, 0.0 }
 0x270   :  { %v5198_v53 = vadd.f32 %v5197_v44, %v5003_v50  ;;  %4607 = vst [vmem:[%s11739_s4 + $0x288] sm:$0xff] %v4067_v10  ;;  %v4802_v40 = vadd.f32 %v4801_v15, %v4067_v10  ;;  %v5004_v37 = vmul.f32 %v4067_v10, %v4067_v10  ;;  %v10792_v43 = vadd.f32 %v5563_v2, %v10648_v57  ;;  %v4079_v39 = vpop.f32.mrf.mxu1  ;;  %v452_v57 = vld [vmem:[%s11736_s0 + $0xd80] sm:$0xff] }
 0x271   :  { %3484 = vmatprep.mubr.bf16.mxu0 %v10656_v25  ;;  %5661 = vmatprep.mubr.bf16.mxu1 %v10676_v28  ;;  %v2620_v26 = vpack.c.bf16 %v2248_v52, %v2245_v23  ;;  %v2690_v49 = vpack.c.bf16 %v2387_v34, %v2384_v61  ;;  %v10800_v16 = vpack.c.bf16 %v2247_v9, %v2244_v32  ;;  %v607_v23 = vld [vmem:[%s11736_s0 + $0x1258] sm:$0xff]  ;;  %v3289_v52 = vpop.f32.mrf.mxu0  ;;  %v2254_v6 = vmax.f32 %v10784_v4, 0.0  ;;  %v462_v32 = vld [vmem:[%s11736_s0 + $0xdd0] sm:$0xff] }
 0x272   :  { %v10802_v38 = vpack.c.bf16 %v2393_v5, %v2390_v42  ;;  %v5005_v59 = vmul.f32 %v4072_v0, %v4072_v0  ;;  %v4803_v25 = vadd.f32 %v4802_v40, %v4072_v0  ;;  %v5199_v36 = vadd.f32 %v5198_v53, %v5004_v37  ;;  %4612 = vst [vmem:[%s11739_s4 + $0x2b0] sm:$0xff] %v10792_v43  ;;  %v5564_v0 = vpop.f32.mrf.mxu1  ;;  %v459_v34 = vld [vmem:[%s11736_s0 + $0xdb8] sm:$0xff] }
 0x273   :  { %v4080_v28 = vadd.f32 %v4079_v39, %v10596_v54  ;;  %v1808_v54 = vadd.f32 %v7214_v35, %v1203_v3  ;;  %v1811_v51 = vadd.f32 %v7214_v35, %v1206_v1  ;;  %v5006_v62 = vmul.f32 %v4075_v46, %v4075_v46  ;;  %v3291_v13 = vpop.f32.mrf.mxu0 }
 0x274   :  { %v4804_v60 = vadd.f32 %v4803_v25, %v4075_v46  ;;  %v5200_v33 = vadd.f32 %v5199_v36, %v5005_v59  ;;  %v4091_v61 = vadd.f32 %v5564_v0, %v10699_v48  ;;  %v4082_v31 = vpop.f32.mrf.mxu1  ;;  %v1057_v17 = vmul.f32 %v5815_v18, %v452_v57  ;;  %v461_v36 = vld [vmem:[%s11736_s0 + $0xdc8] sm:$0xff] }
 0x275   :  { %4610 = vst [vmem:[%s11739_s4 + $0x2a0] sm:$0xff] %v4080_v28  ;;  %v1060_v29 = vmul.f32 %v5815_v18, %v455_v30  ;;  %v1209_v46 = vmul.f32 %v7166_v12, %v604_v41  ;;  %v1212_v8 = vmul.f32 %v7166_v12, %v607_v23  ;;  %v5007_v45 = vmul.f32 %v4080_v28, %v4080_v28  ;;  %v10843_v9 = vpop.f32.mrf.mxu0 }
 0x276   :  { %v5201_v63 = vadd.f32 %v5200_v33, %v5006_v62  ;;  %v4805_v48 = vadd.f32 %v4804_v60, %v4080_v28  ;;  %4613 = vst [vmem:[%s11739_s4 + $0x2b8] sm:$0xff] %v4091_v61  ;;  %v4083_v27 = vadd.f32 %v4082_v31, %v10630_v55  ;;  %v5567_v42 = vpop.f32.mrf.mxu1  ;;  %v2396_v5 = vmax.f32 %v1808_v54, 0.0 }
 0x277   :  { %3485 = vmatmul.mubr.bf16.gmra.mxu0 %v10678_v7  ;;  %5662 = vmatmul.mubr.bf16.gmra.mxu1 %v10680_v56  ;;  %v2399_v20 = vmax.f32 %v1811_v51, 0.0  ;;  %v1064_v12 = vmul.f32 %v5804_v14, %v459_v34  ;;  %v1067_v44 = vmul.f32 %v5804_v14, %v462_v32  ;;  %v4104_v10 = vadd.f32 %v5567_v42, %v10779_v21  ;;  %v3296_v7 = vpop.f32.mrf.mxu0 }
 0x278   :  { %v5202_v15 = vadd.f32 %v5201_v63, %v5007_v45  ;;  %4611 = vst [vmem:[%s11739_s4 + $0x2a8] sm:$0xff] %v4083_v27  ;;  %v4806_v50 = vadd.f32 %v4805_v48, %v4083_v27  ;;  %v5008_v55 = vmul.f32 %v4083_v27, %v4083_v27  ;;  %3492 = vmatprep.mubr.bf16.mxu0 %v2620_v26  ;;  %v4095_v2 = vpop.f32.mrf.mxu1 }
 0x279   :  { %5665 = vmatprep.mubr.bf16.mxu1 %v2690_v49  ;;  %v1662_v56 = vadd.f32 %v5825_v22, %v1057_v17  ;;  %v1665_v4 = vadd.f32 %v5825_v22, %v1060_v29  ;;  %v1814_v3 = vadd.f32 %v7214_v35, %v1209_v46  ;;  %v1817_v14 = vadd.f32 %v7214_v35, %v1212_v8  ;;  %v10864_v37 = vpop.f32.mrf.mxu0 }
 0x27a   :  { %v5009_v1 = vmul.f32 %v10792_v43, %v10792_v43  ;;  %v4807_v53 = vadd.f32 %v4806_v50, %v10792_v43  ;;  %v5203_v40 = vadd.f32 %v5202_v15, %v5008_v55  ;;  %4616 = vst [vmem:[%s11739_s4 + $0x2d0] sm:$0xff] %v4104_v10  ;;  %v4096_v21 = vadd.f32 %v4095_v2, %v10722_v58  ;;  %v5568_v47 = vpop.f32.mrf.mxu1  ;;  %v458_v58 = vld [vmem:[%s11736_s0 + $0xdb0] sm:$0xff] }
 0x27b   :  { %v2623_v39 = vpack.c.bf16 %v2254_v6, %v2251_v11  ;;  %v2696_v26 = vpack.c.bf16 %v2399_v20, %v2396_v5  ;;  %v1669_v49 = vadd.f32 %v5817_v19, %v1064_v12  ;;  %v1672_v35 = vadd.f32 %v5817_v19, %v1067_v44  ;;  %v3299_v28 = vpop.f32.mrf.mxu0 }
 0x27c   :  { %v5010_v57 = vmul.f32 %v4091_v61, %v4091_v61  ;;  %v4808_v59 = vadd.f32 %v4807_v53, %v4091_v61  ;;  %v5204_v25 = vadd.f32 %v5203_v40, %v5009_v1  ;;  %4614 = vst [vmem:[%s11739_s4 + $0x2c0] sm:$0xff] %v4096_v21  ;;  %v4107_v43 = vadd.f32 %v5568_v47, %v3289_v52  ;;  %v4098_v30 = vpop.f32.mrf.mxu1 }
 0x27d   :  { %v2250_v41 = vmax.f32 %v1662_v56, 0.0  ;;  %v2253_v19 = vmax.f32 %v1665_v4, 0.0  ;;  %v2402_v23 = vmax.f32 %v1814_v3, 0.0  ;;  %v2405_v0 = vmax.f32 %v1817_v14, 0.0  ;;  %v3302_v51 = vpop.f32.mrf.mxu0 }
 0x27e   :  { %v5205_v11 = vadd.f32 %v5204_v25, %v5010_v57  ;;  %v4809_v6 = vadd.f32 %v4808_v59, %v4096_v21  ;;  %v5011_v54 = vmul.f32 %v4096_v21, %v4096_v21  ;;  %4617 = vst [vmem:[%s11739_s4 + $0x2d8] sm:$0xff] %v4107_v43  ;;  %v4099_v52 = vadd.f32 %v4098_v30, %v10756_v24  ;;  %v5571_v62 = vpop.f32.mrf.mxu1 }
 0x27f   :  { %3493 = vmatmul.mubr.bf16.gmra.mxu0 %v10800_v16  ;;  %5666 = vmatmul.mubr.bf16.gmra.mxu1 %v10802_v38  ;;  %v2257_v60 = vmax.f32 %v1669_v49, 0.0  ;;  %v2260_v33 = vmax.f32 %v1672_v35, 0.0  ;;  %v1063_v61 = vmul.f32 %v5815_v18, %v458_v58  ;;  %v1066_v34 = vmul.f32 %v5815_v18, %v461_v36  ;;  %v3304_v17 = vpop.f32.mrf.mxu0 }
 0x280   :  { %v5206_v32 = vadd.f32 %v5205_v11, %v5011_v54  ;;  %4615 = vst [vmem:[%s11739_s4 + $0x2c8] sm:$0xff] %v4099_v52  ;;  %v4810_v13 = vadd.f32 %v4809_v6, %v4099_v52  ;;  %v5012_v31 = vmul.f32 %v4099_v52, %v4099_v52  ;;  %v4120_v24 = vadd.f32 %v5571_v62, %v3302_v51  ;;  %v4111_v16 = vpop.f32.mrf.mxu1 }
 0x281   :  { %3500 = vmatprep.mubr.bf16.mxu0 %v2623_v39  ;;  %5669 = vmatprep.mubr.bf16.mxu1 %v2696_v26  ;;  %v2622_v29 = vpack.c.bf16 %v2253_v19, %v2250_v41  ;;  %v5013_v38 = vmul.f32 %v4104_v10, %v4104_v10  ;;  %v4112_v18 = vadd.f32 %v4111_v16, %v10843_v9  ;;  %v3305_v63 = vpop.f32.mrf.mxu0 }
 0x282   :  { %v4811_v46 = vadd.f32 %v4810_v13, %v4104_v10  ;;  %v5207_v8 = vadd.f32 %v5206_v32, %v5012_v31  ;;  %4620 = vst [vmem:[%s11739_s4 + $0x2f0] sm:$0xff] %v4120_v24  ;;  %v5572_v48 = vpop.f32.mrf.mxu1  ;;  %v2699_v45 = vpack.c.bf16 %v2405_v0, %v2402_v23  ;;  %v2626_v27 = vpack.c.bf16 %v2260_v33, %v2257_v60 }
 0x283   :  { %v1668_v42 = vadd.f32 %v5825_v22, %v1063_v61  ;;  %v1671_v5 = vadd.f32 %v5825_v22, %v1066_v34  ;;  %v5014_v20 = vmul.f32 %v4107_v43, %v4107_v43  ;;  %4618 = vst [vmem:[%s11739_s4 + $0x2e0] sm:$0xff] %v4112_v18  ;;  %v4123_v15 = vadd.f32 %v5572_v48, %v3305_v63  ;;  %v3307_v50 = vpop.f32.mrf.mxu0 }
 0x284   :  { %v4812_v12 = vadd.f32 %v4811_v46, %v4107_v43  ;;  %v5208_v44 = vadd.f32 %v5207_v8, %v5013_v38  ;;  %v4114_v55 = vpop.f32.mrf.mxu1  ;;  %v5015_v7 = vmul.f32 %v4112_v18, %v4112_v18  ;;  %v5017_v47 = vmul.f32 %v4120_v24, %v4120_v24 }
 0x285   :  { %4621 = vst [vmem:[%s11739_s4 + $0x2f8] sm:$0xff] %v4123_v15  ;;  %v4115_v2 = vadd.f32 %v4114_v55, %v10864_v37  ;;  %v3310_v22 = vpop.f32.mrf.mxu0  ;;  %v2256_v4 = vmax.f32 %v1668_v42, 0.0  ;;  %v2259_v3 = vmax.f32 %v1671_v5, 0.0  ;;  %v5018_v59 = vmul.f32 %v4123_v15, %v4123_v15 }
 0x286   :  { %v5209_v10 = vadd.f32 %v5208_v44, %v5014_v20  ;;  %v4813_v9 = vadd.f32 %v4812_v12, %v4112_v18  ;;  %v5575_v56 = vpop.f32.mrf.mxu1 }
 0x287   :  { %3501 = vmatmul.mubr.bf16.gmra.mxu0 %v2622_v29  ;;  %5670 = vmatmul.mubr.bf16.gmra.mxu1 %v2699_v45  ;;  %4619 = vst [vmem:[%s11739_s4 + $0x2e8] sm:$0xff] %v4115_v2  ;;  %v5016_v53 = vmul.f32 %v4115_v2, %v4115_v2  ;;  %v3312_v40 = vpop.f32.mrf.mxu0  ;;  %v2625_v57 = vpack.c.bf16 %v2259_v3, %v2256_v4 }
 0x288   :  { %v5210_v14 = vadd.f32 %v5209_v10, %v5015_v7  ;;  %v4814_v1 = vadd.f32 %v4813_v9, %v4115_v2  ;;  %3508 = vmatprep.mubr.bf16.mxu0 %v2626_v27  ;;  %v4127_v21 = vpop.f32.mrf.mxu1 }
 0x289   :  { %v4128_v37 = vadd.f32 %v4127_v21, %v3310_v22  ;;  %v3313_v49 = vpop.f32.mrf.mxu0 }
 0x28a   :  { %v4815_v39 = vadd.f32 %v4814_v1, %v4120_v24  ;;  %v5211_v26 = vadd.f32 %v5210_v14, %v5016_v53  ;;  %v5576_v35 = vpop.f32.mrf.mxu1 }
 0x28b   :  { %4622 = vst [vmem:[%s11739_s4 + $0x300] sm:$0xff] %v4128_v37  ;;  %v3315_v58 = vpop.f32.mrf.mxu0  ;;  %v5019_v41 = vmul.f32 %v4128_v37, %v4128_v37 }
 0x28c   :  { %v4816_v25 = vadd.f32 %v4815_v39, %v4123_v15  ;;  %v5212_v43 = vadd.f32 %v5211_v26, %v5017_v47  ;;  %v4130_v36 = vpop.f32.mrf.mxu1 }
 0x28d   :  { %v4131_v19 = vadd.f32 %v4130_v36, %v3313_v49  ;;  %v3318_v23 = vpop.f32.mrf.mxu0 }
 0x28e   :  { %v5213_v28 = vadd.f32 %v5212_v43, %v5018_v59  ;;  %v4817_v30 = vadd.f32 %v4816_v25, %v4128_v37  ;;  %v5579_v0 = vpop.f32.mrf.mxu1  ;;  %v4136_v52 = vadd.f32 %v5575_v56, %v3318_v23 }
 0x28f   :  { %3509 = vmatmul.mubr.bf16.gmra.mxu0 %v2625_v57  ;;  %4623 = vst [vmem:[%s11739_s4 + $0x308] sm:$0xff] %v4131_v19  ;;  %v5020_v54 = vmul.f32 %v4131_v19, %v4131_v19  ;;  %v3320_v51 = vpop.f32.mrf.mxu0 }
 0x290   :  { %v5214_v11 = vadd.f32 %v5213_v28, %v5019_v41  ;;  %v4818_v6 = vadd.f32 %v4817_v30, %v4131_v19  ;;  %v4143_v62 = vpop.f32.mrf.mxu1  ;;  %4624 = vst [vmem:[%s11739_s4 + $0x310] sm:$0xff] %v4136_v52  ;;  %v5021_v61 = vmul.f32 %v4136_v52, %v4136_v52 }
 0x291   :  { %v3321_v34 = vpop.f32.mrf.mxu0 }
 0x292   :  { %v5215_v60 = vadd.f32 %v5214_v11, %v5020_v54  ;;  %v4819_v33 = vadd.f32 %v4818_v6, %v4136_v52  ;;  %v5580_v32 = vpop.f32.mrf.mxu1  ;;  %v4139_v31 = vadd.f32 %v5576_v35, %v3321_v34 }
 0x293   :  { %v3323_v24 = vpop.f32.mrf.mxu0 }
 0x294   :  { %v5216_v13 = vadd.f32 %v5215_v60, %v5021_v61  ;;  %v4146_v17 = vpop.f32.mrf.mxu1  ;;  %4625 = vst [vmem:[%s11739_s4 + $0x318] sm:$0xff] %v4139_v31  ;;  %v4820_v16 = vadd.f32 %v4819_v33, %v4139_v31  ;;  %v5022_v29 = vmul.f32 %v4139_v31, %v4139_v31 }
 0x295   :  { %v3326_v38 = vpop.f32.mrf.mxu0 }
 0x296   :  { %v5583_v46 = vpop.f32.mrf.mxu1  ;;  %v5217_v8 = vadd.f32 %v5216_v13, %v5022_v29  ;;  %v4144_v18 = vadd.f32 %v4143_v62, %v3326_v38 }
 0x297   :  { %v3328_v63 = vpop.f32.mrf.mxu0 }
 0x298   :  { %v4159_v48 = vpop.f32.mrf.mxu1  ;;  %4626 = vst [vmem:[%s11739_s4 + $0x320] sm:$0xff] %v4144_v18  ;;  %v4821_v45 = vadd.f32 %v4820_v16, %v4144_v18  ;;  %v5023_v27 = vmul.f32 %v4144_v18, %v4144_v18 }
 0x299   :  { %v3329_v42 = vpop.f32.mrf.mxu0 }
 0x29a   :  { %v5584_v5 = vpop.f32.mrf.mxu1  ;;  %v5218_v20 = vadd.f32 %v5217_v8, %v5023_v27  ;;  %v4147_v12 = vadd.f32 %v4146_v17, %v3329_v42 }
 0x29b   :  { %v3331_v44 = vpop.f32.mrf.mxu0 }
 0x29c   :  { %v4162_v15 = vpop.f32.mrf.mxu1  ;;  %4627 = vst [vmem:[%s11739_s4 + $0x328] sm:$0xff] %v4147_v12  ;;  %v4822_v50 = vadd.f32 %v4821_v45, %v4147_v12  ;;  %v5024_v55 = vmul.f32 %v4147_v12, %v4147_v12 }
 0x29d   :  { %v3334_v10 = vpop.f32.mrf.mxu0 }
 0x29e   :  { %v10922_v9 = vpop.f32.mrf.mxu1  ;;  %v5219_v7 = vadd.f32 %v5218_v20, %v5024_v55  ;;  %v4152_v2 = vadd.f32 %v5579_v0, %v3334_v10 }
 0x29f   :  { %v3336_v22 = vpop.f32.mrf.mxu0 }
 0x2a0   :  { %v4175_v56 = vpop.f32.mrf.mxu1  ;;  %4628 = vst [vmem:[%s11739_s4 + $0x330] sm:$0xff] %v4152_v2  ;;  %v4823_v4 = vadd.f32 %v4822_v50, %v4152_v2  ;;  %v5025_v3 = vmul.f32 %v4152_v2, %v4152_v2 }
 0x2a1   :  { %v3337_v14 = vpop.f32.mrf.mxu0 }
 0x2a2   :  { %v10927_v1 = vpop.f32.mrf.mxu1  ;;  %v5220_v53 = vadd.f32 %v5219_v7, %v5025_v3  ;;  %v4155_v40 = vadd.f32 %v5580_v32, %v3337_v14 }
 0x2a3   :  { %v3339_v21 = vpop.f32.mrf.mxu0 }
 0x2a4   :  { %v4178_v47 = vpop.f32.mrf.mxu1  ;;  %4629 = vst [vmem:[%s11739_s4 + $0x338] sm:$0xff] %v4155_v40  ;;  %v4824_v39 = vadd.f32 %v4823_v4, %v4155_v40  ;;  %v5026_v26 = vmul.f32 %v4155_v40, %v4155_v40 }
 0x2a5   :  { %v3342_v37 = vpop.f32.mrf.mxu0 }
 0x2a6   :  { %v10932_v49 = vpop.f32.mrf.mxu1  ;;  %v5221_v35 = vadd.f32 %v5220_v53, %v5026_v26  ;;  %v4160_v57 = vadd.f32 %v4159_v48, %v3342_v37 }
 0x2a7   :  { %v3344_v59 = vpop.f32.mrf.mxu0 }
 0x2a8   :  { %v10934_v25 = vpop.f32.mrf.mxu1  ;;  %4630 = vst [vmem:[%s11739_s4 + $0x340] sm:$0xff] %v4160_v57  ;;  %v4825_v43 = vadd.f32 %v4824_v39, %v4160_v57  ;;  %v5027_v58 = vmul.f32 %v4160_v57, %v4160_v57 }
 0x2a9   :  { %v3345_v36 = vpop.f32.mrf.mxu0 }
 0x2aa   :  { %v10939_v28 = vpop.f32.mrf.mxu1  ;;  %v5222_v30 = vadd.f32 %v5221_v35, %v5027_v58  ;;  %v4163_v41 = vadd.f32 %v4162_v15, %v3345_v36 }
 0x2ab   :  { %v3347_v19 = vpop.f32.mrf.mxu0 }
 0x2ac   :  { %v10941_v23 = vpop.f32.mrf.mxu1  ;;  %4631 = vst [vmem:[%s11739_s4 + $0x348] sm:$0xff] %v4163_v41  ;;  %v4826_v0 = vadd.f32 %v4825_v43, %v4163_v41  ;;  %v5028_v11 = vmul.f32 %v4163_v41, %v4163_v41 }
 0x2ad   :  { %v3350_v6 = vpop.f32.mrf.mxu0 }
 0x2ae   :  { %v10946_v54 = vpop.f32.mrf.mxu1  ;;  %v5223_v52 = vadd.f32 %v5222_v30, %v5028_v11  ;;  %v4168_v51 = vadd.f32 %v5583_v46, %v3350_v6 }
 0x2af   :  { %v3352_v62 = vpop.f32.mrf.mxu0 }
 0x2b0   :  { %v10948_v60 = vpop.f32.mrf.mxu1  ;;  %4632 = vst [vmem:[%s11739_s4 + $0x350] sm:$0xff] %v4168_v51  ;;  %v4827_v33 = vadd.f32 %v4826_v0, %v4168_v51  ;;  %v5029_v61 = vmul.f32 %v4168_v51, %v4168_v51 }
 0x2b1   :  { %v3353_v34 = vpop.f32.mrf.mxu0 }
 0x2b2   :  { %v10953_v32 = vpop.f32.mrf.mxu1  ;;  %v5224_v13 = vadd.f32 %v5223_v52, %v5029_v61  ;;  %v4171_v31 = vadd.f32 %v5584_v5, %v3353_v34 }
 0x2b3   :  { %v3355_v24 = vpop.f32.mrf.mxu0 }
 0x2b4   :  { %v10955_v17 = vpop.f32.mrf.mxu1  ;;  %4633 = vst [vmem:[%s11739_s4 + $0x358] sm:$0xff] %v4171_v31  ;;  %v4828_v16 = vadd.f32 %v4827_v33, %v4171_v31  ;;  %v5030_v29 = vmul.f32 %v4171_v31, %v4171_v31 }
 0x2b5   :  { %v3358_v38 = vpop.f32.mrf.mxu0 }
 0x2b6   :  { %v10960_v46 = vpop.f32.mrf.mxu1  ;;  %v5225_v8 = vadd.f32 %v5224_v13, %v5030_v29  ;;  %v4176_v18 = vadd.f32 %v4175_v56, %v3358_v38 }
 0x2b7   :  { %v3360_v63 = vpop.f32.mrf.mxu0 }
 0x2b8   :  { %v10962_v48 = vpop.f32.mrf.mxu1  ;;  %4634 = vst [vmem:[%s11739_s4 + $0x360] sm:$0xff] %v4176_v18  ;;  %v4829_v45 = vadd.f32 %v4828_v16, %v4176_v18  ;;  %v5031_v27 = vmul.f32 %v4176_v18, %v4176_v18 }
 0x2b9   :  { %v3361_v42 = vpop.f32.mrf.mxu0 }
 0x2ba   :  { %v10967_v5 = vpop.f32.mrf.mxu1  ;;  %v5226_v20 = vadd.f32 %v5225_v8, %v5031_v27  ;;  %v4179_v12 = vadd.f32 %v4178_v47, %v3361_v42 }
 0x2bb   :  { %v3363_v44 = vpop.f32.mrf.mxu0 }
 0x2bc   :  { %v10969_v15 = vpop.f32.mrf.mxu1  ;;  %4635 = vst [vmem:[%s11739_s4 + $0x368] sm:$0xff] %v4179_v12  ;;  %v4830_v50 = vadd.f32 %v4829_v45, %v4179_v12  ;;  %v5032_v55 = vmul.f32 %v4179_v12, %v4179_v12 }
 0x2bd   :  { %v3366_v10 = vpop.f32.mrf.mxu0 }
 0x2be   :  { %v10974_v7 = vpop.f32.mrf.mxu1  ;;  %v5227_v2 = vadd.f32 %v5226_v20, %v5032_v55  ;;  %v4184_v22 = vadd.f32 %v10922_v9, %v3366_v10 }
 0x2bf   :  { %v3368_v56 = vpop.f32.mrf.mxu0 }
 0x2c0   :  { %v10977_v4 = vpop.f32.mrf.mxu1  ;;  %4636 = vst [vmem:[%s11739_s4 + $0x370] sm:$0xff] %v4184_v22  ;;  %v4831_v3 = vadd.f32 %v4830_v50, %v4184_v22  ;;  %v5033_v14 = vmul.f32 %v4184_v22, %v4184_v22 }
 0x2c1   :  { %v3369_v53 = vpop.f32.mrf.mxu0 }
 0x2c2   :  { %v10982_v40 = vpop.f32.mrf.mxu1  ;;  %v5228_v21 = vadd.f32 %v5227_v2, %v5033_v14  ;;  %v4187_v47 = vadd.f32 %v10927_v1, %v3369_v53 }
 0x2c3   :  { %v3371_v39 = vpop.f32.mrf.mxu0 }
 0x2c4   :  { %v10985_v26 = vpop.f32.mrf.mxu1  ;;  %4637 = vst [vmem:[%s11739_s4 + $0x378] sm:$0xff] %v4187_v47  ;;  %v4832_v9 = vadd.f32 %v4831_v3, %v4187_v47  ;;  %v5034_v37 = vmul.f32 %v4187_v47, %v4187_v47 }
 0x2c5   :  { %v3374_v35 = vpop.f32.mrf.mxu0 }
 0x2c6   :  { %v10990_v57 = vpop.f32.mrf.mxu1  ;;  %v5229_v59 = vadd.f32 %v5228_v21, %v5034_v37  ;;  %v4192_v43 = vadd.f32 %v10934_v25, %v3374_v35 }
 0x2c7   :  { %v3376_v58 = vpop.f32.mrf.mxu0 }
 0x2c8   :  { %v10993_v36 = vpop.f32.mrf.mxu1  ;;  %4638 = vst [vmem:[%s11739_s4 + $0x380] sm:$0xff] %v4192_v43  ;;  %v4833_v1 = vadd.f32 %v4832_v9, %v4192_v43  ;;  %v5035_v30 = vmul.f32 %v4192_v43, %v4192_v43 }
 0x2c9   :  { %v3377_v41 = vpop.f32.mrf.mxu0 }
 0x2ca   :  { %v10998_v19 = vpop.f32.mrf.mxu1  ;;  %v5230_v0 = vadd.f32 %v5229_v59, %v5035_v30  ;;  %v4195_v11 = vadd.f32 %v10941_v23, %v3377_v41 }
 0x2cb   :  { %v3379_v6 = vpop.f32.mrf.mxu0 }
 0x2cc   :  { %v11001_v52 = vpop.f32.mrf.mxu1  ;;  %4639 = vst [vmem:[%s11739_s4 + $0x388] sm:$0xff] %v4195_v11  ;;  %v4834_v25 = vadd.f32 %v4833_v1, %v4195_v11  ;;  %v5036_v51 = vmul.f32 %v4195_v11, %v4195_v11 }
 0x2cd   :  { %v3382_v62 = vpop.f32.mrf.mxu0 }
 0x2ce   :  { %v11006_v33 = vpop.f32.mrf.mxu1  ;;  %v5231_v61 = vadd.f32 %v5230_v0, %v5036_v51  ;;  %v4200_v34 = vadd.f32 %v10932_v49, %v3382_v62 }
 0x2cf   :  { %v3384_v13 = vpop.f32.mrf.mxu0 }
 0x2d0   :  { %v11009_v31 = vpop.f32.mrf.mxu1  ;;  %4640 = vst [vmem:[%s11739_s4 + $0x390] sm:$0xff] %v4200_v34  ;;  %v4835_v23 = vadd.f32 %v4834_v25, %v4200_v34  ;;  %v5037_v24 = vmul.f32 %v4200_v34, %v4200_v34  ;;  %v12002_v13 = vld [vmem:[#allocation8_spill] sm:$0xff] }
 0x2d1   :  { %v3385_v16 = vpop.f32.mrf.mxu0 }
 0x2d2   :  { %v11014_v29 = vpop.f32.mrf.mxu1  ;;  %v5232_v38 = vadd.f32 %v5231_v61, %v5037_v24  ;;  %v4203_v8 = vadd.f32 %v10939_v28, %v3385_v16 }
 0x2d3   :  { %v3387_v18 = vpop.f32.mrf.mxu0 }
 0x2d4   :  { %v11017_v63 = vpop.f32.mrf.mxu1  ;;  %4641 = vst [vmem:[%s11739_s4 + $0x398] sm:$0xff] %v4203_v8  ;;  %v4836_v49 = vadd.f32 %v4835_v23, %v4203_v8  ;;  %v5038_v45 = vmul.f32 %v4203_v8, %v4203_v8  ;;  %v12003_v18 = vld [vmem:[#allocation3_spill] sm:$0xff] }
 0x2d5   :  { %v3390_v27 = vpop.f32.mrf.mxu0 }
 0x2d6   :  { %v11022_v42 = vpop.f32.mrf.mxu1  ;;  %v5233_v20 = vadd.f32 %v5232_v38, %v5038_v45  ;;  %v4208_v12 = vadd.f32 %v10948_v60, %v3390_v27 }
 0x2d7   :  { %v3392_v44 = vpop.f32.mrf.mxu0 }
 0x2d8   :  { %v11025_v50 = vpop.f32.mrf.mxu1  ;;  %4642 = vst [vmem:[%s11739_s4 + $0x3a0] sm:$0xff] %v4208_v12  ;;  %v4837_v28 = vadd.f32 %v4836_v49, %v4208_v12 }
 0x2d9   :  { %v3393_v55 = vpop.f32.mrf.mxu0 }
 0x2da   :  { %v11030_v10 = vpop.f32.mrf.mxu1  ;;  %v4211_v2 = vadd.f32 %v10955_v17, %v3393_v55 }
 0x2db   :  { %v3395_v22 = vpop.f32.mrf.mxu0 }
 0x2dc   :  { %v11033_v56 = vpop.f32.mrf.mxu1  ;;  %4643 = vst [vmem:[%s11739_s4 + $0x3a8] sm:$0xff] %v4211_v2  ;;  %v5040_v0 = vmul.f32 %v4211_v2, %v4211_v2  ;;  %v4838_v61 = vadd.f32 %v4837_v28, %v4211_v2  ;;  %v12004_v28 = vld [vmem:[#allocation10_spill] sm:$0xff] }
 0x2dd   :  { %v3398_v60 = vpop.f32.mrf.mxu0 }
 0x2de   :  { %v11038_v3 = vpop.f32.mrf.mxu1  ;;  %v4216_v14 = vadd.f32 %v10946_v54, %v3398_v60 }
 0x2df   :  { %v3400_v53 = vpop.f32.mrf.mxu0 }
 0x2e0   :  { %v11041_v21 = vpop.f32.mrf.mxu1  ;;  %4644 = vst [vmem:[%s11739_s4 + $0x3b0] sm:$0xff] %v4216_v14  ;;  %v5041_v25 = vmul.f32 %v4216_v14, %v4216_v14  ;;  %v4839_v8 = vadd.f32 %v4838_v61, %v4216_v14 }
 0x2e1   :  { %v3401_v17 = vpop.f32.mrf.mxu0 }
 0x2e2   :  { %v11046_v47 = vpop.f32.mrf.mxu1  ;;  %v4219_v39 = vadd.f32 %v10953_v32, %v3401_v17  ;;  %v5039_v32 = vmul.f32 %v4208_v12, %v4208_v12  ;;  %v12005_v17 = vld [vmem:[#allocation5_spill] sm:$0xff] }
 0x2e3   :  { %v3403_v9 = vpop.f32.mrf.mxu0 }
 0x2e4   :  { %v11049_v37 = vpop.f32.mrf.mxu1  ;;  %4645 = vst [vmem:[%s11739_s4 + $0x3b8] sm:$0xff] %v4219_v39  ;;  %v4840_v12 = vadd.f32 %v4839_v8, %v4219_v39 }
 0x2e5   :  { %v3406_v54 = vpop.f32.mrf.mxu0 }
 0x2e6   :  { %v11054_v35 = vpop.f32.mrf.mxu1  ;;  %v4224_v59 = vadd.f32 %v10962_v48, %v3406_v54  ;;  %v5234_v48 = vadd.f32 %v5233_v20, %v5039_v32 }
 0x2e7   :  { %v3408_v43 = vpop.f32.mrf.mxu0 }
 0x2e8   :  { %v11057_v58 = vpop.f32.mrf.mxu1  ;;  %4646 = vst [vmem:[%s11739_s4 + $0x3c0] sm:$0xff] %v4224_v59  ;;  %v5235_v24 = vadd.f32 %v5234_v48, %v5040_v0  ;;  %v5043_v45 = vmul.f32 %v4224_v59, %v4224_v59  ;;  %v4841_v53 = vadd.f32 %v4840_v12, %v4224_v59  ;;  %v12009_v12 = vld [vmem:[#allocation14_spill] sm:$0xff] }
 0x2e9   :  { %v3409_v1 = vpop.f32.mrf.mxu0 }
 0x2ea   :  { %v11062_v30 = vpop.f32.mrf.mxu1  ;;  %v4227_v41 = vadd.f32 %v10969_v15, %v3409_v1  ;;  %v5042_v15 = vmul.f32 %v4219_v39, %v4219_v39  ;;  %v12006_v1 = vld [vmem:[#allocation17_spill] sm:$0xff] }
 0x2eb   :  { %v3411_v11 = vpop.f32.mrf.mxu0 }
 0x2ec   :  { %v11065_v6 = vpop.f32.mrf.mxu1  ;;  %4647 = vst [vmem:[%s11739_s4 + $0x3c8] sm:$0xff] %v4227_v41  ;;  %v5044_v22 = vmul.f32 %v4227_v41, %v4227_v41  ;;  %v4842_v32 = vadd.f32 %v4841_v53, %v4227_v41  ;;  %v12007_v41 = vld [vmem:[#allocation12_spill] sm:$0xff] }
 0x2ee   :  { %v3414_v51 = vpop.f32.mrf.mxu0  ;;  %v5627_v62 = vpop.f32.mrf.mxu1 }
 0x2ef   :  { %v4232_v34 = vadd.f32 %v10960_v46, %v3414_v51  ;;  %v11072_v23 = vadd.f32 %v5627_v62, %v12002_v13  ;;  %v5236_v46 = vadd.f32 %v5235_v24, %v5041_v25 }
 0x2f0   :  { %v3416_v16 = vpop.f32.mrf.mxu0  ;;  %v4335_v38 = vpop.f32.mrf.mxu1 }
 0x2f1   :  { %4648 = vst [vmem:[%s11739_s4 + $0x3d0] sm:$0xff] %v4232_v34  ;;  %4676 = vst [vmem:[%s11739_s4 + $0x4b0] sm:$0xff] %v11072_v23  ;;  %v11082_v49 = vadd.f32 %v4335_v38, %v12003_v18  ;;  %v5237_v2 = vadd.f32 %v5236_v46, %v5042_v15  ;;  %v5045_v9 = vmul.f32 %v4232_v34, %v4232_v34  ;;  %v12008_v38 = vld [vmem:[#allocation19_spill] sm:$0xff] }
 0x2f2   :  { %v3417_v27 = vpop.f32.mrf.mxu0  ;;  %v5628_v20 = vpop.f32.mrf.mxu1  ;;  %v4843_v51 = vadd.f32 %v4842_v32, %v4232_v34  ;;  %v12011_v32 = vld [vmem:[#allocation21_spill] sm:$0xff] }
 0x2f3   :  { %4674 = vst [vmem:[%s11739_s4 + $0x4a0] sm:$0xff] %v11082_v49  ;;  %v4235_v44 = vadd.f32 %v10967_v5, %v3417_v27  ;;  %v11090_v55 = vadd.f32 %v5628_v20, %v12004_v28  ;;  %v5238_v5 = vadd.f32 %v5237_v2, %v5043_v45 }
 0x2f4   :  { %v3419_v60 = vpop.f32.mrf.mxu0  ;;  %v4338_v14 = vpop.f32.mrf.mxu1 }
 0x2f5   :  { %4649 = vst [vmem:[%s11739_s4 + $0x3d8] sm:$0xff] %v4235_v44  ;;  %4677 = vst [vmem:[%s11739_s4 + $0x4b8] sm:$0xff] %v11090_v55  ;;  %v11100_v39 = vadd.f32 %v4338_v14, %v12005_v17  ;;  %v5239_v11 = vadd.f32 %v5238_v5, %v5044_v22  ;;  %v5046_v62 = vmul.f32 %v4235_v44, %v4235_v44  ;;  %v12010_v14 = vld [vmem:[#allocation26_spill] sm:$0xff] }
 0x2f6   :  { %v3422_v54 = vpop.f32.mrf.mxu0  ;;  %v5631_v43 = vpop.f32.mrf.mxu1  ;;  %v4844_v15 = vadd.f32 %v4843_v51, %v4235_v44 }
 0x2f7   :  { %4675 = vst [vmem:[%s11739_s4 + $0x4a8] sm:$0xff] %v11100_v39  ;;  %v4240_v59 = vadd.f32 %v10977_v4, %v3422_v54  ;;  %v11108_v0 = vadd.f32 %v5631_v43, %v12006_v1  ;;  %v5240_v4 = vadd.f32 %v5239_v11, %v5045_v9 }
 0x2f8   :  { %v3424_v48 = vpop.f32.mrf.mxu0  ;;  %v4351_v25 = vpop.f32.mrf.mxu1 }
 0x2f9   :  { %4650 = vst [vmem:[%s11739_s4 + $0x3e0] sm:$0xff] %v4240_v59  ;;  %4680 = vst [vmem:[%s11739_s4 + $0x4d0] sm:$0xff] %v11108_v0  ;;  %v11118_v61 = vadd.f32 %v4351_v25, %v12007_v41  ;;  %v5047_v16 = vmul.f32 %v4240_v59, %v4240_v59  ;;  %v5241_v45 = vadd.f32 %v5240_v4, %v5046_v62  ;;  %v12012_v25 = vld [vmem:[#allocation28_spill] sm:$0xff] }
 0x2fa   :  { %v3425_v13 = vpop.f32.mrf.mxu0  ;;  %v5632_v24 = vpop.f32.mrf.mxu1  ;;  %v4845_v27 = vadd.f32 %v4844_v15, %v4240_v59 }
 0x2fb   :  { %4678 = vst [vmem:[%s11739_s4 + $0x4c0] sm:$0xff] %v11118_v61  ;;  %v4243_v34 = vadd.f32 %v10985_v26, %v3425_v13  ;;  %v11126_v8 = vadd.f32 %v5632_v24, %v12008_v38  ;;  %v5242_v2 = vadd.f32 %v5241_v45, %v5047_v16  ;;  %v12013_v24 = vld [vmem:[#allocation23_spill] sm:$0xff] }
 0x2fc   :  { %v3427_v18 = vpop.f32.mrf.mxu0  ;;  %v4354_v46 = vpop.f32.mrf.mxu1 }
 0x2fd   :  { %4651 = vst [vmem:[%s11739_s4 + $0x3e8] sm:$0xff] %v4243_v34  ;;  %v5048_v20 = vmul.f32 %v4243_v34, %v4243_v34  ;;  %4681 = vst [vmem:[%s11739_s4 + $0x4d8] sm:$0xff] %v11126_v8  ;;  %v11136_v44 = vadd.f32 %v4354_v46, %v12009_v12  ;;  %v4846_v22 = vadd.f32 %v4845_v27, %v4243_v34  ;;  %v12014_v18 = vld [vmem:[#allocation35_spill] sm:$0xff] }
 0x2fe   :  { %v3430_v26 = vpop.f32.mrf.mxu0 }
 0x2ff   :  { %v5635_v28 = vpop.f32.mrf.mxu1  ;;  %4679 = vst [vmem:[%s11739_s4 + $0x4c8] sm:$0xff] %v11136_v44  ;;  %v4248_v60 = vadd.f32 %v10974_v7, %v3430_v26  ;;  %v5243_v9 = vadd.f32 %v5242_v2, %v5048_v20  ;;  %v12015_v20 = vld [vmem:[#allocation30_spill] sm:$0xff]  ;;  %v12016_v2 = vld [vmem:[#allocation37_spill] sm:$0xff] }
 0x300   :  { %v11144_v53 = vadd.f32 %v5635_v28, %v12010_v14  ;;  %v3432_v17 = vpop.f32.mrf.mxu0 }
 0x301   :  { %v4367_v5 = vpop.f32.mrf.mxu1  ;;  %4652 = vst [vmem:[%s11739_s4 + $0x3f0] sm:$0xff] %v4248_v60  ;;  %v4847_v54 = vadd.f32 %v4846_v22, %v4248_v60  ;;  %v5049_v43 = vmul.f32 %v4248_v60, %v4248_v60  ;;  %v12017_v17 = vld [vmem:[#allocation32_spill] sm:$0xff] }
 0x302   :  { %4684 = vst [vmem:[%s11739_s4 + $0x4f0] sm:$0xff] %v11144_v53  ;;  %v11154_v59 = vadd.f32 %v4367_v5, %v12011_v32  ;;  %v3433_v7 = vpop.f32.mrf.mxu0 }
 0x303   :  { %v5636_v1 = vpop.f32.mrf.mxu1  ;;  %v5244_v11 = vadd.f32 %v5243_v9, %v5049_v43  ;;  %v4251_v48 = vadd.f32 %v10982_v40, %v3433_v7  ;;  %v12018_v43 = vld [vmem:[#allocation44_spill] sm:$0xff] }
 0x304   :  { %4682 = vst [vmem:[%s11739_s4 + $0x4e0] sm:$0xff] %v11154_v59  ;;  %v11162_v51 = vadd.f32 %v5636_v1, %v12012_v25  ;;  %v3435_v62 = vpop.f32.mrf.mxu0 }
 0x305   :  { %v4370_v41 = vpop.f32.mrf.mxu1  ;;  %4653 = vst [vmem:[%s11739_s4 + $0x3f8] sm:$0xff] %v4251_v48  ;;  %v11167_v4 = vadd.f32 %v4847_v54, %v4251_v48  ;;  %v5050_v13 = vmul.f32 %v4251_v48, %v4251_v48 }
 0x306   :  { %4685 = vst [vmem:[%s11739_s4 + $0x4f8] sm:$0xff] %v11162_v51  ;;  %v11174_v15 = vadd.f32 %v4370_v41, %v12013_v24  ;;  %v12020_v41 = vld [vmem:[#allocation46_spill] sm:$0xff] }
 0x307   :  { %v3438_v40 = vpop.f32.mrf.mxu0  ;;  %v5639_v16 = vpop.f32.mrf.mxu1  ;;  %v11176_v34 = vadd.f32 %v5244_v11, %v5050_v13  ;;  %v12019_v11 = vld [vmem:[#allocation39_spill] sm:$0xff] }
 0x308   :  { %4683 = vst [vmem:[%s11739_s4 + $0x4e8] sm:$0xff] %v11174_v15  ;;  %v11183_v38 = vadd.f32 %v10993_v36, %v3438_v40  ;;  %v11186_v46 = vadd.f32 %v5639_v16, %v12014_v18  ;;  %v12021_v16 = vld [vmem:[#allocation41_spill] sm:$0xff] }
 0x309   :  { %v3440_v45 = vpop.f32.mrf.mxu0  ;;  %v4383_v27 = vpop.f32.mrf.mxu1 }
 0x30a   :  { %4654 = vst [vmem:[%s11739_s4 + $0x400] sm:$0xff] %v11183_v38  ;;  %4688 = vst [vmem:[%s11739_s4 + $0x510] sm:$0xff] %v11186_v46  ;;  %v11197_v12 = vadd.f32 %v4383_v27, %v12015_v20  ;;  %v12022_v20 = vld [vmem:[#allocation53_spill] sm:$0xff] }
 0x30b   :  { %v3441_v36 = vpop.f32.mrf.mxu0  ;;  %v5640_v26 = vpop.f32.mrf.mxu1 }
 0x30c   :  { %4686 = vst [vmem:[%s11739_s4 + $0x500] sm:$0xff] %v11197_v12  ;;  %v11204_v28 = vadd.f32 %v11001_v52, %v3441_v36  ;;  %v11207_v22 = vadd.f32 %v5640_v26, %v12016_v2 }
 0x30d   :  { %v3443_v60 = vpop.f32.mrf.mxu0  ;;  %v4386_v14 = vpop.f32.mrf.mxu1 }
 0x30e   :  { %4655 = vst [vmem:[%s11739_s4 + $0x408] sm:$0xff] %v11204_v28  ;;  %4689 = vst [vmem:[%s11739_s4 + $0x518] sm:$0xff] %v11207_v22  ;;  %v11218_v5 = vadd.f32 %v4386_v14, %v12017_v17  ;;  %v12023_v60 = vld [vmem:[#allocation48_spill] sm:$0xff] }
 0x30f   :  { %v3446_v52 = vpop.f32.mrf.mxu0  ;;  %v5643_v9 = vpop.f32.mrf.mxu1 }
 0x310   :  { %4687 = vst [vmem:[%s11739_s4 + $0x508] sm:$0xff] %v11218_v5  ;;  %v11225_v54 = vadd.f32 %v10990_v57, %v3446_v52  ;;  %v11228_v32 = vadd.f32 %v5643_v9, %v12018_v43  ;;  %v12024_v9 = vld [vmem:[#allocation55_spill] sm:$0xff] }
 0x311   :  { %v3448_v7 = vpop.f32.mrf.mxu0  ;;  %v4399_v1 = vpop.f32.mrf.mxu1 }
 0x312   :  { %4656 = vst [vmem:[%s11739_s4 + $0x410] sm:$0xff] %v11225_v54  ;;  %4692 = vst [vmem:[%s11739_s4 + $0x530] sm:$0xff] %v11228_v32  ;;  %v11239_v48 = vadd.f32 %v4399_v1, %v12019_v11  ;;  %v12025_v11 = vld [vmem:[#allocation50_spill] sm:$0xff] }
 0x313   :  { %v3449_v57 = vpop.f32.mrf.mxu0  ;;  %v5644_v25 = vpop.f32.mrf.mxu1 }
 0x314   :  { %4690 = vst [vmem:[%s11739_s4 + $0x520] sm:$0xff] %v11239_v48  ;;  %v11246_v62 = vadd.f32 %v10998_v19, %v3449_v57  ;;  %v11249_v13 = vadd.f32 %v5644_v25, %v12020_v41 }
 0x315   :  { %v3451_v24 = vpop.f32.mrf.mxu0  ;;  %v4402_v40 = vpop.f32.mrf.mxu1 }
 0x316   :  { %4657 = vst [vmem:[%s11739_s4 + $0x418] sm:$0xff] %v11246_v62  ;;  %4693 = vst [vmem:[%s11739_s4 + $0x538] sm:$0xff] %v11249_v13  ;;  %v11260_v18 = vadd.f32 %v4402_v40, %v12021_v16  ;;  %v12026_v24 = vld [vmem:[#allocation63_spill] sm:$0xff] }
 0x317   :  { %v3454_v19 = vpop.f32.mrf.mxu0  ;;  %v5647_v45 = vpop.f32.mrf.mxu1 }
 0x318   :  { %4691 = vst [vmem:[%s11739_s4 + $0x528] sm:$0xff] %v11260_v18  ;;  %v11267_v27 = vadd.f32 %v11009_v31, %v3454_v19  ;;  %v11270_v36 = vadd.f32 %v5647_v45, %v12022_v20  ;;  %v12027_v45 = vld [vmem:[#allocation57_spill] sm:$0xff] }
 0x319   :  { %v3456_v26 = vpop.f32.mrf.mxu0  ;;  %v4415_v2 = vpop.f32.mrf.mxu1 }
 0x31a   :  { %4658 = vst [vmem:[%s11739_s4 + $0x420] sm:$0xff] %v11267_v27  ;;  %4696 = vst [vmem:[%s11739_s4 + $0x550] sm:$0xff] %v11270_v36  ;;  %v11281_v14 = vadd.f32 %v4415_v2, %v12023_v60  ;;  %v12028_v60 = vld [vmem:[#allocation65_spill] sm:$0xff] }
 0x31b   :  { %v3457_v31 = vpop.f32.mrf.mxu0  ;;  %v5648_v17 = vpop.f32.mrf.mxu1 }
 0x31c   :  { %4694 = vst [vmem:[%s11739_s4 + $0x540] sm:$0xff] %v11281_v14  ;;  %v11288_v52 = vadd.f32 %v11017_v63, %v3457_v31  ;;  %v11291_v43 = vadd.f32 %v5648_v17, %v12024_v9 }
 0x31d   :  { %v3459_v7 = vpop.f32.mrf.mxu0  ;;  %v4418_v1 = vpop.f32.mrf.mxu1 }
 0x31e   :  { %4659 = vst [vmem:[%s11739_s4 + $0x428] sm:$0xff] %v11288_v52  ;;  %4697 = vst [vmem:[%s11739_s4 + $0x558] sm:$0xff] %v11291_v43  ;;  %v11302_v57 = vadd.f32 %v4418_v1, %v12025_v11  ;;  %v12029_v7 = vld [vmem:[#allocation59_spill] sm:$0xff] }
 0x31f   :  { %v3462_v63 = vpop.f32.mrf.mxu0  ;;  %v5651_v25 = vpop.f32.mrf.mxu1 }
 0x320   :  { %4695 = vst [vmem:[%s11739_s4 + $0x548] sm:$0xff] %v11302_v57  ;;  %v11309_v41 = vadd.f32 %v11006_v33, %v3462_v63  ;;  %v11312_v40 = vadd.f32 %v5651_v25, %v12026_v24  ;;  %v12030_v25 = vld [vmem:[#allocation33_spill] sm:$0xff] }
 0x321   :  { %v3464_v16 = vpop.f32.mrf.mxu0  ;;  %v4431_v19 = vpop.f32.mrf.mxu1 }
 0x322   :  { %4660 = vst [vmem:[%s11739_s4 + $0x430] sm:$0xff] %v11309_v41  ;;  %4700 = vst [vmem:[%s11739_s4 + $0x570] sm:$0xff] %v11312_v40  ;;  %v11323_v20 = vadd.f32 %v4431_v19, %v12027_v45  ;;  %v12032_v45 = vld [vmem:[#allocation67_spill] sm:$0xff] }
 0x323   :  { %v3465_v33 = vpop.f32.mrf.mxu0  ;;  %v5652_v26 = vpop.f32.mrf.mxu1 }
 0x324   :  { %4698 = vst [vmem:[%s11739_s4 + $0x560] sm:$0xff] %v11323_v20  ;;  %v11330_v2 = vadd.f32 %v11014_v29, %v3465_v33  ;;  %v11333_v31 = vadd.f32 %v5652_v26, %v12028_v60 }
 0x325   :  { %v3467_v17 = vpop.f32.mrf.mxu0  ;;  %v4434_v9 = vpop.f32.mrf.mxu1 }
 0x326   :  { %4661 = vst [vmem:[%s11739_s4 + $0x438] sm:$0xff] %v11330_v2  ;;  %4701 = vst [vmem:[%s11739_s4 + $0x578] sm:$0xff] %v11333_v31  ;;  %v11344_v1 = vadd.f32 %v4434_v9, %v12029_v7  ;;  %v12033_v17 = vld [vmem:[#allocation75_spill] sm:$0xff]  ;;  %v5051_v7 = vmul.f32 %v11183_v38, %v11183_v38 }
 0x327   :  { %v3470_v29 = vpop.f32.mrf.mxu0  ;;  %v5655_v11 = vpop.f32.mrf.mxu1 }
 0x328   :  { %4699 = vst [vmem:[%s11739_s4 + $0x568] sm:$0xff] %v11344_v1  ;;  %v11351_v63 = vadd.f32 %v11025_v50, %v3470_v29  ;;  %v11354_v24 = vadd.f32 %v5655_v11, %v12030_v25 }
 0x329   :  { %v3472_v16 = vpop.f32.mrf.mxu0  ;;  %v4447_v19 = vpop.f32.mrf.mxu1 }
 0x32a   :  { %12031 = vst [vmem:[#allocation87_spill] sm:$0xff] %v11354_v24  ;;  %4662 = vst [vmem:[%s11739_s4 + $0x440] sm:$0xff] %v11351_v63  ;;  %v11365_v33 = vadd.f32 %v4447_v19, %v12032_v45  ;;  %v5052_v16 = vmul.f32 %v11204_v28, %v11204_v28 }
 0x32b   :  { %4704 = vst [vmem:[%s11739_s4 + $0x590] sm:$0xff] %v11354_v24  ;;  %v3473_v50 = vpop.f32.mrf.mxu0  ;;  %v5656_v26 = vpop.f32.mrf.mxu1 }
 0x32c   :  { %4702 = vst [vmem:[%s11739_s4 + $0x580] sm:$0xff] %v11365_v33  ;;  %v11372_v60 = vadd.f32 %v11033_v56, %v3473_v50  ;;  %v11375_v9 = vadd.f32 %v5656_v26, %v12033_v17  ;;  %v12035_v56 = vld [vmem:[#allocation71_spill] sm:$0xff]  ;;  %v4849_v50 = vadd.f32 %v11167_v4, %v11183_v38  ;;  %v12036_v17 = vld [vmem:[#allocation6_spill] sm:$0xff] }
 0x32d   :  { %v3475_v29 = vpop.f32.mrf.mxu0  ;;  %v4450_v11 = vpop.f32.mrf.mxu1 }
 0x32e   :  { %12034 = vst [vmem:[#allocation88_spill] sm:$0xff] %v11375_v9  ;;  %4663 = vst [vmem:[%s11739_s4 + $0x448] sm:$0xff] %v11372_v60  ;;  %v11388_v25 = vadd.f32 %v4450_v11, %v12035_v56  ;;  %v5246_v11 = vadd.f32 %v11176_v34, %v5051_v7  ;;  %v5053_v56 = vmul.f32 %v11225_v54, %v11225_v54 }
 0x32f   :  { %4705 = vst [vmem:[%s11739_s4 + $0x598] sm:$0xff] %v11375_v9  ;;  %v3478_v19 = vpop.f32.mrf.mxu0  ;;  %v5659_v45 = vpop.f32.mrf.mxu1  ;;  %v4850_v4 = vadd.f32 %v4849_v50, %v11204_v28  ;;  %v12039_v50 = vld [vmem:[#allocation83_spill] sm:$0xff] }
 0x330   :  { %4703 = vst [vmem:[%s11739_s4 + $0x588] sm:$0xff] %v11388_v25  ;;  %v11399_v26 = vadd.f32 %v11022_v42, %v3478_v19  ;;  %v11402_v29 = vadd.f32 %v5659_v45, %v12036_v17  ;;  %v12038_v42 = vld [vmem:[#allocation77_spill] sm:$0xff]  ;;  %v5247_v34 = vadd.f32 %v5246_v11, %v5052_v16  ;;  %v5055_v16 = vmul.f32 %v11267_v27, %v11267_v27 }
 0x331   :  { %v3480_v9 = vpop.f32.mrf.mxu0  ;;  %v4463_v24 = vpop.f32.mrf.mxu1  ;;  %v4851_v28 = vadd.f32 %v4850_v4, %v11225_v54  ;;  %v5056_v4 = vmul.f32 %v11288_v52, %v11288_v52 }
 0x332   :  { %12037 = vst [vmem:[#allocation43_spill] sm:$0xff] %v11402_v29  ;;  %4664 = vst [vmem:[%s11739_s4 + $0x450] sm:$0xff] %v11399_v26  ;;  %v11417_v38 = vadd.f32 %v4463_v24, %v12038_v42  ;;  %v5054_v9 = vmul.f32 %v11246_v62, %v11246_v62  ;;  %v5248_v24 = vadd.f32 %v5247_v34, %v5053_v56 }
 0x333   :  { %4708 = vst [vmem:[%s11739_s4 + $0x5b0] sm:$0xff] %v11402_v29  ;;  %v3481_v7 = vpop.f32.mrf.mxu0  ;;  %v5660_v19 = vpop.f32.mrf.mxu1  ;;  %v4852_v29 = vadd.f32 %v4851_v28, %v11246_v62  ;;  %v12041_v28 = vld [vmem:[#allocation93_spill] sm:$0xff] }
 0x334   :  { %4706 = vst [vmem:[%s11739_s4 + $0x5a0] sm:$0xff] %v11417_v38  ;;  %v11427_v45 = vadd.f32 %v11030_v10, %v3481_v7  ;;  %v11430_v17 = vadd.f32 %v5660_v19, %v12039_v50  ;;  %v12040_v10 = vld [vmem:[#allocation79_spill] sm:$0xff]  ;;  %v5249_v56 = vadd.f32 %v5248_v24, %v5054_v9  ;;  %v5057_v9 = vmul.f32 %v11309_v41, %v11309_v41 }
 0x335   :  { %v3483_v11 = vpop.f32.mrf.mxu0  ;;  %v4466_v42 = vpop.f32.mrf.mxu1  ;;  %v4853_v62 = vadd.f32 %v4852_v29, %v11267_v27 }
 0x336   :  { %4665 = vst [vmem:[%s11739_s4 + $0x458] sm:$0xff] %v11427_v45  ;;  %4709 = vst [vmem:[%s11739_s4 + $0x5b8] sm:$0xff] %v11430_v17  ;;  %v11444_v54 = vadd.f32 %v4466_v42, %v12040_v10  ;;  %v5250_v11 = vadd.f32 %v5249_v56, %v5055_v16  ;;  %v5058_v16 = vmul.f32 %v11330_v2, %v11330_v2 }
 0x337   :  { %v3486_v34 = vpop.f32.mrf.mxu0  ;;  %v5663_v7 = vpop.f32.mrf.mxu1  ;;  %v4854_v10 = vadd.f32 %v4853_v62, %v11288_v52  ;;  %v12043_v62 = vld [vmem:[#allocation51_spill] sm:$0xff] }
 0x338   :  { %4707 = vst [vmem:[%s11739_s4 + $0x5a8] sm:$0xff] %v11444_v54  ;;  %v4304_v19 = vadd.f32 %v11041_v21, %v3486_v34  ;;  %v11455_v50 = vadd.f32 %v5663_v7, %v12041_v28  ;;  %v12042_v21 = vld [vmem:[#allocation85_spill] sm:$0xff]  ;;  %v5251_v29 = vadd.f32 %v5250_v11, %v5056_v4  ;;  %v5059_v4 = vmul.f32 %v11351_v63, %v11351_v63 }
 0x339   :  { %v3488_v24 = vpop.f32.mrf.mxu0  ;;  %v4479_v42 = vpop.f32.mrf.mxu1  ;;  %v4855_v52 = vadd.f32 %v4854_v10, %v11309_v41  ;;  %v5060_v10 = vmul.f32 %v11372_v60, %v11372_v60 }
 0x33a   :  { %4666 = vst [vmem:[%s11739_s4 + $0x460] sm:$0xff] %v4304_v19  ;;  %4712 = vst [vmem:[%s11739_s4 + $0x5d0] sm:$0xff] %v11455_v50  ;;  %v11468_v27 = vadd.f32 %v4479_v42, %v12042_v21  ;;  %v5252_v24 = vadd.f32 %v5251_v29, %v5057_v9 }
 0x33b   :  { %v3489_v56 = vpop.f32.mrf.mxu0  ;;  %v5664_v34 = vpop.f32.mrf.mxu1  ;;  %v4856_v21 = vadd.f32 %v4855_v52, %v11330_v2  ;;  %v12045_v52 = vld [vmem:[#allocation104_spill] sm:$0xff] }
 0x33c   :  { %4710 = vst [vmem:[%s11739_s4 + $0x5c0] sm:$0xff] %v11468_v27  ;;  %v4307_v7 = vadd.f32 %v11049_v37, %v3489_v56  ;;  %v11479_v28 = vadd.f32 %v5664_v34, %v12043_v62  ;;  %v12044_v37 = vld [vmem:[#allocation90_spill] sm:$0xff]  ;;  %v5253_v9 = vadd.f32 %v5252_v24, %v5058_v16  ;;  %v5061_v16 = vmul.f32 %v11399_v26, %v11399_v26 }
 0x33d   :  { %v3491_v11 = vpop.f32.mrf.mxu0  ;;  %v4482_v42 = vpop.f32.mrf.mxu1  ;;  %v4857_v2 = vadd.f32 %v4856_v21, %v11351_v63  ;;  %v5062_v21 = vmul.f32 %v11427_v45, %v11427_v45 }
 0x33e   :  { %4667 = vst [vmem:[%s11739_s4 + $0x468] sm:$0xff] %v4307_v7  ;;  %4713 = vst [vmem:[%s11739_s4 + $0x5d8] sm:$0xff] %v11479_v28  ;;  %v11492_v41 = vadd.f32 %v4482_v42, %v12044_v37  ;;  %v5254_v11 = vadd.f32 %v5253_v9, %v5059_v4 }
 0x33f   :  { %v3494_v29 = vpop.f32.mrf.mxu0  ;;  %v5667_v56 = vpop.f32.mrf.mxu1  ;;  %v4858_v37 = vadd.f32 %v4857_v2, %v11372_v60  ;;  %v12048_v2 = vld [vmem:[#allocation60_spill] sm:$0xff] }
 0x340   :  { %4711 = vst [vmem:[%s11739_s4 + $0x5c8] sm:$0xff] %v11492_v41  ;;  %v4312_v34 = vadd.f32 %v11038_v3, %v3494_v29  ;;  %v11503_v62 = vadd.f32 %v5667_v56, %v12045_v52  ;;  %v12047_v3 = vld [vmem:[#allocation95_spill] sm:$0xff]  ;;  %v5255_v4 = vadd.f32 %v5254_v11, %v5060_v10 }
 0x341   :  { %v3496_v24 = vpop.f32.mrf.mxu0  ;;  %v4495_v42 = vpop.f32.mrf.mxu1  ;;  %v4859_v60 = vadd.f32 %v4858_v37, %v11399_v26  ;;  %v12050_v26 = vld [vmem:[#allocation98_spill] sm:$0xff] }
 0x342   :  { %12046 = vst [vmem:[#allocation91_spill] sm:$0xff] %v11503_v62  ;;  %4668 = vst [vmem:[%s11739_s4 + $0x470] sm:$0xff] %v4312_v34  ;;  %v11516_v63 = vadd.f32 %v4495_v42, %v12047_v3  ;;  %v5256_v24 = vadd.f32 %v5255_v4, %v5061_v16  ;;  %v5063_v42 = vmul.f32 %v4304_v19, %v4304_v19 }
 0x343   :  { %4716 = vst [vmem:[%s11739_s4 + $0x5f0] sm:$0xff] %v11503_v62  ;;  %v3497_v9 = vpop.f32.mrf.mxu0  ;;  %v5668_v29 = vpop.f32.mrf.mxu1  ;;  %v4860_v3 = vadd.f32 %v4859_v60, %v11427_v45  ;;  %v12051_v60 = vld [vmem:[#allocation109_spill] sm:$0xff] }
 0x344   :  { %4714 = vst [vmem:[%s11739_s4 + $0x5e0] sm:$0xff] %v11516_v63  ;;  %v4315_v56 = vadd.f32 %v11046_v47, %v3497_v9  ;;  %v11527_v52 = vadd.f32 %v5668_v29, %v12048_v2  ;;  %v5257_v37 = vadd.f32 %v5256_v24, %v5062_v21  ;;  %v5064_v9 = vmul.f32 %v4307_v7, %v4307_v7 }
 0x345   :  { %v3499_v10 = vpop.f32.mrf.mxu0  ;;  %v4498_v11 = vpop.f32.mrf.mxu1  ;;  %v4861_v29 = vadd.f32 %v4860_v3, %v4304_v19  ;;  %v12052_v19 = vld [vmem:[#allocation61_spill] sm:$0xff] }
 0x346   :  { %12049 = vst [vmem:[#allocation38_spill] sm:$0xff] %v11527_v52  ;;  %4669 = vst [vmem:[%s11739_s4 + $0x478] sm:$0xff] %v4315_v56  ;;  %v11538_v47 = vadd.f32 %v4498_v11, %v12050_v26  ;;  %v5258_v10 = vadd.f32 %v5257_v37, %v5063_v42  ;;  %v5065_v26 = vmul.f32 %v4312_v34, %v4312_v34  ;;  %v12053_v37 = vld [vmem:[#allocation110_spill] sm:$0xff] }
 0x347   :  { %4717 = vst [vmem:[%s11739_s4 + $0x5f8] sm:$0xff] %v11527_v52  ;;  %v3502_v16 = vpop.f32.mrf.mxu0  ;;  %v5671_v4 = vpop.f32.mrf.mxu1  ;;  %v4862_v11 = vadd.f32 %v4861_v29, %v4307_v7 }
 0x348   :  { %4715 = vst [vmem:[%s11739_s4 + $0x5e8] sm:$0xff] %v11538_v47  ;;  %v4320_v45 = vadd.f32 %v11057_v58, %v3502_v16  ;;  %v11546_v2 = vadd.f32 %v5671_v4, %v12051_v60  ;;  %v5259_v58 = vadd.f32 %v5258_v10, %v5064_v9 }
 0x349   :  { %v3504_v52 = vpop.f32.mrf.mxu0  ;;  %v4511_v62 = vpop.f32.mrf.mxu1  ;;  %v4863_v42 = vadd.f32 %v4862_v11, %v4312_v34  ;;  %v12054_v34 = vld [vmem:[#allocation107_spill] sm:$0xff] }
 0x34a   :  { %4670 = vst [vmem:[%s11739_s4 + $0x480] sm:$0xff] %v4320_v45  ;;  %4720 = vst [vmem:[%s11739_s4 + $0x610] sm:$0xff] %v11546_v2  ;;  %v11556_v21 = vadd.f32 %v4511_v62, %v12052_v19  ;;  %v5066_v52 = vmul.f32 %v4315_v56, %v4315_v56  ;;  %v5260_v60 = vadd.f32 %v5259_v58, %v5065_v26 }
 0x34b   :  { %v3505_v24 = vpop.f32.mrf.mxu0  ;;  %v5672_v3 = vpop.f32.mrf.mxu1  ;;  %v4864_v62 = vadd.f32 %v4863_v42, %v4315_v56  ;;  %v5067_v19 = vmul.f32 %v4320_v45, %v4320_v45 }
 0x34c   :  { %4718 = vst [vmem:[%s11739_s4 + $0x600] sm:$0xff] %v11556_v21  ;;  %v4323_v7 = vadd.f32 %v11065_v6, %v3505_v24  ;;  %v11564_v16 = vadd.f32 %v5672_v3, %v12053_v37  ;;  %v5261_v10 = vadd.f32 %v5260_v60, %v5066_v52 }
 0x34d   :  { %v3507_v4 = vpop.f32.mrf.mxu0  ;;  %v4514_v29 = vpop.f32.mrf.mxu1  ;;  %v4865_v11 = vadd.f32 %v4864_v62, %v4320_v45 }
 0x34e   :  { %4671 = vst [vmem:[%s11739_s4 + $0x488] sm:$0xff] %v4323_v7  ;;  %4721 = vst [vmem:[%s11739_s4 + $0x618] sm:$0xff] %v11564_v16  ;;  %v11574_v9 = vadd.f32 %v4514_v29, %v12054_v34  ;;  %v5068_v24 = vmul.f32 %v4323_v7, %v4323_v7  ;;  %v5262_v58 = vadd.f32 %v5261_v10, %v5067_v19 }
 0x34f   :  { %v3510_v6 = vpop.f32.mrf.mxu0  ;;  %v4866_v3 = vadd.f32 %v4865_v11, %v4323_v7  ;;  %v5071_v7 = vmul.f32 %v11082_v49, %v11082_v49  ;;  %v5073_v11 = vmul.f32 %v11072_v23, %v11072_v23 }
 0x350   :  { %4719 = vst [vmem:[%s11739_s4 + $0x608] sm:$0xff] %v11574_v9  ;;  %v4328_v56 = vadd.f32 %v11054_v35, %v3510_v6  ;;  %v5263_v4 = vadd.f32 %v5262_v58, %v5068_v24  ;;  %v5072_v6 = vmul.f32 %v11100_v39, %v11100_v39 }
 0x351   :  { %v3512_v26 = vpop.f32.mrf.mxu0 }
 0x352   :  { %4672 = vst [vmem:[%s11739_s4 + $0x490] sm:$0xff] %v4328_v56  ;;  %v5069_v42 = vmul.f32 %v4328_v56, %v4328_v56  ;;  %v4867_v52 = vadd.f32 %v4866_v3, %v4328_v56  ;;  %v5074_v26 = vmul.f32 %v11090_v55, %v11090_v55 }
 0x353   :  { %v3513_v37 = vpop.f32.mrf.mxu0 }
 0x354   :  { %v4331_v45 = vadd.f32 %v11062_v30, %v3513_v37  ;;  %v5264_v60 = vadd.f32 %v5263_v4, %v5069_v42 }
 0x355   :  { %v3515_v29 = vpop.f32.mrf.mxu0 }
 0x356   :  { %4673 = vst [vmem:[%s11739_s4 + $0x498] sm:$0xff] %v4331_v45  ;;  %v4868_v35 = vadd.f32 %v4867_v52, %v4331_v45  ;;  %v5070_v62 = vmul.f32 %v4331_v45, %v4331_v45 }
 0x358   :  { %v4869_v19 = vadd.f32 %v4868_v35, %v11082_v49  ;;  %v5265_v34 = vadd.f32 %v5264_v60, %v5070_v62  ;;  %v5075_v49 = vmul.f32 %v11118_v61, %v11118_v61 }
 0x35a   :  { %v4870_v10 = vadd.f32 %v4869_v19, %v11100_v39  ;;  %v5266_v30 = vadd.f32 %v5265_v34, %v5071_v7  ;;  %v5076_v39 = vmul.f32 %v11136_v44, %v11136_v44 }
 0x35c   :  { %v4871_v24 = vadd.f32 %v4870_v10, %v11072_v23  ;;  %v5267_v56 = vadd.f32 %v5266_v30, %v5072_v6  ;;  %v5077_v23 = vmul.f32 %v11108_v0, %v11108_v0 }
 0x35e   :  { %v4872_v58 = vadd.f32 %v4871_v24, %v11090_v55  ;;  %v5268_v3 = vadd.f32 %v5267_v56, %v5073_v11  ;;  %v5078_v55 = vmul.f32 %v11126_v8, %v11126_v8 }
 0x360   :  { %v4873_v42 = vadd.f32 %v4872_v58, %v11118_v61  ;;  %v5269_v37 = vadd.f32 %v5268_v3, %v5074_v26  ;;  %v5079_v61 = vmul.f32 %v11154_v59, %v11154_v59 }
 0x362   :  { %v4874_v4 = vadd.f32 %v4873_v42, %v11136_v44  ;;  %v5270_v52 = vadd.f32 %v5269_v37, %v5075_v49  ;;  %v5080_v44 = vmul.f32 %v11174_v15, %v11174_v15 }
 0x364   :  { %v4875_v45 = vadd.f32 %v4874_v4, %v11108_v0  ;;  %v5271_v29 = vadd.f32 %v5270_v52, %v5076_v39  ;;  %v5081_v0 = vmul.f32 %v11144_v53, %v11144_v53 }
 0x366   :  { %v4876_v60 = vadd.f32 %v4875_v45, %v11126_v8  ;;  %v5272_v35 = vadd.f32 %v5271_v29, %v5077_v23  ;;  %v5082_v8 = vmul.f32 %v11162_v51, %v11162_v51 }
 0x368   :  { %v4877_v62 = vadd.f32 %v4876_v60, %v11154_v59  ;;  %v5273_v7 = vadd.f32 %v5272_v35, %v5078_v55  ;;  %v5083_v59 = vmul.f32 %v11197_v12, %v11197_v12 }
 0x36a   :  { %v4878_v19 = vadd.f32 %v4877_v62, %v11174_v15  ;;  %v5274_v34 = vadd.f32 %v5273_v7, %v5079_v61  ;;  %v5084_v15 = vmul.f32 %v11218_v5, %v11218_v5 }
 0x36c   :  { %v4879_v6 = vadd.f32 %v4878_v19, %v11144_v53  ;;  %v5275_v10 = vadd.f32 %v5274_v34, %v5080_v44  ;;  %v5085_v53 = vmul.f32 %v11186_v46, %v11186_v46 }
 0x36e   :  { %v4880_v30 = vadd.f32 %v4879_v6, %v11162_v51  ;;  %v5276_v11 = vadd.f32 %v5275_v10, %v5081_v0  ;;  %v5086_v51 = vmul.f32 %v11207_v22, %v11207_v22 }
 0x370   :  { %v4881_v24 = vadd.f32 %v4880_v30, %v11197_v12  ;;  %v5277_v56 = vadd.f32 %v5276_v11, %v5082_v8  ;;  %v5087_v12 = vmul.f32 %v11239_v48, %v11239_v48 }
 0x372   :  { %v4882_v26 = vadd.f32 %v4881_v24, %v11218_v5  ;;  %v5278_v58 = vadd.f32 %v5277_v56, %v5083_v59  ;;  %v5088_v5 = vmul.f32 %v11260_v18, %v11260_v18 }
 0x374   :  { %v4883_v3 = vadd.f32 %v4882_v26, %v11186_v46  ;;  %v5279_v49 = vadd.f32 %v5278_v58, %v5084_v15  ;;  %v5089_v46 = vmul.f32 %v11228_v32, %v11228_v32 }
 0x376   :  { %v4884_v42 = vadd.f32 %v4883_v3, %v11207_v22  ;;  %v5280_v37 = vadd.f32 %v5279_v49, %v5085_v53  ;;  %v5090_v22 = vmul.f32 %v11249_v13, %v11249_v13 }
 0x378   :  { %v4885_v39 = vadd.f32 %v4884_v42, %v11239_v48  ;;  %v5281_v4 = vadd.f32 %v5280_v37, %v5086_v51  ;;  %v5091_v48 = vmul.f32 %v11281_v14, %v11281_v14 }
 0x37a   :  { %v4886_v52 = vadd.f32 %v4885_v39, %v11260_v18  ;;  %v5282_v23 = vadd.f32 %v5281_v4, %v5087_v12  ;;  %v5092_v18 = vmul.f32 %v11302_v57, %v11302_v57 }
 0x37c   :  { %v4887_v45 = vadd.f32 %v4886_v52, %v11228_v32  ;;  %v5283_v29 = vadd.f32 %v5282_v23, %v5088_v5  ;;  %v5093_v32 = vmul.f32 %v11270_v36, %v11270_v36  ;;  %v12057_v23 = vld [vmem:[#allocation43_spill] sm:$0xff] }
 0x37e   :  { %v4888_v55 = vadd.f32 %v4887_v45, %v11249_v13  ;;  %v5284_v60 = vadd.f32 %v5283_v29, %v5089_v46  ;;  %v5094_v13 = vmul.f32 %v11291_v43, %v11291_v43  ;;  %v5105_v46 = vmul.f32 %v12057_v23, %v12057_v23 }
 0x380   :  { %v4889_v35 = vadd.f32 %v4888_v55, %v11281_v14  ;;  %v5285_v61 = vadd.f32 %v5284_v60, %v5090_v22  ;;  %v5095_v14 = vmul.f32 %v11323_v20, %v11323_v20  ;;  %v5106_v22 = vmul.f32 %v11430_v17, %v11430_v17 }
 0x382   :  { %v4890_v62 = vadd.f32 %v4889_v35, %v11302_v57  ;;  %v5286_v7 = vadd.f32 %v5285_v61, %v5091_v48  ;;  %v5096_v57 = vmul.f32 %v11344_v1, %v11344_v1 }
 0x384   :  { %v4891_v44 = vadd.f32 %v4890_v62, %v11270_v36  ;;  %v5287_v19 = vadd.f32 %v5286_v7, %v5092_v18  ;;  %v5097_v36 = vmul.f32 %v11312_v40, %v11312_v40  ;;  %v5109_v62 = vmul.f32 %v11455_v50, %v11455_v50 }
 0x386   :  { %v4892_v34 = vadd.f32 %v4891_v44, %v11291_v43  ;;  %v5288_v0 = vadd.f32 %v5287_v19, %v5093_v32  ;;  %v5098_v43 = vmul.f32 %v11333_v31, %v11333_v31 }
 0x388   :  { %v4893_v6 = vadd.f32 %v4892_v34, %v11323_v20  ;;  %v5289_v10 = vadd.f32 %v5288_v0, %v5094_v13  ;;  %v5099_v20 = vmul.f32 %v11365_v33, %v11365_v33 }
 0x38a   :  { %v4894_v8 = vadd.f32 %v4893_v6, %v11344_v1  ;;  %v5290_v30 = vadd.f32 %v5289_v10, %v5095_v14  ;;  %v5100_v1 = vmul.f32 %v11388_v25, %v11388_v25 }
 0x38c   :  { %v4895_v11 = vadd.f32 %v4894_v8, %v11312_v40  ;;  %v5291_v59 = vadd.f32 %v5290_v30, %v5096_v57  ;;  %v12055_v40 = vld [vmem:[#allocation87_spill] sm:$0xff] }
 0x38d   :  { %v5101_v3 = vmul.f32 %v12055_v40, %v12055_v40 }
 0x38e   :  { %v4896_v24 = vadd.f32 %v4895_v11, %v11333_v31  ;;  %v5292_v56 = vadd.f32 %v5291_v59, %v5097_v36  ;;  %v12056_v31 = vld [vmem:[#allocation88_spill] sm:$0xff] }
 0x38f   :  { %v5102_v42 = vmul.f32 %v12056_v31, %v12056_v31 }
 0x390   :  { %v4897_v15 = vadd.f32 %v4896_v24, %v11365_v33  ;;  %v5293_v26 = vadd.f32 %v5292_v56, %v5098_v43  ;;  %v5103_v33 = vmul.f32 %v11417_v38, %v11417_v38  ;;  %v5117_v56 = vmul.f32 %v11546_v2, %v11546_v2 }
 0x392   :  { %v4898_v58 = vadd.f32 %v4897_v15, %v11388_v25  ;;  %v5294_v53 = vadd.f32 %v5293_v26, %v5099_v20  ;;  %v5104_v25 = vmul.f32 %v11444_v54, %v11444_v54  ;;  %v5118_v26 = vmul.f32 %v11564_v16, %v11564_v16 }
 0x394   :  { %v4899_v49 = vadd.f32 %v4898_v58, %v12055_v40  ;;  %v5295_v51 = vadd.f32 %v5294_v53, %v5100_v1 }
 0x396   :  { %v4900_v37 = vadd.f32 %v4899_v49, %v12056_v31  ;;  %v5296_v12 = vadd.f32 %v5295_v51, %v5101_v3 }
 0x398   :  { %v4901_v39 = vadd.f32 %v4900_v37, %v11417_v38  ;;  %v5297_v4 = vadd.f32 %v5296_v12, %v5102_v42  ;;  %v5107_v38 = vmul.f32 %v11468_v27, %v11468_v27 }
 0x39a   :  { %v4902_v5 = vadd.f32 %v4901_v39, %v11444_v54  ;;  %v5298_v52 = vadd.f32 %v5297_v4, %v5103_v33  ;;  %v5108_v54 = vmul.f32 %v11492_v41, %v11492_v41 }
 0x39c   :  { %v4903_v45 = vadd.f32 %v4902_v5, %v12057_v23  ;;  %v5299_v29 = vadd.f32 %v5298_v52, %v5104_v25 }
 0x39e   :  { %v4904_v55 = vadd.f32 %v4903_v45, %v11430_v17  ;;  %v5300_v60 = vadd.f32 %v5299_v29, %v5105_v46  ;;  %v5110_v17 = vmul.f32 %v11479_v28, %v11479_v28 }
 0x3a0   :  { %v4905_v48 = vadd.f32 %v4904_v55, %v11468_v27  ;;  %v5301_v35 = vadd.f32 %v5300_v60, %v5106_v22  ;;  %v5111_v27 = vmul.f32 %v11516_v63, %v11516_v63 }
 0x3a2   :  { %v4906_v61 = vadd.f32 %v4905_v48, %v11492_v41  ;;  %v5302_v18 = vadd.f32 %v5301_v35, %v5107_v38  ;;  %v5112_v41 = vmul.f32 %v11538_v47, %v11538_v47 }
 0x3a4   :  { %v4907_v7 = vadd.f32 %v4906_v61, %v11455_v50  ;;  %v5303_v32 = vadd.f32 %v5302_v18, %v5108_v54  ;;  %v12058_v50 = vld [vmem:[#allocation91_spill] sm:$0xff] }
 0x3a5   :  { %v5113_v6 = vmul.f32 %v12058_v50, %v12058_v50 }
 0x3a6   :  { %v4908_v44 = vadd.f32 %v4907_v7, %v11479_v28  ;;  %v5304_v19 = vadd.f32 %v5303_v32, %v5109_v62  ;;  %v12059_v28 = vld [vmem:[#allocation38_spill] sm:$0xff] }
 0x3a7   :  { %v5114_v8 = vmul.f32 %v12059_v28, %v12059_v28 }
 0x3a8   :  { %v4909_v13 = vadd.f32 %v4908_v44, %v11516_v63  ;;  %v5305_v34 = vadd.f32 %v5304_v19, %v5110_v17  ;;  %v5115_v63 = vmul.f32 %v11556_v21, %v11556_v21 }
 0x3aa   :  { %v4910_v0 = vadd.f32 %v4909_v13, %v11538_v47  ;;  %v5306_v14 = vadd.f32 %v5305_v34, %v5111_v27  ;;  %v5116_v47 = vmul.f32 %v11574_v9, %v11574_v9 }
 0x3ac   :  { %v4911_v10 = vadd.f32 %v4910_v0, %v12058_v50  ;;  %v5307_v57 = vadd.f32 %v5306_v14, %v5112_v41 }
 0x3ae   :  { %v4912_v30 = vadd.f32 %v4911_v10, %v12059_v28  ;;  %v5308_v36 = vadd.f32 %v5307_v57, %v5113_v6 }
 0x3b0   :  { %v4913_v11 = vadd.f32 %v4912_v30, %v11556_v21  ;;  %v5309_v59 = vadd.f32 %v5308_v36, %v5114_v8 }
 0x3b2   :  { %v4914_v43 = vadd.f32 %v4913_v11, %v11574_v9  ;;  %v5310_v24 = vadd.f32 %v5309_v59, %v5115_v63 }
 0x3b4   :  { %v4915_v20 = vadd.f32 %v4914_v43, %v11546_v2  ;;  %v5311_v15 = vadd.f32 %v5310_v24, %v5116_v47 }
 0x3b6   :  { %v4916_v1 = vadd.f32 %v4915_v20, %v11564_v16  ;;  %v5312_v58 = vadd.f32 %v5311_v15, %v5117_v56 }
 0x3b8   :  { %v4917_v21 = vrot.slane %v4916_v1, 4  ;;  %v5313_v53 = vadd.f32 %v5312_v58, %v5118_v26 }
 0x3ba   :  { %v4918_v40 = vadd.f32 %v4917_v21, %v4916_v1  ;;  %v5314_v3 = vrot.slane %v5313_v53, 4 }
 0x3bc   :  { %v4919_v49 = vrot.slane %v4918_v40, 2  ;;  %v5315_v51 = vadd.f32 %v5314_v3, %v5313_v53 }
 0x3be   :  { %v4920_v9 = vadd.f32 %v4919_v49, %v4918_v40  ;;  %v5316_v31 = vrot.slane %v5315_v51, 2 }
 0x3c0   :  { %v4921_v42 = vrot.slane %v4920_v9, 1  ;;  %v5317_v37 = vadd.f32 %v5316_v31, %v5315_v51 }
 0x3c2   :  { %v5318_v12 = vrot.slane %v5317_v37, 1  ;;  %v4922_v2 = vadd.f32 %v4921_v42, %v4920_v9 }
 0x3c4   :  { %v5319_v33 = vadd.f32 %v5318_v12, %v5317_v37 }
 0x3c6   :  { %v5321_v39 = vsel %vm5320_vm0, %v4922_v2, %v5319_v33 }
 0x3c7   :  { %5322 = vst [vmem:[%s11740_s5] sm:$0x3] %v5321_v39 }

// kernel: forward.3
= control target key start
LH: loop header
LB: loop body
LE: loop exit
PB: predicated region body
PF: predicated region fallthrough
CT: control target
= control target key end

     0   :  { %s5456_s15 = smov 0   ;;  %s5458_s16 = smov 0   ;;  %s7108_s0 = inlined_call_operand.vmem [shape: f32[2,28,28,128], index: 0, kind: input, shape index: {}]   ;;  %s7109_s1 = inlined_call_operand.vmem [shape: f32[1,128], index: 1, kind: input, shape index: {}]   ;;  %s7110_s2 = inlined_call_operand.vmem [shape: f32[1,128], index: 2, kind: input, shape index: {}]   ;;  %s7111_s3 = inlined_call_operand.vmem [shape: bf16[1152,128], index: 3, kind: input, shape index: {}]   ;;  %s7112_s4 = inlined_call_operand.vmem [shape: f32[2,1024,128], index: 4, kind: output, shape index: {}]  }
   0x1   :  { %s5460_s17 = smov 0   ;;  %s5462_s18 = smov 0  }
   0x2   :  { %s5464_s19 = smov 0  }
   0x3 LB: > { %s23_s20 = sadd.s32 1, %s5420_s17  ;;  %s26_s21 = sadd.s32 1, %s5424_s18  ;;  %s5428_s19 = sphi %s5464_s19, %s14_s19   ;;  %s5424_s18 = sphi %s5462_s18, %s7200_s18   ;;  %s5420_s17 = sphi %s5460_s17, %s7199_s17   ;;  %s5416_s16 = sphi %s5458_s16, %s7198_s16   ;;  %s5412_s15 = sphi %s5456_s15, %s7197_s15  }
   0x4   : > { %p24_p0 = scmp.ge.s32.totalorder %s23_s20, 4  ;;  %p4263_p1 = scmp.ge.s32.totalorder %s5428_s19, 1 }
   0x5   : > { %p176_p2 = scmp.lt.s32.totalorder %s5428_s19, 9 }
   0x6   : > { %s7202_s20 = smov (%p24_p0, %s23_s20), 0  ;;  %s7204_s21 = smov (!%p24_p0, %s26_s21), %s5424_s18 }
   0x7   : > { %p177_p3 = pnand %p4263_p1, %p176_p2  ;;  %p28_p4 = scmp.ge.s32.totalorder %s7204_s21, 2 }
   0x9   : > { %s7206_s21 = smov (%p28_p4, %s7204_s21), 0  ;;  %180 = sbr.rel (%p177_p3) target bundleno = 701 (0x2bd), region = 36 }
   0xe   : > { %p206_p5 = scmp.lt.s32.totalorder %s5416_s16, 1  ;;  %s4265_s22 = sshll.u32 %s5412_s15, 5 }
   0xf   : > { %p214_p6 = scmp.lt.s32.totalorder %s4265_s22, 127  ;;  %p4268_p7 = scmp.ne.s32.totalorder %s5412_s15, 0 }
  0x10   : > { %s7208_s16 = smov (!%p206_p5, %s5416_s16), 1 }
  0x11   : > { %s7210_s22 = smov (!%p214_p6, %s4265_s22), 127  ;;  %s5274_s23 = smul.u32 896, %s7208_s16 }
  0x12   : > { %s4266_s24 = sshll.u32 %s7208_s16, 7  ;;  %225 = sbr.rel (%p4268_p7) target bundleno = 184 (0xb8), region = 40 }
  0x13   : > { %s217_s25 = sadd.s32 %s4266_s24, %s7210_s22  ;;  %s5492_s28 = scalar_lea.vmem %s7108_s0, %s5274_s23 }
  0x14   : > { %s4267_s29 = sshll.u32 %s217_s25, 3 }
  0x15   : > { %s5497_s6 = scalar_lea.vmem %s7112_s4, %s4267_s29 }
  0x17   : > { %v366_v0 = vld [vmem:[%s5492_s28] sm:$0xff]  ;;  %v5430_v3 = vmov 0.0   ;;  %vm940_vm0 = vcmask 1040384   ;;  %v367_v5 = vld [vmem:[%s5492_s28 + $0x8] sm:$0xff]  ;;  %v368_v6 = vld [vmem:[%s5492_s28 + $0x10] sm:$0xff]  ;;  %vm1277_vm1 = vcmask 1044480  }
  0x18   : > { %v5504_v1 = vld [vmem:[%s7109_s1] ss:$0 sm:$0xff]  ;;  %226 = vst [vmem:[#allocation2] sm:$0xff] %v5430_v3  ;;  %227 = vst [vmem:[#allocation2 + $0x8] sm:$0xff] %v5430_v3  ;;  %v369_v7 = vld [vmem:[%s5492_s28 + $0x18] sm:$0xf] }
  0x19   : > { %v5509_v2 = vld [vmem:[%s7110_s2] ss:$0 sm:$0xff]  ;;  %228 = vst [vmem:[#allocation2 + $0x10] sm:$0xff] %v5430_v3  ;;  %229 = vst [vmem:[#allocation2 + $0x18] sm:$0xff] %v5430_v3  ;;  %v485_v4 = vmul.f32 %v5504_v1, %v366_v0  ;;  %v486_v8 = vmul.f32 %v5504_v1, %v367_v5  ;;  %v487_v9 = vmul.f32 %v5504_v1, %v368_v6  ;;  %v371_v12 = vld [vmem:[%s5492_s28 + $0x28] sm:$0xff] }
  0x1a   : > { %342 = vst [vmem:[#allocation2 + $0x3a0] sm:$0xff] %v5430_v3  ;;  %343 = vst [vmem:[#allocation2 + $0x3a8] sm:$0xff] %v5430_v3  ;;  %v488_v10 = vmul.f32 %v5504_v1, %v369_v7  ;;  %v370_v11 = vld [vmem:[%s5492_s28 + $0x20] sm:$0xff]  ;;  %v372_v13 = vld [vmem:[%s5492_s28 + $0x30] sm:$0xff]  ;;  %v490_v16 = vmul.f32 %v5504_v1, %v371_v12 }
  0x1b   : > { %344 = vst [vmem:[#allocation2 + $0x3b0] sm:$0xff] %v5430_v3  ;;  %345 = vst [vmem:[#allocation2 + $0x3b8] sm:$0xff] %v5430_v3  ;;  %v604_v14 = vadd.f32 %v5509_v2, %v485_v4  ;;  %v489_v15 = vmul.f32 %v5504_v1, %v370_v11  ;;  %v491_v17 = vmul.f32 %v5504_v1, %v372_v13  ;;  %v373_v18 = vld [vmem:[%s5492_s28 + $0x38] sm:$0xf]  ;;  %v374_v39 = vld [vmem:[%s5492_s28 + $0x40] sm:$0xff] }
  0x1c   : > { %346 = vst [vmem:[#allocation2 + $0x3c0] sm:$0xff] %v5430_v3  ;;  %347 = vst [vmem:[#allocation2 + $0x3c8] sm:$0xff] %v5430_v3  ;;  %v605_v19 = vadd.f32 %v5509_v2, %v486_v8  ;;  %v606_v20 = vadd.f32 %v5509_v2, %v487_v9  ;;  %v607_v21 = vadd.f32 %v5509_v2, %v488_v10  ;;  %v375_v44 = vld [vmem:[%s5492_s28 + $0x48] sm:$0xff]  ;;  %v376_v45 = vld [vmem:[%s5492_s28 + $0x50] sm:$0xff] }
  0x1d   : > { %348 = vst [vmem:[#allocation2 + $0x3d0] sm:$0xff] %v5430_v3  ;;  %349 = vst [vmem:[#allocation2 + $0x3d8] sm:$0xff] %v5430_v3  ;;  %v492_v22 = vmul.f32 %v5504_v1, %v373_v18  ;;  %v716_v23 = vmax.f32 %v604_v14, 0.0  ;;  %v608_v24 = vadd.f32 %v5509_v2, %v489_v15  ;;  %v609_v25 = vadd.f32 %v5509_v2, %v490_v16  ;;  %v377_v50 = vld [vmem:[%s5492_s28 + $0x58] sm:$0xf]  ;;  %v378_v51 = vld [vmem:[%s5492_s28 + $0x60] sm:$0xff] }
  0x1e   : > { %350 = vst [vmem:[#allocation2 + $0x3e0] sm:$0xff] %v5430_v3  ;;  %351 = vst [vmem:[#allocation2 + $0x3e8] sm:$0xff] %v5430_v3  ;;  %v610_v26 = vadd.f32 %v5509_v2, %v491_v17  ;;  %v717_v27 = vmax.f32 %v605_v19, 0.0  ;;  %v718_v28 = vmax.f32 %v606_v20, 0.0  ;;  %v719_v29 = vmax.f32 %v607_v21, 0.0  ;;  %v379_v52 = vld [vmem:[%s5492_s28 + $0x68] sm:$0xff] }
  0x1f   : > { %352 = vst [vmem:[#allocation2 + $0x3f0] sm:$0xff] %v5430_v3  ;;  %353 = vst [vmem:[#allocation2 + $0x3f8] sm:$0xff] %v5430_v3  ;;  %v611_v30 = vadd.f32 %v5509_v2, %v492_v22  ;;  %v941_v31 = vrot.slane %v716_v23, 7  ;;  %v720_v32 = vmax.f32 %v608_v24, 0.0  ;;  %v721_v33 = vmax.f32 %v609_v25, 0.0  ;;  %v380_v57 = vld [vmem:[%s5492_s28 + $0x70] sm:$0xff] }
  0x20   : > { %354 = vst [vmem:[#allocation2 + $0x400] sm:$0xff] %v5430_v3  ;;  %355 = vst [vmem:[#allocation2 + $0x408] sm:$0xff] %v5430_v3  ;;  %v722_v34 = vmax.f32 %v610_v26, 0.0  ;;  %v942_v35 = vrot.slane %v717_v27, 7  ;;  %v944_v36 = vrot.slane %v718_v28, 7  ;;  %v946_v37 = vrot.slane %v719_v29, 7 }
  0x21   : > { %356 = vst [vmem:[#allocation2 + $0x410] sm:$0xff] %v5430_v3  ;;  %357 = vst [vmem:[#allocation2 + $0x418] sm:$0xff] %v5430_v3  ;;  %v723_v38 = vmax.f32 %v611_v30, 0.0  ;;  %v1249_v40 = vsel %vm940_vm0, 0.0, %v941_v31  ;;  %v948_v41 = vrot.slane %v720_v32, 7  ;;  %v949_v42 = vrot.slane %v721_v33, 7 }
  0x22   : > { %358 = vst [vmem:[#allocation2 + $0x420] sm:$0xff] %v5430_v3  ;;  %359 = vst [vmem:[#allocation2 + $0x428] sm:$0xff] %v5430_v3  ;;  %v951_v43 = vrot.slane %v722_v34, 7  ;;  %v943_v46 = vsel %vm940_vm0, %v941_v31, %v942_v35  ;;  %v945_v47 = vsel %vm940_vm0, %v942_v35, %v944_v36  ;;  %v947_v48 = vsel %vm940_vm0, %v944_v36, %v946_v37  ;;  %v381_v62 = vld [vmem:[%s5492_s28 + $0x78] sm:$0xf]  ;;  %v382_v29 = vld [vmem:[%s5492_s28 + $0x80] sm:$0xff] }
  0x23   : > { %360 = vst [vmem:[#allocation2 + $0x430] sm:$0xff] %v5430_v3  ;;  %361 = vst [vmem:[#allocation2 + $0x438] sm:$0xff] %v5430_v3  ;;  %v953_v49 = vrot.slane %v723_v38, 7  ;;  %v1278_v53 = vsel %vm1277_vm1, %v947_v48, 0.0  ;;  %v1250_v54 = vsel %vm940_vm0, 0.0, %v948_v41  ;;  %v950_v55 = vsel %vm940_vm0, %v948_v41, %v949_v42  ;;  %v383_v30 = vld [vmem:[%s5492_s28 + $0x88] sm:$0xff] }
  0x24   : > { %362 = vst [vmem:[#allocation2 + $0x440] sm:$0xff] %v5430_v3  ;;  %363 = vst [vmem:[#allocation2 + $0x448] sm:$0xff] %v5430_v3  ;;  %v952_v56 = vsel %vm940_vm0, %v949_v42, %v951_v43  ;;  %v493_v59 = vmul.f32 %v5504_v1, %v374_v39  ;;  %v494_v60 = vmul.f32 %v5504_v1, %v375_v44  ;;  %v384_v35 = vld [vmem:[%s5492_s28 + $0x90] sm:$0xff]  ;;  %v385_v36 = vld [vmem:[%s5492_s28 + $0x98] sm:$0xf] }
  0x25   : > { %364 = vst [vmem:[#allocation2 + $0x450] sm:$0xff] %v5430_v3  ;;  %365 = vst [vmem:[#allocation2 + $0x458] sm:$0xff] %v5430_v3  ;;  %v954_v58 = vsel %vm940_vm0, %v951_v43, %v953_v49  ;;  %v495_v61 = vmul.f32 %v5504_v1, %v376_v45  ;;  %v496_v0 = vmul.f32 %v5504_v1, %v377_v50  ;;  %v386_v37 = vld [vmem:[%s5492_s28 + $0xa0] sm:$0xff]  ;;  %v387_v42 = vld [vmem:[%s5492_s28 + $0xa8] sm:$0xff] }
  0x26   : > { %1306 = vst [vmem:[#allocation2 + $0x20] sm:$0xff] %v1249_v40  ;;  %1307 = vst [vmem:[#allocation2 + $0x28] sm:$0xff] %v943_v46  ;;  %v1279_v63 = vsel %vm1277_vm1, %v954_v58, 0.0  ;;  %v497_v3 = vmul.f32 %v5504_v1, %v378_v51  ;;  %v498_v4 = vmul.f32 %v5504_v1, %v379_v52  ;;  %v612_v5 = vadd.f32 %v5509_v2, %v493_v59  ;;  %v389_v52 = vld [vmem:[%s5492_s28 + $0xb8] sm:$0xf] }
  0x27   : > { %1308 = vst [vmem:[#allocation2 + $0x30] sm:$0xff] %v945_v47  ;;  %1309 = vst [vmem:[#allocation2 + $0x38] sm:$0xff] %v1278_v53  ;;  %v613_v6 = vadd.f32 %v5509_v2, %v494_v60  ;;  %v614_v7 = vadd.f32 %v5509_v2, %v495_v61  ;;  %v499_v8 = vmul.f32 %v5504_v1, %v380_v57  ;;  %v388_v47 = vld [vmem:[%s5492_s28 + $0xb0] sm:$0xff] }
  0x28   : > { %1310 = vst [vmem:[#allocation2 + $0x40] sm:$0xff] %v1250_v54  ;;  %1311 = vst [vmem:[#allocation2 + $0x48] sm:$0xff] %v950_v55  ;;  %v615_v9 = vadd.f32 %v5509_v2, %v496_v0  ;;  %v616_v10 = vadd.f32 %v5509_v2, %v497_v3  ;;  %v617_v11 = vadd.f32 %v5509_v2, %v498_v4  ;;  %v724_v13 = vmax.f32 %v612_v5, 0.0 }
  0x29   : > { %1312 = vst [vmem:[#allocation2 + $0x50] sm:$0xff] %v952_v56  ;;  %1313 = vst [vmem:[#allocation2 + $0x58] sm:$0xff] %v1279_v63  ;;  %v500_v12 = vmul.f32 %v5504_v1, %v381_v62  ;;  %v725_v14 = vmax.f32 %v613_v6, 0.0  ;;  %v726_v15 = vmax.f32 %v614_v7, 0.0  ;;  %v618_v16 = vadd.f32 %v5509_v2, %v499_v8 }
  0x2a   : > { %v727_v17 = vmax.f32 %v615_v9, 0.0  ;;  %v728_v18 = vmax.f32 %v616_v10, 0.0  ;;  %v729_v19 = vmax.f32 %v617_v11, 0.0  ;;  %v955_v21 = vrot.slane %v724_v13, 7 }
  0x2b   : > { %v619_v20 = vadd.f32 %v5509_v2, %v500_v12  ;;  %v956_v22 = vrot.slane %v725_v14, 7  ;;  %v958_v23 = vrot.slane %v726_v15, 7  ;;  %v730_v24 = vmax.f32 %v618_v16, 0.0  ;;  %v390_v15 = vld [vmem:[%s5492_s28 + $0xc0] sm:$0xff]  ;;  %v391_v16 = vld [vmem:[%s5492_s28 + $0xc8] sm:$0xff] }
  0x2c   : > { %v960_v25 = vrot.slane %v727_v17, 7  ;;  %v962_v26 = vrot.slane %v728_v18, 7  ;;  %v963_v27 = vrot.slane %v729_v19, 7  ;;  %v1251_v31 = vsel %vm940_vm0, 0.0, %v955_v21 }
  0x2d   : > { %v731_v28 = vmax.f32 %v619_v20, 0.0  ;;  %v957_v32 = vsel %vm940_vm0, %v955_v21, %v956_v22  ;;  %v959_v33 = vsel %vm940_vm0, %v956_v22, %v958_v23  ;;  %v965_v34 = vrot.slane %v730_v24, 7  ;;  %1314 = vst [vmem:[#allocation2 + $0x60] sm:$0xff] %v1251_v31  ;;  %v392_v21 = vld [vmem:[%s5492_s28 + $0xd0] sm:$0xff]  ;;  %v393_v22 = vld [vmem:[%s5492_s28 + $0xd8] sm:$0xf] }
  0x2e   : > { %1315 = vst [vmem:[#allocation2 + $0x68] sm:$0xff] %v957_v32  ;;  %1316 = vst [vmem:[#allocation2 + $0x70] sm:$0xff] %v959_v33  ;;  %v961_v38 = vsel %vm940_vm0, %v958_v23, %v960_v25  ;;  %v1252_v39 = vsel %vm940_vm0, 0.0, %v962_v26  ;;  %v964_v40 = vsel %vm940_vm0, %v962_v26, %v963_v27  ;;  %v501_v45 = vmul.f32 %v5504_v1, %v382_v29 }
  0x2f   : > { %v967_v41 = vrot.slane %v731_v28, 7  ;;  %v1280_v43 = vsel %vm1277_vm1, %v961_v38, 0.0  ;;  %1318 = vst [vmem:[#allocation2 + $0x80] sm:$0xff] %v1252_v39  ;;  %1319 = vst [vmem:[#allocation2 + $0x88] sm:$0xff] %v964_v40  ;;  %v966_v44 = vsel %vm940_vm0, %v963_v27, %v965_v34  ;;  %v502_v46 = vmul.f32 %v5504_v1, %v383_v30  ;;  %v394_v27 = vld [vmem:[%s5492_s28 + $0xe0] sm:$0xff]  ;;  %v395_v28 = vld [vmem:[%s5492_s28 + $0xe8] sm:$0xff] }
  0x30   : > { %1317 = vst [vmem:[#allocation2 + $0x78] sm:$0xff] %v1280_v43  ;;  %1320 = vst [vmem:[#allocation2 + $0x90] sm:$0xff] %v966_v44  ;;  %v503_v49 = vmul.f32 %v5504_v1, %v384_v35  ;;  %v504_v50 = vmul.f32 %v5504_v1, %v385_v36  ;;  %v505_v51 = vmul.f32 %v5504_v1, %v386_v37  ;;  %v396_v37 = vld [vmem:[%s5492_s28 + $0xf0] sm:$0xff] }
  0x31   : > { %v968_v48 = vsel %vm940_vm0, %v965_v34, %v967_v41  ;;  %v620_v54 = vadd.f32 %v5509_v2, %v501_v45  ;;  %v621_v55 = vadd.f32 %v5509_v2, %v502_v46  ;;  %v506_v56 = vmul.f32 %v5504_v1, %v387_v42  ;;  %v397_v42 = vld [vmem:[%s5492_s28 + $0xf8] sm:$0xf] }
  0x32   : > { %v1281_v53 = vsel %vm1277_vm1, %v968_v48, 0.0  ;;  %v622_v57 = vadd.f32 %v5509_v2, %v503_v49  ;;  %v623_v58 = vadd.f32 %v5509_v2, %v504_v50  ;;  %v624_v59 = vadd.f32 %v5509_v2, %v505_v51 }
  0x33   : > { %1321 = vst [vmem:[#allocation2 + $0x98] sm:$0xff] %v1281_v53  ;;  %v507_v60 = vmul.f32 %v5504_v1, %v388_v47  ;;  %v732_v61 = vmax.f32 %v620_v54, 0.0  ;;  %v733_v62 = vmax.f32 %v621_v55, 0.0  ;;  %v625_v63 = vadd.f32 %v5509_v2, %v506_v56 }
  0x34   : > { %v508_v0 = vmul.f32 %v5504_v1, %v389_v52  ;;  %v734_v3 = vmax.f32 %v622_v57, 0.0  ;;  %v735_v4 = vmax.f32 %v623_v58, 0.0  ;;  %v736_v5 = vmax.f32 %v624_v59, 0.0 }
  0x35   : > { %v626_v6 = vadd.f32 %v5509_v2, %v507_v60  ;;  %v969_v7 = vrot.slane %v732_v61, 7  ;;  %v970_v8 = vrot.slane %v733_v62, 7  ;;  %v737_v9 = vmax.f32 %v625_v63, 0.0  ;;  %v398_v63 = vld [vmem:[%s5492_s28 + $0x100] sm:$0xff] }
  0x36   : > { %v627_v10 = vadd.f32 %v5509_v2, %v508_v0  ;;  %v972_v11 = vrot.slane %v734_v3, 7  ;;  %v974_v12 = vrot.slane %v735_v4, 7  ;;  %v976_v13 = vrot.slane %v736_v5, 7 }
  0x37   : > { %v738_v14 = vmax.f32 %v626_v6, 0.0  ;;  %v1253_v17 = vsel %vm940_vm0, 0.0, %v969_v7  ;;  %v971_v18 = vsel %vm940_vm0, %v969_v7, %v970_v8  ;;  %v977_v19 = vrot.slane %v737_v9, 7  ;;  %v399_v6 = vld [vmem:[%s5492_s28 + $0x108] sm:$0xff]  ;;  %v400_v7 = vld [vmem:[%s5492_s28 + $0x110] sm:$0xff] }
  0x38   : > { %v739_v20 = vmax.f32 %v627_v10, 0.0  ;;  %1322 = vst [vmem:[#allocation2 + $0xa0] sm:$0xff] %v1253_v17  ;;  %1323 = vst [vmem:[#allocation2 + $0xa8] sm:$0xff] %v971_v18  ;;  %v973_v23 = vsel %vm940_vm0, %v970_v8, %v972_v11  ;;  %v975_v24 = vsel %vm940_vm0, %v972_v11, %v974_v12  ;;  %v1254_v25 = vsel %vm940_vm0, 0.0, %v976_v13  ;;  %v401_v12 = vld [vmem:[%s5492_s28 + $0x118] sm:$0xf] }
  0x39   : > { %v979_v26 = vrot.slane %v738_v14, 7  ;;  %1324 = vst [vmem:[#allocation2 + $0xb0] sm:$0xff] %v973_v23  ;;  %v1282_v29 = vsel %vm1277_vm1, %v975_v24, 0.0  ;;  %1326 = vst [vmem:[#allocation2 + $0xc0] sm:$0xff] %v1254_v25  ;;  %v978_v30 = vsel %vm940_vm0, %v976_v13, %v977_v19  ;;  %v509_v32 = vmul.f32 %v5504_v1, %v390_v15  ;;  %v402_v13 = vld [vmem:[%s5492_s28 + $0x120] sm:$0xff]  ;;  %v403_v14 = vld [vmem:[%s5492_s28 + $0x128] sm:$0xff] }
  0x3a   : > { %v981_v31 = vrot.slane %v739_v20, 7  ;;  %1325 = vst [vmem:[#allocation2 + $0xb8] sm:$0xff] %v1282_v29  ;;  %1327 = vst [vmem:[#allocation2 + $0xc8] sm:$0xff] %v978_v30  ;;  %v510_v34 = vmul.f32 %v5504_v1, %v391_v16  ;;  %v511_v35 = vmul.f32 %v5504_v1, %v392_v21  ;;  %v512_v36 = vmul.f32 %v5504_v1, %v393_v22 }
  0x3b   : > { %v980_v33 = vsel %vm940_vm0, %v977_v19, %v979_v26  ;;  %v628_v39 = vadd.f32 %v5509_v2, %v509_v32  ;;  %v513_v40 = vmul.f32 %v5504_v1, %v394_v27  ;;  %v514_v41 = vmul.f32 %v5504_v1, %v395_v28  ;;  %v404_v27 = vld [vmem:[%s5492_s28 + $0x130] sm:$0xff]  ;;  %v405_v32 = vld [vmem:[%s5492_s28 + $0x138] sm:$0xf] }
  0x3c   : > { %1328 = vst [vmem:[#allocation2 + $0xd0] sm:$0xff] %v980_v33  ;;  %v982_v38 = vsel %vm940_vm0, %v979_v26, %v981_v31  ;;  %v629_v44 = vadd.f32 %v5509_v2, %v510_v34  ;;  %v630_v45 = vadd.f32 %v5509_v2, %v511_v35  ;;  %v631_v46 = vadd.f32 %v5509_v2, %v512_v36 }
  0x3d   : > { %v1283_v43 = vsel %vm1277_vm1, %v982_v38, 0.0  ;;  %v740_v47 = vmax.f32 %v628_v39, 0.0  ;;  %v632_v48 = vadd.f32 %v5509_v2, %v513_v40  ;;  %v633_v49 = vadd.f32 %v5509_v2, %v514_v41 }
  0x3e   : > { %1329 = vst [vmem:[#allocation2 + $0xd8] sm:$0xff] %v1283_v43  ;;  %v515_v50 = vmul.f32 %v5504_v1, %v396_v37  ;;  %v741_v51 = vmax.f32 %v629_v44, 0.0  ;;  %v742_v52 = vmax.f32 %v630_v45, 0.0  ;;  %v743_v53 = vmax.f32 %v631_v46, 0.0 }
  0x3f   : > { %v516_v54 = vmul.f32 %v5504_v1, %v397_v42  ;;  %v983_v55 = vrot.slane %v740_v47, 7  ;;  %v744_v56 = vmax.f32 %v632_v48, 0.0  ;;  %v745_v57 = vmax.f32 %v633_v49, 0.0 }
  0x40   : > { %v634_v58 = vadd.f32 %v5509_v2, %v515_v50  ;;  %v984_v59 = vrot.slane %v741_v51, 7  ;;  %v986_v60 = vrot.slane %v742_v52, 7  ;;  %v988_v61 = vrot.slane %v743_v53, 7  ;;  %v406_v53 = vld [vmem:[%s5492_s28 + $0x140] sm:$0xff] }
  0x41   : > { %v635_v62 = vadd.f32 %v5509_v2, %v516_v54  ;;  %v1255_v0 = vsel %vm940_vm0, 0.0, %v983_v55  ;;  %v990_v3 = vrot.slane %v744_v56, 7  ;;  %v991_v4 = vrot.slane %v745_v57, 7  ;;  %v407_v54 = vld [vmem:[%s5492_s28 + $0x148] sm:$0xff] }
  0x42   : > { %v746_v5 = vmax.f32 %v634_v58, 0.0  ;;  %1330 = vst [vmem:[#allocation2 + $0xe0] sm:$0xff] %v1255_v0  ;;  %v985_v8 = vsel %vm940_vm0, %v983_v55, %v984_v59  ;;  %v987_v9 = vsel %vm940_vm0, %v984_v59, %v986_v60  ;;  %v989_v10 = vsel %vm940_vm0, %v986_v60, %v988_v61  ;;  %v408_v59 = vld [vmem:[%s5492_s28 + $0x150] sm:$0xff]  ;;  %v409_v60 = vld [vmem:[%s5492_s28 + $0x158] sm:$0xf]  ;;  %v410_v61 = vld [vmem:[%s5492_s28 + $0x160] sm:$0xff] }
  0x43   : > { %v747_v11 = vmax.f32 %v635_v62, 0.0  ;;  %1331 = vst [vmem:[#allocation2 + $0xe8] sm:$0xff] %v985_v8  ;;  %1332 = vst [vmem:[#allocation2 + $0xf0] sm:$0xff] %v987_v9  ;;  %v1284_v15 = vsel %vm1277_vm1, %v989_v10, 0.0  ;;  %v1256_v16 = vsel %vm940_vm0, 0.0, %v990_v3  ;;  %v992_v17 = vsel %vm940_vm0, %v990_v3, %v991_v4 }
  0x44   : > { %v993_v18 = vrot.slane %v746_v5, 7  ;;  %1333 = vst [vmem:[#allocation2 + $0xf8] sm:$0xff] %v1284_v15  ;;  %1334 = vst [vmem:[#allocation2 + $0x100] sm:$0xff] %v1256_v16  ;;  %v517_v20 = vmul.f32 %v5504_v1, %v398_v63  ;;  %v518_v21 = vmul.f32 %v5504_v1, %v399_v6  ;;  %v519_v22 = vmul.f32 %v5504_v1, %v400_v7 }
  0x45   : > { %1335 = vst [vmem:[#allocation2 + $0x108] sm:$0xff] %v992_v17  ;;  %v995_v19 = vrot.slane %v747_v11, 7  ;;  %v520_v24 = vmul.f32 %v5504_v1, %v401_v12  ;;  %v521_v25 = vmul.f32 %v5504_v1, %v402_v13  ;;  %v522_v26 = vmul.f32 %v5504_v1, %v403_v14  ;;  %v412_v17 = vld [vmem:[%s5492_s28 + $0x170] sm:$0xff] }
  0x46   : > { %v994_v23 = vsel %vm940_vm0, %v991_v4, %v993_v18  ;;  %v636_v29 = vadd.f32 %v5509_v2, %v517_v20  ;;  %v637_v30 = vadd.f32 %v5509_v2, %v518_v21  ;;  %v638_v31 = vadd.f32 %v5509_v2, %v519_v22  ;;  %v411_v4 = vld [vmem:[%s5492_s28 + $0x168] sm:$0xff]  ;;  %v413_v22 = vld [vmem:[%s5492_s28 + $0x178] sm:$0xf] }
  0x47   : > { %1336 = vst [vmem:[#allocation2 + $0x110] sm:$0xff] %v994_v23  ;;  %v996_v28 = vsel %vm940_vm0, %v993_v18, %v995_v19  ;;  %v639_v34 = vadd.f32 %v5509_v2, %v520_v24  ;;  %v640_v35 = vadd.f32 %v5509_v2, %v521_v25  ;;  %v641_v36 = vadd.f32 %v5509_v2, %v522_v26 }
  0x48   : > { %v1285_v33 = vsel %vm1277_vm1, %v996_v28, 0.0  ;;  %v748_v37 = vmax.f32 %v636_v29, 0.0  ;;  %v749_v38 = vmax.f32 %v637_v30, 0.0  ;;  %v750_v39 = vmax.f32 %v638_v31, 0.0 }
  0x49   : > { %1337 = vst [vmem:[#allocation2 + $0x118] sm:$0xff] %v1285_v33  ;;  %v523_v40 = vmul.f32 %v5504_v1, %v404_v27  ;;  %v751_v41 = vmax.f32 %v639_v34, 0.0  ;;  %v752_v42 = vmax.f32 %v640_v35, 0.0  ;;  %v753_v43 = vmax.f32 %v641_v36, 0.0 }
  0x4a   : > { %v524_v44 = vmul.f32 %v5504_v1, %v405_v32  ;;  %v997_v45 = vrot.slane %v748_v37, 7  ;;  %v998_v46 = vrot.slane %v749_v38, 7  ;;  %v1000_v47 = vrot.slane %v750_v39, 7  ;;  %v414_v39 = vld [vmem:[%s5492_s28 + $0x180] sm:$0xff] }
  0x4b   : > { %v642_v48 = vadd.f32 %v5509_v2, %v523_v40  ;;  %v1002_v49 = vrot.slane %v751_v41, 7  ;;  %v1004_v50 = vrot.slane %v752_v42, 7  ;;  %v1005_v51 = vrot.slane %v753_v43, 7 }
  0x4c   : > { %v643_v52 = vadd.f32 %v5509_v2, %v524_v44  ;;  %v1257_v55 = vsel %vm940_vm0, 0.0, %v997_v45  ;;  %v999_v56 = vsel %vm940_vm0, %v997_v45, %v998_v46  ;;  %v1001_v57 = vsel %vm940_vm0, %v998_v46, %v1000_v47  ;;  %v415_v44 = vld [vmem:[%s5492_s28 + $0x188] sm:$0xff]  ;;  %v416_v45 = vld [vmem:[%s5492_s28 + $0x190] sm:$0xff]  ;;  %v417_v46 = vld [vmem:[%s5492_s28 + $0x198] sm:$0xf] }
  0x4d   : > { %v754_v58 = vmax.f32 %v642_v48, 0.0  ;;  %1338 = vst [vmem:[#allocation2 + $0x120] sm:$0xff] %v1257_v55  ;;  %1339 = vst [vmem:[#allocation2 + $0x128] sm:$0xff] %v999_v56  ;;  %v1003_v62 = vsel %vm940_vm0, %v1000_v47, %v1002_v49  ;;  %v1258_v63 = vsel %vm940_vm0, 0.0, %v1004_v50  ;;  %v1006_v0 = vsel %vm940_vm0, %v1004_v50, %v1005_v51 }
  0x4e   : > { %1340 = vst [vmem:[#allocation2 + $0x130] sm:$0xff] %v1001_v57  ;;  %v755_v3 = vmax.f32 %v643_v52, 0.0  ;;  %v1286_v5 = vsel %vm1277_vm1, %v1003_v62, 0.0  ;;  %1342 = vst [vmem:[#allocation2 + $0x140] sm:$0xff] %v1258_v63  ;;  %v525_v7 = vmul.f32 %v5504_v1, %v406_v53  ;;  %v526_v8 = vmul.f32 %v5504_v1, %v407_v54  ;;  %v419_v52 = vld [vmem:[%s5492_s28 + $0x1a8] sm:$0xff] }
  0x4f   : > { %1343 = vst [vmem:[#allocation2 + $0x148] sm:$0xff] %v1006_v0  ;;  %v1007_v6 = vrot.slane %v754_v58, 7  ;;  %1341 = vst [vmem:[#allocation2 + $0x138] sm:$0xff] %v1286_v5  ;;  %v527_v10 = vmul.f32 %v5504_v1, %v408_v59  ;;  %v528_v11 = vmul.f32 %v5504_v1, %v409_v60  ;;  %v529_v12 = vmul.f32 %v5504_v1, %v410_v61 }
  0x50   : > { %v1009_v9 = vrot.slane %v755_v3, 7  ;;  %v644_v14 = vadd.f32 %v5509_v2, %v525_v7  ;;  %v645_v15 = vadd.f32 %v5509_v2, %v526_v8  ;;  %v530_v16 = vmul.f32 %v5504_v1, %v411_v4  ;;  %v420_v7 = vld [vmem:[%s5492_s28 + $0x1b0] sm:$0xff] }
  0x51   : > { %v1008_v13 = vsel %vm940_vm0, %v1005_v51, %v1007_v6  ;;  %v646_v19 = vadd.f32 %v5509_v2, %v527_v10  ;;  %v647_v20 = vadd.f32 %v5509_v2, %v528_v11  ;;  %v648_v21 = vadd.f32 %v5509_v2, %v529_v12  ;;  %v418_v51 = vld [vmem:[%s5492_s28 + $0x1a0] sm:$0xff]  ;;  %v421_v12 = vld [vmem:[%s5492_s28 + $0x1b8] sm:$0xf] }
  0x52   : > { %1344 = vst [vmem:[#allocation2 + $0x150] sm:$0xff] %v1008_v13  ;;  %v1010_v18 = vsel %vm940_vm0, %v1007_v6, %v1009_v9  ;;  %v756_v24 = vmax.f32 %v644_v14, 0.0  ;;  %v757_v25 = vmax.f32 %v645_v15, 0.0  ;;  %v649_v26 = vadd.f32 %v5509_v2, %v530_v16 }
  0x53   : > { %v1287_v23 = vsel %vm1277_vm1, %v1010_v18, 0.0  ;;  %v758_v27 = vmax.f32 %v646_v19, 0.0  ;;  %v759_v28 = vmax.f32 %v647_v20, 0.0  ;;  %v760_v29 = vmax.f32 %v648_v21, 0.0 }
  0x54   : > { %1345 = vst [vmem:[#allocation2 + $0x158] sm:$0xff] %v1287_v23  ;;  %v531_v30 = vmul.f32 %v5504_v1, %v412_v17  ;;  %v1011_v31 = vrot.slane %v756_v24, 7  ;;  %v1012_v32 = vrot.slane %v757_v25, 7  ;;  %v761_v33 = vmax.f32 %v649_v26, 0.0 }
  0x55   : > { %v532_v34 = vmul.f32 %v5504_v1, %v413_v22  ;;  %v1014_v35 = vrot.slane %v758_v27, 7  ;;  %v1016_v36 = vrot.slane %v759_v28, 7  ;;  %v1018_v37 = vrot.slane %v760_v29, 7  ;;  %v422_v29 = vld [vmem:[%s5492_s28 + $0x1c0] sm:$0xff] }
  0x56   : > { %v650_v38 = vadd.f32 %v5509_v2, %v531_v30  ;;  %v1259_v40 = vsel %vm940_vm0, 0.0, %v1011_v31  ;;  %v1013_v41 = vsel %vm940_vm0, %v1011_v31, %v1012_v32  ;;  %v1019_v42 = vrot.slane %v761_v33, 7  ;;  %v423_v30 = vld [vmem:[%s5492_s28 + $0x1c8] sm:$0xff]  ;;  %v424_v31 = vld [vmem:[%s5492_s28 + $0x1d0] sm:$0xff] }
  0x57   : > { %v651_v43 = vadd.f32 %v5509_v2, %v532_v34  ;;  %1346 = vst [vmem:[#allocation2 + $0x160] sm:$0xff] %v1259_v40  ;;  %1347 = vst [vmem:[#allocation2 + $0x168] sm:$0xff] %v1013_v41  ;;  %v1015_v47 = vsel %vm940_vm0, %v1012_v32, %v1014_v35  ;;  %v1017_v48 = vsel %vm940_vm0, %v1014_v35, %v1016_v36  ;;  %v1260_v49 = vsel %vm940_vm0, 0.0, %v1018_v37  ;;  %v425_v36 = vld [vmem:[%s5492_s28 + $0x1d8] sm:$0xf] }
  0x58   : > { %v762_v50 = vmax.f32 %v650_v38, 0.0  ;;  %1348 = vst [vmem:[#allocation2 + $0x170] sm:$0xff] %v1015_v47  ;;  %v1288_v53 = vsel %vm1277_vm1, %v1017_v48, 0.0  ;;  %1350 = vst [vmem:[#allocation2 + $0x180] sm:$0xff] %v1260_v49  ;;  %v1020_v54 = vsel %vm940_vm0, %v1018_v37, %v1019_v42  ;;  %v533_v56 = vmul.f32 %v5504_v1, %v414_v39  ;;  %v426_v37 = vld [vmem:[%s5492_s28 + $0x1e0] sm:$0xff]  ;;  %v427_v38 = vld [vmem:[%s5492_s28 + $0x1e8] sm:$0xff] }
  0x59   : > { %v763_v55 = vmax.f32 %v651_v43, 0.0  ;;  %1349 = vst [vmem:[#allocation2 + $0x178] sm:$0xff] %v1288_v53  ;;  %1351 = vst [vmem:[#allocation2 + $0x188] sm:$0xff] %v1020_v54  ;;  %v534_v58 = vmul.f32 %v5504_v1, %v415_v44  ;;  %v535_v59 = vmul.f32 %v5504_v1, %v416_v45  ;;  %v536_v60 = vmul.f32 %v5504_v1, %v417_v46 }
  0x5a   : > { %v1021_v57 = vrot.slane %v762_v50, 7  ;;  %v652_v62 = vadd.f32 %v5509_v2, %v533_v56  ;;  %v537_v63 = vmul.f32 %v5504_v1, %v418_v51  ;;  %v538_v0 = vmul.f32 %v5504_v1, %v419_v52 }
  0x5b   : > { %v1023_v61 = vrot.slane %v763_v55, 7  ;;  %v653_v4 = vadd.f32 %v5509_v2, %v534_v58  ;;  %v654_v5 = vadd.f32 %v5509_v2, %v535_v59  ;;  %v655_v6 = vadd.f32 %v5509_v2, %v536_v60  ;;  %v428_v59 = vld [vmem:[%s5492_s28 + $0x1f0] sm:$0xff] }
  0x5c   : > { %v1022_v3 = vsel %vm940_vm0, %v1019_v42, %v1021_v57  ;;  %v764_v9 = vmax.f32 %v652_v62, 0.0  ;;  %v656_v10 = vadd.f32 %v5509_v2, %v537_v63  ;;  %v657_v11 = vadd.f32 %v5509_v2, %v538_v0  ;;  %v429_v0 = vld [vmem:[%s5492_s28 + $0x1f8] sm:$0xf] }
  0x5d   : > { %1352 = vst [vmem:[#allocation2 + $0x190] sm:$0xff] %v1022_v3  ;;  %v1024_v8 = vsel %vm940_vm0, %v1021_v57, %v1023_v61  ;;  %v765_v14 = vmax.f32 %v653_v4, 0.0  ;;  %v766_v15 = vmax.f32 %v654_v5, 0.0  ;;  %v767_v16 = vmax.f32 %v655_v6, 0.0 }
  0x5e   : > { %v1289_v13 = vsel %vm1277_vm1, %v1024_v8, 0.0  ;;  %v1025_v17 = vrot.slane %v764_v9, 7  ;;  %v768_v18 = vmax.f32 %v656_v10, 0.0  ;;  %v769_v19 = vmax.f32 %v657_v11, 0.0 }
  0x5f   : > { %1353 = vst [vmem:[#allocation2 + $0x198] sm:$0xff] %v1289_v13  ;;  %v539_v20 = vmul.f32 %v5504_v1, %v420_v7  ;;  %v1026_v21 = vrot.slane %v765_v14, 7  ;;  %v1028_v22 = vrot.slane %v766_v15, 7  ;;  %v1030_v23 = vrot.slane %v767_v16, 7  ;;  %v430_v15 = vld [vmem:[%s5492_s28 + $0x200] sm:$0xff]  ;;  %v431_v16 = vld [vmem:[%s5492_s28 + $0x208] sm:$0xff] }
  0x60   : > { %v540_v24 = vmul.f32 %v5504_v1, %v421_v12  ;;  %v1261_v25 = vsel %vm940_vm0, 0.0, %v1025_v17  ;;  %v1032_v26 = vrot.slane %v768_v18, 7  ;;  %v1033_v27 = vrot.slane %v769_v19, 7 }
  0x61   : > { %v658_v28 = vadd.f32 %v5509_v2, %v539_v20  ;;  %1354 = vst [vmem:[#allocation2 + $0x1a0] sm:$0xff] %v1261_v25  ;;  %v1027_v32 = vsel %vm940_vm0, %v1025_v17, %v1026_v21  ;;  %v1029_v33 = vsel %vm940_vm0, %v1026_v21, %v1028_v22  ;;  %v1031_v34 = vsel %vm940_vm0, %v1028_v22, %v1030_v23  ;;  %v432_v21 = vld [vmem:[%s5492_s28 + $0x210] sm:$0xff]  ;;  %v433_v22 = vld [vmem:[%s5492_s28 + $0x218] sm:$0xf]  ;;  %v434_v23 = vld [vmem:[%s5492_s28 + $0x220] sm:$0xff] }
  0x62   : > { %v659_v35 = vadd.f32 %v5509_v2, %v540_v24  ;;  %1355 = vst [vmem:[#allocation2 + $0x1a8] sm:$0xff] %v1027_v32  ;;  %1356 = vst [vmem:[#allocation2 + $0x1b0] sm:$0xff] %v1029_v33  ;;  %v1290_v39 = vsel %vm1277_vm1, %v1031_v34, 0.0  ;;  %v1262_v40 = vsel %vm940_vm0, 0.0, %v1032_v26  ;;  %v1034_v41 = vsel %vm940_vm0, %v1032_v26, %v1033_v27 }
  0x63   : > { %v770_v42 = vmax.f32 %v658_v28, 0.0  ;;  %1357 = vst [vmem:[#allocation2 + $0x1b8] sm:$0xff] %v1290_v39  ;;  %1358 = vst [vmem:[#allocation2 + $0x1c0] sm:$0xff] %v1262_v40  ;;  %v541_v44 = vmul.f32 %v5504_v1, %v422_v29  ;;  %v542_v45 = vmul.f32 %v5504_v1, %v423_v30  ;;  %v543_v46 = vmul.f32 %v5504_v1, %v424_v31  ;;  %v435_v28 = vld [vmem:[%s5492_s28 + $0x228] sm:$0xff] }
  0x64   : > { %1359 = vst [vmem:[#allocation2 + $0x1c8] sm:$0xff] %v1034_v41  ;;  %v771_v43 = vmax.f32 %v659_v35, 0.0  ;;  %v544_v48 = vmul.f32 %v5504_v1, %v425_v36  ;;  %v545_v49 = vmul.f32 %v5504_v1, %v426_v37  ;;  %v546_v50 = vmul.f32 %v5504_v1, %v427_v38 }
  0x65   : > { %v1035_v47 = vrot.slane %v770_v42, 7  ;;  %v660_v52 = vadd.f32 %v5509_v2, %v541_v44  ;;  %v661_v53 = vadd.f32 %v5509_v2, %v542_v45  ;;  %v662_v54 = vadd.f32 %v5509_v2, %v543_v46 }
  0x66   : > { %v1037_v51 = vrot.slane %v771_v43, 7  ;;  %v663_v56 = vadd.f32 %v5509_v2, %v544_v48  ;;  %v664_v57 = vadd.f32 %v5509_v2, %v545_v49  ;;  %v665_v58 = vadd.f32 %v5509_v2, %v546_v50  ;;  %v436_v49 = vld [vmem:[%s5492_s28 + $0x230] sm:$0xff] }
  0x67   : > { %v1036_v55 = vsel %vm940_vm0, %v1033_v27, %v1035_v47  ;;  %v772_v61 = vmax.f32 %v660_v52, 0.0  ;;  %v773_v62 = vmax.f32 %v661_v53, 0.0  ;;  %v774_v63 = vmax.f32 %v662_v54, 0.0  ;;  %v437_v53 = vld [vmem:[%s5492_s28 + $0x238] sm:$0xf] }
  0x68   : > { %1360 = vst [vmem:[#allocation2 + $0x1d0] sm:$0xff] %v1036_v55  ;;  %v1038_v60 = vsel %vm940_vm0, %v1035_v47, %v1037_v51  ;;  %v775_v4 = vmax.f32 %v663_v56, 0.0  ;;  %v776_v5 = vmax.f32 %v664_v57, 0.0  ;;  %v777_v6 = vmax.f32 %v665_v58, 0.0 }
  0x69   : > { %v1291_v3 = vsel %vm1277_vm1, %v1038_v60, 0.0  ;;  %v1039_v7 = vrot.slane %v772_v61, 7  ;;  %v1040_v8 = vrot.slane %v773_v62, 7  ;;  %v1042_v9 = vrot.slane %v774_v63, 7  ;;  %v5805_v60 = vld [vmem:[%s7109_s1] ss:$0 sm:$0xff] }
  0x6a   : > { %1361 = vst [vmem:[#allocation2 + $0x1d8] sm:$0xff] %v1291_v3  ;;  %v547_v10 = vmul.f32 %v5504_v1, %v428_v59  ;;  %v1044_v11 = vrot.slane %v775_v4, 7  ;;  %v1046_v12 = vrot.slane %v776_v5, 7  ;;  %v1047_v13 = vrot.slane %v777_v6, 7  ;;  %v438_v62 = vld [vmem:[%s5492_s28 + $0x240] sm:$0xff]  ;;  %v439_v5 = vld [vmem:[%s5492_s28 + $0x248] sm:$0xff] }
  0x6b   : > { %v548_v14 = vmul.f32 %v5504_v1, %v429_v0  ;;  %v1263_v17 = vsel %vm940_vm0, 0.0, %v1039_v7  ;;  %v1041_v18 = vsel %vm940_vm0, %v1039_v7, %v1040_v8  ;;  %v1043_v19 = vsel %vm940_vm0, %v1040_v8, %v1042_v9  ;;  %v440_v6 = vld [vmem:[%s5492_s28 + $0x250] sm:$0xff]  ;;  %v441_v7 = vld [vmem:[%s5492_s28 + $0x258] sm:$0xf] }
  0x6c   : > { %v666_v20 = vadd.f32 %v5509_v2, %v547_v10  ;;  %1362 = vst [vmem:[#allocation2 + $0x1e0] sm:$0xff] %v1263_v17  ;;  %1363 = vst [vmem:[#allocation2 + $0x1e8] sm:$0xff] %v1041_v18  ;;  %v1045_v24 = vsel %vm940_vm0, %v1042_v9, %v1044_v11  ;;  %v1264_v25 = vsel %vm940_vm0, 0.0, %v1046_v12  ;;  %v1048_v26 = vsel %vm940_vm0, %v1046_v12, %v1047_v13  ;;  %v5821_v11 = vld [vmem:[%s7110_s2] ss:$0 sm:$0xff] }
  0x6d   : > { %1364 = vst [vmem:[#allocation2 + $0x1f0] sm:$0xff] %v1043_v19  ;;  %v667_v27 = vadd.f32 %v5509_v2, %v548_v14  ;;  %v1292_v29 = vsel %vm1277_vm1, %v1045_v24, 0.0  ;;  %1366 = vst [vmem:[#allocation2 + $0x200] sm:$0xff] %v1264_v25  ;;  %v549_v31 = vmul.f32 %v5504_v1, %v430_v15  ;;  %v550_v32 = vmul.f32 %v5504_v1, %v431_v16  ;;  %v443_v14 = vld [vmem:[%s5492_s28 + $0x268] sm:$0xff] }
  0x6e   : > { %1367 = vst [vmem:[#allocation2 + $0x208] sm:$0xff] %v1048_v26  ;;  %v778_v30 = vmax.f32 %v666_v20, 0.0  ;;  %1365 = vst [vmem:[#allocation2 + $0x1f8] sm:$0xff] %v1292_v29  ;;  %v551_v34 = vmul.f32 %v5504_v1, %v432_v21  ;;  %v552_v35 = vmul.f32 %v5504_v1, %v433_v22  ;;  %v553_v36 = vmul.f32 %v5504_v1, %v434_v23 }
  0x6f   : > { %v779_v33 = vmax.f32 %v667_v27, 0.0  ;;  %v668_v38 = vadd.f32 %v5509_v2, %v549_v31  ;;  %v669_v39 = vadd.f32 %v5509_v2, %v550_v32  ;;  %v554_v40 = vmul.f32 %v5504_v1, %v435_v28 }
  0x70   : > { %v1049_v37 = vrot.slane %v778_v30, 7  ;;  %v670_v42 = vadd.f32 %v5509_v2, %v551_v34  ;;  %v671_v43 = vadd.f32 %v5509_v2, %v552_v35  ;;  %v672_v44 = vadd.f32 %v5509_v2, %v553_v36 }
  0x71   : > { %v1051_v41 = vrot.slane %v779_v33, 7  ;;  %v780_v46 = vmax.f32 %v668_v38, 0.0  ;;  %v781_v47 = vmax.f32 %v669_v39, 0.0  ;;  %v673_v48 = vadd.f32 %v5509_v2, %v554_v40  ;;  %v444_v39 = vld [vmem:[%s5492_s28 + $0x270] sm:$0xff] }
  0x72   : > { %v1050_v45 = vsel %vm940_vm0, %v1047_v13, %v1049_v37  ;;  %v782_v51 = vmax.f32 %v670_v42, 0.0  ;;  %v783_v1 = vmax.f32 %v671_v43, 0.0  ;;  %v784_v52 = vmax.f32 %v672_v44, 0.0  ;;  %v442_v13 = vld [vmem:[%s5492_s28 + $0x260] sm:$0xff]  ;;  %v445_v44 = vld [vmem:[%s5492_s28 + $0x278] sm:$0xf] }
  0x73   : > { %1368 = vst [vmem:[#allocation2 + $0x210] sm:$0xff] %v1050_v45  ;;  %v1052_v50 = vsel %vm940_vm0, %v1049_v37, %v1051_v41  ;;  %v1053_v55 = vrot.slane %v780_v46, 7  ;;  %v1054_v56 = vrot.slane %v781_v47, 7  ;;  %v785_v57 = vmax.f32 %v673_v48, 0.0 }
  0x74   : > { %v1293_v54 = vsel %vm1277_vm1, %v1052_v50, 0.0  ;;  %v1056_v58 = vrot.slane %v782_v51, 7  ;;  %v1058_v2 = vrot.slane %v783_v1, 7  ;;  %v1060_v59 = vrot.slane %v784_v52, 7  ;;  %v446_v52 = vld [vmem:[%s5492_s28 + $0x280] sm:$0xff] }
  0x75   : > { %1369 = vst [vmem:[#allocation2 + $0x218] sm:$0xff] %v1293_v54  ;;  %v555_v61 = vmul.f32 %v5805_v60, %v436_v49  ;;  %v1265_v63 = vsel %vm940_vm0, 0.0, %v1053_v55  ;;  %v1055_v0 = vsel %vm940_vm0, %v1053_v55, %v1054_v56  ;;  %v1061_v3 = vrot.slane %v785_v57, 7  ;;  %v448_v54 = vld [vmem:[%s5492_s28 + $0x290] sm:$0xff] }
  0x76   : > { %v556_v4 = vmul.f32 %v5805_v60, %v437_v53  ;;  %1370 = vst [vmem:[#allocation2 + $0x220] sm:$0xff] %v1265_v63  ;;  %1371 = vst [vmem:[#allocation2 + $0x228] sm:$0xff] %v1055_v0  ;;  %v1057_v8 = vsel %vm940_vm0, %v1054_v56, %v1056_v58  ;;  %v1059_v9 = vsel %vm940_vm0, %v1056_v58, %v1058_v2  ;;  %v1266_v10 = vsel %vm940_vm0, 0.0, %v1060_v59  ;;  %v447_v53 = vld [vmem:[%s5492_s28 + $0x288] sm:$0xff]  ;;  %v449_v2 = vld [vmem:[%s5492_s28 + $0x298] sm:$0xf] }
  0x77   : > { %v674_v12 = vadd.f32 %v5821_v11, %v555_v61  ;;  %1372 = vst [vmem:[#allocation2 + $0x230] sm:$0xff] %v1057_v8  ;;  %v1294_v15 = vsel %vm1277_vm1, %v1059_v9, 0.0  ;;  %1374 = vst [vmem:[#allocation2 + $0x240] sm:$0xff] %v1266_v10  ;;  %v1062_v16 = vsel %vm940_vm0, %v1060_v59, %v1061_v3  ;;  %v557_v18 = vmul.f32 %v5805_v60, %v438_v62  ;;  %v450_v59 = vld [vmem:[%s5492_s28 + $0x2a0] sm:$0xff]  ;;  %v451_v61 = vld [vmem:[%s5492_s28 + $0x2a8] sm:$0xff] }
  0x78   : > { %v675_v17 = vadd.f32 %v5821_v11, %v556_v4  ;;  %1373 = vst [vmem:[#allocation2 + $0x238] sm:$0xff] %v1294_v15  ;;  %1375 = vst [vmem:[#allocation2 + $0x248] sm:$0xff] %v1062_v16  ;;  %v558_v20 = vmul.f32 %v5805_v60, %v439_v5  ;;  %v559_v21 = vmul.f32 %v5805_v60, %v440_v6 }
  0x79   : > { %v786_v19 = vmax.f32 %v674_v12, 0.0  ;;  %v560_v22 = vmul.f32 %v5805_v60, %v441_v7  ;;  %v676_v24 = vadd.f32 %v5821_v11, %v557_v18  ;;  %v561_v25 = vmul.f32 %v5805_v60, %v442_v13 }
  0x7a   : > { %v787_v23 = vmax.f32 %v675_v17, 0.0  ;;  %v562_v26 = vmul.f32 %v5805_v60, %v443_v14  ;;  %v677_v28 = vadd.f32 %v5821_v11, %v558_v20  ;;  %v678_v29 = vadd.f32 %v5821_v11, %v559_v21 }
  0x7b   : > { %v1063_v27 = vrot.slane %v786_v19, 7  ;;  %v679_v30 = vadd.f32 %v5821_v11, %v560_v22  ;;  %v788_v32 = vmax.f32 %v676_v24, 0.0  ;;  %v680_v33 = vadd.f32 %v5821_v11, %v561_v25 }
  0x7c   : > { %v1065_v31 = vrot.slane %v787_v23, 7  ;;  %v681_v34 = vadd.f32 %v5821_v11, %v562_v26  ;;  %v789_v36 = vmax.f32 %v677_v28, 0.0  ;;  %v790_v37 = vmax.f32 %v678_v29, 0.0  ;;  %v452_v29 = vld [vmem:[%s5492_s28 + $0x2b0] sm:$0xff] }
  0x7d   : > { %v1064_v35 = vsel %vm940_vm0, %v1061_v3, %v1063_v27  ;;  %v791_v38 = vmax.f32 %v679_v30, 0.0  ;;  %v1067_v41 = vrot.slane %v788_v32, 7  ;;  %v792_v42 = vmax.f32 %v680_v33, 0.0 }
  0x7e   : > { %1376 = vst [vmem:[#allocation2 + $0x250] sm:$0xff] %v1064_v35  ;;  %v1066_v40 = vsel %vm940_vm0, %v1063_v27, %v1065_v31  ;;  %v793_v43 = vmax.f32 %v681_v34, 0.0  ;;  %v1068_v46 = vrot.slane %v789_v36, 7  ;;  %v1070_v47 = vrot.slane %v790_v37, 7  ;;  %v453_v34 = vld [vmem:[%s5492_s28 + $0x2b8] sm:$0xf] }
  0x7f   : > { %v1295_v45 = vsel %vm1277_vm1, %v1066_v40, 0.0  ;;  %v1072_v48 = vrot.slane %v791_v38, 7  ;;  %v1267_v49 = vsel %vm940_vm0, 0.0, %v1067_v41  ;;  %v1074_v50 = vrot.slane %v792_v42, 7  ;;  %v455_v40 = vld [vmem:[%s5492_s28 + $0x2c8] sm:$0xff] }
  0x80   : > { %1377 = vst [vmem:[#allocation2 + $0x258] sm:$0xff] %v1295_v45  ;;  %v1075_v51 = vrot.slane %v793_v43, 7  ;;  %v563_v1 = vmul.f32 %v5805_v60, %v444_v39  ;;  %1378 = vst [vmem:[#allocation2 + $0x260] sm:$0xff] %v1267_v49  ;;  %v1069_v55 = vsel %vm940_vm0, %v1067_v41, %v1068_v46  ;;  %v1071_v56 = vsel %vm940_vm0, %v1068_v46, %v1070_v47  ;;  %v454_v39 = vld [vmem:[%s5492_s28 + $0x2c0] sm:$0xff]  ;;  %v456_v45 = vld [vmem:[%s5492_s28 + $0x2d0] sm:$0xff] }
  0x81   : > { %v1073_v57 = vsel %vm940_vm0, %v1070_v47, %v1072_v48  ;;  %v564_v58 = vmul.f32 %v5805_v60, %v445_v44  ;;  %1379 = vst [vmem:[#allocation2 + $0x268] sm:$0xff] %v1069_v55  ;;  %1380 = vst [vmem:[#allocation2 + $0x270] sm:$0xff] %v1071_v56  ;;  %v1268_v63 = vsel %vm940_vm0, 0.0, %v1074_v50  ;;  %v565_v5 = vmul.f32 %v5805_v60, %v446_v52  ;;  %v457_v46 = vld [vmem:[%s5492_s28 + $0x2d8] sm:$0xf]  ;;  %v458_v47 = vld [vmem:[%s5492_s28 + $0x2e0] sm:$0xff] }
  0x82   : > { %v1296_v62 = vsel %vm1277_vm1, %v1073_v57, 0.0  ;;  %v1076_v0 = vsel %vm940_vm0, %v1074_v50, %v1075_v51  ;;  %v682_v3 = vadd.f32 %v5821_v11, %v563_v1  ;;  %1382 = vst [vmem:[#allocation2 + $0x280] sm:$0xff] %v1268_v63  ;;  %v566_v6 = vmul.f32 %v5805_v60, %v447_v53  ;;  %v459_v1 = vld [vmem:[%s5492_s28 + $0x2e8] sm:$0xff] }
  0x83   : > { %1381 = vst [vmem:[#allocation2 + $0x278] sm:$0xff] %v1296_v62  ;;  %1383 = vst [vmem:[#allocation2 + $0x288] sm:$0xff] %v1076_v0  ;;  %v683_v4 = vadd.f32 %v5821_v11, %v564_v58  ;;  %v567_v7 = vmul.f32 %v5805_v60, %v448_v54  ;;  %v568_v9 = vmul.f32 %v5805_v60, %v449_v2 }
  0x84   : > { %v794_v8 = vmax.f32 %v682_v3, 0.0  ;;  %v569_v10 = vmul.f32 %v5805_v60, %v450_v59  ;;  %v570_v12 = vmul.f32 %v5805_v60, %v451_v61  ;;  %v684_v14 = vadd.f32 %v5821_v11, %v565_v5 }
  0x85   : > { %v795_v13 = vmax.f32 %v683_v4, 0.0  ;;  %v685_v15 = vadd.f32 %v5821_v11, %v566_v6  ;;  %v686_v16 = vadd.f32 %v5821_v11, %v567_v7  ;;  %v687_v18 = vadd.f32 %v5821_v11, %v568_v9 }
  0x86   : > { %v1077_v17 = vrot.slane %v794_v8, 7  ;;  %v688_v19 = vadd.f32 %v5821_v11, %v569_v10  ;;  %v689_v20 = vadd.f32 %v5821_v11, %v570_v12  ;;  %v796_v22 = vmax.f32 %v684_v14, 0.0 }
  0x87   : > { %v1079_v21 = vrot.slane %v795_v13, 7  ;;  %v797_v23 = vmax.f32 %v685_v15, 0.0  ;;  %v798_v24 = vmax.f32 %v686_v16, 0.0  ;;  %v799_v26 = vmax.f32 %v687_v18, 0.0 }
  0x88   : > { %v1078_v25 = vsel %vm940_vm0, %v1075_v51, %v1077_v17  ;;  %v800_v27 = vmax.f32 %v688_v19, 0.0  ;;  %v801_v28 = vmax.f32 %v689_v20, 0.0  ;;  %v1081_v31 = vrot.slane %v796_v22, 7  ;;  %v460_v19 = vld [vmem:[%s5492_s28 + $0x2f0] sm:$0xff]  ;;  %v461_v20 = vld [vmem:[%s5492_s28 + $0x2f8] sm:$0xf] }
  0x89   : > { %1384 = vst [vmem:[#allocation2 + $0x290] sm:$0xff] %v1078_v25  ;;  %v1080_v30 = vsel %vm940_vm0, %v1077_v17, %v1079_v21  ;;  %v1082_v32 = vrot.slane %v797_v23, 7  ;;  %v1084_v33 = vrot.slane %v798_v24, 7  ;;  %v1086_v36 = vrot.slane %v799_v26, 7  ;;  %v462_v25 = vld [vmem:[%s5492_s28 + $0x300] sm:$0xff]  ;;  %v463_v26 = vld [vmem:[%s5492_s28 + $0x308] sm:$0xff] }
  0x8a   : > { %v1297_v35 = vsel %vm1277_vm1, %v1080_v30, 0.0  ;;  %v1088_v37 = vrot.slane %v800_v27, 7  ;;  %v1089_v38 = vrot.slane %v801_v28, 7  ;;  %v1269_v41 = vsel %vm940_vm0, 0.0, %v1081_v31 }
  0x8b   : > { %1385 = vst [vmem:[#allocation2 + $0x298] sm:$0xff] %v1297_v35  ;;  %v1083_v42 = vsel %vm940_vm0, %v1081_v31, %v1082_v32  ;;  %v1085_v43 = vsel %vm940_vm0, %v1082_v32, %v1084_v33  ;;  %v571_v44 = vmul.f32 %v5805_v60, %v452_v29  ;;  %1386 = vst [vmem:[#allocation2 + $0x2a0] sm:$0xff] %v1269_v41  ;;  %v464_v31 = vld [vmem:[%s5492_s28 + $0x310] sm:$0xff]  ;;  %v465_v32 = vld [vmem:[%s5492_s28 + $0x318] sm:$0xf] }
  0x8c   : > { %1387 = vst [vmem:[#allocation2 + $0x2a8] sm:$0xff] %v1083_v42  ;;  %1388 = vst [vmem:[#allocation2 + $0x2b0] sm:$0xff] %v1085_v43  ;;  %v1087_v48 = vsel %vm940_vm0, %v1084_v33, %v1086_v36  ;;  %v1270_v49 = vsel %vm940_vm0, 0.0, %v1088_v37  ;;  %v1090_v50 = vsel %vm940_vm0, %v1088_v37, %v1089_v38  ;;  %v572_v51 = vmul.f32 %v5805_v60, %v453_v34  ;;  %v466_v37 = vld [vmem:[%s5492_s28 + $0x320] sm:$0xff] }
  0x8d   : > { %v1298_v52 = vsel %vm1277_vm1, %v1087_v48, 0.0  ;;  %1390 = vst [vmem:[#allocation2 + $0x2c0] sm:$0xff] %v1270_v49  ;;  %1391 = vst [vmem:[#allocation2 + $0x2c8] sm:$0xff] %v1090_v50  ;;  %v690_v53 = vadd.f32 %v5821_v11, %v571_v44  ;;  %v573_v54 = vmul.f32 %v5805_v60, %v454_v39  ;;  %v574_v55 = vmul.f32 %v5805_v60, %v455_v40 }
  0x8e   : > { %1389 = vst [vmem:[#allocation2 + $0x2b8] sm:$0xff] %v1298_v52  ;;  %v691_v56 = vadd.f32 %v5821_v11, %v572_v51  ;;  %v575_v57 = vmul.f32 %v5805_v60, %v456_v45  ;;  %v576_v58 = vmul.f32 %v5805_v60, %v457_v46  ;;  %v577_v2 = vmul.f32 %v5805_v60, %v458_v47 }
  0x8f   : > { %v802_v59 = vmax.f32 %v690_v53, 0.0  ;;  %v692_v61 = vadd.f32 %v5821_v11, %v573_v54  ;;  %v693_v62 = vadd.f32 %v5821_v11, %v574_v55  ;;  %v578_v63 = vmul.f32 %v5805_v60, %v459_v1 }
  0x90   : > { %v803_v0 = vmax.f32 %v691_v56, 0.0  ;;  %v694_v3 = vadd.f32 %v5821_v11, %v575_v57  ;;  %v695_v4 = vadd.f32 %v5821_v11, %v576_v58  ;;  %v696_v5 = vadd.f32 %v5821_v11, %v577_v2 }
  0x91   : > { %v1091_v6 = vrot.slane %v802_v59, 7  ;;  %v804_v7 = vmax.f32 %v692_v61, 0.0  ;;  %v805_v8 = vmax.f32 %v693_v62, 0.0  ;;  %v697_v9 = vadd.f32 %v5821_v11, %v578_v63 }
  0x92   : > { %v1093_v10 = vrot.slane %v803_v0, 7  ;;  %v806_v12 = vmax.f32 %v694_v3, 0.0  ;;  %v807_v13 = vmax.f32 %v695_v4, 0.0  ;;  %v808_v14 = vmax.f32 %v696_v5, 0.0 }
  0x93   : > { %v1092_v15 = vsel %vm940_vm0, %v1089_v38, %v1091_v6  ;;  %v1095_v16 = vrot.slane %v804_v7, 7  ;;  %v1096_v17 = vrot.slane %v805_v8, 7  ;;  %v809_v18 = vmax.f32 %v697_v9, 0.0  ;;  %v467_v38 = vld [vmem:[%s5492_s28 + $0x328] sm:$0xff]  ;;  %v468_v8 = vld [vmem:[%s5492_s28 + $0x330] sm:$0xff] }
  0x94   : > { %1392 = vst [vmem:[#allocation2 + $0x2d0] sm:$0xff] %v1092_v15  ;;  %v1094_v21 = vsel %vm940_vm0, %v1091_v6, %v1093_v10  ;;  %v1098_v22 = vrot.slane %v806_v12, 7  ;;  %v1100_v23 = vrot.slane %v807_v13, 7  ;;  %v1102_v24 = vrot.slane %v808_v14, 7  ;;  %v469_v9 = vld [vmem:[%s5492_s28 + $0x338] sm:$0xf] }
  0x95   : > { %v1299_v27 = vsel %vm1277_vm1, %v1094_v21, 0.0  ;;  %v1271_v28 = vsel %vm940_vm0, 0.0, %v1095_v16  ;;  %v1097_v29 = vsel %vm940_vm0, %v1095_v16, %v1096_v17  ;;  %v1103_v30 = vrot.slane %v809_v18, 7  ;;  %v470_v15 = vld [vmem:[%s5492_s28 + $0x340] sm:$0xff]  ;;  %v471_v16 = vld [vmem:[%s5492_s28 + $0x348] sm:$0xff] }
  0x96   : > { %1393 = vst [vmem:[#allocation2 + $0x2d8] sm:$0xff] %v1299_v27  ;;  %1394 = vst [vmem:[#allocation2 + $0x2e0] sm:$0xff] %v1271_v28  ;;  %v1099_v33 = vsel %vm940_vm0, %v1096_v17, %v1098_v22  ;;  %v1101_v34 = vsel %vm940_vm0, %v1098_v22, %v1100_v23  ;;  %v1272_v35 = vsel %vm940_vm0, 0.0, %v1102_v24  ;;  %v579_v36 = vmul.f32 %v5805_v60, %v460_v19  ;;  %v472_v17 = vld [vmem:[%s5492_s28 + $0x350] sm:$0xff]  ;;  %v473_v22 = vld [vmem:[%s5492_s28 + $0x358] sm:$0xf] }
  0x97   : > { %1395 = vst [vmem:[#allocation2 + $0x2e8] sm:$0xff] %v1097_v29  ;;  %1396 = vst [vmem:[#allocation2 + $0x2f0] sm:$0xff] %v1099_v33  ;;  %v1300_v39 = vsel %vm1277_vm1, %v1101_v34, 0.0  ;;  %v1104_v40 = vsel %vm940_vm0, %v1102_v24, %v1103_v30  ;;  %v580_v41 = vmul.f32 %v5805_v60, %v461_v20  ;;  %v581_v42 = vmul.f32 %v5805_v60, %v462_v25  ;;  %v474_v23 = vld [vmem:[%s5492_s28 + $0x360] sm:$0xff]  ;;  %v475_v24 = vld [vmem:[%s5492_s28 + $0x368] sm:$0xff] }
  0x98   : > { %1398 = vst [vmem:[#allocation2 + $0x300] sm:$0xff] %v1272_v35  ;;  %1397 = vst [vmem:[#allocation2 + $0x2f8] sm:$0xff] %v1300_v39  ;;  %v698_v43 = vadd.f32 %v5821_v11, %v579_v36  ;;  %v582_v44 = vmul.f32 %v5805_v60, %v463_v26  ;;  %v583_v45 = vmul.f32 %v5805_v60, %v464_v31 }
  0x99   : > { %1399 = vst [vmem:[#allocation2 + $0x308] sm:$0xff] %v1104_v40  ;;  %v584_v46 = vmul.f32 %v5805_v60, %v465_v32  ;;  %v699_v47 = vadd.f32 %v5821_v11, %v580_v41  ;;  %v700_v48 = vadd.f32 %v5821_v11, %v581_v42  ;;  %v585_v49 = vmul.f32 %v5805_v60, %v466_v37 }
  0x9a   : > { %v586_v50 = vmul.f32 %v5805_v60, %v467_v38  ;;  %v810_v51 = vmax.f32 %v698_v43, 0.0  ;;  %v701_v1 = vadd.f32 %v5821_v11, %v582_v44  ;;  %v702_v52 = vadd.f32 %v5821_v11, %v583_v45 }
  0x9b   : > { %v703_v53 = vadd.f32 %v5821_v11, %v584_v46  ;;  %v811_v54 = vmax.f32 %v699_v47, 0.0  ;;  %v812_v55 = vmax.f32 %v700_v48, 0.0  ;;  %v704_v56 = vadd.f32 %v5821_v11, %v585_v49 }
  0x9c   : > { %v705_v57 = vadd.f32 %v5821_v11, %v586_v50  ;;  %v1105_v58 = vrot.slane %v810_v51, 7  ;;  %v813_v2 = vmax.f32 %v701_v1, 0.0  ;;  %v814_v59 = vmax.f32 %v702_v52, 0.0 }
  0x9d   : > { %v815_v61 = vmax.f32 %v703_v53, 0.0  ;;  %v1107_v62 = vrot.slane %v811_v54, 7  ;;  %v1109_v63 = vrot.slane %v812_v55, 7  ;;  %v816_v0 = vmax.f32 %v704_v56, 0.0 }
  0x9e   : > { %v817_v3 = vmax.f32 %v705_v57, 0.0  ;;  %v1106_v4 = vsel %vm940_vm0, %v1103_v30, %v1105_v58  ;;  %v1110_v5 = vrot.slane %v813_v2, 7  ;;  %v1112_v6 = vrot.slane %v814_v59, 7  ;;  %v476_v59 = vld [vmem:[%s5492_s28 + $0x370] sm:$0xff] }
  0x9f   : > { %v1114_v7 = vrot.slane %v815_v61, 7  ;;  %1400 = vst [vmem:[#allocation2 + $0x310] sm:$0xff] %v1106_v4  ;;  %v1108_v10 = vsel %vm940_vm0, %v1105_v58, %v1107_v62  ;;  %v1273_v12 = vsel %vm940_vm0, 0.0, %v1109_v63  ;;  %v1116_v13 = vrot.slane %v816_v0, 7  ;;  %v477_v61 = vld [vmem:[%s5492_s28 + $0x378] sm:$0xf] }
  0xa0   : > { %v1117_v14 = vrot.slane %v817_v3, 7  ;;  %v1301_v18 = vsel %vm1277_vm1, %v1108_v10, 0.0  ;;  %1402 = vst [vmem:[#allocation2 + $0x320] sm:$0xff] %v1273_v12  ;;  %v1111_v19 = vsel %vm940_vm0, %v1109_v63, %v1110_v5  ;;  %v1113_v20 = vsel %vm940_vm0, %v1110_v5, %v1112_v6 }
  0xa1   : > { %v1115_v21 = vsel %vm940_vm0, %v1112_v6, %v1114_v7  ;;  %1401 = vst [vmem:[#allocation2 + $0x318] sm:$0xff] %v1301_v18  ;;  %1403 = vst [vmem:[#allocation2 + $0x328] sm:$0xff] %v1111_v19  ;;  %v1274_v26 = vsel %vm940_vm0, 0.0, %v1116_v13  ;;  %v587_v28 = vmul.f32 %v5805_v60, %v468_v8  ;;  %v588_v29 = vmul.f32 %v5805_v60, %v469_v9 }
  0xa2   : > { %1404 = vst [vmem:[#allocation2 + $0x330] sm:$0xff] %v1113_v20  ;;  %v1302_v25 = vsel %vm1277_vm1, %v1115_v21, 0.0  ;;  %v1118_v27 = vsel %vm940_vm0, %v1116_v13, %v1117_v14  ;;  %1406 = vst [vmem:[#allocation2 + $0x340] sm:$0xff] %v1274_v26  ;;  %v589_v30 = vmul.f32 %v5805_v60, %v470_v15  ;;  %v590_v31 = vmul.f32 %v5805_v60, %v471_v16 }
  0xa3   : > { %1405 = vst [vmem:[#allocation2 + $0x338] sm:$0xff] %v1302_v25  ;;  %1407 = vst [vmem:[#allocation2 + $0x348] sm:$0xff] %v1118_v27  ;;  %v591_v32 = vmul.f32 %v5805_v60, %v472_v17  ;;  %v706_v33 = vadd.f32 %v5821_v11, %v587_v28  ;;  %v592_v34 = vmul.f32 %v5805_v60, %v473_v22 }
  0xa4   : > { %v593_v35 = vmul.f32 %v5805_v60, %v474_v23  ;;  %v594_v36 = vmul.f32 %v5805_v60, %v475_v24  ;;  %v707_v37 = vadd.f32 %v5821_v11, %v588_v29  ;;  %v708_v38 = vadd.f32 %v5821_v11, %v589_v30 }
  0xa5   : > { %v709_v39 = vadd.f32 %v5821_v11, %v590_v31  ;;  %v710_v40 = vadd.f32 %v5821_v11, %v591_v32  ;;  %v818_v41 = vmax.f32 %v706_v33, 0.0  ;;  %v711_v42 = vadd.f32 %v5821_v11, %v592_v34 }
  0xa6   : > { %v712_v43 = vadd.f32 %v5821_v11, %v593_v35  ;;  %v713_v44 = vadd.f32 %v5821_v11, %v594_v36  ;;  %v819_v45 = vmax.f32 %v707_v37, 0.0  ;;  %v820_v46 = vmax.f32 %v708_v38, 0.0 }
  0xa7   : > { %v821_v47 = vmax.f32 %v709_v39, 0.0  ;;  %v822_v48 = vmax.f32 %v710_v40, 0.0  ;;  %v1119_v49 = vrot.slane %v818_v41, 7  ;;  %v823_v50 = vmax.f32 %v711_v42, 0.0 }
  0xa8   : > { %v824_v51 = vmax.f32 %v712_v43, 0.0  ;;  %v825_v1 = vmax.f32 %v713_v44, 0.0  ;;  %v1121_v52 = vrot.slane %v819_v45, 7  ;;  %v1123_v53 = vrot.slane %v820_v46, 7 }
  0xa9   : > { %v1124_v54 = vrot.slane %v821_v47, 7  ;;  %v1126_v55 = vrot.slane %v822_v48, 7  ;;  %v1120_v56 = vsel %vm940_vm0, %v1117_v14, %v1119_v49  ;;  %v1128_v57 = vrot.slane %v823_v50, 7 }
  0xaa   : > { %v1130_v58 = vrot.slane %v824_v51, 7  ;;  %v1131_v2 = vrot.slane %v825_v1, 7  ;;  %1408 = vst [vmem:[#allocation2 + $0x350] sm:$0xff] %v1120_v56  ;;  %v1122_v62 = vsel %vm940_vm0, %v1119_v49, %v1121_v52  ;;  %v1275_v63 = vsel %vm940_vm0, 0.0, %v1123_v53 }
  0xab   : > { %v1125_v0 = vsel %vm940_vm0, %v1123_v53, %v1124_v54  ;;  %v1127_v3 = vsel %vm940_vm0, %v1124_v54, %v1126_v55  ;;  %v1303_v4 = vsel %vm1277_vm1, %v1122_v62, 0.0  ;;  %1410 = vst [vmem:[#allocation2 + $0x360] sm:$0xff] %v1275_v63  ;;  %v1129_v5 = vsel %vm940_vm0, %v1126_v55, %v1128_v57 }
  0xac   : > { %1411 = vst [vmem:[#allocation2 + $0x368] sm:$0xff] %v1125_v0  ;;  %1412 = vst [vmem:[#allocation2 + $0x370] sm:$0xff] %v1127_v3  ;;  %v1276_v6 = vsel %vm940_vm0, 0.0, %v1130_v58  ;;  %v1132_v7 = vsel %vm940_vm0, %v1130_v58, %v1131_v2  ;;  %v1304_v8 = vsel %vm1277_vm1, %v1129_v5, 0.0  ;;  %v595_v9 = vmul.f32 %v5805_v60, %v476_v59 }
  0xad   : > { %1409 = vst [vmem:[#allocation2 + $0x358] sm:$0xff] %v1303_v4  ;;  %1414 = vst [vmem:[#allocation2 + $0x380] sm:$0xff] %v1276_v6  ;;  %v596_v10 = vmul.f32 %v5805_v60, %v477_v61 }
  0xae   : > { %1415 = vst [vmem:[#allocation2 + $0x388] sm:$0xff] %v1132_v7  ;;  %1413 = vst [vmem:[#allocation2 + $0x378] sm:$0xff] %v1304_v8  ;;  %v714_v12 = vadd.f32 %v5821_v11, %v595_v9 }
  0xaf   : > { %v715_v13 = vadd.f32 %v5821_v11, %v596_v10 }
  0xb0   : > { %v826_v14 = vmax.f32 %v714_v12, 0.0 }
  0xb1   : > { %v827_v15 = vmax.f32 %v715_v13, 0.0 }
  0xb2   : > { %v1133_v16 = vrot.slane %v826_v14, 7 }
  0xb3   : > { %v1135_v17 = vrot.slane %v827_v15, 7 }
  0xb4   : > { %v1134_v18 = vsel %vm940_vm0, %v1131_v2, %v1133_v16 }
  0xb5   : > { %v1136_v19 = vsel %vm940_vm0, %v1133_v16, %v1135_v17  ;;  %1416 = vst [vmem:[#allocation2 + $0x390] sm:$0xff] %v1134_v18 }
  0xb6   : > { %v1305_v20 = vsel %vm1277_vm1, %v1136_v19, 0.0 }
  0xb7   : > { %1417 = vst [vmem:[#allocation2 + $0x398] sm:$0xff] %v1305_v20 }
  0xb8 PF: > { %v5318_v60 = vld [vmem:[%s7111_s3 + $0x78] sm:$0xff]   ;;  %v5319_v11 = vld [vmem:[%s7111_s3 + $0x70] sm:$0xff]   ;;  %s4271_s25 = sshll.u32 %s5412_s15, 8  ;;  %v5320_v21 = vld [vmem:[%s7111_s3 + $0x68] sm:$0xff]  }
  0xb9   : > { %4826 = vmatprep.subr.bf16.mxu0 %v5318_v60  ;;  %5258 = vmatprep.subr.bf16.mxu1 %v5318_v60  ;;  %v5321_v22 = vld [vmem:[%s7111_s3 + $0x60] sm:$0xff]   ;;  %s6009_s30 = scalar_lea.vmem [#allocation2], %s4271_s25  ;;  %v5322_v29 = vld [vmem:[%s7111_s3 + $0x58] sm:$0xff]   ;;  %v5323_v30 = vld [vmem:[%s7111_s3 + $0x50] sm:$0xff]  }
  0xba   : > { %4827 = vmatpush3.bf16.msra.mxu0 %v5318_v60  ;;  %5266 = vmatpush3.bf16.msra.mxu1 %v5318_v60  ;;  %v5324_v31 = vld [vmem:[%s7111_s3 + $0x48] sm:$0xff]   ;;  %v5325_v32 = vld [vmem:[%s7111_s3 + $0x40] sm:$0xff]   ;;  %v5326_v37 = vld [vmem:[%s7111_s3 + $0x38] sm:$0xff]  }
  0xbb   : > { %4828 = vmatprep.subr.bf16.mxu0 %v5319_v11  ;;  %5259 = vmatprep.subr.bf16.mxu1 %v5319_v11  ;;  %v5327_v38 = vld [vmem:[%s7111_s3 + $0xb8] sm:$0xff]   ;;  %v5328_v45 = vld [vmem:[%s7111_s3 + $0x30] sm:$0xff]   ;;  %v5330_v52 = vld [vmem:[%s7111_s3 + $0x28] sm:$0xff]  }
  0xbc   : > { %v5329_v46 = vld [vmem:[%s7111_s3 + $0xb0] sm:$0xff]   ;;  %v5331_v53 = vld [vmem:[%s7111_s3 + $0xa8] sm:$0xff]   ;;  %v5332_v59 = vld [vmem:[%s7111_s3 + $0x20] sm:$0xff]  }
  0xbd   : > { %v5333_v61 = vld [vmem:[%s7111_s3 + $0xa0] sm:$0xff]   ;;  %v5334_v6 = vld [vmem:[%s7111_s3 + $0x18] sm:$0xff]   ;;  %v5336_v15 = vld [vmem:[%s7111_s3 + $0x10] sm:$0xff]  }
  0xbe   : > { %4829 = vmatpush3.bf16.msra.mxu0 %v5319_v11  ;;  %5267 = vmatpush3.bf16.msra.mxu1 %v5319_v11  ;;  %v4273_v23 = vld [vmem:[%s6009_s30 + $0x1] sm:$0xff]  ;;  %v4274_v24 = vld [vmem:[%s6009_s30 + $0x9] sm:$0xff]  ;;  %v4275_v33 = vld [vmem:[%s6009_s30 + $0x11] sm:$0xff] }
  0xbf   : > { %4830 = vmatprep.subr.bf16.mxu0 %v5320_v21  ;;  %5260 = vmatprep.subr.bf16.mxu1 %v5320_v21  ;;  %v4289_v25 = vld [vmem:[%s6009_s30 + $0x81] sm:$0xff]  ;;  %v1518_v26 = vpack.c.bf16 %v4274_v24, %v4273_v23  ;;  %v4290_v27 = vld [vmem:[%s6009_s30 + $0x89] sm:$0xff]  ;;  %v4276_v34 = vld [vmem:[%s6009_s30 + $0x19] sm:$0xff] }
  0xc0   : > { %v6015_v28 = vpack.c.bf16 %v4290_v27, %v4289_v25  ;;  %v4291_v35 = vld [vmem:[%s6009_s30 + $0x91] sm:$0xff]  ;;  %v4292_v36 = vld [vmem:[%s6009_s30 + $0x99] sm:$0xff]  ;;  %v4277_v39 = vld [vmem:[%s6009_s30 + $0x21] sm:$0xff]  ;;  %v1519_v41 = vpack.c.bf16 %v4276_v34, %v4275_v33 }
  0xc1   : > { %4842 = vmatprep.mubr.bf16.mxu0 %v1518_v26  ;;  %v4278_v40 = vld [vmem:[%s6009_s30 + $0x29] sm:$0xff]  ;;  %v6042_v42 = vpack.c.bf16 %v4292_v36, %v4291_v35  ;;  %v4293_v43 = vld [vmem:[%s6009_s30 + $0xa1] sm:$0xff]  ;;  %v4279_v49 = vld [vmem:[%s6009_s30 + $0x31] sm:$0xff] }
  0xc2   : > { %4831 = vmatpush3.bf16.msra.mxu0 %v5320_v21  ;;  %5268 = vmatpush3.bf16.msra.mxu1 %v5320_v21  ;;  %v4294_v44 = vld [vmem:[%s6009_s30 + $0xa9] sm:$0xff]  ;;  %v6052_v47 = vpack.c.bf16 %v4278_v40, %v4277_v39  ;;  %v4280_v50 = vld [vmem:[%s6009_s30 + $0x39] sm:$0xff]  ;;  %v4295_v51 = vld [vmem:[%s6009_s30 + $0xb1] sm:$0xff] }
  0xc3   : > { %4832 = vmatprep.subr.bf16.mxu0 %v5321_v22  ;;  %5261 = vmatprep.subr.bf16.mxu1 %v5321_v22  ;;  %v6054_v48 = vpack.c.bf16 %v4294_v44, %v4293_v43  ;;  %v4296_v1 = vld [vmem:[%s6009_s30 + $0xb9] sm:$0xff]  ;;  %v4281_v54 = vld [vmem:[%s6009_s30 + $0x41] sm:$0xff]  ;;  %v4282_v55 = vld [vmem:[%s6009_s30 + $0x49] sm:$0xff]  ;;  %v6072_v57 = vpack.c.bf16 %v4280_v50, %v4279_v49 }
  0xc4   : > { %4858 = vmatprep.mubr.bf16.mxu1 %v6015_v28  ;;  %v4297_v56 = vld [vmem:[%s6009_s30 + $0xc1] sm:$0xff]  ;;  %v6074_v58 = vpack.c.bf16 %v4296_v1, %v4295_v51  ;;  %v4298_v2 = vld [vmem:[%s6009_s30 + $0xc9] sm:$0xff]  ;;  %v6083_v62 = vpack.c.bf16 %v4282_v55, %v4281_v54  ;;  %v4283_v0 = vld [vmem:[%s6009_s30 + $0x51] sm:$0xff] }
  0xc5   : > { %v6085_v63 = vpack.c.bf16 %v4298_v2, %v4297_v56  ;;  %v4284_v3 = vld [vmem:[%s6009_s30 + $0x59] sm:$0xff]  ;;  %v4299_v4 = vld [vmem:[%s6009_s30 + $0xd1] sm:$0xff]  ;;  %v4285_v8 = vld [vmem:[%s6009_s30 + $0x61] sm:$0xff] }
  0xc6   : > { %4833 = vmatpush3.bf16.msra.mxu0 %v5321_v22  ;;  %5269 = vmatpush3.bf16.msra.mxu1 %v5321_v22  ;;  %v4300_v5 = vld [vmem:[%s6009_s30 + $0xd9] sm:$0xff]  ;;  %v4286_v9 = vld [vmem:[%s6009_s30 + $0x69] sm:$0xff]  ;;  %v6103_v10 = vpack.c.bf16 %v4284_v3, %v4283_v0  ;;  %v4301_v13 = vld [vmem:[%s6009_s30 + $0xe1] sm:$0xff] }
  0xc7   : > { %4834 = vmatprep.subr.bf16.mxu0 %v5322_v29  ;;  %5262 = vmatprep.subr.bf16.mxu1 %v5322_v29  ;;  %v5335_v7 = vld [vmem:[%s7111_s3 + $0x98] sm:$0xff]   ;;  %v6105_v12 = vpack.c.bf16 %v4300_v5, %v4299_v4  ;;  %v4302_v14 = vld [vmem:[%s6009_s30 + $0xe9] sm:$0xff]  ;;  %v6115_v17 = vpack.c.bf16 %v4286_v9, %v4285_v8  ;;  %v1420_v23 = vld [vmem:[%s6009_s30] sm:$0xff] }
  0xc8   : > { %v5337_v16 = vld [vmem:[%s7111_s3 + $0x90] sm:$0xff]   ;;  %v6117_v18 = vpack.c.bf16 %v4302_v14, %v4301_v13  ;;  %v4288_v20 = vld [vmem:[%s6009_s30 + $0x79] sm:$0xff]  ;;  %v5338_v21 = vld [vmem:[%s7111_s3 + $0x8] sm:$0xff]  }
  0xc9   : > { %v4287_v19 = vld [vmem:[%s6009_s30 + $0x71] sm:$0xff]  ;;  %v4304_v11 = vld [vmem:[%s6009_s30 + $0xf9] sm:$0xff]  ;;  %v5339_v22 = vld [vmem:[%s7111_s3 + $0x88] sm:$0xff]  }
  0xca   : > { %4835 = vmatpush3.bf16.msra.mxu0 %v5322_v29  ;;  %5270 = vmatpush3.bf16.msra.mxu1 %v5322_v29  ;;  %v4303_v60 = vld [vmem:[%s6009_s30 + $0xf1] sm:$0xff]  ;;  %v6134_v24 = vpack.c.bf16 %v4288_v20, %v4287_v19  ;;  %v1421_v26 = vld [vmem:[%s6009_s30 + $0x8] sm:$0xff]  ;;  %v1424_v40 = vld [vmem:[%s6009_s30 + $0x20] sm:$0xff] }
  0xcb   : > { %4836 = vmatprep.subr.bf16.mxu0 %v5323_v30  ;;  %5263 = vmatprep.subr.bf16.mxu1 %v5323_v30  ;;  %v6136_v25 = vpack.c.bf16 %v4304_v11, %v4303_v60  ;;  %v4322_v27 = vld [vmem:[%s6009_s30 + $0x2] sm:$0xff]  ;;  %v4323_v29 = vld [vmem:[%s6009_s30 + $0xa] sm:$0xff]  ;;  %v1423_v35 = vld [vmem:[%s6009_s30 + $0x18] sm:$0xff] }
  0xcc   : > { %v2002_v33 = vpack.c.bf16 %v4323_v29, %v4322_v27  ;;  %v1422_v34 = vld [vmem:[%s6009_s30 + $0x10] sm:$0xff]  ;;  %v5343_v39 = vld [vmem:[%s7111_s3 + $0x138] sm:$0xff]   ;;  %v4326_v43 = vld [vmem:[%s6009_s30 + $0x22] sm:$0xff] }
  0xcd   : > { %v4324_v36 = vld [vmem:[%s6009_s30 + $0x12] sm:$0xff]  ;;  %v4327_v44 = vld [vmem:[%s6009_s30 + $0x2a] sm:$0xff]  ;;  %v4329_v55 = vld [vmem:[%s6009_s30 + $0x3a] sm:$0xff] }
  0xce   : > { %4837 = vmatpush3.bf16.msra.mxu0 %v5323_v30  ;;  %5271 = vmatpush3.bf16.msra.mxu1 %v5323_v30  ;;  %v5340_v30 = vld [vmem:[%s7111_s3] sm:$0xff]   ;;  %v6165_v50 = vpack.c.bf16 %v4327_v44, %v4326_v43  ;;  %v5344_v51 = vld [vmem:[%s7111_s3 + $0xf0] sm:$0xff]   ;;  %v1429_v2 = vld [vmem:[%s6009_s30 + $0x48] sm:$0xff] }
  0xcf   : > { %4838 = vmatprep.subr.bf16.mxu0 %v5324_v31  ;;  %5264 = vmatprep.subr.bf16.mxu1 %v5324_v31  ;;  %v1426_v1 = vld [vmem:[%s6009_s30 + $0x30] sm:$0xff]  ;;  %v1428_v56 = vld [vmem:[%s6009_s30 + $0x40] sm:$0xff]  ;;  %v5346_v0 = vld [vmem:[%s7111_s3 + $0xe8] sm:$0xff]  }
  0xd0   : > { %v5345_v54 = vld [vmem:[%s7111_s3 + $0x130] sm:$0xff]   ;;  %v5347_v3 = vld [vmem:[%s7111_s3 + $0x128] sm:$0xff]   ;;  %v5348_v8 = vld [vmem:[%s7111_s3 + $0xe0] sm:$0xff]  }
  0xd1   : > { %v1430_v9 = vld [vmem:[%s6009_s30 + $0x50] sm:$0xff]  ;;  %v1431_v13 = vld [vmem:[%s6009_s30 + $0x58] sm:$0xff]  ;;  %v1432_v19 = vld [vmem:[%s6009_s30 + $0x60] sm:$0xff] }
  0xd2   : > { %4839 = vmatpush3.bf16.msra.mxu0 %v5324_v31  ;;  %5272 = vmatpush3.bf16.msra.mxu1 %v5324_v31  ;;  %v5341_v31 = vld [vmem:[%s7111_s3 + $0x80] sm:$0xff]   ;;  %v4332_v14 = vld [vmem:[%s6009_s30 + $0x52] sm:$0xff]  ;;  %v1433_v20 = vld [vmem:[%s6009_s30 + $0x68] sm:$0xff] }
  0xd3   : > { %4840 = vmatprep.subr.bf16.mxu0 %v5325_v32  ;;  %5265 = vmatprep.subr.bf16.mxu1 %v5325_v32  ;;  %v4334_v60 = vld [vmem:[%s6009_s30 + $0x62] sm:$0xff]  ;;  %v4335_v11 = vld [vmem:[%s6009_s30 + $0x6a] sm:$0xff]  ;;  %v6225_v27 = vpack.c.bf16 %v1433_v20, %v1432_v19  ;;  %v4344_v19 = vld [vmem:[%s6009_s30 + $0xb2] sm:$0xff] }
  0xd4   : > { %v6227_v29 = vpack.c.bf16 %v4335_v11, %v4334_v60  ;;  %v4345_v20 = vld [vmem:[%s6009_s30 + $0xba] sm:$0xff]  ;;  %v1445_v11 = vld [vmem:[%s6009_s30 + $0xc8] sm:$0xff] }
  0xd5   : > { %v1444_v60 = vld [vmem:[%s6009_s30 + $0xc0] sm:$0xff] }
  0xd6   : > { %4841 = vmatpush3.bf16.msra.mxu0 %v5325_v32  ;;  %5273 = vmatpush3.bf16.msra.mxu1 %v5325_v32  ;;  %v1452_v32 = vpack.c.bf16 %v1421_v26, %v1420_v23  ;;  %v6221_v23 = vpack.c.bf16 %v1431_v13, %v1430_v9 }
  0xd7   : > { %4874 = vmatprep.subr.bf16.mxu1 %v5326_v37  ;;  %4922 = vmatprep.subr.bf16.mxu0 %v5327_v38 }
  0xd9   : > { %4843 = vmatmul.mubr.bf16.vlgmr.msra.gmra.mxu0 %v1519_v41  ;;  %4859 = vmatmul.mubr.bf16.vlgmr.msra.gmra.mxu1 %v6042_v42  ;;  %v1425_v41 = vld [vmem:[%s6009_s30 + $0x28] sm:$0xff] }
  0xda   : > { %4875 = vmatpush3.bf16.msra.mxu1 %v5326_v37  ;;  %4923 = vmatpush3.bf16.msra.mxu0 %v5327_v38  ;;  %v4325_v37 = vld [vmem:[%s6009_s30 + $0x1a] sm:$0xff]  ;;  %v6163_v49 = vpack.c.bf16 %v1425_v41, %v1424_v40  ;;  %v5354_v40 = vld [vmem:[%s7111_s3 + $0xc8] sm:$0xff]  }
  0xdb   : > { %4876 = vmatprep.subr.bf16.mxu1 %v5328_v45  ;;  %4924 = vmatprep.subr.bf16.mxu0 %v5329_v46  ;;  %v5342_v38 = vld [vmem:[%s7111_s3 + $0xf8] sm:$0xff]   ;;  %v5355_v41 = vld [vmem:[%s7111_s3 + $0x108] sm:$0xff]  }
  0xdc   : > { %4846 = vmatprep.mubr.bf16.mxu0 %v6052_v47  ;;  %4862 = vmatprep.mubr.bf16.mxu1 %v6054_v48 }
  0xde   : > { %4877 = vmatpush3.bf16.msra.mxu1 %v5328_v45  ;;  %4925 = vmatpush3.bf16.msra.mxu0 %v5329_v46  ;;  %v1453_v45 = vpack.c.bf16 %v1423_v35, %v1422_v34  ;;  %v2003_v46 = vpack.c.bf16 %v4325_v37, %v4324_v36  ;;  %v4337_v34 = vld [vmem:[%s6009_s30 + $0x7a] sm:$0xff]  ;;  %v5353_v35 = vld [vmem:[%s7111_s3 + $0x110] sm:$0xff]   ;;  %v1437_v37 = vld [vmem:[%s6009_s30 + $0x88] sm:$0xff] }
  0xdf   : > { %4878 = vmatprep.subr.bf16.mxu1 %v5330_v52  ;;  %4926 = vmatprep.subr.bf16.mxu0 %v5331_v53  ;;  %v1436_v36 = vld [vmem:[%s6009_s30 + $0x80] sm:$0xff] }
  0xe1   : > { %4847 = vmatmul.mubr.bf16.gmra.mxu0 %v6072_v57  ;;  %4863 = vmatmul.mubr.bf16.gmra.mxu1 %v6074_v58 }
  0xe2   : > { %4879 = vmatpush3.bf16.msra.mxu1 %v5330_v52  ;;  %4927 = vmatpush3.bf16.msra.mxu0 %v5331_v53  ;;  %v1427_v52 = vld [vmem:[%s6009_s30 + $0x38] sm:$0xff] }
  0xe3   : > { %4880 = vmatprep.subr.bf16.mxu1 %v5332_v59  ;;  %4928 = vmatprep.subr.bf16.mxu0 %v5333_v61  ;;  %v4328_v53 = vld [vmem:[%s6009_s30 + $0x32] sm:$0xff]  ;;  %v6189_v4 = vpack.c.bf16 %v1427_v52, %v1426_v1 }
  0xe4   : > { %4850 = vmatprep.mubr.bf16.mxu0 %v6083_v62  ;;  %4866 = vmatprep.mubr.bf16.mxu1 %v6085_v63  ;;  %v6191_v5 = vpack.c.bf16 %v4329_v55, %v4328_v53  ;;  %v1438_v1 = vld [vmem:[%s6009_s30 + $0x90] sm:$0xff]  ;;  %v1439_v52 = vld [vmem:[%s6009_s30 + $0x98] sm:$0xff]  ;;  %v5357_v55 = vld [vmem:[%s7111_s3 + $0x100] sm:$0xff]  }
  0xe5   : > { %v4340_v53 = vld [vmem:[%s6009_s30 + $0x92] sm:$0xff] }
  0xe6   : > { %4881 = vmatpush3.bf16.msra.mxu1 %v5332_v59  ;;  %4929 = vmatpush3.bf16.msra.mxu0 %v5333_v61  ;;  %v4330_v59 = vld [vmem:[%s6009_s30 + $0x42] sm:$0xff]  ;;  %v4331_v61 = vld [vmem:[%s6009_s30 + $0x4a] sm:$0xff] }
  0xe7   : > { %4882 = vmatprep.subr.bf16.mxu1 %v5334_v6  ;;  %4930 = vmatprep.subr.bf16.mxu0 %v5335_v7 }
  0xe9   : > { %4851 = vmatmul.mubr.bf16.gmra.mxu0 %v6103_v10  ;;  %4867 = vmatmul.mubr.bf16.gmra.mxu1 %v6105_v12 }
  0xea   : > { %4883 = vmatpush3.bf16.msra.mxu1 %v5334_v6  ;;  %4931 = vmatpush3.bf16.msra.mxu0 %v5335_v7  ;;  %v6193_v6 = vpack.c.bf16 %v1429_v2, %v1428_v56  ;;  %v6195_v7 = vpack.c.bf16 %v4331_v61, %v4330_v59  ;;  %v1440_v56 = vld [vmem:[%s6009_s30 + $0xa0] sm:$0xff]  ;;  %v1441_v2 = vld [vmem:[%s6009_s30 + $0xa8] sm:$0xff] }
  0xeb   : > { %4884 = vmatprep.subr.bf16.mxu1 %v5336_v15  ;;  %4932 = vmatprep.subr.bf16.mxu0 %v5337_v16  ;;  %v4342_v59 = vld [vmem:[%s6009_s30 + $0xa2] sm:$0xff]  ;;  %v4343_v61 = vld [vmem:[%s6009_s30 + $0xaa] sm:$0xff]  ;;  %v6289_v13 = vpack.c.bf16 %v1441_v2, %v1440_v56  ;;  %v4352_v56 = vld [vmem:[%s6009_s30 + $0xf2] sm:$0xff] }
  0xec   : > { %4854 = vmatprep.mubr.bf16.mxu0 %v6115_v17  ;;  %4870 = vmatprep.mubr.bf16.mxu1 %v6117_v18  ;;  %v4353_v2 = vld [vmem:[%s6009_s30 + $0xfa] sm:$0xff] }
  0xee   : > { %4885 = vmatpush3.bf16.msra.mxu1 %v5336_v15  ;;  %4933 = vmatpush3.bf16.msra.mxu0 %v5337_v16  ;;  %v4333_v15 = vld [vmem:[%s6009_s30 + $0x5a] sm:$0xff] }
  0xef   : > { %4886 = vmatprep.subr.bf16.mxu1 %v5338_v21  ;;  %4934 = vmatprep.subr.bf16.mxu0 %v5339_v22  ;;  %v5349_v16 = vld [vmem:[%s7111_s3 + $0x120] sm:$0xff]   ;;  %v6223_v26 = vpack.c.bf16 %v4333_v15, %v4332_v14  ;;  %v6291_v14 = vpack.c.bf16 %v4343_v61, %v4342_v59  ;;  %v1442_v15 = vld [vmem:[%s6009_s30 + $0xb0] sm:$0xff]  ;;  %v6343_v61 = vpack.c.bf16 %v4353_v2, %v4352_v56 }
  0xf1   : > { %4855 = vmatmul.mubr.bf16.gmra.mxu0 %v6134_v24  ;;  %4871 = vmatmul.mubr.bf16.gmra.mxu1 %v6136_v25 }
  0xf2   : > { %4887 = vmatpush3.bf16.msra.mxu1 %v5338_v21  ;;  %4935 = vmatpush3.bf16.msra.mxu0 %v5339_v22  ;;  %v5350_v21 = vld [vmem:[%s7111_s3 + $0xd8] sm:$0xff]  }
  0xf3   : > { %4888 = vmatprep.subr.bf16.mxu1 %v5340_v30  ;;  %4936 = vmatprep.subr.bf16.mxu0 %v5341_v31  ;;  %v5351_v22 = vld [vmem:[%s7111_s3 + $0x118] sm:$0xff]  }
  0xf4   : > { %4890 = vmatprep.mubr.bf16.mxu1 %v1452_v32  ;;  %4938 = vmatprep.mubr.bf16.mxu0 %v2002_v33  ;;  %v1435_v32 = vld [vmem:[%s6009_s30 + $0x78] sm:$0xff] }
  0xf5   : > { %v4336_v33 = vld [vmem:[%s6009_s30 + $0x72] sm:$0xff] }
  0xf6   : > { %4889 = vmatpush3.bf16.msra.mxu1 %v5340_v30  ;;  %4937 = vmatpush3.bf16.msra.mxu0 %v5341_v31  ;;  %v5352_v30 = vld [vmem:[%s7111_s3 + $0xd0] sm:$0xff]   ;;  %v6255_v44 = vpack.c.bf16 %v4337_v34, %v4336_v33 }
  0xf7   : > { %4970 = vmatprep.subr.bf16.mxu1 %v5342_v38  ;;  %5018 = vmatprep.subr.bf16.mxu0 %v5343_v39  ;;  %v1434_v31 = vld [vmem:[%s6009_s30 + $0x70] sm:$0xff] }
  0xf8   : > { %v6253_v43 = vpack.c.bf16 %v1435_v32, %v1434_v31  ;;  %v6307_v31 = vpack.c.bf16 %v4345_v20, %v4344_v19  ;;  %v6309_v32 = vpack.c.bf16 %v1445_v11, %v1444_v60  ;;  %v1446_v34 = vld [vmem:[%s6009_s30 + $0xd0] sm:$0xff]  ;;  %v5371_v19 = vld [vmem:[%s7111_s3 + $0x188] sm:$0xff]   ;;  %v5374_v20 = vld [vmem:[%s7111_s3 + $0x1f8] sm:$0xff]  }
  0xf9   : > { %4891 = vmatmul.mubr.bf16.vlgmr.msra.gmra.mxu1 %v1453_v45  ;;  %4939 = vmatmul.mubr.bf16.vlgmr.msra.gmra.mxu0 %v2003_v46  ;;  %v6257_v45 = vpack.c.bf16 %v1437_v37, %v1436_v36  ;;  %v4348_v36 = vld [vmem:[%s6009_s30 + $0xd2] sm:$0xff]  ;;  %v4349_v37 = vld [vmem:[%s6009_s30 + $0xda] sm:$0xff] }
  0xfa   : > { %4971 = vmatpush3.bf16.msra.mxu1 %v5342_v38  ;;  %5019 = vmatpush3.bf16.msra.mxu0 %v5343_v39  ;;  %v4338_v38 = vld [vmem:[%s6009_s30 + $0x82] sm:$0xff]  ;;  %v4339_v39 = vld [vmem:[%s6009_s30 + $0x8a] sm:$0xff]  ;;  %v5375_v60 = vld [vmem:[%s7111_s3 + $0x238] sm:$0xff]  }
  0xfb   : > { %4894 = vmatprep.mubr.bf16.mxu1 %v6163_v49  ;;  %4942 = vmatprep.mubr.bf16.mxu0 %v6165_v50  ;;  %v6259_v46 = vpack.c.bf16 %v4339_v39, %v4338_v38  ;;  %v1448_v38 = vld [vmem:[%s6009_s30 + $0xe0] sm:$0xff]  ;;  %v1449_v39 = vld [vmem:[%s6009_s30 + $0xe8] sm:$0xff] }
  0xfc   : > { %4972 = vmatprep.subr.bf16.mxu1 %v5344_v51  ;;  %5020 = vmatprep.subr.bf16.mxu0 %v5345_v54  ;;  %v4432_v11 = vld [vmem:[%s6009_s30 + $0x101] sm:$0xff] }
  0xfe   : > { %4973 = vmatpush3.bf16.msra.mxu1 %v5344_v51  ;;  %5021 = vmatpush3.bf16.msra.mxu0 %v5345_v54  ;;  %v5356_v51 = vld [vmem:[%s7111_s3 + $0xc0] sm:$0xff]  }
  0xff   : > { %4974 = vmatprep.subr.bf16.mxu1 %v5346_v0  ;;  %5022 = vmatprep.subr.bf16.mxu0 %v5347_v3  ;;  %v4341_v54 = vld [vmem:[%s6009_s30 + $0x9a] sm:$0xff] }
 0x100   : > { %v6287_v9 = vpack.c.bf16 %v4341_v54, %v4340_v53  ;;  %v1450_v54 = vld [vmem:[%s6009_s30 + $0xf0] sm:$0xff] }
 0x101   : > { %4895 = vmatmul.mubr.bf16.gmra.mxu1 %v6189_v4  ;;  %4943 = vmatmul.mubr.bf16.gmra.mxu0 %v6191_v5 }
 0x102   : > { %4898 = vmatprep.mubr.bf16.mxu1 %v6193_v6  ;;  %4946 = vmatprep.mubr.bf16.mxu0 %v6195_v7 }
 0x103   : > { %4975 = vmatpush3.bf16.msra.mxu1 %v5346_v0  ;;  %5023 = vmatpush3.bf16.msra.mxu0 %v5347_v3  ;;  %v5358_v0 = vld [vmem:[%s7111_s3 + $0x178] sm:$0xff]  }
 0x104   : > { %4976 = vmatprep.subr.bf16.mxu1 %v5348_v8  ;;  %5024 = vmatprep.subr.bf16.mxu0 %v5349_v16  ;;  %v5359_v3 = vld [vmem:[%s7111_s3 + $0x1b8] sm:$0xff]  }
 0x107   : > { %4977 = vmatpush3.bf16.msra.mxu1 %v5348_v8  ;;  %5025 = vmatpush3.bf16.msra.mxu0 %v5349_v16  ;;  %v6285_v8 = vpack.c.bf16 %v1439_v52, %v1438_v1  ;;  %v1443_v16 = vld [vmem:[%s6009_s30 + $0xb8] sm:$0xff]  ;;  %v6327_v1 = vpack.c.bf16 %v4349_v37, %v4348_v36  ;;  %v6329_v52 = vpack.c.bf16 %v1449_v39, %v1448_v38  ;;  %v5377_v37 = vld [vmem:[%s7111_s3 + $0x230] sm:$0xff]  }
 0x108   : > { %4978 = vmatprep.subr.bf16.mxu1 %v5350_v21  ;;  %5026 = vmatprep.subr.bf16.mxu0 %v5351_v22 }
 0x109   : > { %4899 = vmatmul.mubr.bf16.gmra.mxu1 %v6221_v23  ;;  %4947 = vmatmul.mubr.bf16.gmra.mxu0 %v6223_v26 }
 0x10a   : > { %4902 = vmatprep.mubr.bf16.mxu1 %v6225_v27  ;;  %4950 = vmatprep.mubr.bf16.mxu0 %v6227_v29 }
 0x10b   : > { %4979 = vmatpush3.bf16.msra.mxu1 %v5350_v21  ;;  %5027 = vmatpush3.bf16.msra.mxu0 %v5351_v22  ;;  %v4346_v21 = vld [vmem:[%s6009_s30 + $0xc2] sm:$0xff]  ;;  %v4347_v22 = vld [vmem:[%s6009_s30 + $0xca] sm:$0xff] }
 0x10c   : > { %4980 = vmatprep.subr.bf16.mxu1 %v5352_v30  ;;  %5028 = vmatprep.subr.bf16.mxu0 %v5353_v35  ;;  %v6311_v33 = vpack.c.bf16 %v4347_v22, %v4346_v21  ;;  %v4433_v21 = vld [vmem:[%s6009_s30 + $0x109] sm:$0xff] }
 0x10d   : > { %v6427_v22 = vpack.c.bf16 %v4433_v21, %v4432_v11 }
 0x10f   : > { %4981 = vmatpush3.bf16.msra.mxu1 %v5352_v30  ;;  %5029 = vmatpush3.bf16.msra.mxu0 %v5353_v35  ;;  %v6305_v30 = vpack.c.bf16 %v1443_v16, %v1442_v15  ;;  %v1447_v35 = vld [vmem:[%s6009_s30 + $0xd8] sm:$0xff]  ;;  %v5360_v15 = vld [vmem:[%s7111_s3 + $0x170] sm:$0xff]  }
 0x110   : > { %4982 = vmatprep.subr.bf16.mxu1 %v5354_v40  ;;  %5030 = vmatprep.subr.bf16.mxu0 %v5355_v41  ;;  %v5361_v16 = vld [vmem:[%s7111_s3 + $0x1b0] sm:$0xff]  }
 0x111   : > { %4903 = vmatmul.mubr.bf16.gmra.mxu1 %v6253_v43  ;;  %4951 = vmatmul.mubr.bf16.gmra.mxu0 %v6255_v44 }
 0x112   : > { %4906 = vmatprep.mubr.bf16.mxu1 %v6257_v45  ;;  %4954 = vmatprep.mubr.bf16.mxu0 %v6259_v46 }
 0x113   : > { %4983 = vmatpush3.bf16.msra.mxu1 %v5354_v40  ;;  %5031 = vmatpush3.bf16.msra.mxu0 %v5355_v41  ;;  %v4350_v40 = vld [vmem:[%s6009_s30 + $0xe2] sm:$0xff]  ;;  %v4351_v41 = vld [vmem:[%s6009_s30 + $0xea] sm:$0xff] }
 0x114   : > { %4984 = vmatprep.subr.bf16.mxu1 %v5356_v51  ;;  %5032 = vmatprep.subr.bf16.mxu0 %v5357_v55  ;;  %v6331_v53 = vpack.c.bf16 %v4351_v41, %v4350_v40  ;;  %v4473_v40 = vld [vmem:[%s6009_s30 + $0x102] sm:$0xff] }
 0x117   : > { %4985 = vmatpush3.bf16.msra.mxu1 %v5356_v51  ;;  %5033 = vmatpush3.bf16.msra.mxu0 %v5357_v55  ;;  %v6325_v51 = vpack.c.bf16 %v1447_v35, %v1446_v34  ;;  %v1451_v55 = vld [vmem:[%s6009_s30 + $0xf8] sm:$0xff] }
 0x118   : > { %5066 = vmatprep.subr.bf16.mxu1 %v5358_v0  ;;  %5114 = vmatprep.subr.bf16.mxu0 %v5359_v3  ;;  %v6341_v59 = vpack.c.bf16 %v1451_v55, %v1450_v54  ;;  %v4434_v34 = vld [vmem:[%s6009_s30 + $0x111] sm:$0xff]  ;;  %v4514_v54 = vld [vmem:[%s6009_s30 + $0x120] sm:$0xff]  ;;  %v4515_v55 = vld [vmem:[%s6009_s30 + $0x128] sm:$0xff] }
 0x119   : > { %4907 = vmatmul.mubr.bf16.gmra.mxu1 %v6285_v8  ;;  %4955 = vmatmul.mubr.bf16.gmra.mxu0 %v6287_v9  ;;  %v3244_v2 = vpack.c.bf16 %v4515_v55, %v4514_v54  ;;  %v4533_v54 = vld [vmem:[%s6009_s30 + $0x71] sm:$0xff]  ;;  %v4534_v55 = vld [vmem:[%s6009_s30 + $0x79] sm:$0xff] }
 0x11a   : > { %4910 = vmatprep.mubr.bf16.mxu1 %v6289_v13  ;;  %4958 = vmatprep.mubr.bf16.mxu0 %v6291_v14 }
 0x121   : > { %4911 = vmatmul.mubr.bf16.gmra.mxu1 %v6305_v30  ;;  %4959 = vmatmul.mubr.bf16.gmra.mxu0 %v6307_v31 }
 0x122   : > { %4914 = vmatprep.mubr.bf16.mxu1 %v6309_v32  ;;  %4962 = vmatprep.mubr.bf16.mxu0 %v6311_v33 }
 0x129   : > { %4915 = vmatmul.mubr.bf16.gmra.mxu1 %v6325_v51  ;;  %4963 = vmatmul.mubr.bf16.gmra.mxu0 %v6327_v1 }
 0x12a   : > { %4918 = vmatprep.mubr.bf16.mxu1 %v6329_v52  ;;  %4966 = vmatprep.mubr.bf16.mxu0 %v6331_v53 }
 0x131   : > { %4919 = vmatmul.mubr.bf16.gmra.mxu1 %v6341_v59  ;;  %4967 = vmatmul.mubr.bf16.gmra.mxu0 %v6343_v61 }
 0x132   : > { %4986 = vmatprep.mubr.bf16.mxu1 %v6163_v49  ;;  %5034 = vmatprep.mubr.bf16.mxu0 %v6052_v47  ;;  %v5362_v47 = vld [vmem:[%s7111_s3 + $0x168] sm:$0xff]  }
 0x133   : > { %v5363_v49 = vld [vmem:[%s7111_s3 + $0x1a8] sm:$0xff]  }
 0x139   : > { %4987 = vmatmul.mubr.bf16.vlgmr.msra.gmra.mxu1 %v6189_v4  ;;  %5035 = vmatmul.mubr.bf16.vlgmr.msra.gmra.mxu0 %v6072_v57  ;;  %v5364_v57 = vld [vmem:[%s7111_s3 + $0x160] sm:$0xff]   ;;  %v5366_v4 = vld [vmem:[%s7111_s3 + $0x158] sm:$0xff]  }
 0x13a   : > { %5067 = vmatpush3.bf16.msra.mxu1 %v5358_v0  ;;  %5115 = vmatpush3.bf16.msra.mxu0 %v5359_v3  ;;  %v5367_v0 = vld [vmem:[%s7111_s3 + $0x198] sm:$0xff]   ;;  %v5370_v3 = vld [vmem:[%s7111_s3 + $0x148] sm:$0xff]  }
 0x13b   : > { %4990 = vmatprep.mubr.bf16.mxu1 %v6193_v6  ;;  %5038 = vmatprep.mubr.bf16.mxu0 %v6083_v62  ;;  %v5365_v62 = vld [vmem:[%s7111_s3 + $0x1a0] sm:$0xff]  }
 0x13c   : > { %5068 = vmatprep.subr.bf16.mxu1 %v5360_v15  ;;  %5116 = vmatprep.subr.bf16.mxu0 %v5361_v16 }
 0x13e   : > { %5069 = vmatpush3.bf16.msra.mxu1 %v5360_v15  ;;  %5117 = vmatpush3.bf16.msra.mxu0 %v5361_v16 }
 0x13f   : > { %5070 = vmatprep.subr.bf16.mxu1 %v5362_v47  ;;  %5118 = vmatprep.subr.bf16.mxu0 %v5363_v49 }
 0x141   : > { %4991 = vmatmul.mubr.bf16.gmra.mxu1 %v6221_v23  ;;  %5039 = vmatmul.mubr.bf16.gmra.mxu0 %v6103_v10  ;;  %v5368_v10 = vld [vmem:[%s7111_s3 + $0x150] sm:$0xff]  }
 0x142   : > { %4994 = vmatprep.mubr.bf16.mxu1 %v6225_v27  ;;  %5042 = vmatprep.mubr.bf16.mxu0 %v6115_v17  ;;  %v5369_v17 = vld [vmem:[%s7111_s3 + $0x190] sm:$0xff]  }
 0x143   : > { %5071 = vmatpush3.bf16.msra.mxu1 %v5362_v47  ;;  %5119 = vmatpush3.bf16.msra.mxu0 %v5363_v49  ;;  %v4475_v49 = vld [vmem:[%s6009_s30 + $0x112] sm:$0xff] }
 0x144   : > { %5072 = vmatprep.subr.bf16.mxu1 %v5364_v57  ;;  %5120 = vmatprep.subr.bf16.mxu0 %v5365_v62 }
 0x147   : > { %5073 = vmatpush3.bf16.msra.mxu1 %v5364_v57  ;;  %5121 = vmatpush3.bf16.msra.mxu0 %v5365_v62  ;;  %v4476_v57 = vld [vmem:[%s6009_s30 + $0x11a] sm:$0xff]  ;;  %v4516_v62 = vld [vmem:[%s6009_s30 + $0x130] sm:$0xff] }
 0x148   : > { %5074 = vmatprep.subr.bf16.mxu1 %v5366_v4  ;;  %5122 = vmatprep.subr.bf16.mxu0 %v5367_v0 }
 0x149   : > { %4995 = vmatmul.mubr.bf16.gmra.mxu1 %v6253_v43  ;;  %5043 = vmatmul.mubr.bf16.gmra.mxu0 %v6134_v24  ;;  %v5373_v24 = vld [vmem:[%s7111_s3 + $0x180] sm:$0xff]  }
 0x14a   : > { %4998 = vmatprep.mubr.bf16.mxu1 %v6257_v45  ;;  %5046 = vmatprep.mubr.bf16.mxu0 %v6015_v28  ;;  %v5372_v28 = vld [vmem:[%s7111_s3 + $0x140] sm:$0xff]  }
 0x14b   : > { %5075 = vmatpush3.bf16.msra.mxu1 %v5366_v4  ;;  %5123 = vmatpush3.bf16.msra.mxu0 %v5367_v0  ;;  %v4517_v4 = vld [vmem:[%s6009_s30 + $0x138] sm:$0xff]  ;;  %v4527_v0 = vld [vmem:[%s6009_s30 + $0x41] sm:$0xff] }
 0x14c   : > { %5076 = vmatprep.subr.bf16.mxu1 %v5368_v10  ;;  %5124 = vmatprep.subr.bf16.mxu0 %v5369_v17 }
 0x14f   : > { %5077 = vmatpush3.bf16.msra.mxu1 %v5368_v10  ;;  %5125 = vmatpush3.bf16.msra.mxu0 %v5369_v17 }
 0x150   : > { %5078 = vmatprep.subr.bf16.mxu1 %v5370_v3  ;;  %5126 = vmatprep.subr.bf16.mxu0 %v5371_v19 }
 0x151   : > { %4999 = vmatmul.mubr.bf16.gmra.mxu1 %v6285_v8  ;;  %5047 = vmatmul.mubr.bf16.gmra.mxu0 %v6042_v42  ;;  %v4391_v42 = vld [vmem:[%s6009_s30 + $0x100] sm:$0xff] }
 0x152   : > { %5002 = vmatprep.mubr.bf16.mxu1 %v6289_v13  ;;  %5050 = vmatprep.mubr.bf16.mxu0 %v6054_v48  ;;  %v4392_v48 = vld [vmem:[%s6009_s30 + $0x108] sm:$0xff] }
 0x153   : > { %5079 = vmatpush3.bf16.msra.mxu1 %v5370_v3  ;;  %5127 = vmatpush3.bf16.msra.mxu0 %v5371_v19  ;;  %v4528_v3 = vld [vmem:[%s6009_s30 + $0x49] sm:$0xff] }
 0x154   : > { %5080 = vmatprep.subr.bf16.mxu1 %v5372_v28  ;;  %5128 = vmatprep.subr.bf16.mxu0 %v5373_v24  ;;  %v4568_v19 = vld [vmem:[%s6009_s30 + $0x42] sm:$0xff] }
 0x157   : > { %5081 = vmatpush3.bf16.msra.mxu1 %v5372_v28  ;;  %5129 = vmatpush3.bf16.msra.mxu0 %v5373_v24  ;;  %v4569_v28 = vld [vmem:[%s6009_s30 + $0x4a] sm:$0xff] }
 0x158   : > { %5162 = vmatprep.subr.bf16.mxu1 %v5374_v20  ;;  %5210 = vmatprep.subr.bf16.mxu0 %v5375_v60 }
 0x159   : > { %5003 = vmatmul.mubr.bf16.gmra.mxu1 %v6305_v30  ;;  %5051 = vmatmul.mubr.bf16.gmra.mxu0 %v6074_v58  ;;  %v6425_v58 = vpack.c.bf16 %v4392_v48, %v4391_v42  ;;  %v3537_v42 = vpack.c.bf16 %v4528_v3, %v4527_v0  ;;  %v3844_v48 = vpack.c.bf16 %v4569_v28, %v4568_v19  ;;  %v4536_v3 = vld [vmem:[%s6009_s30 + $0x89] sm:$0xff] }
 0x15a   : > { %5006 = vmatprep.mubr.bf16.mxu1 %v6309_v32  ;;  %5054 = vmatprep.mubr.bf16.mxu0 %v6085_v63  ;;  %v4393_v63 = vld [vmem:[%s6009_s30 + $0x110] sm:$0xff]  ;;  %v4576_v19 = vld [vmem:[%s6009_s30 + $0x82] sm:$0xff] }
 0x15b   : > { %v4577_v28 = vld [vmem:[%s6009_s30 + $0x8a] sm:$0xff] }
 0x161   : > { %5007 = vmatmul.mubr.bf16.gmra.mxu1 %v6325_v51  ;;  %5055 = vmatmul.mubr.bf16.gmra.mxu0 %v6105_v12  ;;  %v4394_v12 = vld [vmem:[%s6009_s30 + $0x118] sm:$0xff] }
 0x162   : > { %5010 = vmatprep.mubr.bf16.mxu1 %v6329_v52  ;;  %5058 = vmatprep.mubr.bf16.mxu0 %v6117_v18  ;;  %v4435_v18 = vld [vmem:[%s6009_s30 + $0x119] sm:$0xff]  ;;  %v6437_v35 = vpack.c.bf16 %v4394_v12, %v4393_v63  ;;  %v4529_v12 = vld [vmem:[%s6009_s30 + $0x51] sm:$0xff] }
 0x163   : > { %v6439_v36 = vpack.c.bf16 %v4435_v18, %v4434_v34  ;;  %v4530_v34 = vld [vmem:[%s6009_s30 + $0x59] sm:$0xff] }
 0x164   : > { %v4570_v18 = vld [vmem:[%s6009_s30 + $0x52] sm:$0xff] }
 0x169   : > { %5011 = vmatmul.mubr.bf16.gmra.mxu1 %v6341_v59  ;;  %5059 = vmatmul.mubr.bf16.gmra.mxu0 %v6136_v25  ;;  %v5376_v25 = vld [vmem:[%s7111_s3 + $0x1f0] sm:$0xff]  }
 0x16a   : > { %5014 = vmatprep.mubr.bf16.mxu1 %v6425_v58  ;;  %5062 = vmatprep.mubr.bf16.mxu0 %v6427_v22 }
 0x171   : > { %5015 = vmatmul.mubr.bf16.gmra.mxu1 %v6437_v35  ;;  %5063 = vmatmul.mubr.bf16.gmra.mxu0 %v6439_v36 }
 0x172   : > { %5082 = vmatprep.mubr.bf16.mxu1 %v6165_v50  ;;  %5130 = vmatprep.mubr.bf16.mxu0 %v6193_v6  ;;  %v5378_v50 = vld [vmem:[%s7111_s3 + $0x1e8] sm:$0xff]  }
 0x173   : > { %v5379_v6 = vld [vmem:[%s7111_s3 + $0x228] sm:$0xff]  }
 0x179   : > { %5083 = vmatmul.mubr.bf16.vlgmr.msra.gmra.mxu1 %v6191_v5  ;;  %5131 = vmatmul.mubr.bf16.vlgmr.msra.gmra.mxu0 %v6221_v23  ;;  %v5380_v5 = vld [vmem:[%s7111_s3 + $0x1e0] sm:$0xff]   ;;  %v5382_v23 = vld [vmem:[%s7111_s3 + $0x1d8] sm:$0xff]  }
 0x17a   : > { %5163 = vmatpush3.bf16.msra.mxu1 %v5374_v20  ;;  %5211 = vmatpush3.bf16.msra.mxu0 %v5375_v60  ;;  %v6572_v20 = vpack.c.bf16 %v4476_v57, %v4475_v49  ;;  %v3245_v60 = vpack.c.bf16 %v4517_v4, %v4516_v62  ;;  %v4574_v49 = vld [vmem:[%s6009_s30 + $0x72] sm:$0xff]  ;;  %v4575_v57 = vld [vmem:[%s6009_s30 + $0x7a] sm:$0xff] }
 0x17b   : > { %5086 = vmatprep.mubr.bf16.mxu1 %v6195_v7  ;;  %5134 = vmatprep.mubr.bf16.mxu0 %v6225_v27  ;;  %v5381_v7 = vld [vmem:[%s7111_s3 + $0x220] sm:$0xff]   ;;  %v5383_v27 = vld [vmem:[%s7111_s3 + $0x218] sm:$0xff]  }
 0x17c   : > { %5164 = vmatprep.subr.bf16.mxu1 %v5376_v25  ;;  %5212 = vmatprep.subr.bf16.mxu0 %v5377_v37  ;;  %v4535_v62 = vld [vmem:[%s6009_s30 + $0x81] sm:$0xff] }
 0x17e   : > { %5165 = vmatpush3.bf16.msra.mxu1 %v5376_v25  ;;  %5213 = vmatpush3.bf16.msra.mxu0 %v5377_v37  ;;  %v4531_v25 = vld [vmem:[%s6009_s30 + $0x61] sm:$0xff] }
 0x17f   : > { %5166 = vmatprep.subr.bf16.mxu1 %v5378_v50  ;;  %5214 = vmatprep.subr.bf16.mxu0 %v5379_v6 }
 0x181   : > { %5087 = vmatmul.mubr.bf16.gmra.mxu1 %v6223_v26  ;;  %5135 = vmatmul.mubr.bf16.gmra.mxu0 %v6253_v43  ;;  %v5384_v26 = vld [vmem:[%s7111_s3 + $0x1d0] sm:$0xff]   ;;  %v5386_v43 = vld [vmem:[%s7111_s3 + $0x1c8] sm:$0xff]  }
 0x182   : > { %5090 = vmatprep.mubr.bf16.mxu1 %v6227_v29  ;;  %5138 = vmatprep.mubr.bf16.mxu0 %v6257_v45  ;;  %v5385_v29 = vld [vmem:[%s7111_s3 + $0x210] sm:$0xff]   ;;  %v5387_v45 = vld [vmem:[%s7111_s3 + $0x208] sm:$0xff]  }
 0x183   : > { %5167 = vmatpush3.bf16.msra.mxu1 %v5378_v50  ;;  %5215 = vmatpush3.bf16.msra.mxu0 %v5379_v6  ;;  %v4532_v6 = vld [vmem:[%s6009_s30 + $0x69] sm:$0xff] }
 0x184   : > { %5168 = vmatprep.subr.bf16.mxu1 %v5380_v5  ;;  %5216 = vmatprep.subr.bf16.mxu0 %v5381_v7 }
 0x187   : > { %5169 = vmatpush3.bf16.msra.mxu1 %v5380_v5  ;;  %5217 = vmatpush3.bf16.msra.mxu0 %v5381_v7  ;;  %v4572_v5 = vld [vmem:[%s6009_s30 + $0x62] sm:$0xff]  ;;  %v4573_v7 = vld [vmem:[%s6009_s30 + $0x6a] sm:$0xff] }
 0x188   : > { %5170 = vmatprep.subr.bf16.mxu1 %v5382_v23  ;;  %5218 = vmatprep.subr.bf16.mxu0 %v5383_v27 }
 0x189   : > { %5091 = vmatmul.mubr.bf16.gmra.mxu1 %v6255_v44  ;;  %5139 = vmatmul.mubr.bf16.gmra.mxu0 %v6285_v8  ;;  %v5388_v44 = vld [vmem:[%s7111_s3 + $0x1c0] sm:$0xff]  }
 0x18a   : > { %5094 = vmatprep.mubr.bf16.mxu1 %v6259_v46  ;;  %5142 = vmatprep.mubr.bf16.mxu0 %v6289_v13  ;;  %v5389_v46 = vld [vmem:[%s7111_s3 + $0x200] sm:$0xff]  }
 0x18b   : > { %5171 = vmatpush3.bf16.msra.mxu1 %v5382_v23  ;;  %5219 = vmatpush3.bf16.msra.mxu0 %v5383_v27 }
 0x18c   : > { %5172 = vmatprep.subr.bf16.mxu1 %v5384_v26  ;;  %5220 = vmatprep.subr.bf16.mxu0 %v5385_v29 }
 0x18f   : > { %5173 = vmatpush3.bf16.msra.mxu1 %v5384_v26  ;;  %5221 = vmatpush3.bf16.msra.mxu0 %v5385_v29  ;;  %v3538_v26 = vpack.c.bf16 %v4530_v34, %v4529_v12  ;;  %v3540_v34 = vpack.c.bf16 %v4534_v55, %v4533_v54  ;;  %v4578_v54 = vld [vmem:[%s6009_s30 + $0x92] sm:$0xff]  ;;  %v4579_v55 = vld [vmem:[%s6009_s30 + $0x9a] sm:$0xff] }
 0x190   : > { %5174 = vmatprep.subr.bf16.mxu1 %v5386_v43  ;;  %5222 = vmatprep.subr.bf16.mxu0 %v5387_v45 }
 0x191   : > { %5095 = vmatmul.mubr.bf16.gmra.mxu1 %v6287_v9  ;;  %5143 = vmatmul.mubr.bf16.gmra.mxu0 %v6305_v30 }
 0x192   : > { %5098 = vmatprep.mubr.bf16.mxu1 %v6291_v14  ;;  %5146 = vmatprep.mubr.bf16.mxu0 %v6309_v32 }
 0x193   : > { %5175 = vmatpush3.bf16.msra.mxu1 %v5386_v43  ;;  %5223 = vmatpush3.bf16.msra.mxu0 %v5387_v45  ;;  %v3539_v43 = vpack.c.bf16 %v4532_v6, %v4531_v25  ;;  %v3846_v45 = vpack.c.bf16 %v4573_v7, %v4572_v5  ;;  %v3541_v25 = vpack.c.bf16 %v4536_v3, %v4535_v62  ;;  %v4580_v62 = vld [vmem:[%s6009_s30 + $0xa2] sm:$0xff] }
 0x194   : > { %5176 = vmatprep.subr.bf16.mxu1 %v5388_v44  ;;  %5224 = vmatprep.subr.bf16.mxu0 %v5389_v46  ;;  %v3848_v6 = vpack.c.bf16 %v4577_v28, %v4576_v19 }
 0x197   : > { %5177 = vmatpush3.bf16.msra.mxu1 %v5388_v44  ;;  %5225 = vmatpush3.bf16.msra.mxu0 %v5389_v46 }
 0x199   : > { %v6503_v8 = vpop.f32.mrf.mxu0  ;;  %v6505_v13 = vpop.f32.mrf.mxu1  ;;  %5099 = vmatmul.mubr.bf16.gmra.mxu1 %v6307_v31  ;;  %5147 = vmatmul.mubr.bf16.gmra.mxu0 %v6325_v51 }
 0x19a   : > { %5102 = vmatprep.mubr.bf16.mxu1 %v6311_v33  ;;  %5150 = vmatprep.mubr.bf16.mxu0 %v6329_v52  ;;  %v4474_v52 = vld [vmem:[%s6009_s30 + $0x10a] sm:$0xff] }
 0x19b   : > { %v6511_v9 = vpop.f32.mrf.mxu0  ;;  %v6513_v14 = vpop.f32.mrf.mxu1 }
 0x19d   : > { %v6515_v30 = vpop.f32.mrf.mxu0  ;;  %v6517_v32 = vpop.f32.mrf.mxu1 }
 0x19f   : > { %v6519_v38 = vpop.f32.mrf.mxu0  ;;  %v6521_v31 = vpop.f32.mrf.mxu1 }
 0x1a1   : > { %v6523_v39 = vpop.f32.mrf.mxu0  ;;  %v6525_v33 = vpop.f32.mrf.mxu1  ;;  %5103 = vmatmul.mubr.bf16.gmra.mxu1 %v6327_v1  ;;  %5151 = vmatmul.mubr.bf16.gmra.mxu0 %v6341_v59 }
 0x1a2   : > { %5106 = vmatprep.mubr.bf16.mxu1 %v6331_v53  ;;  %5154 = vmatprep.mubr.bf16.mxu0 %v6425_v58  ;;  %v6543_v53 = vpack.c.bf16 %v4474_v52, %v4473_v40 }
 0x1a3   : > { %v6532_v41 = vpop.f32.mrf.mxu0  ;;  %v6534_v51 = vpop.f32.mrf.mxu1 }
 0x1a5   : > { %v6539_v56 = vpop.f32.mrf.mxu0  ;;  %v6541_v1 = vpop.f32.mrf.mxu1 }
 0x1a7   : > { %v6545_v59 = vpop.f32.mrf.mxu0  ;;  %v6547_v15 = vpop.f32.mrf.mxu1 }
 0x1a9   : > { %v6549_v16 = vpop.f32.mrf.mxu0  ;;  %v6551_v47 = vpop.f32.mrf.mxu1  ;;  %5107 = vmatmul.mubr.bf16.gmra.mxu1 %v6343_v61  ;;  %5155 = vmatmul.mubr.bf16.gmra.mxu0 %v6437_v35  ;;  %v4571_v35 = vld [vmem:[%s6009_s30 + $0x5a] sm:$0xff] }
 0x1aa   : > { %5110 = vmatprep.mubr.bf16.mxu1 %v6543_v53  ;;  %5158 = vmatprep.mubr.bf16.mxu0 %v3244_v2  ;;  %v3845_v29 = vpack.c.bf16 %v4571_v35, %v4570_v18 }
 0x1ab   : > { %v6561_v10 = vpop.f32.mrf.mxu0  ;;  %v6563_v17 = vpop.f32.mrf.mxu1 }
 0x1ad   : > { %v6568_v61 = vpop.f32.mrf.mxu0  ;;  %v6570_v24 = vpop.f32.mrf.mxu1 }
 0x1af   : > { %v6574_v11 = vpop.f32.mrf.mxu0  ;;  %v6576_v21 = vpop.f32.mrf.mxu1 }
 0x1b1   : > { %v6578_v58 = vpop.f32.mrf.mxu0  ;;  %v6580_v63 = vpop.f32.mrf.mxu1  ;;  %5111 = vmatmul.mubr.bf16.gmra.mxu1 %v6572_v20  ;;  %5159 = vmatmul.mubr.bf16.gmra.mxu0 %v3245_v60 }
 0x1b2   : > { %5178 = vmatprep.mubr.bf16.mxu1 %v3537_v42  ;;  %5226 = vmatprep.mubr.bf16.mxu0 %v3844_v48 }
 0x1b3   : > { %v6588_v37 = vpop.f32.mrf.mxu0  ;;  %v6590_v50 = vpop.f32.mrf.mxu1 }
 0x1b5   : > { %v6595_v23 = vpop.f32.mrf.mxu0  ;;  %v6597_v27 = vpop.f32.mrf.mxu1 }
 0x1b7   : > { %v6599_v44 = vpop.f32.mrf.mxu0  ;;  %v6601_v46 = vpop.f32.mrf.mxu1 }
 0x1b9   : > { %v4892_v40 = vpop.f32.mrf.mxu1  ;;  %v4940_v52 = vpop.f32.mrf.mxu0  ;;  %5179 = vmatmul.mubr.bf16.vlgmr.msra.gmra.mxu1 %v3538_v26  ;;  %5227 = vmatmul.mubr.bf16.vlgmr.msra.gmra.mxu0 %v3845_v29 }
 0x1ba   : > { %v1850_v2 = vadd.f32 %v4892_v40, %v6503_v8  ;;  %5182 = vmatprep.mubr.bf16.mxu1 %v3539_v43  ;;  %5230 = vmatprep.mubr.bf16.mxu0 %v3846_v45  ;;  %v3847_v8 = vpack.c.bf16 %v4575_v57, %v4574_v49  ;;  %v4537_v45 = vld [vmem:[%s6009_s30 + $0x91] sm:$0xff]  ;;  %v4540_v57 = vld [vmem:[%s6009_s30 + $0xa9] sm:$0xff] }
 0x1bb   : > { %v1841_v4 = vpop.f32.mrf.mxu1  ;;  %v2116_v0 = vpop.f32.mrf.mxu0 }
 0x1bc   : > { %v6612_v60 = vadd.f32 %v4940_v52, %v1850_v2  ;;  %v1842_v42 = vadd.f32 %v1841_v4, %v6511_v9  ;;  %v4539_v2 = vld [vmem:[%s6009_s30 + $0xa1] sm:$0xff]  ;;  %v4581_v4 = vld [vmem:[%s6009_s30 + $0xaa] sm:$0xff] }
 0x1bd   : > { %v4893_v48 = vpop.f32.mrf.mxu1  ;;  %v4941_v12 = vpop.f32.mrf.mxu0 }
 0x1be   : > { %v6615_v18 = vadd.f32 %v2116_v0, %v1842_v42  ;;  %v1853_v35 = vadd.f32 %v4893_v48, %v6515_v30  ;;  %v4538_v30 = vld [vmem:[%s6009_s30 + $0x99] sm:$0xff] }
 0x1bf   : > { %v1844_v5 = vpop.f32.mrf.mxu1  ;;  %v2119_v7 = vpop.f32.mrf.mxu0  ;;  %v3542_v42 = vpack.c.bf16 %v4538_v30, %v4537_v45  ;;  %v4582_v45 = vld [vmem:[%s6009_s30 + $0xb2] sm:$0xff]  ;;  %v4583_v30 = vld [vmem:[%s6009_s30 + $0xba] sm:$0xff] }
 0x1c0   : > { %v6618_v26 = vadd.f32 %v4941_v12, %v1853_v35  ;;  %v1845_v9 = vadd.f32 %v1844_v5, %v6519_v38 }
 0x1c1   : > { %v4896_v29 = vpop.f32.mrf.mxu1  ;;  %v4944_v43 = vpop.f32.mrf.mxu0  ;;  %5183 = vmatmul.mubr.bf16.gmra.mxu1 %v3540_v34  ;;  %5231 = vmatmul.mubr.bf16.gmra.mxu0 %v3847_v8  ;;  %v3543_v34 = vpack.c.bf16 %v4540_v57, %v4539_v2  ;;  %v3850_v8 = vpack.c.bf16 %v4581_v4, %v4580_v62  ;;  %v4584_v2 = vld [vmem:[%s6009_s30 + $0xc2] sm:$0xff] }
 0x1c2   : > { %v6623_v40 = vadd.f32 %v2119_v7, %v1845_v9  ;;  %v1866_v52 = vadd.f32 %v4896_v29, %v6523_v39  ;;  %5186 = vmatprep.mubr.bf16.mxu1 %v3541_v25  ;;  %5234 = vmatprep.mubr.bf16.mxu0 %v3848_v6  ;;  %v3849_v39 = vpack.c.bf16 %v4579_v55, %v4578_v54  ;;  %v4541_v9 = vld [vmem:[%s6009_s30 + $0xb1] sm:$0xff]  ;;  %v4544_v55 = vld [vmem:[%s6009_s30 + $0xc9] sm:$0xff] }
 0x1c3   : > { %v1857_v49 = vpop.f32.mrf.mxu1  ;;  %v2132_v38 = vpop.f32.mrf.mxu0 }
 0x1c4   : > { %v6632_v0 = vadd.f32 %v4944_v43, %v1866_v52  ;;  %v1858_v3 = vadd.f32 %v1857_v49, %v6532_v41  ;;  %v4543_v52 = vld [vmem:[%s6009_s30 + $0xc1] sm:$0xff]  ;;  %v4585_v49 = vld [vmem:[%s6009_s30 + $0xca] sm:$0xff] }
 0x1c5   : > { %v4897_v19 = vpop.f32.mrf.mxu1  ;;  %v4945_v28 = vpop.f32.mrf.mxu0 }
 0x1c6   : > { %v6635_v48 = vadd.f32 %v2132_v38, %v1858_v3  ;;  %v1869_v12 = vadd.f32 %v4897_v19, %v6539_v56  ;;  %v4542_v56 = vld [vmem:[%s6009_s30 + $0xb9] sm:$0xff] }
 0x1c7   : > { %v1860_v35 = vpop.f32.mrf.mxu1  ;;  %v2135_v25 = vpop.f32.mrf.mxu0  ;;  %v3544_v3 = vpack.c.bf16 %v4542_v56, %v4541_v9  ;;  %v4586_v9 = vld [vmem:[%s6009_s30 + $0xd2] sm:$0xff]  ;;  %v4587_v56 = vld [vmem:[%s6009_s30 + $0xda] sm:$0xff] }
 0x1c8   : > { %v6638_v6 = vadd.f32 %v4945_v28, %v1869_v12  ;;  %v1861_v41 = vadd.f32 %v1860_v35, %v6545_v59 }
 0x1c9   : > { %v4900_v5 = vpop.f32.mrf.mxu1  ;;  %v4948_v7 = vpop.f32.mrf.mxu0  ;;  %5187 = vmatmul.mubr.bf16.gmra.mxu1 %v3542_v42  ;;  %5235 = vmatmul.mubr.bf16.gmra.mxu0 %v3849_v39  ;;  %v3545_v42 = vpack.c.bf16 %v4544_v55, %v4543_v52  ;;  %v3852_v39 = vpack.c.bf16 %v4585_v49, %v4584_v2  ;;  %v4588_v52 = vld [vmem:[%s6009_s30 + $0xe2] sm:$0xff] }
 0x1ca   : > { %v6643_v29 = vadd.f32 %v2135_v25, %v1861_v41  ;;  %v1882_v43 = vadd.f32 %v4900_v5, %v6549_v16  ;;  %5190 = vmatprep.mubr.bf16.mxu1 %v3543_v34  ;;  %5238 = vmatprep.mubr.bf16.mxu0 %v3850_v8  ;;  %v3851_v16 = vpack.c.bf16 %v4583_v30, %v4582_v45  ;;  %v4545_v41 = vld [vmem:[%s6009_s30 + $0xd1] sm:$0xff]  ;;  %v4548_v30 = vld [vmem:[%s6009_s30 + $0xe9] sm:$0xff] }
 0x1cb   : > { %v1873_v54 = vpop.f32.mrf.mxu1  ;;  %v2148_v59 = vpop.f32.mrf.mxu0 }
 0x1cc   : > { %v6652_v38 = vadd.f32 %v4948_v7, %v1882_v43  ;;  %v1874_v57 = vadd.f32 %v1873_v54, %v6561_v10  ;;  %v4547_v43 = vld [vmem:[%s6009_s30 + $0xe1] sm:$0xff]  ;;  %v4589_v54 = vld [vmem:[%s6009_s30 + $0xea] sm:$0xff] }
 0x1cd   : > { %v4901_v62 = vpop.f32.mrf.mxu1  ;;  %v4949_v4 = vpop.f32.mrf.mxu0 }
 0x1ce   : > { %v6655_v19 = vadd.f32 %v2148_v59, %v1874_v57  ;;  %v1885_v28 = vadd.f32 %v4901_v62, %v6568_v61  ;;  %v4546_v61 = vld [vmem:[%s6009_s30 + $0xd9] sm:$0xff]  ;;  %v3853_v62 = vpack.c.bf16 %v4587_v56, %v4586_v9 }
 0x1cf   : > { %v1876_v12 = vpop.f32.mrf.mxu1  ;;  %v2151_v34 = vpop.f32.mrf.mxu0  ;;  %v3546_v57 = vpack.c.bf16 %v4546_v61, %v4545_v41  ;;  %v4590_v41 = vld [vmem:[%s6009_s30 + $0xf2] sm:$0xff]  ;;  %v4591_v61 = vld [vmem:[%s6009_s30 + $0xfa] sm:$0xff] }
 0x1d0   : > { %v6658_v8 = vadd.f32 %v4949_v4, %v1885_v28  ;;  %v1877_v10 = vadd.f32 %v1876_v12, %v6574_v11 }
 0x1d1   : > { %v4904_v35 = vpop.f32.mrf.mxu1  ;;  %v4952_v25 = vpop.f32.mrf.mxu0  ;;  %5191 = vmatmul.mubr.bf16.gmra.mxu1 %v3544_v3  ;;  %5239 = vmatmul.mubr.bf16.gmra.mxu0 %v3851_v16  ;;  %v3547_v3 = vpack.c.bf16 %v4548_v30, %v4547_v43  ;;  %v3854_v16 = vpack.c.bf16 %v4589_v54, %v4588_v52  ;;  %v3855_v30 = vpack.c.bf16 %v4591_v61, %v4590_v41 }
 0x1d2   : > { %v6663_v5 = vadd.f32 %v2151_v34, %v1877_v10  ;;  %v1898_v7 = vadd.f32 %v4904_v35, %v6578_v58  ;;  %5194 = vmatprep.mubr.bf16.mxu1 %v3545_v42  ;;  %5242 = vmatprep.mubr.bf16.mxu0 %v3852_v39  ;;  %v4549_v10 = vld [vmem:[%s6009_s30 + $0xf1] sm:$0xff] }
 0x1d3   : > { %v1889_v45 = vpop.f32.mrf.mxu1  ;;  %v2164_v11 = vpop.f32.mrf.mxu0 }
 0x1d4   : > { %v6672_v59 = vadd.f32 %v4952_v25, %v1898_v7  ;;  %v1890_v55 = vadd.f32 %v1889_v45, %v6588_v37  ;;  %v4550_v25 = vld [vmem:[%s6009_s30 + $0xf9] sm:$0xff] }
 0x1d5   : > { %v4905_v2 = vpop.f32.mrf.mxu1  ;;  %v4953_v49 = vpop.f32.mrf.mxu0 }
 0x1d6   : > { %v6675_v58 = vadd.f32 %v2164_v11, %v1890_v55  ;;  %v1901_v4 = vadd.f32 %v4905_v2, %v6595_v23  ;;  %v3548_v11 = vpack.c.bf16 %v4550_v25, %v4549_v10 }
 0x1d7   : > { %v1892_v28 = vpop.f32.mrf.mxu1  ;;  %v2167_v42 = vpop.f32.mrf.mxu0 }
 0x1d8   : > { %v6678_v39 = vadd.f32 %v4953_v49, %v1901_v4  ;;  %v1893_v37 = vadd.f32 %v1892_v28, %v6599_v44  ;;  %v4556_v28 = vld [vmem:[%s6009_s30 + $0x129] sm:$0xff] }
 0x1d9   : > { %v4908_v12 = vpop.f32.mrf.mxu1  ;;  %v4956_v34 = vpop.f32.mrf.mxu0  ;;  %5195 = vmatmul.mubr.bf16.gmra.mxu1 %v3546_v57  ;;  %5243 = vmatmul.mubr.bf16.gmra.mxu0 %v3853_v62 }
 0x1da   : > { %v6682_v35 = vadd.f32 %v2167_v42, %v1893_v37  ;;  %v1914_v23 = vadd.f32 %v4908_v12, %v6505_v13  ;;  %5198 = vmatprep.mubr.bf16.mxu1 %v3547_v3  ;;  %5246 = vmatprep.mubr.bf16.mxu0 %v3854_v16  ;;  %v4596_v42 = vld [vmem:[%s6009_s30 + $0x122] sm:$0xff]  ;;  %v4597_v37 = vld [vmem:[%s6009_s30 + $0x12a] sm:$0xff] }
 0x1db   : > { %v1905_v7 = vpop.f32.mrf.mxu1  ;;  %v2180_v9 = vpop.f32.mrf.mxu0 }
 0x1dc   : > { %v6688_v56 = vadd.f32 %v4956_v34, %v1914_v23  ;;  %v1906_v44 = vadd.f32 %v1905_v7, %v6513_v14 }
 0x1dd   : > { %v4909_v43 = vpop.f32.mrf.mxu1  ;;  %v4957_v45 = vpop.f32.mrf.mxu0 }
 0x1de   : > { %v6691_v52 = vadd.f32 %v2180_v9, %v1906_v44  ;;  %v1917_v13 = vadd.f32 %v4909_v43, %v6517_v32  ;;  %v4555_v32 = vld [vmem:[%s6009_s30 + $0x121] sm:$0xff] }
 0x1df   : > { %v1908_v54 = vpop.f32.mrf.mxu1  ;;  %v2183_v55 = vpop.f32.mrf.mxu0 }
 0x1e0   : > { %v6694_v2 = vadd.f32 %v4957_v45, %v1917_v13  ;;  %v1909_v49 = vadd.f32 %v1908_v54, %v6521_v31  ;;  %v4558_v45 = vld [vmem:[%s6009_s30 + $0x139] sm:$0xff] }
 0x1e1   : > { %v4912_v57 = vpop.f32.mrf.mxu1  ;;  %v4960_v14 = vpop.f32.mrf.mxu0  ;;  %5199 = vmatmul.mubr.bf16.gmra.mxu1 %v3548_v11  ;;  %5247 = vmatmul.mubr.bf16.gmra.mxu0 %v3855_v30  ;;  %v4598_v11 = vld [vmem:[%s6009_s30 + $0x132] sm:$0xff]  ;;  %v4599_v30 = vld [vmem:[%s6009_s30 + $0x13a] sm:$0xff] }
 0x1e2   : > { %v6697_v62 = vadd.f32 %v2183_v55, %v1909_v49  ;;  %v1930_v4 = vadd.f32 %v4912_v57, %v6525_v33  ;;  %5202 = vmatprep.mubr.bf16.mxu1 %v6427_v22  ;;  %5250 = vmatprep.mubr.bf16.mxu0 %v6543_v53  ;;  %v3551_v22 = vpack.c.bf16 %v4556_v28, %v4555_v32 }
 0x1e3   : > { %v1921_v3 = vpop.f32.mrf.mxu1  ;;  %v2196_v16 = vpop.f32.mrf.mxu0  ;;  %v3858_v53 = vpack.c.bf16 %v4597_v37, %v4596_v42 }
 0x1e4   : > { %v6706_v12 = vadd.f32 %v4960_v14, %v1930_v4  ;;  %v1922_v31 = vadd.f32 %v1921_v3, %v6534_v51  ;;  %v4557_v51 = vld [vmem:[%s6009_s30 + $0x131] sm:$0xff] }
 0x1e5   : > { %v4913_v34 = vpop.f32.mrf.mxu1  ;;  %v4961_v10 = vpop.f32.mrf.mxu0  ;;  %v3552_v57 = vpack.c.bf16 %v4558_v45, %v4557_v51 }
 0x1e6   : > { %v6709_v23 = vadd.f32 %v2196_v16, %v1922_v31  ;;  %v1933_v33 = vadd.f32 %v4913_v34, %v6541_v1 }
 0x1e7   : > { %v1924_v25 = vpop.f32.mrf.mxu1  ;;  %v2199_v41 = vpop.f32.mrf.mxu0 }
 0x1e8   : > { %v6712_v61 = vadd.f32 %v4961_v10, %v1933_v33  ;;  %v1925_v7 = vadd.f32 %v1924_v25, %v6547_v15 }
 0x1e9   : > { %v4916_v9 = vpop.f32.mrf.mxu1  ;;  %v4964_v44 = vpop.f32.mrf.mxu0  ;;  %5203 = vmatmul.mubr.bf16.gmra.mxu1 %v6439_v36  ;;  %5251 = vmatmul.mubr.bf16.gmra.mxu0 %v6572_v20  ;;  %v3859_v20 = vpack.c.bf16 %v4599_v30, %v4598_v11 }
 0x1ea   : > { %v6718_v43 = vadd.f32 %v2199_v41, %v1925_v7  ;;  %v1946_v1 = vadd.f32 %v4916_v9, %v6551_v47  ;;  %5206 = vmatprep.mubr.bf16.mxu1 %v3551_v22  ;;  %5254 = vmatprep.mubr.bf16.mxu0 %v3858_v53 }
 0x1eb   : > { %v1937_v13 = vpop.f32.mrf.mxu1  ;;  %v2212_v54 = vpop.f32.mrf.mxu0 }
 0x1ec   : > { %v6724_v55 = vadd.f32 %v4964_v44, %v1946_v1  ;;  %v1938_v15 = vadd.f32 %v1937_v13, %v6563_v17 }
 0x1ed   : > { %v4917_v49 = vpop.f32.mrf.mxu1  ;;  %v4965_v36 = vpop.f32.mrf.mxu0 }
 0x1ee   : > { %v6727_v14 = vadd.f32 %v2212_v54, %v1938_v15  ;;  %v1949_v4 = vadd.f32 %v4917_v49, %v6570_v24 }
 0x1ef   : > { %v1940_v47 = vpop.f32.mrf.mxu1  ;;  %v2215_v32 = vpop.f32.mrf.mxu0 }
 0x1f0   : > { %v6730_v3 = vadd.f32 %v4965_v36, %v1949_v4  ;;  %v1941_v16 = vadd.f32 %v1940_v47, %v6576_v21 }
 0x1f1   : > { %v4920_v28 = vpop.f32.mrf.mxu1  ;;  %v4968_v42 = vpop.f32.mrf.mxu0  ;;  %5207 = vmatmul.mubr.bf16.gmra.mxu1 %v3552_v57  ;;  %5255 = vmatmul.mubr.bf16.gmra.mxu0 %v3859_v20 }
 0x1f2   : > { %v6733_v37 = vadd.f32 %v2215_v32, %v1941_v16  ;;  %v1962_v17 = vadd.f32 %v4920_v28, %v6580_v63 }
 0x1f3   : > { %v1953_v31 = vpop.f32.mrf.mxu1  ;;  %v2228_v34 = vpop.f32.mrf.mxu0 }
 0x1f4   : > { %v6736_v10 = vadd.f32 %v4968_v42, %v1962_v17  ;;  %v1954_v24 = vadd.f32 %v1953_v31, %v6590_v50 }
 0x1f5   : > { %v4921_v33 = vpop.f32.mrf.mxu1  ;;  %v4969_v22 = vpop.f32.mrf.mxu0 }
 0x1f6   : > { %v6739_v53 = vadd.f32 %v2228_v34, %v1954_v24  ;;  %v1965_v21 = vadd.f32 %v4921_v33, %v6597_v27 }
 0x1f7   : > { %v1956_v25 = vpop.f32.mrf.mxu1  ;;  %v2231_v41 = vpop.f32.mrf.mxu0 }
 0x1f8   : > { %v6742_v7 = vadd.f32 %v4969_v22, %v1965_v21  ;;  %v1957_v9 = vadd.f32 %v1956_v25, %v6601_v46 }
 0x1f9   : > { %v4988_v44 = vpop.f32.mrf.mxu1  ;;  %v5036_v63 = vpop.f32.mrf.mxu0 }
 0x1fa   : > { %v6745_v51 = vadd.f32 %v2231_v41, %v1957_v9  ;;  %v2552_v1 = vadd.f32 %v4988_v44, %v6612_v60 }
 0x1fb   : > { %v2423_v45 = vpop.f32.mrf.mxu1  ;;  %v2730_v50 = vpop.f32.mrf.mxu0 }
 0x1fc   : > { %v6748_v11 = vadd.f32 %v5036_v63, %v2552_v1  ;;  %v2550_v30 = vadd.f32 %v2423_v45, %v6615_v18 }
 0x1fd   : > { %v4989_v13 = vpop.f32.mrf.mxu1  ;;  %v5037_v27 = vpop.f32.mrf.mxu0 }
 0x1fe   : > { %v6751_v54 = vadd.f32 %v2730_v50, %v2550_v30  ;;  %v2553_v15 = vadd.f32 %v4989_v13, %v6618_v26 }
 0x1ff   : > { %v2426_v49 = vpop.f32.mrf.mxu1  ;;  %v2733_v46 = vpop.f32.mrf.mxu0 }
 0x200   : > { %v6754_v36 = vadd.f32 %v5037_v27, %v2553_v15  ;;  %v2551_v57 = vadd.f32 %v2426_v49, %v6623_v40 }
 0x201   : > { %v4992_v20 = vpop.f32.mrf.mxu1  ;;  %v5040_v60 = vpop.f32.mrf.mxu0 }
 0x202   : > { %v6757_v4 = vadd.f32 %v2733_v46, %v2551_v57  ;;  %v2556_v47 = vadd.f32 %v4992_v20, %v6632_v0 }
 0x203   : > { %v2439_v32 = vpop.f32.mrf.mxu1  ;;  %v2746_v18 = vpop.f32.mrf.mxu0 }
 0x204   : > { %v6760_v16 = vadd.f32 %v5040_v60, %v2556_v47  ;;  %v2554_v28 = vadd.f32 %v2439_v32, %v6635_v48 }
 0x205   : > { %v4993_v42 = vpop.f32.mrf.mxu1  ;;  %v5041_v26 = vpop.f32.mrf.mxu0 }
 0x206   : > { %v6763_v17 = vadd.f32 %v2746_v18, %v2554_v28  ;;  %v2557_v31 = vadd.f32 %v4993_v42, %v6638_v6 }
 0x207   : > { %v2442_v34 = vpop.f32.mrf.mxu1  ;;  %v2749_v40 = vpop.f32.mrf.mxu0 }
 0x208   : > { %v6766_v24 = vadd.f32 %v5041_v26, %v2557_v31  ;;  %v2555_v33 = vadd.f32 %v2442_v34, %v6643_v29 }
 0x209   : > { %v4996_v22 = vpop.f32.mrf.mxu1  ;;  %v5044_v0 = vpop.f32.mrf.mxu0 }
 0x20a   : > { %v6769_v21 = vadd.f32 %v2749_v40, %v2555_v33  ;;  %v2560_v25 = vadd.f32 %v4996_v22, %v6652_v38 }
 0x20b   : > { %v2455_v41 = vpop.f32.mrf.mxu1  ;;  %v2762_v48 = vpop.f32.mrf.mxu0 }
 0x20c   : > { %v6772_v9 = vadd.f32 %v5044_v0, %v2560_v25  ;;  %v2558_v44 = vadd.f32 %v2455_v41, %v6655_v19 }
 0x20d   : > { %v4997_v63 = vpop.f32.mrf.mxu1  ;;  %v5045_v6 = vpop.f32.mrf.mxu0 }
 0x20e   : > { %v6775_v1 = vadd.f32 %v2762_v48, %v2558_v44  ;;  %v2561_v45 = vadd.f32 %v4997_v63, %v6658_v8 }
 0x20f   : > { %v2458_v50 = vpop.f32.mrf.mxu1  ;;  %v2765_v29 = vpop.f32.mrf.mxu0 }
 0x210   : > { %v6778_v30 = vadd.f32 %v5045_v6, %v2561_v45  ;;  %v2559_v13 = vadd.f32 %v2458_v50, %v6663_v5 }
 0x211   : > { %v5000_v27 = vpop.f32.mrf.mxu1  ;;  %v5048_v38 = vpop.f32.mrf.mxu0 }
 0x212   : > { %v6781_v15 = vadd.f32 %v2765_v29, %v2559_v13  ;;  %v2564_v49 = vadd.f32 %v5000_v27, %v6672_v59 }
 0x213   : > { %v2471_v46 = vpop.f32.mrf.mxu1  ;;  %v2778_v19 = vpop.f32.mrf.mxu0 }
 0x214   : > { %v6784_v57 = vadd.f32 %v5048_v38, %v2564_v49  ;;  %v2562_v20 = vadd.f32 %v2471_v46, %v6675_v58 }
 0x215   : > { %v5001_v60 = vpop.f32.mrf.mxu1  ;;  %v5049_v8 = vpop.f32.mrf.mxu0 }
 0x216   : > { %v6787_v47 = vadd.f32 %v2778_v19, %v2562_v20  ;;  %v2565_v32 = vadd.f32 %v5001_v60, %v6678_v39 }
 0x217   : > { %v2474_v18 = vpop.f32.mrf.mxu1  ;;  %v2781_v5 = vpop.f32.mrf.mxu0 }
 0x218   : > { %v6790_v28 = vadd.f32 %v5049_v8, %v2565_v32  ;;  %v2563_v42 = vadd.f32 %v2474_v18, %v6682_v35 }
 0x219   : > { %v5004_v26 = vpop.f32.mrf.mxu1  ;;  %v5052_v59 = vpop.f32.mrf.mxu0 }
 0x21a   : > { %v6793_v31 = vadd.f32 %v2781_v5, %v2563_v42  ;;  %v2568_v34 = vadd.f32 %v5004_v26, %v6688_v56 }
 0x21b   : > { %v2487_v40 = vpop.f32.mrf.mxu1  ;;  %v2794_v58 = vpop.f32.mrf.mxu0 }
 0x21c   : > { %v6796_v33 = vadd.f32 %v5052_v59, %v2568_v34  ;;  %v2566_v22 = vadd.f32 %v2487_v40, %v6691_v52 }
 0x21d   : > { %v5005_v0 = vpop.f32.mrf.mxu1  ;;  %v5053_v39 = vpop.f32.mrf.mxu0 }
 0x21e   : > { %v6799_v25 = vadd.f32 %v2794_v58, %v2566_v22  ;;  %v2569_v41 = vadd.f32 %v5005_v0, %v6694_v2 }
 0x21f   : > { %v2490_v48 = vpop.f32.mrf.mxu1  ;;  %v2797_v35 = vpop.f32.mrf.mxu0 }
 0x220   : > { %v6802_v44 = vadd.f32 %v5053_v39, %v2569_v41  ;;  %v2567_v63 = vadd.f32 %v2490_v48, %v6697_v62 }
 0x221   : > { %v5008_v6 = vpop.f32.mrf.mxu1  ;;  %v5056_v56 = vpop.f32.mrf.mxu0 }
 0x222   : > { %7113 = vst [vmem:[#allocation3_spill] sm:$0xff] %v6802_v44  ;;  %v6805_v45 = vadd.f32 %v2797_v35, %v2567_v63  ;;  %v2572_v50 = vadd.f32 %v5008_v6, %v6706_v12 }
 0x223   : > { %v2503_v29 = vpop.f32.mrf.mxu1  ;;  %v2810_v52 = vpop.f32.mrf.mxu0 }
 0x224   : > { %7114 = vst [vmem:[#allocation4_spill] sm:$0xff] %v6805_v45  ;;  %v6808_v13 = vadd.f32 %v5056_v56, %v2572_v50  ;;  %v2570_v27 = vadd.f32 %v2503_v29, %v6709_v23 }
 0x225   : > { %v5009_v38 = vpop.f32.mrf.mxu1  ;;  %v5057_v2 = vpop.f32.mrf.mxu0 }
 0x226   : > { %7115 = vst [vmem:[#allocation5_spill] sm:$0xff] %v6808_v13  ;;  %v6811_v49 = vadd.f32 %v2810_v52, %v2570_v27  ;;  %v2573_v46 = vadd.f32 %v5009_v38, %v6712_v61 }
 0x227   : > { %v2506_v19 = vpop.f32.mrf.mxu1  ;;  %v2813_v62 = vpop.f32.mrf.mxu0 }
 0x228   : > { %7116 = vst [vmem:[#allocation6_spill] sm:$0xff] %v6811_v49  ;;  %v6814_v20 = vadd.f32 %v5057_v2, %v2573_v46  ;;  %v2571_v60 = vadd.f32 %v2506_v19, %v6718_v43 }
 0x229   : > { %v5012_v8 = vpop.f32.mrf.mxu1  ;;  %v5060_v12 = vpop.f32.mrf.mxu0 }
 0x22a   : > { %7117 = vst [vmem:[#allocation7_spill] sm:$0xff] %v6814_v20  ;;  %v6817_v32 = vadd.f32 %v2813_v62, %v2571_v60  ;;  %v2576_v18 = vadd.f32 %v5012_v8, %v6724_v55 }
 0x22b   : > { %v2519_v5 = vpop.f32.mrf.mxu1  ;;  %v2826_v23 = vpop.f32.mrf.mxu0 }
 0x22c   : > { %7118 = vst [vmem:[#allocation8_spill] sm:$0xff] %v6817_v32  ;;  %v6820_v42 = vadd.f32 %v5060_v12, %v2576_v18  ;;  %v2574_v26 = vadd.f32 %v2519_v5, %v6727_v14 }
 0x22d   : > { %v5013_v59 = vpop.f32.mrf.mxu1  ;;  %v5061_v61 = vpop.f32.mrf.mxu0 }
 0x22e   : > { %7119 = vst [vmem:[#allocation9_spill] sm:$0xff] %v6820_v42  ;;  %v6823_v34 = vadd.f32 %v2826_v23, %v2574_v26  ;;  %v2577_v40 = vadd.f32 %v5013_v59, %v6730_v3 }
 0x22f   : > { %v2522_v58 = vpop.f32.mrf.mxu1  ;;  %v2829_v43 = vpop.f32.mrf.mxu0 }
 0x230   : > { %7120 = vst [vmem:[#allocation10_spill] sm:$0xff] %v6823_v34  ;;  %v6826_v22 = vadd.f32 %v5061_v61, %v2577_v40  ;;  %v2575_v0 = vadd.f32 %v2522_v58, %v6733_v37 }
 0x231   : > { %v5016_v39 = vpop.f32.mrf.mxu1  ;;  %v5064_v55 = vpop.f32.mrf.mxu0 }
 0x232   : > { %7121 = vst [vmem:[#allocation11_spill] sm:$0xff] %v6826_v22  ;;  %v6829_v41 = vadd.f32 %v2829_v43, %v2575_v0  ;;  %v2580_v48 = vadd.f32 %v5016_v39, %v6736_v10 }
 0x233   : > { %v2535_v35 = vpop.f32.mrf.mxu1  ;;  %v2842_v14 = vpop.f32.mrf.mxu0 }
 0x234   : > { %7122 = vst [vmem:[#allocation12_spill] sm:$0xff] %v6829_v41  ;;  %v6832_v63 = vadd.f32 %v5064_v55, %v2580_v48  ;;  %v2578_v6 = vadd.f32 %v2535_v35, %v6739_v53 }
 0x235   : > { %v5017_v56 = vpop.f32.mrf.mxu1  ;;  %v5065_v3 = vpop.f32.mrf.mxu0 }
 0x236   : > { %7123 = vst [vmem:[#allocation13_spill] sm:$0xff] %v6832_v63  ;;  %v6835_v50 = vadd.f32 %v2842_v14, %v2578_v6  ;;  %v2581_v29 = vadd.f32 %v5017_v56, %v6742_v7 }
 0x237   : > { %v2538_v52 = vpop.f32.mrf.mxu1  ;;  %v2845_v37 = vpop.f32.mrf.mxu0 }
 0x238   : > { %7124 = vst [vmem:[#allocation14_spill] sm:$0xff] %v6835_v50  ;;  %v6838_v27 = vadd.f32 %v5065_v3, %v2581_v29  ;;  %v2579_v38 = vadd.f32 %v2538_v52, %v6745_v51 }
 0x239   : > { %v5084_v2 = vpop.f32.mrf.mxu1  ;;  %v6841_v10 = vpop.f32.mrf.mxu0 }
 0x23a   : > { %7125 = vst [vmem:[#allocation15_spill] sm:$0xff] %v6838_v27  ;;  %v6843_v46 = vadd.f32 %v2845_v37, %v2579_v38 }
 0x23b   : > { %v3037_v19 = vpop.f32.mrf.mxu1  ;;  %v6845_v62 = vpop.f32.mrf.mxu0 }
 0x23c   : > { %7126 = vst [vmem:[#allocation16_spill] sm:$0xff] %v6843_v46 }
 0x23d   : > { %v6847_v53 = vpop.f32.mrf.mxu1  ;;  %v6849_v60 = vpop.f32.mrf.mxu0 }
 0x23f   : > { %v6851_v8 = vpop.f32.mrf.mxu1  ;;  %v6853_v7 = vpop.f32.mrf.mxu0 }
 0x241   : > { %v6855_v12 = vpop.f32.mrf.mxu1  ;;  %v6857_v18 = vpop.f32.mrf.mxu0 }
 0x243   : > { %v6859_v51 = vpop.f32.mrf.mxu1  ;;  %v6861_v5 = vpop.f32.mrf.mxu0 }
 0x245   : > { %v6863_v23 = vpop.f32.mrf.mxu1  ;;  %v6865_v26 = vpop.f32.mrf.mxu0 }
 0x247   : > { %v6867_v59 = vpop.f32.mrf.mxu1  ;;  %v6869_v61 = vpop.f32.mrf.mxu0 }
 0x249   : > { %v6871_v40 = vpop.f32.mrf.mxu1  ;;  %v6873_v58 = vpop.f32.mrf.mxu0 }
 0x24b   : > { %v6875_v43 = vpop.f32.mrf.mxu1  ;;  %v6877_v0 = vpop.f32.mrf.mxu0 }
 0x24d   : > { %v6879_v39 = vpop.f32.mrf.mxu1  ;;  %v6881_v55 = vpop.f32.mrf.mxu0 }
 0x24f   : > { %v6883_v48 = vpop.f32.mrf.mxu1  ;;  %v6885_v35 = vpop.f32.mrf.mxu0 }
 0x251   : > { %v6887_v14 = vpop.f32.mrf.mxu1  ;;  %v6889_v6 = vpop.f32.mrf.mxu0 }
 0x253   : > { %v6891_v56 = vpop.f32.mrf.mxu1  ;;  %v6893_v3 = vpop.f32.mrf.mxu0 }
 0x255   : > { %v6895_v29 = vpop.f32.mrf.mxu1  ;;  %v6897_v52 = vpop.f32.mrf.mxu0 }
 0x257   : > { %v6899_v37 = vpop.f32.mrf.mxu1  ;;  %v6901_v38 = vpop.f32.mrf.mxu0 }
 0x259   : > { %v6903_v46 = vpop.f32.mrf.mxu1  ;;  %v6905_v27 = vpop.f32.mrf.mxu0 }
 0x25b   : > { %v6907_v50 = vpop.f32.mrf.mxu1  ;;  %v6909_v63 = vpop.f32.mrf.mxu0 }
 0x25c   : > { %7127 = vst [vmem:[#allocation17_spill] sm:$0xff] %v6909_v63 }
 0x25d   : > { %v6911_v41 = vpop.f32.mrf.mxu1  ;;  %v6913_v22 = vpop.f32.mrf.mxu0 }
 0x25e   : > { %7128 = vst [vmem:[#allocation18_spill] sm:$0xff] %v6911_v41  ;;  %7129 = vst [vmem:[#allocation19_spill] sm:$0xff] %v6913_v22 }
 0x25f   : > { %v6915_v34 = vpop.f32.mrf.mxu1  ;;  %v6917_v42 = vpop.f32.mrf.mxu0 }
 0x260   : > { %7130 = vst [vmem:[#allocation20_spill] sm:$0xff] %v6915_v34  ;;  %7131 = vst [vmem:[#allocation21_spill] sm:$0xff] %v6917_v42 }
 0x261   : > { %v6919_v32 = vpop.f32.mrf.mxu1  ;;  %v6921_v20 = vpop.f32.mrf.mxu0 }
 0x262   : > { %7132 = vst [vmem:[#allocation22_spill] sm:$0xff] %v6919_v32  ;;  %7133 = vst [vmem:[#allocation23_spill] sm:$0xff] %v6921_v20 }
 0x263   : > { %v6923_v49 = vpop.f32.mrf.mxu1  ;;  %v6925_v13 = vpop.f32.mrf.mxu0 }
 0x264   : > { %7134 = vst [vmem:[#allocation24_spill] sm:$0xff] %v6923_v49  ;;  %7135 = vst [vmem:[#allocation25_spill] sm:$0xff] %v6925_v13 }
 0x265   : > { %v6927_v45 = vpop.f32.mrf.mxu1  ;;  %v6929_v44 = vpop.f32.mrf.mxu0 }
 0x266   : > { %7136 = vst [vmem:[#allocation26_spill] sm:$0xff] %v6927_v45  ;;  %7137 = vst [vmem:[#allocation27_spill] sm:$0xff] %v6929_v44 }
 0x267   : > { %v6931_v63 = vpop.f32.mrf.mxu1  ;;  %v6933_v41 = vpop.f32.mrf.mxu0 }
 0x268   : > { %7138 = vst [vmem:[#allocation28_spill] sm:$0xff] %v6931_v63  ;;  %7139 = vst [vmem:[#allocation29_spill] sm:$0xff] %v6933_v41 }
 0x269   : > { %v6935_v22 = vpop.f32.mrf.mxu1  ;;  %v6937_v34 = vpop.f32.mrf.mxu0 }
 0x26a   : > { %7140 = vst [vmem:[#allocation30_spill] sm:$0xff] %v6935_v22  ;;  %7141 = vst [vmem:[#allocation31_spill] sm:$0xff] %v6937_v34  ;;  %v3166_v34 = vadd.f32 %v5084_v2, %v6748_v11  ;;  %v3165_v2 = vadd.f32 %v6851_v8, %v6757_v4 }
 0x26b   : > { %v6939_v42 = vpop.f32.mrf.mxu1  ;;  %v6941_v32 = vpop.f32.mrf.mxu0 }
 0x26c   : > { %7142 = vst [vmem:[#allocation32_spill] sm:$0xff] %v6939_v42  ;;  %7143 = vst [vmem:[#allocation33_spill] sm:$0xff] %v6941_v32 }
 0x26d   : > { %v6943_v20 = vpop.f32.mrf.mxu1  ;;  %v6945_v49 = vpop.f32.mrf.mxu0 }
 0x26e   : > { %7144 = vst [vmem:[#allocation34_spill] sm:$0xff] %v6943_v20  ;;  %7145 = vst [vmem:[#allocation35_spill] sm:$0xff] %v6945_v49  ;;  %v3164_v49 = vadd.f32 %v3037_v19, %v6751_v54 }
 0x26f   : > { %v6947_v13 = vpop.f32.mrf.mxu1  ;;  %v6949_v45 = vpop.f32.mrf.mxu0 }
 0x270   : > { %7146 = vst [vmem:[#allocation36_spill] sm:$0xff] %v6947_v13  ;;  %7147 = vst [vmem:[#allocation37_spill] sm:$0xff] %v6949_v45  ;;  %v3473_v45 = vadd.f32 %v6841_v10, %v3166_v34  ;;  %v3471_v11 = vadd.f32 %v6845_v62, %v3164_v49  ;;  %v3170_v34 = vadd.f32 %v6855_v12, %v6760_v16 }
 0x271   : > { %v6951_v44 = vpop.f32.mrf.mxu1  ;;  %v6953_v63 = vpop.f32.mrf.mxu0  ;;  %v3168_v49 = vadd.f32 %v6859_v51, %v6763_v17  ;;  %v3171_v16 = vadd.f32 %v6863_v23, %v6766_v24  ;;  %v3169_v17 = vadd.f32 %v6867_v59, %v6769_v21  ;;  %v3174_v24 = vadd.f32 %v6871_v40, %v6772_v9 }
 0x272   : > { %7148 = vst [vmem:[#allocation38_spill] sm:$0xff] %v6953_v63  ;;  %v3167_v63 = vadd.f32 %v6847_v53, %v6754_v36  ;;  %v3172_v21 = vadd.f32 %v6875_v43, %v6775_v1  ;;  %v3175_v9 = vadd.f32 %v6879_v39, %v6778_v30  ;;  %v3173_v1 = vadd.f32 %v6883_v48, %v6781_v15 }
 0x273   : > { %v6955_v41 = vpop.f32.mrf.mxu1  ;;  %v6957_v22 = vpop.f32.mrf.mxu0  ;;  %v3475_v8 = vadd.f32 %v6861_v5, %v3168_v49  ;;  %v3478_v51 = vadd.f32 %v6865_v26, %v3171_v16  ;;  %v3178_v30 = vadd.f32 %v6887_v14, %v6784_v57  ;;  %v3176_v15 = vadd.f32 %v6891_v56, %v6787_v47 }
 0x274   : > { %7149 = vst [vmem:[#allocation39_spill] sm:$0xff] %v6955_v41  ;;  %7150 = vst [vmem:[#allocation40_spill] sm:$0xff] %v6957_v22  ;;  %v3474_v19 = vadd.f32 %v6849_v60, %v3167_v63  ;;  %v3477_v63 = vadd.f32 %v6857_v18, %v3170_v34  ;;  %v3481_v34 = vadd.f32 %v6873_v58, %v3174_v24 }
 0x275   : > { %v6960_v42 = vpop.f32.mrf.mxu1  ;;  %v6962_v32 = vpop.f32.mrf.mxu0  ;;  %v3179_v57 = vadd.f32 %v6895_v29, %v6790_v28  ;;  %v3177_v47 = vadd.f32 %v6899_v37, %v6793_v31  ;;  %v3182_v28 = vadd.f32 %v6903_v46, %v6796_v33  ;;  %v3180_v31 = vadd.f32 %v6907_v50, %v6799_v25  ;;  %v7156_v33 = vld [vmem:[#allocation18_spill] sm:$0xff]  ;;  %v7159_v25 = vld [vmem:[#allocation20_spill] sm:$0xff] }
 0x276   : > { %7151 = vst [vmem:[#allocation41_spill] sm:$0xff] %v6960_v42  ;;  %7152 = vst [vmem:[#allocation42_spill] sm:$0xff] %v6962_v32 }
 0x277   : > { %v6965_v20 = vpop.f32.mrf.mxu1  ;;  %v6967_v13 = vpop.f32.mrf.mxu0 }
 0x278   : > { %7153 = vst [vmem:[#allocation43_spill] sm:$0xff] %v6965_v20  ;;  %7154 = vst [vmem:[#allocation44_spill] sm:$0xff] %v6967_v13  ;;  %v3472_v20 = vadd.f32 %v6853_v7, %v3165_v2  ;;  %v3476_v2 = vadd.f32 %v6869_v61, %v3169_v17 }
 0x279   : > { %v5180_v41 = vpop.f32.mrf.mxu1  ;;  %v5228_v22 = vpop.f32.mrf.mxu0 }
 0x27a   : > { %v3780_v32 = vadd.f32 %v5180_v41, %v3473_v45 }
 0x27b   : > { %v3651_v42 = vpop.f32.mrf.mxu1  ;;  %v3958_v54 = vpop.f32.mrf.mxu0 }
 0x27c   : > { %v4087_v10 = vadd.f32 %v5228_v22, %v3780_v32  ;;  %v3778_v13 = vadd.f32 %v3651_v42, %v3471_v11 }
 0x27d   : > { %v5181_v36 = vpop.f32.mrf.mxu1  ;;  %v5229_v53 = vpop.f32.mrf.mxu0 }
 0x27e   : > { %4119 = vst [vmem:[%s5497_s6 + $0x10] sm:$0xff] %v4087_v10  ;;  %v4085_v4 = vadd.f32 %v3958_v54, %v3778_v13  ;;  %v3781_v45 = vadd.f32 %v5181_v36, %v3474_v19 }
 0x27f   : > { %v3654_v41 = vpop.f32.mrf.mxu1  ;;  %v3961_v62 = vpop.f32.mrf.mxu0 }
 0x280   : > { %4117 = vst [vmem:[%s5497_s6] sm:$0xff] %v4085_v4  ;;  %v4088_v32 = vadd.f32 %v5229_v53, %v3781_v45  ;;  %v3779_v42 = vadd.f32 %v3654_v41, %v3472_v20  ;;  %v3479_v53 = vadd.f32 %v6877_v0, %v3172_v21  ;;  %v3482_v45 = vadd.f32 %v6881_v55, %v3175_v9 }
 0x281   : > { %v5184_v22 = vpop.f32.mrf.mxu1  ;;  %v5232_v60 = vpop.f32.mrf.mxu0 }
 0x282   : > { %4120 = vst [vmem:[%s5497_s6 + $0x18] sm:$0xff] %v4088_v32  ;;  %v4086_v13 = vadd.f32 %v3961_v62, %v3779_v42  ;;  %v3784_v7 = vadd.f32 %v5184_v22, %v3477_v63  ;;  %v3480_v63 = vadd.f32 %v6885_v35, %v3173_v1  ;;  %v3485_v42 = vadd.f32 %v6889_v6, %v3178_v30  ;;  %v7164_v30 = vld [vmem:[#allocation6_spill] sm:$0xff] }
 0x283   : > { %v3667_v12 = vpop.f32.mrf.mxu1  ;;  %v3974_v18 = vpop.f32.mrf.mxu0 }
 0x284   : > { %4118 = vst [vmem:[%s5497_s6 + $0x8] sm:$0xff] %v4086_v13  ;;  %v4091_v20 = vadd.f32 %v5232_v60, %v3784_v7  ;;  %v3782_v23 = vadd.f32 %v3667_v12, %v3475_v8  ;;  %v3483_v8 = vadd.f32 %v6893_v3, %v3176_v15  ;;  %v3486_v7 = vadd.f32 %v6897_v52, %v3179_v57 }
 0x285   : > { %v5185_v11 = vpop.f32.mrf.mxu1  ;;  %v5233_v5 = vpop.f32.mrf.mxu0 }
 0x286   : > { %4123 = vst [vmem:[%s5497_s6 + $0x30] sm:$0xff] %v4091_v20  ;;  %v4089_v59 = vadd.f32 %v3974_v18, %v3782_v23  ;;  %v3785_v54 = vadd.f32 %v5185_v11, %v3478_v51  ;;  %v3484_v51 = vadd.f32 %v6901_v38, %v3177_v47  ;;  %v3489_v23 = vadd.f32 %v6905_v27, %v3182_v28  ;;  %v7155_v11 = vld [vmem:[#allocation3_spill] sm:$0xff]  ;;  %v7170_v47 = vld [vmem:[#allocation8_spill] sm:$0xff] }
 0x287   : > { %v3670_v19 = vpop.f32.mrf.mxu1  ;;  %v3977_v26 = vpop.f32.mrf.mxu0  ;;  %v3183_v46 = vadd.f32 %v7156_v33, %v7155_v11  ;;  %v7176_v11 = vld [vmem:[#allocation10_spill] sm:$0xff]  ;;  %v7177_v33 = vld [vmem:[#allocation32_spill] sm:$0xff] }
 0x288   : > { %4121 = vst [vmem:[%s5497_s6 + $0x20] sm:$0xff] %v4089_v59  ;;  %v4092_v40 = vadd.f32 %v5233_v5, %v3785_v54  ;;  %v3783_v10 = vadd.f32 %v3670_v19, %v3476_v2  ;;  %v7157_v59 = vld [vmem:[#allocation17_spill] sm:$0xff]  ;;  %v7158_v19 = vld [vmem:[#allocation4_spill] sm:$0xff] }
 0x289   : > { %v5188_v36 = vpop.f32.mrf.mxu1  ;;  %v5236_v61 = vpop.f32.mrf.mxu0  ;;  %v3487_v54 = vadd.f32 %v7157_v59, %v3180_v31  ;;  %v3181_v50 = vadd.f32 %v7159_v25, %v7158_v19  ;;  %v7178_v59 = vld [vmem:[#allocation31_spill] sm:$0xff]  ;;  %v7180_v25 = vld [vmem:[#allocation34_spill] sm:$0xff] }
 0x28a   : > { %4124 = vst [vmem:[%s5497_s6 + $0x38] sm:$0xff] %v4092_v40  ;;  %v4090_v43 = vadd.f32 %v3977_v26, %v3783_v10  ;;  %v3788_v49 = vadd.f32 %v5188_v36, %v3481_v34  ;;  %v7160_v40 = vld [vmem:[#allocation19_spill] sm:$0xff]  ;;  %v7161_v36 = vld [vmem:[#allocation5_spill] sm:$0xff] }
 0x28b   : > { %v3683_v4 = vpop.f32.mrf.mxu1  ;;  %v3990_v58 = vpop.f32.mrf.mxu0  ;;  %v3490_v10 = vadd.f32 %v7160_v40, %v3183_v46  ;;  %v3188_v46 = vadd.f32 %v7177_v33, %v7176_v11  ;;  %v7179_v19 = vld [vmem:[#allocation11_spill] sm:$0xff]  ;;  %v7181_v40 = vld [vmem:[#allocation33_spill] sm:$0xff] }
 0x28c   : > { %4122 = vst [vmem:[%s5497_s6 + $0x28] sm:$0xff] %v4090_v43  ;;  %v4095_v39 = vadd.f32 %v5236_v61, %v3788_v49  ;;  %v3786_v41 = vadd.f32 %v3683_v4, %v3479_v53  ;;  %v7162_v61 = vld [vmem:[#allocation22_spill] sm:$0xff] }
 0x28d   : > { %v5189_v62 = vpop.f32.mrf.mxu1  ;;  %v5237_v0 = vpop.f32.mrf.mxu0  ;;  %v3186_v53 = vadd.f32 %v7162_v61, %v7161_v36  ;;  %v7182_v36 = vld [vmem:[#allocation12_spill] sm:$0xff] }
 0x28e   : > { %4127 = vst [vmem:[%s5497_s6 + $0x50] sm:$0xff] %v4095_v39  ;;  %v4093_v48 = vadd.f32 %v3990_v58, %v3786_v41  ;;  %v3789_v16 = vadd.f32 %v5189_v62, %v3482_v45  ;;  %v7163_v58 = vld [vmem:[#allocation21_spill] sm:$0xff]  ;;  %v7165_v39 = vld [vmem:[#allocation24_spill] sm:$0xff] }
 0x28f   : > { %v3686_v32 = vpop.f32.mrf.mxu1  ;;  %v3993_v55 = vpop.f32.mrf.mxu0  ;;  %v3488_v45 = vadd.f32 %v7163_v58, %v3181_v50  ;;  %v3184_v41 = vadd.f32 %v7165_v39, %v7164_v30  ;;  %v3191_v50 = vadd.f32 %v7180_v25, %v7179_v19  ;;  %v7183_v61 = vld [vmem:[#allocation36_spill] sm:$0xff]  ;;  %v7184_v58 = vld [vmem:[#allocation35_spill] sm:$0xff]  ;;  %v7185_v30 = vld [vmem:[#allocation13_spill] sm:$0xff] }
 0x290   : > { %4125 = vst [vmem:[%s5497_s6 + $0x40] sm:$0xff] %v4093_v48  ;;  %v4096_v14 = vadd.f32 %v5237_v0, %v3789_v16  ;;  %v3787_v22 = vadd.f32 %v3686_v32, %v3480_v63  ;;  %v7166_v48 = vld [vmem:[#allocation23_spill] sm:$0xff]  ;;  %v3194_v39 = vadd.f32 %v6951_v44, %v7185_v30 }
 0x291   : > { %v5192_v60 = vpop.f32.mrf.mxu1  ;;  %v5240_v35 = vpop.f32.mrf.mxu0  ;;  %v3493_v16 = vadd.f32 %v7166_v48, %v3186_v53  ;;  %v7167_v32 = vld [vmem:[#allocation7_spill] sm:$0xff]  ;;  %v3189_v53 = vadd.f32 %v7183_v61, %v7182_v36 }
 0x292   : > { %4128 = vst [vmem:[%s5497_s6 + $0x58] sm:$0xff] %v4096_v14  ;;  %v4094_v56 = vadd.f32 %v3993_v55, %v3787_v22  ;;  %v3792_v17 = vadd.f32 %v5192_v60, %v3485_v42  ;;  %v7168_v55 = vld [vmem:[#allocation26_spill] sm:$0xff]  ;;  %v7190_v44 = vld [vmem:[#allocation15_spill] sm:$0xff] }
 0x293   : > { %v3699_v13 = vpop.f32.mrf.mxu1  ;;  %v4006_v6 = vpop.f32.mrf.mxu0  ;;  %v3187_v42 = vadd.f32 %v7168_v55, %v7167_v32  ;;  %v7188_v32 = vld [vmem:[#allocation39_spill] sm:$0xff] }
 0x294   : > { %4126 = vst [vmem:[%s5497_s6 + $0x48] sm:$0xff] %v4094_v56  ;;  %v4099_v29 = vadd.f32 %v5240_v35, %v3792_v17  ;;  %v3790_v12 = vadd.f32 %v3699_v13, %v3483_v8  ;;  %v7169_v35 = vld [vmem:[#allocation25_spill] sm:$0xff]  ;;  %v7171_v56 = vld [vmem:[#allocation28_spill] sm:$0xff] }
 0x295   : > { %v5193_v18 = vpop.f32.mrf.mxu1  ;;  %v5241_v3 = vpop.f32.mrf.mxu0  ;;  %v3491_v8 = vadd.f32 %v7169_v35, %v3184_v41  ;;  %v3185_v17 = vadd.f32 %v7171_v56, %v7170_v47 }
 0x296   : > { %4131 = vst [vmem:[%s5497_s6 + $0x70] sm:$0xff] %v4099_v29  ;;  %v4097_v37 = vadd.f32 %v4006_v6, %v3790_v12  ;;  %v3793_v24 = vadd.f32 %v5193_v18, %v3486_v7  ;;  %v7172_v29 = vld [vmem:[#allocation27_spill] sm:$0xff]  ;;  %v7173_v18 = vld [vmem:[#allocation9_spill] sm:$0xff] }
 0x297   : > { %v3702_v20 = vpop.f32.mrf.mxu1  ;;  %v4009_v52 = vpop.f32.mrf.mxu0  ;;  %v3494_v12 = vadd.f32 %v7172_v29, %v3187_v42  ;;  %v7193_v29 = vld [vmem:[#allocation16_spill] sm:$0xff] }
 0x298   : > { %4129 = vst [vmem:[%s5497_s6 + $0x60] sm:$0xff] %v4097_v37  ;;  %v4100_v5 = vadd.f32 %v5241_v3, %v3793_v24  ;;  %v3791_v2 = vadd.f32 %v3702_v20, %v3484_v51  ;;  %v7174_v3 = vld [vmem:[#allocation30_spill] sm:$0xff] }
 0x299   : > { %v5196_v21 = vpop.f32.mrf.mxu1  ;;  %v5244_v38 = vpop.f32.mrf.mxu0  ;;  %v3190_v51 = vadd.f32 %v7174_v3, %v7173_v18 }
 0x29a   : > { %4132 = vst [vmem:[%s5497_s6 + $0x78] sm:$0xff] %v4100_v5  ;;  %v4098_v26 = vadd.f32 %v4009_v52, %v3791_v2  ;;  %v3796_v34 = vadd.f32 %v5196_v21, %v3489_v23  ;;  %v7175_v52 = vld [vmem:[#allocation29_spill] sm:$0xff] }
 0x29b   : > { %v3715_v9 = vpop.f32.mrf.mxu1  ;;  %v4022_v27 = vpop.f32.mrf.mxu0  ;;  %v3492_v23 = vadd.f32 %v7175_v52, %v3185_v17 }
 0x29c   : > { %4130 = vst [vmem:[%s5497_s6 + $0x68] sm:$0xff] %v4098_v26  ;;  %v4103_v1 = vadd.f32 %v5244_v38, %v3796_v34  ;;  %v3794_v43 = vadd.f32 %v3715_v9, %v3487_v54  ;;  %v3497_v54 = vadd.f32 %v7178_v59, %v3190_v51 }
 0x29d   : > { %v5197_v49 = vpop.f32.mrf.mxu1  ;;  %v5245_v4 = vpop.f32.mrf.mxu0 }
 0x29e   : > { %4135 = vst [vmem:[%s5497_s6 + $0x90] sm:$0xff] %v4103_v1  ;;  %v4101_v62 = vadd.f32 %v4022_v27, %v3794_v43  ;;  %v3797_v0 = vadd.f32 %v5197_v49, %v3490_v10  ;;  %v3495_v10 = vadd.f32 %v7181_v40, %v3188_v46  ;;  %v7196_v46 = vld [vmem:[#allocation44_spill] sm:$0xff] }
 0x29f   : > { %v3718_v63 = vpop.f32.mrf.mxu1  ;;  %v4025_v15 = vpop.f32.mrf.mxu0 }
 0x2a0   : > { %4133 = vst [vmem:[%s5497_s6 + $0x80] sm:$0xff] %v4101_v62  ;;  %v4104_v57 = vadd.f32 %v5245_v4, %v3797_v0  ;;  %v3795_v14 = vadd.f32 %v3718_v63, %v3488_v45  ;;  %v3498_v45 = vadd.f32 %v7184_v58, %v3191_v50 }
 0x2a1   : > { %v5200_v22 = vpop.f32.mrf.mxu1  ;;  %v5248_v60 = vpop.f32.mrf.mxu0 }
 0x2a2   : > { %4136 = vst [vmem:[%s5497_s6 + $0x98] sm:$0xff] %v4104_v57  ;;  %v4102_v13 = vadd.f32 %v4025_v15, %v3795_v14  ;;  %v3800_v6 = vadd.f32 %v5200_v22, %v3493_v16  ;;  %v7186_v15 = vld [vmem:[#allocation37_spill] sm:$0xff]  ;;  %v7187_v16 = vld [vmem:[#allocation14_spill] sm:$0xff] }
 0x2a3   : > { %v3731_v7 = vpop.f32.mrf.mxu1  ;;  %v4038_v28 = vpop.f32.mrf.mxu0  ;;  %v3496_v48 = vadd.f32 %v7186_v15, %v3189_v53  ;;  %v3192_v55 = vadd.f32 %v7188_v32, %v7187_v16 }
 0x2a4   : > { %4134 = vst [vmem:[%s5497_s6 + $0x88] sm:$0xff] %v4102_v13  ;;  %v4107_v31 = vadd.f32 %v5248_v60, %v3800_v6  ;;  %v3798_v37 = vadd.f32 %v3731_v7, %v3491_v8  ;;  %v7189_v60 = vld [vmem:[#allocation38_spill] sm:$0xff]  ;;  %v7191_v8 = vld [vmem:[#allocation41_spill] sm:$0xff]  ;;  %v7192_v7 = vld [vmem:[#allocation40_spill] sm:$0xff] }
 0x2a5   : > { %v5201_v24 = vpop.f32.mrf.mxu1  ;;  %v5249_v20 = vpop.f32.mrf.mxu0  ;;  %v3501_v35 = vadd.f32 %v7189_v60, %v3194_v39  ;;  %v3195_v47 = vadd.f32 %v7191_v8, %v7190_v44 }
 0x2a6   : > { %4139 = vst [vmem:[%s5497_s6 + $0xb0] sm:$0xff] %v4107_v31  ;;  %v4105_v5 = vadd.f32 %v4038_v28, %v3798_v37  ;;  %v3801_v2 = vadd.f32 %v5201_v24, %v3494_v12  ;;  %v3499_v28 = vadd.f32 %v7192_v7, %v3192_v55  ;;  %v7194_v12 = vld [vmem:[#allocation43_spill] sm:$0xff]  ;;  %v7195_v24 = vld [vmem:[#allocation42_spill] sm:$0xff] }
 0x2a7   : > { %v3734_v21 = vpop.f32.mrf.mxu1  ;;  %v4041_v38 = vpop.f32.mrf.mxu0  ;;  %v3193_v18 = vadd.f32 %v7194_v12, %v7193_v29 }
 0x2a8   : > { %4137 = vst [vmem:[%s5497_s6 + $0xa0] sm:$0xff] %v4105_v5  ;;  %v4108_v26 = vadd.f32 %v5249_v20, %v3801_v2  ;;  %v3799_v34 = vadd.f32 %v3734_v21, %v3492_v23  ;;  %v3502_v20 = vadd.f32 %v7195_v24, %v3195_v47 }
 0x2a9   : > { %v5204_v9 = vpop.f32.mrf.mxu1  ;;  %v5252_v27 = vpop.f32.mrf.mxu0  ;;  %v3500_v5 = vadd.f32 %v7196_v46, %v3193_v18 }
 0x2aa   : > { %4140 = vst [vmem:[%s5497_s6 + $0xb8] sm:$0xff] %v4108_v26  ;;  %v4106_v1 = vadd.f32 %v4041_v38, %v3799_v34  ;;  %v3804_v43 = vadd.f32 %v5204_v9, %v3497_v54 }
 0x2ab   : > { %v3747_v49 = vpop.f32.mrf.mxu1  ;;  %v4054_v4 = vpop.f32.mrf.mxu0 }
 0x2ac   : > { %4138 = vst [vmem:[%s5497_s6 + $0xa8] sm:$0xff] %v4106_v1  ;;  %v4111_v41 = vadd.f32 %v5252_v27, %v3804_v43  ;;  %v3802_v62 = vadd.f32 %v3747_v49, %v3495_v10 }
 0x2ad   : > { %v5205_v0 = vpop.f32.mrf.mxu1  ;;  %v5253_v63 = vpop.f32.mrf.mxu0 }
 0x2ae   : > { %4143 = vst [vmem:[%s5497_s6 + $0xd0] sm:$0xff] %v4111_v41  ;;  %v4109_v42 = vadd.f32 %v4054_v4, %v3802_v62  ;;  %v3805_v57 = vadd.f32 %v5205_v0, %v3498_v45 }
 0x2af   : > { %v3750_v14 = vpop.f32.mrf.mxu1  ;;  %v4057_v22 = vpop.f32.mrf.mxu0 }
 0x2b0   : > { %4141 = vst [vmem:[%s5497_s6 + $0xc0] sm:$0xff] %v4109_v42  ;;  %v4112_v56 = vadd.f32 %v5253_v63, %v3805_v57  ;;  %v3803_v17 = vadd.f32 %v3750_v14, %v3496_v48 }
 0x2b1   : > { %v5208_v13 = vpop.f32.mrf.mxu1  ;;  %v5256_v6 = vpop.f32.mrf.mxu0 }
 0x2b2   : > { %4144 = vst [vmem:[%s5497_s6 + $0xd8] sm:$0xff] %v4112_v56  ;;  %v4110_v3 = vadd.f32 %v4057_v22, %v3803_v17  ;;  %v3808_v51 = vadd.f32 %v5208_v13, %v3501_v35 }
 0x2b3   : > { %v3763_v31 = vpop.f32.mrf.mxu1  ;;  %v4070_v37 = vpop.f32.mrf.mxu0 }
 0x2b4   : > { %4142 = vst [vmem:[%s5497_s6 + $0xc8] sm:$0xff] %v4110_v3  ;;  %v4115_v52 = vadd.f32 %v5256_v6, %v3808_v51  ;;  %v3806_v23 = vadd.f32 %v3763_v31, %v3499_v28 }
 0x2b5   : > { %v5209_v11 = vpop.f32.mrf.mxu1  ;;  %v5257_v33 = vpop.f32.mrf.mxu0 }
 0x2b6   : > { %4147 = vst [vmem:[%s5497_s6 + $0xf0] sm:$0xff] %v4115_v52  ;;  %v4113_v2 = vadd.f32 %v4070_v37, %v3806_v23  ;;  %v3809_v21 = vadd.f32 %v5209_v11, %v3502_v20 }
 0x2b7   : > { %v3766_v38 = vpop.f32.mrf.mxu1  ;;  %v4073_v19 = vpop.f32.mrf.mxu0 }
 0x2b8   : > { %4145 = vst [vmem:[%s5497_s6 + $0xe0] sm:$0xff] %v4113_v2  ;;  %v4116_v59 = vadd.f32 %v5257_v33, %v3809_v21  ;;  %v3807_v54 = vadd.f32 %v3766_v38, %v3500_v5 }
 0x2ba   : > { %4148 = vst [vmem:[%s5497_s6 + $0xf8] sm:$0xff] %v4116_v59  ;;  %v4114_v25 = vadd.f32 %v4073_v19, %v3807_v54 }
 0x2bc   : > { %4146 = vst [vmem:[%s5497_s6 + $0xe8] sm:$0xff] %v4114_v25 }
 0x2bd PF: > { %s14_s19 = sadd.s32 1, %s5428_s19   ;;  %s7197_s15 = smov %s5420_s17 }
 0x2be   : > { %p11_p8 = scmp.ge.s32.totalorder %s14_s19, 10   ;;  %s7198_s16 = smov %s5424_s18 }
 0x2bf   : > { %s7199_s17 = smov %s7202_s20  ;;  %s7200_s18 = smov %s7206_s21 }
 0x2c0   :  { %13 = sbr.rel (!%p11_p8) target bundleno = 3 (0x3), region = 79 }

</bundles_post_ra>
